<compile_context>
chip_gen: v7x
topology: tpu7x:2x2x1
jax: 0.10.0
libtpu: 0.0.40
codegen_flags: <defaults>
</compile_context>

<pallas_src>
import jax
import jax.numpy as jnp
from jax import lax
from jax.experimental import pallas as pl
from jax.experimental.pallas import tpu as pltpu


def gru_fc_kernel(emb_ref, lens_ref,
                  w_ih_ref, b_ih_ref, w_hh_ref, b_hh_ref,
                  w_fc_ref, b_fc_ref,
                  out_ref, gi_ref, h_ref):
    T, Bb, Hp = emb_ref.shape              # time-major embedding block
    H3 = 3 * Hp

    # ---- 1) Hoisted input projection for BOTH directions -----------------
    # (rows, Hp) @ (Hp, 6*Hp): no serial dependence -> big MXU matmuls off the
    # latency-critical recurrence chain.  Chunked over T so the transient f32
    # output stays bounded; result stored as bf16 (halves gi VMEM footprint).
    w_ih = w_ih_ref[...]                    # (Hp, 6*Hp) bf16  [fwd | bwd]
    b_ih = b_ih_ref[...]                    # (1, 6*Hp)  f32
    t_chunk = max(1, 512 // Bb)             # ~512-row projection matmuls
    for t0 in range(0, T, t_chunk):
        tc = min(t_chunk, T - t0)
        x = emb_ref[t0:t0 + tc].reshape(tc * Bb, Hp)              # bf16
        gi = jnp.dot(x, w_ih, preferred_element_type=jnp.float32) + b_ih
        gi_ref[t0:t0 + tc] = gi.reshape(tc, Bb, 6 * Hp).astype(gi_ref.dtype)

    lens = lens_ref[...]                    # (Bb, 1) int32
    w_hh = w_hh_ref[...]                    # (Hp, 6*Hp) bf16  [fwd | bwd]
    b_hh = b_hh_ref[...]                    # (1, 6*Hp)  f32

    def gru_gates(gi_t, gh_t, h):
        # gi_t, gh_t: (Bb, 3*Hp). Gate blocks sit at 128-lane multiples.
        r = jax.nn.sigmoid(gi_t[:, :Hp] + gh_t[:, :Hp])
        z = jax.nn.sigmoid(gi_t[:, Hp:2 * Hp] + gh_t[:, Hp:2 * Hp])
        n = jnp.tanh(gi_t[:, 2 * Hp:] + r * gh_t[:, 2 * Hp:])
        return (1.0 - z) * n + z * h

    # ---- 2) Fused bidirectional recurrence --------------------------------
    # Stacked hidden state (fwd rows [:Bb], bwd rows [Bb:]) lives in a VMEM
    # scratch; a single (2*Bb, Hp) @ (Hp, 6*Hp) matmul per step covers both
    # directions.  pack_padded_sequence is emulated by only updating rows
    # whose time index is within that sequence's length.
    h_ref[...] = jnp.zeros_like(h_ref)

    def body(t, _):
        tb = T - 1 - t                      # backward-direction time index
        h = h_ref[...]                      # (2*Bb, Hp) f32
        gh = jnp.dot(h.astype(w_hh.dtype), w_hh,
                     preferred_element_type=jnp.float32) + b_hh

        gi_f = gi_ref[t, :, :H3].astype(jnp.float32)   # fwd gates, time t
        gi_b = gi_ref[tb, :, H3:].astype(jnp.float32)  # bwd gates, time tb

        hf_new = gru_gates(gi_f, gh[:Bb, :H3], h[:Bb])
        hb_new = gru_gates(gi_b, gh[Bb:, H3:], h[Bb:])

        # Aligned sublane slice stores (Bb is a multiple of 8): no concat /
        # dynamic_update_slice on the serial critical path.
        h_ref[:Bb] = jnp.where(t < lens, hf_new, h[:Bb])
        h_ref[Bb:] = jnp.where(tb < lens, hb_new, h[Bb:])
        return 0

    unroll = True if T <= 64 else 8
    lax.fori_loop(0, T, body, 0, unroll=unroll)

    # ---- 3) fc(cat([h_bwd, h_fwd], dim=1)) ---------------------------------
    # Split matmuls keep all lanes 128-aligned; output slab is lane-dense.
    h_f = h_ref[:Bb]
    h_b = h_ref[Bb:]
    w_fc = w_fc_ref[...]                    # (2*Hp, Op) bf16
    out_ref[...] = (
        jnp.dot(h_b.astype(w_fc.dtype), w_fc[:Hp, :],
                preferred_element_type=jnp.float32)
        + jnp.dot(h_f.astype(w_fc.dtype), w_fc[Hp:, :],
                  preferred_element_type=jnp.float32)
        + b_fc_ref[...])


# --------------------------- wrapper / glue -------------------------------

def _round_up(x, m):
    return (x + m - 1) // m * m


def _choose_b_blk(batch):
    """Batch rows per grid step.

    Prefer >= 2 batch blocks (keeps both v7x TensorCores busy under the
    "parallel" grid axis) while capping at 128 rows so the stacked recurrent
    matmul LHS is <= 256 rows (MXU height on v6e/v7x).  Override via the
    `b_blk=` kwarg of rnn_classifier_forward for single-TC chips.
    """
    bp = _round_up(batch, 8)
    if bp <= 8:
        return 8
    return min(128, _round_up(pl.cdiv(bp, 2), 8))


def _pad_gate_cols(w, H, Hp, n_gates=3):
    # (R, n_gates*H) -> (R, n_gates*Hp): each gate block at lane offset g*Hp.
    R = w.shape[0]
    out = jnp.zeros((R, n_gates * Hp), w.dtype)
    for g in range(n_gates):
        out = out.at[:, g * Hp:g * Hp + H].set(w[:, g * H:(g + 1) * H])
    return out


def pack_params(params):
    """One-time repack: pad H/O to 128 lanes, stack fwd/bwd weights, cast
    matmul operands to bf16 (biases stay f32)."""
    H = params["w_ih_f"].shape[0]
    O = params["w_fc"].shape[1]
    Hp = _round_up(H, 128)
    Op = _round_up(O, 128)

    def pad_w(w):                                    # (H,3H) -> (Hp,3Hp)
        return jnp.pad(_pad_gate_cols(w, H, Hp), ((0, Hp - H), (0, 0)))

    def pad_b(b):                                    # (1,3H) -> (1,3Hp)
        return _pad_gate_cols(b, H, Hp)

    w_ih = jnp.concatenate([pad_w(params["w_ih_f"]), pad_w(params["w_ih_b"])], 1)
    w_hh = jnp.concatenate([pad_w(params["w_hh_f"]), pad_w(params["w_hh_b"])], 1)
    b_ih = jnp.concatenate([pad_b(params["b_ih_f"]), pad_b(params["b_ih_b"])], 1)
    b_hh = jnp.concatenate([pad_b(params["b_hh_f"]), pad_b(params["b_hh_b"])], 1)

    w_fc = jnp.zeros((2 * Hp, Op), jnp.float32)
    w_fc = w_fc.at[:H, :O].set(params["w_fc"][:H])            # backward half
    w_fc = w_fc.at[Hp:Hp + H, :O].set(params["w_fc"][H:])     # forward half
    b_fc = jnp.zeros((1, Op), jnp.float32).at[:, :O].set(params["b_fc"])

    emb = jnp.zeros((params["embedding"].shape[0], Hp), jnp.float32)
    emb = emb.at[:, :H].set(params["embedding"])

    return {
        "embedding": emb.astype(jnp.bfloat16),
        "w_ih": w_ih.astype(jnp.bfloat16), "b_ih": b_ih.astype(jnp.float32),
        "w_hh": w_hh.astype(jnp.bfloat16), "b_hh": b_hh.astype(jnp.float32),
        "w_fc": w_fc.astype(jnp.bfloat16), "b_fc": b_fc.astype(jnp.float32),
        "H": H, "Hp": Hp, "O": O, "Op": Op,
    }


def rnn_classifier_forward(packed, tokens, seq_lengths, *, b_blk=None):
    B, T = tokens.shape
    Hp, Op, O = packed["Hp"], packed["Op"], packed["O"]
    if b_blk is None:
        b_blk = _choose_b_blk(B)
    Bp = _round_up(B, b_blk)
    nblk = Bp // b_blk

    # Glue: embedding gather (time-major), batch pad, repack block-major so
    # each grid step's embedding DMA is one contiguous chunk.
    emb = packed["embedding"][tokens.T]                       # (T, B, Hp) bf16
    if Bp != B:
        emb = jnp.pad(emb, ((0, 0), (0, Bp - B), (0, 0)))
    emb = emb.reshape(T, nblk, b_blk, Hp).transpose(1, 0, 2, 3)  # (nblk,T,Bb,Hp)
    lens = jnp.pad(seq_lengths.astype(jnp.int32), (0, Bp - B)).reshape(Bp, 1)

    # Explicit scoped-VMEM budget: emb block (x2 buffers) + bf16 gi scratch +
    # h scratch + weights + out block, with headroom.  Capped at 64 MiB so the
    # request is valid on v5e/v6e (128 MiB) and v7x (64 MiB) alike.
    bytes_needed = (
        2 * T * b_blk * Hp * 2          # emb block, double-buffered, bf16
        + T * b_blk * 6 * Hp * 2        # gi scratch, bf16
        + 2 * b_blk * Hp * 4            # stacked hidden state, f32
        + 2 * (2 * (Hp * 6 * Hp * 2)    # w_ih + w_hh (headroom for 2 buffers)
               + 2 * Hp * Op * 2)       # w_fc
        + 2 * b_blk * Op * 4)           # out block, double-buffered
    vmem_limit = int(min(max(bytes_needed * 3 // 2 + (4 << 20), 32 << 20),
                         64 << 20))

    def call(single_buffer_weights):
        # Broadcast (grid-invariant) blocks don't need double-buffering.
        wmode = ({"pipeline_mode": pl.Buffered(1)}
                 if single_buffer_weights else {})
        return pl.pallas_call(
            gru_fc_kernel,
            out_shape=jax.ShapeDtypeStruct((Bp, Op), jnp.float32),
            grid_spec=pltpu.PrefetchScalarGridSpec(
                num_scalar_prefetch=0,
                grid=(nblk,),
                in_specs=[
                    pl.BlockSpec((None, T, b_blk, Hp),
                                 lambda b: (b, 0, 0, 0)),                # emb
                    pl.BlockSpec((b_blk, 1), lambda b: (b, 0)),          # lens
                    pl.BlockSpec((Hp, 6 * Hp), lambda b: (0, 0), **wmode),   # w_ih
                    pl.BlockSpec((1, 6 * Hp), lambda b: (0, 0), **wmode),    # b_ih
                    pl.BlockSpec((Hp, 6 * Hp), lambda b: (0, 0), **wmode),   # w_hh
                    pl.BlockSpec((1, 6 * Hp), lambda b: (0, 0), **wmode),    # b_hh
                    pl.BlockSpec((2 * Hp, Op), lambda b: (0, 0), **wmode),   # w_fc
                    pl.BlockSpec((1, Op), lambda b: (0, 0), **wmode),        # b_fc
                ],
                out_specs=pl.BlockSpec((b_blk, Op), lambda b: (b, 0)),
                scratch_shapes=[
                    pltpu.VMEM((T, b_blk, 6 * Hp), jnp.bfloat16),  # gi
                    pltpu.VMEM((2 * b_blk, Hp), jnp.float32),      # stacked h
                ],
            ),
            compiler_params=pltpu.CompilerParams(
                dimension_semantics=("parallel",),
                vmem_limit_bytes=vmem_limit),
        )(emb, lens, packed["w_ih"], packed["b_ih"], packed["w_hh"],
          packed["b_hh"], packed["w_fc"], packed["b_fc"])

    try:
        out = call(True)
    except Exception:
        # Fallback: some JAX versions may reject pipeline_mode on TPU
        # pallas_call BlockSpecs; semantics are identical either way.
        out = call(False)
    return out[:B, :O]


# --------------------------- reference & init -----------------------------

def _reference_forward(params, tokens, seq_lengths):
    # Pure-JAX reference mirroring the PyTorch module with the kernel's
    # precision policy (bf16 matmul inputs, f32 accumulation / gate math).
    bf = jnp.bfloat16
    emb = params["embedding"].astype(bf).astype(jnp.float32)[tokens.T]
    T, B, H = emb.shape
    lens = seq_lengths.astype(jnp.int32).reshape(-1, 1)

    def dot(a, b):
        return jnp.dot(a.astype(bf), b.astype(bf),
                       preferred_element_type=jnp.float32)

    def cell(x, h, wi, wh, bi, bh):
        gi = dot(x, wi) + bi
        gh = dot(h, wh) + bh
        r = jax.nn.sigmoid(gi[:, :H] + gh[:, :H])
        z = jax.nn.sigmoid(gi[:, H:2 * H] + gh[:, H:2 * H])
        n = jnp.tanh(gi[:, 2 * H:] + r * gh[:, 2 * H:])
        return (1.0 - z) * n + z * h

    h_f = jnp.zeros((B, H), jnp.float32)
    for t in range(T):
        h_f = jnp.where(t < lens,
                        cell(emb[t], h_f, params["w_ih_f"], params["w_hh_f"],
                             params["b_ih_f"], params["b_hh_f"]), h_f)
    h_b = jnp.zeros((B, H), jnp.float32)
    for t in range(T - 1, -1, -1):
        h_b = jnp.where(t < lens,
                        cell(emb[t], h_b, params["w_ih_b"], params["w_hh_b"],
                             params["b_ih_b"], params["b_hh_b"]), h_b)
    hidden_cat = jnp.concatenate([h_b, h_f], axis=1)
    return dot(hidden_cat, params["w_fc"]) + params["b_fc"]


def init_params(key, input_size, hidden_size, output_size):
    H = hidden_size
    ks = jax.random.split(key, 12)
    s = 1.0 / jnp.sqrt(H)
    u = lambda k, shape: jax.random.uniform(k, shape, jnp.float32, -s, s)
    return {
        "embedding": jax.random.normal(ks[0], (input_size, H), jnp.float32),
        # GRU weights stored transposed: (H, 3H) so the kernel does x @ W
        "w_ih_f": u(ks[1], (H, 3 * H)),
        "w_hh_f": u(ks[2], (H, 3 * H)),
        "b_ih_f": u(ks[3], (1, 3 * H)),
        "b_hh_f": u(ks[4], (1, 3 * H)),
        "w_ih_b": u(ks[5], (H, 3 * H)),
        "w_hh_b": u(ks[6], (H, 3 * H)),
        "b_ih_b": u(ks[7], (1, 3 * H)),
        "b_hh_b": u(ks[8], (1, 3 * H)),
        # Linear stored transposed: (2H, O); rows [:H]=bwd, [H:]=fwd
        # (matches torch.cat([hidden[-1], hidden[-2]], dim=1)).
        "w_fc": u(ks[9], (2 * H, output_size)),
        "b_fc": u(ks[10], (1, output_size)),
    }


if __name__ == "__main__":
    input_size = 16     # vocab
    hidden_size = 32
    output_size = 8
    batch = 4
    seq_len = 8

    key = jax.random.PRNGKey(0)
    pkey, tkey = jax.random.split(key)
    params = init_params(pkey, input_size, hidden_size, output_size)
    packed = pack_params(params)

    tokens = jax.random.randint(tkey, (batch, seq_len), 0, input_size, jnp.int32)
    # pack_padded_sequence expects lengths sorted in decreasing order
    seq_lengths = jnp.array([8, 6, 4, 2], jnp.int32)

    out = rnn_classifier_forward(packed, tokens, seq_lengths)
    out = jax.block_until_ready(out)

    ref = _reference_forward(params, tokens, seq_lengths)
    assert out.shape == (batch, output_size)
    assert jnp.allclose(out, ref, rtol=2e-2, atol=2e-2), "mismatch vs reference"

    print("KERNEL_OK")
</pallas_src>

<mosaic_0001>
module attributes {stable_mosaic.version = 11 : i64} {
  func.func @gru_fc_kernel(%arg0: i32, %arg1: memref<1x8x8x128xbf16, #tpu.memory_space<vmem>>, %arg2: memref<8x1xi32, #tpu.memory_space<vmem>>, %arg3: memref<128x768xbf16, #tpu.memory_space<vmem>>, %arg4: memref<1x768xf32, #tpu.memory_space<vmem>>, %arg5: memref<128x768xbf16, #tpu.memory_space<vmem>>, %arg6: memref<1x768xf32, #tpu.memory_space<vmem>>, %arg7: memref<256x128xbf16, #tpu.memory_space<vmem>>, %arg8: memref<1x128xf32, #tpu.memory_space<vmem>>, %arg9: memref<8x128xf32, #tpu.memory_space<vmem>>, %arg10: memref<8x8x768xbf16, #tpu.memory_space<vmem>>, %arg11: memref<16x128xf32, #tpu.memory_space<vmem>>) attributes {dimension_semantics = [#tpu.dimension_semantics<parallel>], iteration_bounds = array<i64: 1>, scalar_prefetch = 0 : i64, scratch_operands = 2 : i64, tpu.core_type = #tpu.core_type<tc>, window_params = [{transform_indices = @transform_0, window_bounds = array<i64: 1, 8, 8, 128>}, {transform_indices = @transform_1, window_bounds = array<i64: 8, 1>}, {pipeline_mode = #tpu.pipeline_mode<synchronous>, transform_indices = @transform_2, window_bounds = array<i64: 128, 768>}, {pipeline_mode = #tpu.pipeline_mode<synchronous>, transform_indices = @transform_3, window_bounds = array<i64: 1, 768>}, {pipeline_mode = #tpu.pipeline_mode<synchronous>, transform_indices = @transform_4, window_bounds = array<i64: 128, 768>}, {pipeline_mode = #tpu.pipeline_mode<synchronous>, transform_indices = @transform_5, window_bounds = array<i64: 1, 768>}, {pipeline_mode = #tpu.pipeline_mode<synchronous>, transform_indices = @transform_6, window_bounds = array<i64: 256, 128>}, {pipeline_mode = #tpu.pipeline_mode<synchronous>, transform_indices = @transform_7, window_bounds = array<i64: 1, 128>}, {transform_indices = @transform_8, window_bounds = array<i64: 8, 128>}]} {
    %c0 = arith.constant 0 : index
    %c0_0 = arith.constant 0 : index
    %0 = vector.load %arg3[%c0, %c0_0] : memref<128x768xbf16, #tpu.memory_space<vmem>>, vector<128x768xbf16>
    %c0_1 = arith.constant 0 : index
    %c0_2 = arith.constant 0 : index
    %1 = vector.load %arg4[%c0_1, %c0_2] : memref<1x768xf32, #tpu.memory_space<vmem>>, vector<1x768xf32>
    %c0_3 = arith.constant 0 : index
    %c0_4 = arith.constant 0 : index
    %c0_5 = arith.constant 0 : index
    %c0_6 = arith.constant 0 : index
    %2 = vector.load %arg1[%c0_3, %c0_4, %c0_5, %c0_6] : memref<1x8x8x128xbf16, #tpu.memory_space<vmem>>, vector<1x8x8x128xbf16>
    %3 = vector.shape_cast %2 : vector<1x8x8x128xbf16> to vector<8x8x128xbf16>
    %4 = vector.shape_cast %3 : vector<8x8x128xbf16> to vector<64x128xbf16>
    %cst = arith.constant dense<0.000000e+00> : vector<64x768xf32>
    %5 = tpu.matmul %4, %0, %cst {dimension_numbers = #tpu.dot_dimension_numbers<[1], [0], [0], [1], [0, 0, 1, 1], [], []>} : vector<64x128xbf16>, vector<128x768xbf16>, vector<64x768xf32> -> vector<64x768xf32>
    %6 = vector.broadcast %1 : vector<1x768xf32> to vector<64x768xf32>
    %7 = arith.addf %5, %6 : vector<64x768xf32>
    %8 = vector.shape_cast %7 : vector<64x768xf32> to vector<8x8x768xf32>
    %9 = arith.truncf %8 : vector<8x8x768xf32> to vector<8x8x768xbf16>
    %c0_7 = arith.constant 0 : index
    %c0_8 = arith.constant 0 : index
    %c0_9 = arith.constant 0 : index
    %10 = vector.load %arg10[%c0_7, %c0_8, %c0_9] : memref<8x8x768xbf16, #tpu.memory_space<vmem>>, vector<8x8x768xbf16>
    tpu.vector_store %arg10[%c0_7, %c0_8, %c0_9], %9 {strides = array<i32>} : memref<8x8x768xbf16, #tpu.memory_space<vmem>>, vector<8x8x768xbf16>,
    %c0_10 = arith.constant 0 : index
    %c0_11 = arith.constant 0 : index
    %11 = vector.load %arg2[%c0_10, %c0_11] : memref<8x1xi32, #tpu.memory_space<vmem>>, vector<8x1xi32>
    %c0_12 = arith.constant 0 : index
    %c0_13 = arith.constant 0 : index
    %12 = vector.load %arg5[%c0_12, %c0_13] : memref<128x768xbf16, #tpu.memory_space<vmem>>, vector<128x768xbf16>
    %c0_14 = arith.constant 0 : index
    %c0_15 = arith.constant 0 : index
    %13 = vector.load %arg6[%c0_14, %c0_15] : memref<1x768xf32, #tpu.memory_space<vmem>>, vector<1x768xf32>
    %cst_16 = arith.constant 0.000000e+00 : f32
    %14 = vector.broadcast %cst_16 : f32 to vector<16x128xf32>
    %c0_17 = arith.constant 0 : index
    %c0_18 = arith.constant 0 : index
    %15 = vector.load %arg11[%c0_17, %c0_18] : memref<16x128xf32, #tpu.memory_space<vmem>>, vector<16x128xf32>
    tpu.vector_store %arg11[%c0_17, %c0_18], %14 {strides = array<i32>} : memref<16x128xf32, #tpu.memory_space<vmem>>, vector<16x128xf32>,
    %c0_i32 = arith.constant 0 : i32
    %c7_i32 = arith.constant 7 : i32
    %16 = arith.subi %c7_i32, %c0_i32 : i32
    %c0_19 = arith.constant 0 : index
    %c0_20 = arith.constant 0 : index
    %17 = vector.load %arg11[%c0_19, %c0_20] : memref<16x128xf32, #tpu.memory_space<vmem>>, vector<16x128xf32>
    %18 = arith.truncf %17 : vector<16x128xf32> to vector<16x128xbf16>
    %cst_21 = arith.constant dense<0.000000e+00> : vector<16x768xf32>
    %19 = tpu.matmul %18, %12, %cst_21 {dimension_numbers = #tpu.dot_dimension_numbers<[1], [0], [0], [1], [0, 0, 1, 1], [], []>} : vector<16x128xbf16>, vector<128x768xbf16>, vector<16x768xf32> -> vector<16x768xf32>
    %20 = vector.broadcast %13 : vector<1x768xf32> to vector<16x768xf32>
    %21 = arith.addf %19, %20 : vector<16x768xf32>
    %22 = arith.index_cast %c0_i32 : i32 to index
    %c0_22 = arith.constant 0 : index
    %c0_23 = arith.constant 0 : index
    %23 = vector.load %arg10[%22, %c0_22, %c0_23] : memref<8x8x768xbf16, #tpu.memory_space<vmem>>, vector<1x8x384xbf16>
    %24 = vector.shape_cast %23 : vector<1x8x384xbf16> to vector<8x384xbf16>
    %25 = arith.extf %24 : vector<8x384xbf16> to vector<8x384xf32>
    %26 = arith.index_cast %16 : i32 to index
    %c0_24 = arith.constant 0 : index
    %c384 = arith.constant 384 : index
    %27 = vector.load %arg10[%26, %c0_24, %c384] : memref<8x8x768xbf16, #tpu.memory_space<vmem>>, vector<1x8x384xbf16>
    %28 = vector.shape_cast %27 : vector<1x8x384xbf16> to vector<8x384xbf16>
    %29 = arith.extf %28 : vector<8x384xbf16> to vector<8x384xf32>
    %30 = vector.extract_strided_slice %21 {offsets = [0, 0], sizes = [8, 384], strides = [1, 1]} : vector<16x768xf32> to vector<8x384xf32>
    %31 = vector.extract_strided_slice %17 {offsets = [0, 0], sizes = [8, 128], strides = [1, 1]} : vector<16x128xf32> to vector<8x128xf32>
    %32 = vector.extract_strided_slice %25 {offsets = [0, 0], sizes = [8, 128], strides = [1, 1]} : vector<8x384xf32> to vector<8x128xf32>
    %33 = vector.extract_strided_slice %30 {offsets = [0, 0], sizes = [8, 128], strides = [1, 1]} : vector<8x384xf32> to vector<8x128xf32>
    %34 = arith.addf %32, %33 : vector<8x128xf32>
    %35 = arith.negf %34 : vector<8x128xf32>
    %36 = math.exp %35 : vector<8x128xf32>
    %cst_25 = arith.constant 1.000000e+00 : f32
    %37 = vector.broadcast %cst_25 : f32 to vector<8x128xf32>
    %38 = arith.addf %37, %36 : vector<8x128xf32>
    %39 = arith.divf %37, %38 : vector<8x128xf32>
    %40 = vector.extract_strided_slice %25 {offsets = [0, 128], sizes = [8, 128], strides = [1, 1]} : vector<8x384xf32> to vector<8x128xf32>
    %41 = vector.extract_strided_slice %30 {offsets = [0, 128], sizes = [8, 128], strides = [1, 1]} : vector<8x384xf32> to vector<8x128xf32>
    %42 = arith.addf %40, %41 : vector<8x128xf32>
    %43 = arith.negf %42 : vector<8x128xf32>
    %44 = math.exp %43 : vector<8x128xf32>
    %cst_26 = arith.constant 1.000000e+00 : f32
    %45 = vector.broadcast %cst_26 : f32 to vector<8x128xf32>
    %46 = arith.addf %45, %44 : vector<8x128xf32>
    %47 = arith.divf %45, %46 : vector<8x128xf32>
    %48 = vector.extract_strided_slice %25 {offsets = [0, 256], sizes = [8, 128], strides = [1, 1]} : vector<8x384xf32> to vector<8x128xf32>
    %49 = vector.extract_strided_slice %30 {offsets = [0, 256], sizes = [8, 128], strides = [1, 1]} : vector<8x384xf32> to vector<8x128xf32>
    %50 = arith.mulf %39, %49 : vector<8x128xf32>
    %51 = arith.addf %48, %50 : vector<8x128xf32>
    %52 = math.tanh %51 : vector<8x128xf32>
    %cst_27 = arith.constant 1.000000e+00 : f32
    %53 = vector.broadcast %cst_27 : f32 to vector<8x128xf32>
    %54 = arith.subf %53, %47 : vector<8x128xf32>
    %55 = arith.mulf %54, %52 : vector<8x128xf32>
    %56 = arith.mulf %47, %31 : vector<8x128xf32>
    %57 = arith.addf %55, %56 : vector<8x128xf32>
    %58 = vector.extract_strided_slice %21 {offsets = [8, 384], sizes = [8, 384], strides = [1, 1]} : vector<16x768xf32> to vector<8x384xf32>
    %59 = vector.extract_strided_slice %17 {offsets = [8, 0], sizes = [8, 128], strides = [1, 1]} : vector<16x128xf32> to vector<8x128xf32>
    %60 = vector.extract_strided_slice %29 {offsets = [0, 0], sizes = [8, 128], strides = [1, 1]} : vector<8x384xf32> to vector<8x128xf32>
    %61 = vector.extract_strided_slice %58 {offsets = [0, 0], sizes = [8, 128], strides = [1, 1]} : vector<8x384xf32> to vector<8x128xf32>
    %62 = arith.addf %60, %61 : vector<8x128xf32>
    %63 = arith.negf %62 : vector<8x128xf32>
    %64 = math.exp %63 : vector<8x128xf32>
    %cst_28 = arith.constant 1.000000e+00 : f32
    %65 = vector.broadcast %cst_28 : f32 to vector<8x128xf32>
    %66 = arith.addf %65, %64 : vector<8x128xf32>
    %67 = arith.divf %65, %66 : vector<8x128xf32>
    %68 = vector.extract_strided_slice %29 {offsets = [0, 128], sizes = [8, 128], strides = [1, 1]} : vector<8x384xf32> to vector<8x128xf32>
    %69 = vector.extract_strided_slice %58 {offsets = [0, 128], sizes = [8, 128], strides = [1, 1]} : vector<8x384xf32> to vector<8x128xf32>
    %70 = arith.addf %68, %69 : vector<8x128xf32>
    %71 = arith.negf %70 : vector<8x128xf32>
    %72 = math.exp %71 : vector<8x128xf32>
    %cst_29 = arith.constant 1.000000e+00 : f32
    %73 = vector.broadcast %cst_29 : f32 to vector<8x128xf32>
    %74 = arith.addf %73, %72 : vector<8x128xf32>
    %75 = arith.divf %73, %74 : vector<8x128xf32>
    %76 = vector.extract_strided_slice %29 {offsets = [0, 256], sizes = [8, 128], strides = [1, 1]} : vector<8x384xf32> to vector<8x128xf32>
    %77 = vector.extract_strided_slice %58 {offsets = [0, 256], sizes = [8, 128], strides = [1, 1]} : vector<8x384xf32> to vector<8x128xf32>
    %78 = arith.mulf %67, %77 : vector<8x128xf32>
    %79 = arith.addf %76, %78 : vector<8x128xf32>
    %80 = math.tanh %79 : vector<8x128xf32>
    %cst_30 = arith.constant 1.000000e+00 : f32
    %81 = vector.broadcast %cst_30 : f32 to vector<8x128xf32>
    %82 = arith.subf %81, %75 : vector<8x128xf32>
    %83 = arith.mulf %82, %80 : vector<8x128xf32>
    %84 = arith.mulf %75, %59 : vector<8x128xf32>
    %85 = arith.addf %83, %84 : vector<8x128xf32>
    %86 = vector.broadcast %c0_i32 : i32 to vector<8x1xi32>
    %87 = arith.cmpi slt, %86, %11 : vector<8x1xi32>
    %88 = vector.extract_strided_slice %17 {offsets = [0, 0], sizes = [8, 128], strides = [1, 1]} : vector<16x128xf32> to vector<8x128xf32>
    %89 = vector.shape_cast %87 : vector<8x1xi1> to vector<8x1xi1>
    %90 = vector.broadcast %89 : vector<8x1xi1> to vector<8x128xi1>
    %91 = arith.select %90, %57, %88 : vector<8x128xi1>, vector<8x128xf32>
    %c0_31 = arith.constant 0 : index
    %c0_32 = arith.constant 0 : index
    %92 = vector.load %arg11[%c0_31, %c0_32] : memref<16x128xf32, #tpu.memory_space<vmem>>, vector<8x128xf32>
    tpu.vector_store %arg11[%c0_31, %c0_32], %91 {strides = array<i32>} : memref<16x128xf32, #tpu.memory_space<vmem>>, vector<8x128xf32>,
    %93 = vector.broadcast %16 : i32 to vector<8x1xi32>
    %94 = arith.cmpi slt, %93, %11 : vector<8x1xi32>
    %95 = vector.extract_strided_slice %17 {offsets = [8, 0], sizes = [8, 128], strides = [1, 1]} : vector<16x128xf32> to vector<8x128xf32>
    %96 = vector.shape_cast %94 : vector<8x1xi1> to vector<8x1xi1>
    %97 = vector.broadcast %96 : vector<8x1xi1> to vector<8x128xi1>
    %98 = arith.select %97, %85, %95 : vector<8x128xi1>, vector<8x128xf32>
    %c8 = arith.constant 8 : index
    %c0_33 = arith.constant 0 : index
    %99 = vector.load %arg11[%c8, %c0_33] : memref<16x128xf32, #tpu.memory_space<vmem>>, vector<8x128xf32>
    tpu.vector_store %arg11[%c8, %c0_33], %98 {strides = array<i32>} : memref<16x128xf32, #tpu.memory_space<vmem>>, vector<8x128xf32>,
    %c1_i32 = arith.constant 1 : i32
    %c7_i32_34 = arith.constant 7 : i32
    %100 = arith.subi %c7_i32_34, %c1_i32 : i32
    %c0_35 = arith.constant 0 : index
    %c0_36 = arith.constant 0 : index
    %101 = vector.load %arg11[%c0_35, %c0_36] : memref<16x128xf32, #tpu.memory_space<vmem>>, vector<16x128xf32>
    %102 = arith.truncf %101 : vector<16x128xf32> to vector<16x128xbf16>
    %cst_37 = arith.constant dense<0.000000e+00> : vector<16x768xf32>
    %103 = tpu.matmul %102, %12, %cst_37 {dimension_numbers = #tpu.dot_dimension_numbers<[1], [0], [0], [1], [0, 0, 1, 1], [], []>} : vector<16x128xbf16>, vector<128x768xbf16>, vector<16x768xf32> -> vector<16x768xf32>
    %104 = vector.broadcast %13 : vector<1x768xf32> to vector<16x768xf32>
    %105 = arith.addf %103, %104 : vector<16x768xf32>
    %106 = arith.index_cast %c1_i32 : i32 to index
    %c0_38 = arith.constant 0 : index
    %c0_39 = arith.constant 0 : index
    %107 = vector.load %arg10[%106, %c0_38, %c0_39] : memref<8x8x768xbf16, #tpu.memory_space<vmem>>, vector<1x8x384xbf16>
    %108 = vector.shape_cast %107 : vector<1x8x384xbf16> to vector<8x384xbf16>
    %109 = arith.extf %108 : vector<8x384xbf16> to vector<8x384xf32>
    %110 = arith.index_cast %100 : i32 to index
    %c0_40 = arith.constant 0 : index
    %c384_41 = arith.constant 384 : index
    %111 = vector.load %arg10[%110, %c0_40, %c384_41] : memref<8x8x768xbf16, #tpu.memory_space<vmem>>, vector<1x8x384xbf16>
    %112 = vector.shape_cast %111 : vector<1x8x384xbf16> to vector<8x384xbf16>
    %113 = arith.extf %112 : vector<8x384xbf16> to vector<8x384xf32>
    %114 = vector.extract_strided_slice %105 {offsets = [0, 0], sizes = [8, 384], strides = [1, 1]} : vector<16x768xf32> to vector<8x384xf32>
    %115 = vector.extract_strided_slice %101 {offsets = [0, 0], sizes = [8, 128], strides = [1, 1]} : vector<16x128xf32> to vector<8x128xf32>
    %116 = vector.extract_strided_slice %109 {offsets = [0, 0], sizes = [8, 128], strides = [1, 1]} : vector<8x384xf32> to vector<8x128xf32>
    %117 = vector.extract_strided_slice %114 {offsets = [0, 0], sizes = [8, 128], strides = [1, 1]} : vector<8x384xf32> to vector<8x128xf32>
    %118 = arith.addf %116, %117 : vector<8x128xf32>
    %119 = arith.negf %118 : vector<8x128xf32>
    %120 = math.exp %119 : vector<8x128xf32>
    %cst_42 = arith.constant 1.000000e+00 : f32
    %121 = vector.broadcast %cst_42 : f32 to vector<8x128xf32>
    %122 = arith.addf %121, %120 : vector<8x128xf32>
    %123 = arith.divf %121, %122 : vector<8x128xf32>
    %124 = vector.extract_strided_slice %109 {offsets = [0, 128], sizes = [8, 128], strides = [1, 1]} : vector<8x384xf32> to vector<8x128xf32>
    %125 = vector.extract_strided_slice %114 {offsets = [0, 128], sizes = [8, 128], strides = [1, 1]} : vector<8x384xf32> to vector<8x128xf32>
    %126 = arith.addf %124, %125 : vector<8x128xf32>
    %127 = arith.negf %126 : vector<8x128xf32>
    %128 = math.exp %127 : vector<8x128xf32>
    %cst_43 = arith.constant 1.000000e+00 : f32
    %129 = vector.broadcast %cst_43 : f32 to vector<8x128xf32>
    %130 = arith.addf %129, %128 : vector<8x128xf32>
    %131 = arith.divf %129, %130 : vector<8x128xf32>
    %132 = vector.extract_strided_slice %109 {offsets = [0, 256], sizes = [8, 128], strides = [1, 1]} : vector<8x384xf32> to vector<8x128xf32>
    %133 = vector.extract_strided_slice %114 {offsets = [0, 256], sizes = [8, 128], strides = [1, 1]} : vector<8x384xf32> to vector<8x128xf32>
    %134 = arith.mulf %123, %133 : vector<8x128xf32>
    %135 = arith.addf %132, %134 : vector<8x128xf32>
    %136 = math.tanh %135 : vector<8x128xf32>
    %cst_44 = arith.constant 1.000000e+00 : f32
    %137 = vector.broadcast %cst_44 : f32 to vector<8x128xf32>
    %138 = arith.subf %137, %131 : vector<8x128xf32>
    %139 = arith.mulf %138, %136 : vector<8x128xf32>
    %140 = arith.mulf %131, %115 : vector<8x128xf32>
    %141 = arith.addf %139, %140 : vector<8x128xf32>
    %142 = vector.extract_strided_slice %105 {offsets = [8, 384], sizes = [8, 384], strides = [1, 1]} : vector<16x768xf32> to vector<8x384xf32>
    %143 = vector.extract_strided_slice %101 {offsets = [8, 0], sizes = [8, 128], strides = [1, 1]} : vector<16x128xf32> to vector<8x128xf32>
    %144 = vector.extract_strided_slice %113 {offsets = [0, 0], sizes = [8, 128], strides = [1, 1]} : vector<8x384xf32> to vector<8x128xf32>
    %145 = vector.extract_strided_slice %142 {offsets = [0, 0], sizes = [8, 128], strides = [1, 1]} : vector<8x384xf32> to vector<8x128xf32>
    %146 = arith.addf %144, %145 : vector<8x128xf32>
    %147 = arith.negf %146 : vector<8x128xf32>
    %148 = math.exp %147 : vector<8x128xf32>
    %cst_45 = arith.constant 1.000000e+00 : f32
    %149 = vector.broadcast %cst_45 : f32 to vector<8x128xf32>
    %150 = arith.addf %149, %148 : vector<8x128xf32>
    %151 = arith.divf %149, %150 : vector<8x128xf32>
    %152 = vector.extract_strided_slice %113 {offsets = [0, 128], sizes = [8, 128], strides = [1, 1]} : vector<8x384xf32> to vector<8x128xf32>
    %153 = vector.extract_strided_slice %142 {offsets = [0, 128], sizes = [8, 128], strides = [1, 1]} : vector<8x384xf32> to vector<8x128xf32>
    %154 = arith.addf %152, %153 : vector<8x128xf32>
    %155 = arith.negf %154 : vector<8x128xf32>
    %156 = math.exp %155 : vector<8x128xf32>
    %cst_46 = arith.constant 1.000000e+00 : f32
    %157 = vector.broadcast %cst_46 : f32 to vector<8x128xf32>
    %158 = arith.addf %157, %156 : vector<8x128xf32>
    %159 = arith.divf %157, %158 : vector<8x128xf32>
    %160 = vector.extract_strided_slice %113 {offsets = [0, 256], sizes = [8, 128], strides = [1, 1]} : vector<8x384xf32> to vector<8x128xf32>
    %161 = vector.extract_strided_slice %142 {offsets = [0, 256], sizes = [8, 128], strides = [1, 1]} : vector<8x384xf32> to vector<8x128xf32>
    %162 = arith.mulf %151, %161 : vector<8x128xf32>
    %163 = arith.addf %160, %162 : vector<8x128xf32>
    %164 = math.tanh %163 : vector<8x128xf32>
    %cst_47 = arith.constant 1.000000e+00 : f32
    %165 = vector.broadcast %cst_47 : f32 to vector<8x128xf32>
    %166 = arith.subf %165, %159 : vector<8x128xf32>
    %167 = arith.mulf %166, %164 : vector<8x128xf32>
    %168 = arith.mulf %159, %143 : vector<8x128xf32>
    %169 = arith.addf %167, %168 : vector<8x128xf32>
    %170 = vector.broadcast %c1_i32 : i32 to vector<8x1xi32>
    %171 = arith.cmpi slt, %170, %11 : vector<8x1xi32>
    %172 = vector.extract_strided_slice %101 {offsets = [0, 0], sizes = [8, 128], strides = [1, 1]} : vector<16x128xf32> to vector<8x128xf32>
    %173 = vector.shape_cast %171 : vector<8x1xi1> to vector<8x1xi1>
    %174 = vector.broadcast %173 : vector<8x1xi1> to vector<8x128xi1>
    %175 = arith.select %174, %141, %172 : vector<8x128xi1>, vector<8x128xf32>
    %c0_48 = arith.constant 0 : index
    %c0_49 = arith.constant 0 : index
    %176 = vector.load %arg11[%c0_48, %c0_49] : memref<16x128xf32, #tpu.memory_space<vmem>>, vector<8x128xf32>
    tpu.vector_store %arg11[%c0_48, %c0_49], %175 {strides = array<i32>} : memref<16x128xf32, #tpu.memory_space<vmem>>, vector<8x128xf32>,
    %177 = vector.broadcast %100 : i32 to vector<8x1xi32>
    %178 = arith.cmpi slt, %177, %11 : vector<8x1xi32>
    %179 = vector.extract_strided_slice %101 {offsets = [8, 0], sizes = [8, 128], strides = [1, 1]} : vector<16x128xf32> to vector<8x128xf32>
    %180 = vector.shape_cast %178 : vector<8x1xi1> to vector<8x1xi1>
    %181 = vector.broadcast %180 : vector<8x1xi1> to vector<8x128xi1>
    %182 = arith.select %181, %169, %179 : vector<8x128xi1>, vector<8x128xf32>
    %c8_50 = arith.constant 8 : index
    %c0_51 = arith.constant 0 : index
    %183 = vector.load %arg11[%c8_50, %c0_51] : memref<16x128xf32, #tpu.memory_space<vmem>>, vector<8x128xf32>
    tpu.vector_store %arg11[%c8_50, %c0_51], %182 {strides = array<i32>} : memref<16x128xf32, #tpu.memory_space<vmem>>, vector<8x128xf32>,
    %c2_i32 = arith.constant 2 : i32
    %c7_i32_52 = arith.constant 7 : i32
    %184 = arith.subi %c7_i32_52, %c2_i32 : i32
    %c0_53 = arith.constant 0 : index
    %c0_54 = arith.constant 0 : index
    %185 = vector.load %arg11[%c0_53, %c0_54] : memref<16x128xf32, #tpu.memory_space<vmem>>, vector<16x128xf32>
    %186 = arith.truncf %185 : vector<16x128xf32> to vector<16x128xbf16>
    %cst_55 = arith.constant dense<0.000000e+00> : vector<16x768xf32>
    %187 = tpu.matmul %186, %12, %cst_55 {dimension_numbers = #tpu.dot_dimension_numbers<[1], [0], [0], [1], [0, 0, 1, 1], [], []>} : vector<16x128xbf16>, vector<128x768xbf16>, vector<16x768xf32> -> vector<16x768xf32>
    %188 = vector.broadcast %13 : vector<1x768xf32> to vector<16x768xf32>
    %189 = arith.addf %187, %188 : vector<16x768xf32>
    %190 = arith.index_cast %c2_i32 : i32 to index
    %c0_56 = arith.constant 0 : index
    %c0_57 = arith.constant 0 : index
    %191 = vector.load %arg10[%190, %c0_56, %c0_57] : memref<8x8x768xbf16, #tpu.memory_space<vmem>>, vector<1x8x384xbf16>
    %192 = vector.shape_cast %191 : vector<1x8x384xbf16> to vector<8x384xbf16>
    %193 = arith.extf %192 : vector<8x384xbf16> to vector<8x384xf32>
    %194 = arith.index_cast %184 : i32 to index
    %c0_58 = arith.constant 0 : index
    %c384_59 = arith.constant 384 : index
    %195 = vector.load %arg10[%194, %c0_58, %c384_59] : memref<8x8x768xbf16, #tpu.memory_space<vmem>>, vector<1x8x384xbf16>
    %196 = vector.shape_cast %195 : vector<1x8x384xbf16> to vector<8x384xbf16>
    %197 = arith.extf %196 : vector<8x384xbf16> to vector<8x384xf32>
    %198 = vector.extract_strided_slice %189 {offsets = [0, 0], sizes = [8, 384], strides = [1, 1]} : vector<16x768xf32> to vector<8x384xf32>
    %199 = vector.extract_strided_slice %185 {offsets = [0, 0], sizes = [8, 128], strides = [1, 1]} : vector<16x128xf32> to vector<8x128xf32>
    %200 = vector.extract_strided_slice %193 {offsets = [0, 0], sizes = [8, 128], strides = [1, 1]} : vector<8x384xf32> to vector<8x128xf32>
    %201 = vector.extract_strided_slice %198 {offsets = [0, 0], sizes = [8, 128], strides = [1, 1]} : vector<8x384xf32> to vector<8x128xf32>
    %202 = arith.addf %200, %201 : vector<8x128xf32>
    %203 = arith.negf %202 : vector<8x128xf32>
    %204 = math.exp %203 : vector<8x128xf32>
    %cst_60 = arith.constant 1.000000e+00 : f32
    %205 = vector.broadcast %cst_60 : f32 to vector<8x128xf32>
    %206 = arith.addf %205, %204 : vector<8x128xf32>
    %207 = arith.divf %205, %206 : vector<8x128xf32>
    %208 = vector.extract_strided_slice %193 {offsets = [0, 128], sizes = [8, 128], strides = [1, 1]} : vector<8x384xf32> to vector<8x128xf32>
    %209 = vector.extract_strided_slice %198 {offsets = [0, 128], sizes = [8, 128], strides = [1, 1]} : vector<8x384xf32> to vector<8x128xf32>
    %210 = arith.addf %208, %209 : vector<8x128xf32>
    %211 = arith.negf %210 : vector<8x128xf32>
    %212 = math.exp %211 : vector<8x128xf32>
    %cst_61 = arith.constant 1.000000e+00 : f32
    %213 = vector.broadcast %cst_61 : f32 to vector<8x128xf32>
    %214 = arith.addf %213, %212 : vector<8x128xf32>
    %215 = arith.divf %213, %214 : vector<8x128xf32>
    %216 = vector.extract_strided_slice %193 {offsets = [0, 256], sizes = [8, 128], strides = [1, 1]} : vector<8x384xf32> to vector<8x128xf32>
    %217 = vector.extract_strided_slice %198 {offsets = [0, 256], sizes = [8, 128], strides = [1, 1]} : vector<8x384xf32> to vector<8x128xf32>
    %218 = arith.mulf %207, %217 : vector<8x128xf32>
    %219 = arith.addf %216, %218 : vector<8x128xf32>
    %220 = math.tanh %219 : vector<8x128xf32>
    %cst_62 = arith.constant 1.000000e+00 : f32
    %221 = vector.broadcast %cst_62 : f32 to vector<8x128xf32>
    %222 = arith.subf %221, %215 : vector<8x128xf32>
    %223 = arith.mulf %222, %220 : vector<8x128xf32>
    %224 = arith.mulf %215, %199 : vector<8x128xf32>
    %225 = arith.addf %223, %224 : vector<8x128xf32>
    %226 = vector.extract_strided_slice %189 {offsets = [8, 384], sizes = [8, 384], strides = [1, 1]} : vector<16x768xf32> to vector<8x384xf32>
    %227 = vector.extract_strided_slice %185 {offsets = [8, 0], sizes = [8, 128], strides = [1, 1]} : vector<16x128xf32> to vector<8x128xf32>
    %228 = vector.extract_strided_slice %197 {offsets = [0, 0], sizes = [8, 128], strides = [1, 1]} : vector<8x384xf32> to vector<8x128xf32>
    %229 = vector.extract_strided_slice %226 {offsets = [0, 0], sizes = [8, 128], strides = [1, 1]} : vector<8x384xf32> to vector<8x128xf32>
    %230 = arith.addf %228, %229 : vector<8x128xf32>
    %231 = arith.negf %230 : vector<8x128xf32>
    %232 = math.exp %231 : vector<8x128xf32>
    %cst_63 = arith.constant 1.000000e+00 : f32
    %233 = vector.broadcast %cst_63 : f32 to vector<8x128xf32>
    %234 = arith.addf %233, %232 : vector<8x128xf32>
    %235 = arith.divf %233, %234 : vector<8x128xf32>
    %236 = vector.extract_strided_slice %197 {offsets = [0, 128], sizes = [8, 128], strides = [1, 1]} : vector<8x384xf32> to vector<8x128xf32>
    %237 = vector.extract_strided_slice %226 {offsets = [0, 128], sizes = [8, 128], strides = [1, 1]} : vector<8x384xf32> to vector<8x128xf32>
    %238 = arith.addf %236, %237 : vector<8x128xf32>
    %239 = arith.negf %238 : vector<8x128xf32>
    %240 = math.exp %239 : vector<8x128xf32>
    %cst_64 = arith.constant 1.000000e+00 : f32
    %241 = vector.broadcast %cst_64 : f32 to vector<8x128xf32>
    %242 = arith.addf %241, %240 : vector<8x128xf32>
    %243 = arith.divf %241, %242 : vector<8x128xf32>
    %244 = vector.extract_strided_slice %197 {offsets = [0, 256], sizes = [8, 128], strides = [1, 1]} : vector<8x384xf32> to vector<8x128xf32>
    %245 = vector.extract_strided_slice %226 {offsets = [0, 256], sizes = [8, 128], strides = [1, 1]} : vector<8x384xf32> to vector<8x128xf32>
    %246 = arith.mulf %235, %245 : vector<8x128xf32>
    %247 = arith.addf %244, %246 : vector<8x128xf32>
    %248 = math.tanh %247 : vector<8x128xf32>
    %cst_65 = arith.constant 1.000000e+00 : f32
    %249 = vector.broadcast %cst_65 : f32 to vector<8x128xf32>
    %250 = arith.subf %249, %243 : vector<8x128xf32>
    %251 = arith.mulf %250, %248 : vector<8x128xf32>
    %252 = arith.mulf %243, %227 : vector<8x128xf32>
    %253 = arith.addf %251, %252 : vector<8x128xf32>
    %254 = vector.broadcast %c2_i32 : i32 to vector<8x1xi32>
    %255 = arith.cmpi slt, %254, %11 : vector<8x1xi32>
    %256 = vector.extract_strided_slice %185 {offsets = [0, 0], sizes = [8, 128], strides = [1, 1]} : vector<16x128xf32> to vector<8x128xf32>
    %257 = vector.shape_cast %255 : vector<8x1xi1> to vector<8x1xi1>
    %258 = vector.broadcast %257 : vector<8x1xi1> to vector<8x128xi1>
    %259 = arith.select %258, %225, %256 : vector<8x128xi1>, vector<8x128xf32>
    %c0_66 = arith.constant 0 : index
    %c0_67 = arith.constant 0 : index
    %260 = vector.load %arg11[%c0_66, %c0_67] : memref<16x128xf32, #tpu.memory_space<vmem>>, vector<8x128xf32>
    tpu.vector_store %arg11[%c0_66, %c0_67], %259 {strides = array<i32>} : memref<16x128xf32, #tpu.memory_space<vmem>>, vector<8x128xf32>,
    %261 = vector.broadcast %184 : i32 to vector<8x1xi32>
    %262 = arith.cmpi slt, %261, %11 : vector<8x1xi32>
    %263 = vector.extract_strided_slice %185 {offsets = [8, 0], sizes = [8, 128], strides = [1, 1]} : vector<16x128xf32> to vector<8x128xf32>
    %264 = vector.shape_cast %262 : vector<8x1xi1> to vector<8x1xi1>
    %265 = vector.broadcast %264 : vector<8x1xi1> to vector<8x128xi1>
    %266 = arith.select %265, %253, %263 : vector<8x128xi1>, vector<8x128xf32>
    %c8_68 = arith.constant 8 : index
    %c0_69 = arith.constant 0 : index
    %267 = vector.load %arg11[%c8_68, %c0_69] : memref<16x128xf32, #tpu.memory_space<vmem>>, vector<8x128xf32>
    tpu.vector_store %arg11[%c8_68, %c0_69], %266 {strides = array<i32>} : memref<16x128xf32, #tpu.memory_space<vmem>>, vector<8x128xf32>,
    %c3_i32 = arith.constant 3 : i32
    %c7_i32_70 = arith.constant 7 : i32
    %268 = arith.subi %c7_i32_70, %c3_i32 : i32
    %c0_71 = arith.constant 0 : index
    %c0_72 = arith.constant 0 : index
    %269 = vector.load %arg11[%c0_71, %c0_72] : memref<16x128xf32, #tpu.memory_space<vmem>>, vector<16x128xf32>
    %270 = arith.truncf %269 : vector<16x128xf32> to vector<16x128xbf16>
    %cst_73 = arith.constant dense<0.000000e+00> : vector<16x768xf32>
    %271 = tpu.matmul %270, %12, %cst_73 {dimension_numbers = #tpu.dot_dimension_numbers<[1], [0], [0], [1], [0, 0, 1, 1], [], []>} : vector<16x128xbf16>, vector<128x768xbf16>, vector<16x768xf32> -> vector<16x768xf32>
    %272 = vector.broadcast %13 : vector<1x768xf32> to vector<16x768xf32>
    %273 = arith.addf %271, %272 : vector<16x768xf32>
    %274 = arith.index_cast %c3_i32 : i32 to index
    %c0_74 = arith.constant 0 : index
    %c0_75 = arith.constant 0 : index
    %275 = vector.load %arg10[%274, %c0_74, %c0_75] : memref<8x8x768xbf16, #tpu.memory_space<vmem>>, vector<1x8x384xbf16>
    %276 = vector.shape_cast %275 : vector<1x8x384xbf16> to vector<8x384xbf16>
    %277 = arith.extf %276 : vector<8x384xbf16> to vector<8x384xf32>
    %278 = arith.index_cast %268 : i32 to index
    %c0_76 = arith.constant 0 : index
    %c384_77 = arith.constant 384 : index
    %279 = vector.load %arg10[%278, %c0_76, %c384_77] : memref<8x8x768xbf16, #tpu.memory_space<vmem>>, vector<1x8x384xbf16>
    %280 = vector.shape_cast %279 : vector<1x8x384xbf16> to vector<8x384xbf16>
    %281 = arith.extf %280 : vector<8x384xbf16> to vector<8x384xf32>
    %282 = vector.extract_strided_slice %273 {offsets = [0, 0], sizes = [8, 384], strides = [1, 1]} : vector<16x768xf32> to vector<8x384xf32>
    %283 = vector.extract_strided_slice %269 {offsets = [0, 0], sizes = [8, 128], strides = [1, 1]} : vector<16x128xf32> to vector<8x128xf32>
    %284 = vector.extract_strided_slice %277 {offsets = [0, 0], sizes = [8, 128], strides = [1, 1]} : vector<8x384xf32> to vector<8x128xf32>
    %285 = vector.extract_strided_slice %282 {offsets = [0, 0], sizes = [8, 128], strides = [1, 1]} : vector<8x384xf32> to vector<8x128xf32>
    %286 = arith.addf %284, %285 : vector<8x128xf32>
    %287 = arith.negf %286 : vector<8x128xf32>
    %288 = math.exp %287 : vector<8x128xf32>
    %cst_78 = arith.constant 1.000000e+00 : f32
    %289 = vector.broadcast %cst_78 : f32 to vector<8x128xf32>
    %290 = arith.addf %289, %288 : vector<8x128xf32>
    %291 = arith.divf %289, %290 : vector<8x128xf32>
    %292 = vector.extract_strided_slice %277 {offsets = [0, 128], sizes = [8, 128], strides = [1, 1]} : vector<8x384xf32> to vector<8x128xf32>
    %293 = vector.extract_strided_slice %282 {offsets = [0, 128], sizes = [8, 128], strides = [1, 1]} : vector<8x384xf32> to vector<8x128xf32>
    %294 = arith.addf %292, %293 : vector<8x128xf32>
    %295 = arith.negf %294 : vector<8x128xf32>
    %296 = math.exp %295 : vector<8x128xf32>
    %cst_79 = arith.constant 1.000000e+00 : f32
    %297 = vector.broadcast %cst_79 : f32 to vector<8x128xf32>
    %298 = arith.addf %297, %296 : vector<8x128xf32>
    %299 = arith.divf %297, %298 : vector<8x128xf32>
    %300 = vector.extract_strided_slice %277 {offsets = [0, 256], sizes = [8, 128], strides = [1, 1]} : vector<8x384xf32> to vector<8x128xf32>
    %301 = vector.extract_strided_slice %282 {offsets = [0, 256], sizes = [8, 128], strides = [1, 1]} : vector<8x384xf32> to vector<8x128xf32>
    %302 = arith.mulf %291, %301 : vector<8x128xf32>
    %303 = arith.addf %300, %302 : vector<8x128xf32>
    %304 = math.tanh %303 : vector<8x128xf32>
    %cst_80 = arith.constant 1.000000e+00 : f32
    %305 = vector.broadcast %cst_80 : f32 to vector<8x128xf32>
    %306 = arith.subf %305, %299 : vector<8x128xf32>
    %307 = arith.mulf %306, %304 : vector<8x128xf32>
    %308 = arith.mulf %299, %283 : vector<8x128xf32>
    %309 = arith.addf %307, %308 : vector<8x128xf32>
    %310 = vector.extract_strided_slice %273 {offsets = [8, 384], sizes = [8, 384], strides = [1, 1]} : vector<16x768xf32> to vector<8x384xf32>
    %311 = vector.extract_strided_slice %269 {offsets = [8, 0], sizes = [8, 128], strides = [1, 1]} : vector<16x128xf32> to vector<8x128xf32>
    %312 = vector.extract_strided_slice %281 {offsets = [0, 0], sizes = [8, 128], strides = [1, 1]} : vector<8x384xf32> to vector<8x128xf32>
    %313 = vector.extract_strided_slice %310 {offsets = [0, 0], sizes = [8, 128], strides = [1, 1]} : vector<8x384xf32> to vector<8x128xf32>
    %314 = arith.addf %312, %313 : vector<8x128xf32>
    %315 = arith.negf %314 : vector<8x128xf32>
    %316 = math.exp %315 : vector<8x128xf32>
    %cst_81 = arith.constant 1.000000e+00 : f32
    %317 = vector.broadcast %cst_81 : f32 to vector<8x128xf32>
    %318 = arith.addf %317, %316 : vector<8x128xf32>
    %319 = arith.divf %317, %318 : vector<8x128xf32>
    %320 = vector.extract_strided_slice %281 {offsets = [0, 128], sizes = [8, 128], strides = [1, 1]} : vector<8x384xf32> to vector<8x128xf32>
    %321 = vector.extract_strided_slice %310 {offsets = [0, 128], sizes = [8, 128], strides = [1, 1]} : vector<8x384xf32> to vector<8x128xf32>
    %322 = arith.addf %320, %321 : vector<8x128xf32>
    %323 = arith.negf %322 : vector<8x128xf32>
    %324 = math.exp %323 : vector<8x128xf32>
    %cst_82 = arith.constant 1.000000e+00 : f32
    %325 = vector.broadcast %cst_82 : f32 to vector<8x128xf32>
    %326 = arith.addf %325, %324 : vector<8x128xf32>
    %327 = arith.divf %325, %326 : vector<8x128xf32>
    %328 = vector.extract_strided_slice %281 {offsets = [0, 256], sizes = [8, 128], strides = [1, 1]} : vector<8x384xf32> to vector<8x128xf32>
    %329 = vector.extract_strided_slice %310 {offsets = [0, 256], sizes = [8, 128], strides = [1, 1]} : vector<8x384xf32> to vector<8x128xf32>
    %330 = arith.mulf %319, %329 : vector<8x128xf32>
    %331 = arith.addf %328, %330 : vector<8x128xf32>
    %332 = math.tanh %331 : vector<8x128xf32>
    %cst_83 = arith.constant 1.000000e+00 : f32
    %333 = vector.broadcast %cst_83 : f32 to vector<8x128xf32>
    %334 = arith.subf %333, %327 : vector<8x128xf32>
    %335 = arith.mulf %334, %332 : vector<8x128xf32>
    %336 = arith.mulf %327, %311 : vector<8x128xf32>
    %337 = arith.addf %335, %336 : vector<8x128xf32>
    %338 = vector.broadcast %c3_i32 : i32 to vector<8x1xi32>
    %339 = arith.cmpi slt, %338, %11 : vector<8x1xi32>
    %340 = vector.extract_strided_slice %269 {offsets = [0, 0], sizes = [8, 128], strides = [1, 1]} : vector<16x128xf32> to vector<8x128xf32>
    %341 = vector.shape_cast %339 : vector<8x1xi1> to vector<8x1xi1>
    %342 = vector.broadcast %341 : vector<8x1xi1> to vector<8x128xi1>
    %343 = arith.select %342, %309, %340 : vector<8x128xi1>, vector<8x128xf32>
    %c0_84 = arith.constant 0 : index
    %c0_85 = arith.constant 0 : index
    %344 = vector.load %arg11[%c0_84, %c0_85] : memref<16x128xf32, #tpu.memory_space<vmem>>, vector<8x128xf32>
    tpu.vector_store %arg11[%c0_84, %c0_85], %343 {strides = array<i32>} : memref<16x128xf32, #tpu.memory_space<vmem>>, vector<8x128xf32>,
    %345 = vector.broadcast %268 : i32 to vector<8x1xi32>
    %346 = arith.cmpi slt, %345, %11 : vector<8x1xi32>
    %347 = vector.extract_strided_slice %269 {offsets = [8, 0], sizes = [8, 128], strides = [1, 1]} : vector<16x128xf32> to vector<8x128xf32>
    %348 = vector.shape_cast %346 : vector<8x1xi1> to vector<8x1xi1>
    %349 = vector.broadcast %348 : vector<8x1xi1> to vector<8x128xi1>
    %350 = arith.select %349, %337, %347 : vector<8x128xi1>, vector<8x128xf32>
    %c8_86 = arith.constant 8 : index
    %c0_87 = arith.constant 0 : index
    %351 = vector.load %arg11[%c8_86, %c0_87] : memref<16x128xf32, #tpu.memory_space<vmem>>, vector<8x128xf32>
    tpu.vector_store %arg11[%c8_86, %c0_87], %350 {strides = array<i32>} : memref<16x128xf32, #tpu.memory_space<vmem>>, vector<8x128xf32>,
    %c4_i32 = arith.constant 4 : i32
    %c7_i32_88 = arith.constant 7 : i32
    %352 = arith.subi %c7_i32_88, %c4_i32 : i32
    %c0_89 = arith.constant 0 : index
    %c0_90 = arith.constant 0 : index
    %353 = vector.load %arg11[%c0_89, %c0_90] : memref<16x128xf32, #tpu.memory_space<vmem>>, vector<16x128xf32>
    %354 = arith.truncf %353 : vector<16x128xf32> to vector<16x128xbf16>
    %cst_91 = arith.constant dense<0.000000e+00> : vector<16x768xf32>
    %355 = tpu.matmul %354, %12, %cst_91 {dimension_numbers = #tpu.dot_dimension_numbers<[1], [0], [0], [1], [0, 0, 1, 1], [], []>} : vector<16x128xbf16>, vector<128x768xbf16>, vector<16x768xf32> -> vector<16x768xf32>
    %356 = vector.broadcast %13 : vector<1x768xf32> to vector<16x768xf32>
    %357 = arith.addf %355, %356 : vector<16x768xf32>
    %358 = arith.index_cast %c4_i32 : i32 to index
    %c0_92 = arith.constant 0 : index
    %c0_93 = arith.constant 0 : index
    %359 = vector.load %arg10[%358, %c0_92, %c0_93] : memref<8x8x768xbf16, #tpu.memory_space<vmem>>, vector<1x8x384xbf16>
    %360 = vector.shape_cast %359 : vector<1x8x384xbf16> to vector<8x384xbf16>
    %361 = arith.extf %360 : vector<8x384xbf16> to vector<8x384xf32>
    %362 = arith.index_cast %352 : i32 to index
    %c0_94 = arith.constant 0 : index
    %c384_95 = arith.constant 384 : index
    %363 = vector.load %arg10[%362, %c0_94, %c384_95] : memref<8x8x768xbf16, #tpu.memory_space<vmem>>, vector<1x8x384xbf16>
    %364 = vector.shape_cast %363 : vector<1x8x384xbf16> to vector<8x384xbf16>
    %365 = arith.extf %364 : vector<8x384xbf16> to vector<8x384xf32>
    %366 = vector.extract_strided_slice %357 {offsets = [0, 0], sizes = [8, 384], strides = [1, 1]} : vector<16x768xf32> to vector<8x384xf32>
    %367 = vector.extract_strided_slice %353 {offsets = [0, 0], sizes = [8, 128], strides = [1, 1]} : vector<16x128xf32> to vector<8x128xf32>
    %368 = vector.extract_strided_slice %361 {offsets = [0, 0], sizes = [8, 128], strides = [1, 1]} : vector<8x384xf32> to vector<8x128xf32>
    %369 = vector.extract_strided_slice %366 {offsets = [0, 0], sizes = [8, 128], strides = [1, 1]} : vector<8x384xf32> to vector<8x128xf32>
    %370 = arith.addf %368, %369 : vector<8x128xf32>
    %371 = arith.negf %370 : vector<8x128xf32>
    %372 = math.exp %371 : vector<8x128xf32>
    %cst_96 = arith.constant 1.000000e+00 : f32
    %373 = vector.broadcast %cst_96 : f32 to vector<8x128xf32>
    %374 = arith.addf %373, %372 : vector<8x128xf32>
    %375 = arith.divf %373, %374 : vector<8x128xf32>
    %376 = vector.extract_strided_slice %361 {offsets = [0, 128], sizes = [8, 128], strides = [1, 1]} : vector<8x384xf32> to vector<8x128xf32>
    %377 = vector.extract_strided_slice %366 {offsets = [0, 128], sizes = [8, 128], strides = [1, 1]} : vector<8x384xf32> to vector<8x128xf32>
    %378 = arith.addf %376, %377 : vector<8x128xf32>
    %379 = arith.negf %378 : vector<8x128xf32>
    %380 = math.exp %379 : vector<8x128xf32>
    %cst_97 = arith.constant 1.000000e+00 : f32
    %381 = vector.broadcast %cst_97 : f32 to vector<8x128xf32>
    %382 = arith.addf %381, %380 : vector<8x128xf32>
    %383 = arith.divf %381, %382 : vector<8x128xf32>
    %384 = vector.extract_strided_slice %361 {offsets = [0, 256], sizes = [8, 128], strides = [1, 1]} : vector<8x384xf32> to vector<8x128xf32>
    %385 = vector.extract_strided_slice %366 {offsets = [0, 256], sizes = [8, 128], strides = [1, 1]} : vector<8x384xf32> to vector<8x128xf32>
    %386 = arith.mulf %375, %385 : vector<8x128xf32>
    %387 = arith.addf %384, %386 : vector<8x128xf32>
    %388 = math.tanh %387 : vector<8x128xf32>
    %cst_98 = arith.constant 1.000000e+00 : f32
    %389 = vector.broadcast %cst_98 : f32 to vector<8x128xf32>
    %390 = arith.subf %389, %383 : vector<8x128xf32>
    %391 = arith.mulf %390, %388 : vector<8x128xf32>
    %392 = arith.mulf %383, %367 : vector<8x128xf32>
    %393 = arith.addf %391, %392 : vector<8x128xf32>
    %394 = vector.extract_strided_slice %357 {offsets = [8, 384], sizes = [8, 384], strides = [1, 1]} : vector<16x768xf32> to vector<8x384xf32>
    %395 = vector.extract_strided_slice %353 {offsets = [8, 0], sizes = [8, 128], strides = [1, 1]} : vector<16x128xf32> to vector<8x128xf32>
    %396 = vector.extract_strided_slice %365 {offsets = [0, 0], sizes = [8, 128], strides = [1, 1]} : vector<8x384xf32> to vector<8x128xf32>
    %397 = vector.extract_strided_slice %394 {offsets = [0, 0], sizes = [8, 128], strides = [1, 1]} : vector<8x384xf32> to vector<8x128xf32>
    %398 = arith.addf %396, %397 : vector<8x128xf32>
    %399 = arith.negf %398 : vector<8x128xf32>
    %400 = math.exp %399 : vector<8x128xf32>
    %cst_99 = arith.constant 1.000000e+00 : f32
    %401 = vector.broadcast %cst_99 : f32 to vector<8x128xf32>
    %402 = arith.addf %401, %400 : vector<8x128xf32>
    %403 = arith.divf %401, %402 : vector<8x128xf32>
    %404 = vector.extract_strided_slice %365 {offsets = [0, 128], sizes = [8, 128], strides = [1, 1]} : vector<8x384xf32> to vector<8x128xf32>
    %405 = vector.extract_strided_slice %394 {offsets = [0, 128], sizes = [8, 128], strides = [1, 1]} : vector<8x384xf32> to vector<8x128xf32>
    %406 = arith.addf %404, %405 : vector<8x128xf32>
    %407 = arith.negf %406 : vector<8x128xf32>
    %408 = math.exp %407 : vector<8x128xf32>
    %cst_100 = arith.constant 1.000000e+00 : f32
    %409 = vector.broadcast %cst_100 : f32 to vector<8x128xf32>
    %410 = arith.addf %409, %408 : vector<8x128xf32>
    %411 = arith.divf %409, %410 : vector<8x128xf32>
    %412 = vector.extract_strided_slice %365 {offsets = [0, 256], sizes = [8, 128], strides = [1, 1]} : vector<8x384xf32> to vector<8x128xf32>
    %413 = vector.extract_strided_slice %394 {offsets = [0, 256], sizes = [8, 128], strides = [1, 1]} : vector<8x384xf32> to vector<8x128xf32>
    %414 = arith.mulf %403, %413 : vector<8x128xf32>
    %415 = arith.addf %412, %414 : vector<8x128xf32>
    %416 = math.tanh %415 : vector<8x128xf32>
    %cst_101 = arith.constant 1.000000e+00 : f32
    %417 = vector.broadcast %cst_101 : f32 to vector<8x128xf32>
    %418 = arith.subf %417, %411 : vector<8x128xf32>
    %419 = arith.mulf %418, %416 : vector<8x128xf32>
    %420 = arith.mulf %411, %395 : vector<8x128xf32>
    %421 = arith.addf %419, %420 : vector<8x128xf32>
    %422 = vector.broadcast %c4_i32 : i32 to vector<8x1xi32>
    %423 = arith.cmpi slt, %422, %11 : vector<8x1xi32>
    %424 = vector.extract_strided_slice %353 {offsets = [0, 0], sizes = [8, 128], strides = [1, 1]} : vector<16x128xf32> to vector<8x128xf32>
    %425 = vector.shape_cast %423 : vector<8x1xi1> to vector<8x1xi1>
    %426 = vector.broadcast %425 : vector<8x1xi1> to vector<8x128xi1>
    %427 = arith.select %426, %393, %424 : vector<8x128xi1>, vector<8x128xf32>
    %c0_102 = arith.constant 0 : index
    %c0_103 = arith.constant 0 : index
    %428 = vector.load %arg11[%c0_102, %c0_103] : memref<16x128xf32, #tpu.memory_space<vmem>>, vector<8x128xf32>
    tpu.vector_store %arg11[%c0_102, %c0_103], %427 {strides = array<i32>} : memref<16x128xf32, #tpu.memory_space<vmem>>, vector<8x128xf32>,
    %429 = vector.broadcast %352 : i32 to vector<8x1xi32>
    %430 = arith.cmpi slt, %429, %11 : vector<8x1xi32>
    %431 = vector.extract_strided_slice %353 {offsets = [8, 0], sizes = [8, 128], strides = [1, 1]} : vector<16x128xf32> to vector<8x128xf32>
    %432 = vector.shape_cast %430 : vector<8x1xi1> to vector<8x1xi1>
    %433 = vector.broadcast %432 : vector<8x1xi1> to vector<8x128xi1>
    %434 = arith.select %433, %421, %431 : vector<8x128xi1>, vector<8x128xf32>
    %c8_104 = arith.constant 8 : index
    %c0_105 = arith.constant 0 : index
    %435 = vector.load %arg11[%c8_104, %c0_105] : memref<16x128xf32, #tpu.memory_space<vmem>>, vector<8x128xf32>
    tpu.vector_store %arg11[%c8_104, %c0_105], %434 {strides = array<i32>} : memref<16x128xf32, #tpu.memory_space<vmem>>, vector<8x128xf32>,
    %c5_i32 = arith.constant 5 : i32
    %c7_i32_106 = arith.constant 7 : i32
    %436 = arith.subi %c7_i32_106, %c5_i32 : i32
    %c0_107 = arith.constant 0 : index
    %c0_108 = arith.constant 0 : index
    %437 = vector.load %arg11[%c0_107, %c0_108] : memref<16x128xf32, #tpu.memory_space<vmem>>, vector<16x128xf32>
    %438 = arith.truncf %437 : vector<16x128xf32> to vector<16x128xbf16>
    %cst_109 = arith.constant dense<0.000000e+00> : vector<16x768xf32>
    %439 = tpu.matmul %438, %12, %cst_109 {dimension_numbers = #tpu.dot_dimension_numbers<[1], [0], [0], [1], [0, 0, 1, 1], [], []>} : vector<16x128xbf16>, vector<128x768xbf16>, vector<16x768xf32> -> vector<16x768xf32>
    %440 = vector.broadcast %13 : vector<1x768xf32> to vector<16x768xf32>
    %441 = arith.addf %439, %440 : vector<16x768xf32>
    %442 = arith.index_cast %c5_i32 : i32 to index
    %c0_110 = arith.constant 0 : index
    %c0_111 = arith.constant 0 : index
    %443 = vector.load %arg10[%442, %c0_110, %c0_111] : memref<8x8x768xbf16, #tpu.memory_space<vmem>>, vector<1x8x384xbf16>
    %444 = vector.shape_cast %443 : vector<1x8x384xbf16> to vector<8x384xbf16>
    %445 = arith.extf %444 : vector<8x384xbf16> to vector<8x384xf32>
    %446 = arith.index_cast %436 : i32 to index
    %c0_112 = arith.constant 0 : index
    %c384_113 = arith.constant 384 : index
    %447 = vector.load %arg10[%446, %c0_112, %c384_113] : memref<8x8x768xbf16, #tpu.memory_space<vmem>>, vector<1x8x384xbf16>
    %448 = vector.shape_cast %447 : vector<1x8x384xbf16> to vector<8x384xbf16>
    %449 = arith.extf %448 : vector<8x384xbf16> to vector<8x384xf32>
    %450 = vector.extract_strided_slice %441 {offsets = [0, 0], sizes = [8, 384], strides = [1, 1]} : vector<16x768xf32> to vector<8x384xf32>
    %451 = vector.extract_strided_slice %437 {offsets = [0, 0], sizes = [8, 128], strides = [1, 1]} : vector<16x128xf32> to vector<8x128xf32>
    %452 = vector.extract_strided_slice %445 {offsets = [0, 0], sizes = [8, 128], strides = [1, 1]} : vector<8x384xf32> to vector<8x128xf32>
    %453 = vector.extract_strided_slice %450 {offsets = [0, 0], sizes = [8, 128], strides = [1, 1]} : vector<8x384xf32> to vector<8x128xf32>
    %454 = arith.addf %452, %453 : vector<8x128xf32>
    %455 = arith.negf %454 : vector<8x128xf32>
    %456 = math.exp %455 : vector<8x128xf32>
    %cst_114 = arith.constant 1.000000e+00 : f32
    %457 = vector.broadcast %cst_114 : f32 to vector<8x128xf32>
    %458 = arith.addf %457, %456 : vector<8x128xf32>
    %459 = arith.divf %457, %458 : vector<8x128xf32>
    %460 = vector.extract_strided_slice %445 {offsets = [0, 128], sizes = [8, 128], strides = [1, 1]} : vector<8x384xf32> to vector<8x128xf32>
    %461 = vector.extract_strided_slice %450 {offsets = [0, 128], sizes = [8, 128], strides = [1, 1]} : vector<8x384xf32> to vector<8x128xf32>
    %462 = arith.addf %460, %461 : vector<8x128xf32>
    %463 = arith.negf %462 : vector<8x128xf32>
    %464 = math.exp %463 : vector<8x128xf32>
    %cst_115 = arith.constant 1.000000e+00 : f32
    %465 = vector.broadcast %cst_115 : f32 to vector<8x128xf32>
    %466 = arith.addf %465, %464 : vector<8x128xf32>
    %467 = arith.divf %465, %466 : vector<8x128xf32>
    %468 = vector.extract_strided_slice %445 {offsets = [0, 256], sizes = [8, 128], strides = [1, 1]} : vector<8x384xf32> to vector<8x128xf32>
    %469 = vector.extract_strided_slice %450 {offsets = [0, 256], sizes = [8, 128], strides = [1, 1]} : vector<8x384xf32> to vector<8x128xf32>
    %470 = arith.mulf %459, %469 : vector<8x128xf32>
    %471 = arith.addf %468, %470 : vector<8x128xf32>
    %472 = math.tanh %471 : vector<8x128xf32>
    %cst_116 = arith.constant 1.000000e+00 : f32
    %473 = vector.broadcast %cst_116 : f32 to vector<8x128xf32>
    %474 = arith.subf %473, %467 : vector<8x128xf32>
    %475 = arith.mulf %474, %472 : vector<8x128xf32>
    %476 = arith.mulf %467, %451 : vector<8x128xf32>
    %477 = arith.addf %475, %476 : vector<8x128xf32>
    %478 = vector.extract_strided_slice %441 {offsets = [8, 384], sizes = [8, 384], strides = [1, 1]} : vector<16x768xf32> to vector<8x384xf32>
    %479 = vector.extract_strided_slice %437 {offsets = [8, 0], sizes = [8, 128], strides = [1, 1]} : vector<16x128xf32> to vector<8x128xf32>
    %480 = vector.extract_strided_slice %449 {offsets = [0, 0], sizes = [8, 128], strides = [1, 1]} : vector<8x384xf32> to vector<8x128xf32>
    %481 = vector.extract_strided_slice %478 {offsets = [0, 0], sizes = [8, 128], strides = [1, 1]} : vector<8x384xf32> to vector<8x128xf32>
    %482 = arith.addf %480, %481 : vector<8x128xf32>
    %483 = arith.negf %482 : vector<8x128xf32>
    %484 = math.exp %483 : vector<8x128xf32>
    %cst_117 = arith.constant 1.000000e+00 : f32
    %485 = vector.broadcast %cst_117 : f32 to vector<8x128xf32>
    %486 = arith.addf %485, %484 : vector<8x128xf32>
    %487 = arith.divf %485, %486 : vector<8x128xf32>
    %488 = vector.extract_strided_slice %449 {offsets = [0, 128], sizes = [8, 128], strides = [1, 1]} : vector<8x384xf32> to vector<8x128xf32>
    %489 = vector.extract_strided_slice %478 {offsets = [0, 128], sizes = [8, 128], strides = [1, 1]} : vector<8x384xf32> to vector<8x128xf32>
    %490 = arith.addf %488, %489 : vector<8x128xf32>
    %491 = arith.negf %490 : vector<8x128xf32>
    %492 = math.exp %491 : vector<8x128xf32>
    %cst_118 = arith.constant 1.000000e+00 : f32
    %493 = vector.broadcast %cst_118 : f32 to vector<8x128xf32>
    %494 = arith.addf %493, %492 : vector<8x128xf32>
    %495 = arith.divf %493, %494 : vector<8x128xf32>
    %496 = vector.extract_strided_slice %449 {offsets = [0, 256], sizes = [8, 128], strides = [1, 1]} : vector<8x384xf32> to vector<8x128xf32>
    %497 = vector.extract_strided_slice %478 {offsets = [0, 256], sizes = [8, 128], strides = [1, 1]} : vector<8x384xf32> to vector<8x128xf32>
    %498 = arith.mulf %487, %497 : vector<8x128xf32>
    %499 = arith.addf %496, %498 : vector<8x128xf32>
    %500 = math.tanh %499 : vector<8x128xf32>
    %cst_119 = arith.constant 1.000000e+00 : f32
    %501 = vector.broadcast %cst_119 : f32 to vector<8x128xf32>
    %502 = arith.subf %501, %495 : vector<8x128xf32>
    %503 = arith.mulf %502, %500 : vector<8x128xf32>
    %504 = arith.mulf %495, %479 : vector<8x128xf32>
    %505 = arith.addf %503, %504 : vector<8x128xf32>
    %506 = vector.broadcast %c5_i32 : i32 to vector<8x1xi32>
    %507 = arith.cmpi slt, %506, %11 : vector<8x1xi32>
    %508 = vector.extract_strided_slice %437 {offsets = [0, 0], sizes = [8, 128], strides = [1, 1]} : vector<16x128xf32> to vector<8x128xf32>
    %509 = vector.shape_cast %507 : vector<8x1xi1> to vector<8x1xi1>
    %510 = vector.broadcast %509 : vector<8x1xi1> to vector<8x128xi1>
    %511 = arith.select %510, %477, %508 : vector<8x128xi1>, vector<8x128xf32>
    %c0_120 = arith.constant 0 : index
    %c0_121 = arith.constant 0 : index
    %512 = vector.load %arg11[%c0_120, %c0_121] : memref<16x128xf32, #tpu.memory_space<vmem>>, vector<8x128xf32>
    tpu.vector_store %arg11[%c0_120, %c0_121], %511 {strides = array<i32>} : memref<16x128xf32, #tpu.memory_space<vmem>>, vector<8x128xf32>,
    %513 = vector.broadcast %436 : i32 to vector<8x1xi32>
    %514 = arith.cmpi slt, %513, %11 : vector<8x1xi32>
    %515 = vector.extract_strided_slice %437 {offsets = [8, 0], sizes = [8, 128], strides = [1, 1]} : vector<16x128xf32> to vector<8x128xf32>
    %516 = vector.shape_cast %514 : vector<8x1xi1> to vector<8x1xi1>
    %517 = vector.broadcast %516 : vector<8x1xi1> to vector<8x128xi1>
    %518 = arith.select %517, %505, %515 : vector<8x128xi1>, vector<8x128xf32>
    %c8_122 = arith.constant 8 : index
    %c0_123 = arith.constant 0 : index
    %519 = vector.load %arg11[%c8_122, %c0_123] : memref<16x128xf32, #tpu.memory_space<vmem>>, vector<8x128xf32>
    tpu.vector_store %arg11[%c8_122, %c0_123], %518 {strides = array<i32>} : memref<16x128xf32, #tpu.memory_space<vmem>>, vector<8x128xf32>,
    %c6_i32 = arith.constant 6 : i32
    %c7_i32_124 = arith.constant 7 : i32
    %520 = arith.subi %c7_i32_124, %c6_i32 : i32
    %c0_125 = arith.constant 0 : index
    %c0_126 = arith.constant 0 : index
    %521 = vector.load %arg11[%c0_125, %c0_126] : memref<16x128xf32, #tpu.memory_space<vmem>>, vector<16x128xf32>
    %522 = arith.truncf %521 : vector<16x128xf32> to vector<16x128xbf16>
    %cst_127 = arith.constant dense<0.000000e+00> : vector<16x768xf32>
    %523 = tpu.matmul %522, %12, %cst_127 {dimension_numbers = #tpu.dot_dimension_numbers<[1], [0], [0], [1], [0, 0, 1, 1], [], []>} : vector<16x128xbf16>, vector<128x768xbf16>, vector<16x768xf32> -> vector<16x768xf32>
    %524 = vector.broadcast %13 : vector<1x768xf32> to vector<16x768xf32>
    %525 = arith.addf %523, %524 : vector<16x768xf32>
    %526 = arith.index_cast %c6_i32 : i32 to index
    %c0_128 = arith.constant 0 : index
    %c0_129 = arith.constant 0 : index
    %527 = vector.load %arg10[%526, %c0_128, %c0_129] : memref<8x8x768xbf16, #tpu.memory_space<vmem>>, vector<1x8x384xbf16>
    %528 = vector.shape_cast %527 : vector<1x8x384xbf16> to vector<8x384xbf16>
    %529 = arith.extf %528 : vector<8x384xbf16> to vector<8x384xf32>
    %530 = arith.index_cast %520 : i32 to index
    %c0_130 = arith.constant 0 : index
    %c384_131 = arith.constant 384 : index
    %531 = vector.load %arg10[%530, %c0_130, %c384_131] : memref<8x8x768xbf16, #tpu.memory_space<vmem>>, vector<1x8x384xbf16>
    %532 = vector.shape_cast %531 : vector<1x8x384xbf16> to vector<8x384xbf16>
    %533 = arith.extf %532 : vector<8x384xbf16> to vector<8x384xf32>
    %534 = vector.extract_strided_slice %525 {offsets = [0, 0], sizes = [8, 384], strides = [1, 1]} : vector<16x768xf32> to vector<8x384xf32>
    %535 = vector.extract_strided_slice %521 {offsets = [0, 0], sizes = [8, 128], strides = [1, 1]} : vector<16x128xf32> to vector<8x128xf32>
    %536 = vector.extract_strided_slice %529 {offsets = [0, 0], sizes = [8, 128], strides = [1, 1]} : vector<8x384xf32> to vector<8x128xf32>
    %537 = vector.extract_strided_slice %534 {offsets = [0, 0], sizes = [8, 128], strides = [1, 1]} : vector<8x384xf32> to vector<8x128xf32>
    %538 = arith.addf %536, %537 : vector<8x128xf32>
    %539 = arith.negf %538 : vector<8x128xf32>
    %540 = math.exp %539 : vector<8x128xf32>
    %cst_132 = arith.constant 1.000000e+00 : f32
    %541 = vector.broadcast %cst_132 : f32 to vector<8x128xf32>
    %542 = arith.addf %541, %540 : vector<8x128xf32>
    %543 = arith.divf %541, %542 : vector<8x128xf32>
    %544 = vector.extract_strided_slice %529 {offsets = [0, 128], sizes = [8, 128], strides = [1, 1]} : vector<8x384xf32> to vector<8x128xf32>
    %545 = vector.extract_strided_slice %534 {offsets = [0, 128], sizes = [8, 128], strides = [1, 1]} : vector<8x384xf32> to vector<8x128xf32>
    %546 = arith.addf %544, %545 : vector<8x128xf32>
    %547 = arith.negf %546 : vector<8x128xf32>
    %548 = math.exp %547 : vector<8x128xf32>
    %cst_133 = arith.constant 1.000000e+00 : f32
    %549 = vector.broadcast %cst_133 : f32 to vector<8x128xf32>
    %550 = arith.addf %549, %548 : vector<8x128xf32>
    %551 = arith.divf %549, %550 : vector<8x128xf32>
    %552 = vector.extract_strided_slice %529 {offsets = [0, 256], sizes = [8, 128], strides = [1, 1]} : vector<8x384xf32> to vector<8x128xf32>
    %553 = vector.extract_strided_slice %534 {offsets = [0, 256], sizes = [8, 128], strides = [1, 1]} : vector<8x384xf32> to vector<8x128xf32>
    %554 = arith.mulf %543, %553 : vector<8x128xf32>
    %555 = arith.addf %552, %554 : vector<8x128xf32>
    %556 = math.tanh %555 : vector<8x128xf32>
    %cst_134 = arith.constant 1.000000e+00 : f32
    %557 = vector.broadcast %cst_134 : f32 to vector<8x128xf32>
    %558 = arith.subf %557, %551 : vector<8x128xf32>
    %559 = arith.mulf %558, %556 : vector<8x128xf32>
    %560 = arith.mulf %551, %535 : vector<8x128xf32>
    %561 = arith.addf %559, %560 : vector<8x128xf32>
    %562 = vector.extract_strided_slice %525 {offsets = [8, 384], sizes = [8, 384], strides = [1, 1]} : vector<16x768xf32> to vector<8x384xf32>
    %563 = vector.extract_strided_slice %521 {offsets = [8, 0], sizes = [8, 128], strides = [1, 1]} : vector<16x128xf32> to vector<8x128xf32>
    %564 = vector.extract_strided_slice %533 {offsets = [0, 0], sizes = [8, 128], strides = [1, 1]} : vector<8x384xf32> to vector<8x128xf32>
    %565 = vector.extract_strided_slice %562 {offsets = [0, 0], sizes = [8, 128], strides = [1, 1]} : vector<8x384xf32> to vector<8x128xf32>
    %566 = arith.addf %564, %565 : vector<8x128xf32>
    %567 = arith.negf %566 : vector<8x128xf32>
    %568 = math.exp %567 : vector<8x128xf32>
    %cst_135 = arith.constant 1.000000e+00 : f32
    %569 = vector.broadcast %cst_135 : f32 to vector<8x128xf32>
    %570 = arith.addf %569, %568 : vector<8x128xf32>
    %571 = arith.divf %569, %570 : vector<8x128xf32>
    %572 = vector.extract_strided_slice %533 {offsets = [0, 128], sizes = [8, 128], strides = [1, 1]} : vector<8x384xf32> to vector<8x128xf32>
    %573 = vector.extract_strided_slice %562 {offsets = [0, 128], sizes = [8, 128], strides = [1, 1]} : vector<8x384xf32> to vector<8x128xf32>
    %574 = arith.addf %572, %573 : vector<8x128xf32>
    %575 = arith.negf %574 : vector<8x128xf32>
    %576 = math.exp %575 : vector<8x128xf32>
    %cst_136 = arith.constant 1.000000e+00 : f32
    %577 = vector.broadcast %cst_136 : f32 to vector<8x128xf32>
    %578 = arith.addf %577, %576 : vector<8x128xf32>
    %579 = arith.divf %577, %578 : vector<8x128xf32>
    %580 = vector.extract_strided_slice %533 {offsets = [0, 256], sizes = [8, 128], strides = [1, 1]} : vector<8x384xf32> to vector<8x128xf32>
    %581 = vector.extract_strided_slice %562 {offsets = [0, 256], sizes = [8, 128], strides = [1, 1]} : vector<8x384xf32> to vector<8x128xf32>
    %582 = arith.mulf %571, %581 : vector<8x128xf32>
    %583 = arith.addf %580, %582 : vector<8x128xf32>
    %584 = math.tanh %583 : vector<8x128xf32>
    %cst_137 = arith.constant 1.000000e+00 : f32
    %585 = vector.broadcast %cst_137 : f32 to vector<8x128xf32>
    %586 = arith.subf %585, %579 : vector<8x128xf32>
    %587 = arith.mulf %586, %584 : vector<8x128xf32>
    %588 = arith.mulf %579, %563 : vector<8x128xf32>
    %589 = arith.addf %587, %588 : vector<8x128xf32>
    %590 = vector.broadcast %c6_i32 : i32 to vector<8x1xi32>
    %591 = arith.cmpi slt, %590, %11 : vector<8x1xi32>
    %592 = vector.extract_strided_slice %521 {offsets = [0, 0], sizes = [8, 128], strides = [1, 1]} : vector<16x128xf32> to vector<8x128xf32>
    %593 = vector.shape_cast %591 : vector<8x1xi1> to vector<8x1xi1>
    %594 = vector.broadcast %593 : vector<8x1xi1> to vector<8x128xi1>
    %595 = arith.select %594, %561, %592 : vector<8x128xi1>, vector<8x128xf32>
    %c0_138 = arith.constant 0 : index
    %c0_139 = arith.constant 0 : index
    %596 = vector.load %arg11[%c0_138, %c0_139] : memref<16x128xf32, #tpu.memory_space<vmem>>, vector<8x128xf32>
    tpu.vector_store %arg11[%c0_138, %c0_139], %595 {strides = array<i32>} : memref<16x128xf32, #tpu.memory_space<vmem>>, vector<8x128xf32>,
    %597 = vector.broadcast %520 : i32 to vector<8x1xi32>
    %598 = arith.cmpi slt, %597, %11 : vector<8x1xi32>
    %599 = vector.extract_strided_slice %521 {offsets = [8, 0], sizes = [8, 128], strides = [1, 1]} : vector<16x128xf32> to vector<8x128xf32>
    %600 = vector.shape_cast %598 : vector<8x1xi1> to vector<8x1xi1>
    %601 = vector.broadcast %600 : vector<8x1xi1> to vector<8x128xi1>
    %602 = arith.select %601, %589, %599 : vector<8x128xi1>, vector<8x128xf32>
    %c8_140 = arith.constant 8 : index
    %c0_141 = arith.constant 0 : index
    %603 = vector.load %arg11[%c8_140, %c0_141] : memref<16x128xf32, #tpu.memory_space<vmem>>, vector<8x128xf32>
    tpu.vector_store %arg11[%c8_140, %c0_141], %602 {strides = array<i32>} : memref<16x128xf32, #tpu.memory_space<vmem>>, vector<8x128xf32>,
    %c7_i32_142 = arith.constant 7 : i32
    %c7_i32_143 = arith.constant 7 : i32
    %604 = arith.subi %c7_i32_143, %c7_i32_142 : i32
    %c0_144 = arith.constant 0 : index
    %c0_145 = arith.constant 0 : index
    %605 = vector.load %arg11[%c0_144, %c0_145] : memref<16x128xf32, #tpu.memory_space<vmem>>, vector<16x128xf32>
    %606 = arith.truncf %605 : vector<16x128xf32> to vector<16x128xbf16>
    %cst_146 = arith.constant dense<0.000000e+00> : vector<16x768xf32>
    %607 = tpu.matmul %606, %12, %cst_146 {dimension_numbers = #tpu.dot_dimension_numbers<[1], [0], [0], [1], [0, 0, 1, 1], [], []>} : vector<16x128xbf16>, vector<128x768xbf16>, vector<16x768xf32> -> vector<16x768xf32>
    %608 = vector.broadcast %13 : vector<1x768xf32> to vector<16x768xf32>
    %609 = arith.addf %607, %608 : vector<16x768xf32>
    %610 = arith.index_cast %c7_i32_142 : i32 to index
    %c0_147 = arith.constant 0 : index
    %c0_148 = arith.constant 0 : index
    %611 = vector.load %arg10[%610, %c0_147, %c0_148] : memref<8x8x768xbf16, #tpu.memory_space<vmem>>, vector<1x8x384xbf16>
    %612 = vector.shape_cast %611 : vector<1x8x384xbf16> to vector<8x384xbf16>
    %613 = arith.extf %612 : vector<8x384xbf16> to vector<8x384xf32>
    %614 = arith.index_cast %604 : i32 to index
    %c0_149 = arith.constant 0 : index
    %c384_150 = arith.constant 384 : index
    %615 = vector.load %arg10[%614, %c0_149, %c384_150] : memref<8x8x768xbf16, #tpu.memory_space<vmem>>, vector<1x8x384xbf16>
    %616 = vector.shape_cast %615 : vector<1x8x384xbf16> to vector<8x384xbf16>
    %617 = arith.extf %616 : vector<8x384xbf16> to vector<8x384xf32>
    %618 = vector.extract_strided_slice %609 {offsets = [0, 0], sizes = [8, 384], strides = [1, 1]} : vector<16x768xf32> to vector<8x384xf32>
    %619 = vector.extract_strided_slice %605 {offsets = [0, 0], sizes = [8, 128], strides = [1, 1]} : vector<16x128xf32> to vector<8x128xf32>
    %620 = vector.extract_strided_slice %613 {offsets = [0, 0], sizes = [8, 128], strides = [1, 1]} : vector<8x384xf32> to vector<8x128xf32>
    %621 = vector.extract_strided_slice %618 {offsets = [0, 0], sizes = [8, 128], strides = [1, 1]} : vector<8x384xf32> to vector<8x128xf32>
    %622 = arith.addf %620, %621 : vector<8x128xf32>
    %623 = arith.negf %622 : vector<8x128xf32>
    %624 = math.exp %623 : vector<8x128xf32>
    %cst_151 = arith.constant 1.000000e+00 : f32
    %625 = vector.broadcast %cst_151 : f32 to vector<8x128xf32>
    %626 = arith.addf %625, %624 : vector<8x128xf32>
    %627 = arith.divf %625, %626 : vector<8x128xf32>
    %628 = vector.extract_strided_slice %613 {offsets = [0, 128], sizes = [8, 128], strides = [1, 1]} : vector<8x384xf32> to vector<8x128xf32>
    %629 = vector.extract_strided_slice %618 {offsets = [0, 128], sizes = [8, 128], strides = [1, 1]} : vector<8x384xf32> to vector<8x128xf32>
    %630 = arith.addf %628, %629 : vector<8x128xf32>
    %631 = arith.negf %630 : vector<8x128xf32>
    %632 = math.exp %631 : vector<8x128xf32>
    %cst_152 = arith.constant 1.000000e+00 : f32
    %633 = vector.broadcast %cst_152 : f32 to vector<8x128xf32>
    %634 = arith.addf %633, %632 : vector<8x128xf32>
    %635 = arith.divf %633, %634 : vector<8x128xf32>
    %636 = vector.extract_strided_slice %613 {offsets = [0, 256], sizes = [8, 128], strides = [1, 1]} : vector<8x384xf32> to vector<8x128xf32>
    %637 = vector.extract_strided_slice %618 {offsets = [0, 256], sizes = [8, 128], strides = [1, 1]} : vector<8x384xf32> to vector<8x128xf32>
    %638 = arith.mulf %627, %637 : vector<8x128xf32>
    %639 = arith.addf %636, %638 : vector<8x128xf32>
    %640 = math.tanh %639 : vector<8x128xf32>
    %cst_153 = arith.constant 1.000000e+00 : f32
    %641 = vector.broadcast %cst_153 : f32 to vector<8x128xf32>
    %642 = arith.subf %641, %635 : vector<8x128xf32>
    %643 = arith.mulf %642, %640 : vector<8x128xf32>
    %644 = arith.mulf %635, %619 : vector<8x128xf32>
    %645 = arith.addf %643, %644 : vector<8x128xf32>
    %646 = vector.extract_strided_slice %609 {offsets = [8, 384], sizes = [8, 384], strides = [1, 1]} : vector<16x768xf32> to vector<8x384xf32>
    %647 = vector.extract_strided_slice %605 {offsets = [8, 0], sizes = [8, 128], strides = [1, 1]} : vector<16x128xf32> to vector<8x128xf32>
    %648 = vector.extract_strided_slice %617 {offsets = [0, 0], sizes = [8, 128], strides = [1, 1]} : vector<8x384xf32> to vector<8x128xf32>
    %649 = vector.extract_strided_slice %646 {offsets = [0, 0], sizes = [8, 128], strides = [1, 1]} : vector<8x384xf32> to vector<8x128xf32>
    %650 = arith.addf %648, %649 : vector<8x128xf32>
    %651 = arith.negf %650 : vector<8x128xf32>
    %652 = math.exp %651 : vector<8x128xf32>
    %cst_154 = arith.constant 1.000000e+00 : f32
    %653 = vector.broadcast %cst_154 : f32 to vector<8x128xf32>
    %654 = arith.addf %653, %652 : vector<8x128xf32>
    %655 = arith.divf %653, %654 : vector<8x128xf32>
    %656 = vector.extract_strided_slice %617 {offsets = [0, 128], sizes = [8, 128], strides = [1, 1]} : vector<8x384xf32> to vector<8x128xf32>
    %657 = vector.extract_strided_slice %646 {offsets = [0, 128], sizes = [8, 128], strides = [1, 1]} : vector<8x384xf32> to vector<8x128xf32>
    %658 = arith.addf %656, %657 : vector<8x128xf32>
    %659 = arith.negf %658 : vector<8x128xf32>
    %660 = math.exp %659 : vector<8x128xf32>
    %cst_155 = arith.constant 1.000000e+00 : f32
    %661 = vector.broadcast %cst_155 : f32 to vector<8x128xf32>
    %662 = arith.addf %661, %660 : vector<8x128xf32>
    %663 = arith.divf %661, %662 : vector<8x128xf32>
    %664 = vector.extract_strided_slice %617 {offsets = [0, 256], sizes = [8, 128], strides = [1, 1]} : vector<8x384xf32> to vector<8x128xf32>
    %665 = vector.extract_strided_slice %646 {offsets = [0, 256], sizes = [8, 128], strides = [1, 1]} : vector<8x384xf32> to vector<8x128xf32>
    %666 = arith.mulf %655, %665 : vector<8x128xf32>
    %667 = arith.addf %664, %666 : vector<8x128xf32>
    %668 = math.tanh %667 : vector<8x128xf32>
    %cst_156 = arith.constant 1.000000e+00 : f32
    %669 = vector.broadcast %cst_156 : f32 to vector<8x128xf32>
    %670 = arith.subf %669, %663 : vector<8x128xf32>
    %671 = arith.mulf %670, %668 : vector<8x128xf32>
    %672 = arith.mulf %663, %647 : vector<8x128xf32>
    %673 = arith.addf %671, %672 : vector<8x128xf32>
    %674 = vector.broadcast %c7_i32_142 : i32 to vector<8x1xi32>
    %675 = arith.cmpi slt, %674, %11 : vector<8x1xi32>
    %676 = vector.extract_strided_slice %605 {offsets = [0, 0], sizes = [8, 128], strides = [1, 1]} : vector<16x128xf32> to vector<8x128xf32>
    %677 = vector.shape_cast %675 : vector<8x1xi1> to vector<8x1xi1>
    %678 = vector.broadcast %677 : vector<8x1xi1> to vector<8x128xi1>
    %679 = arith.select %678, %645, %676 : vector<8x128xi1>, vector<8x128xf32>
    %c0_157 = arith.constant 0 : index
    %c0_158 = arith.constant 0 : index
    %680 = vector.load %arg11[%c0_157, %c0_158] : memref<16x128xf32, #tpu.memory_space<vmem>>, vector<8x128xf32>
    tpu.vector_store %arg11[%c0_157, %c0_158], %679 {strides = array<i32>} : memref<16x128xf32, #tpu.memory_space<vmem>>, vector<8x128xf32>,
    %681 = vector.broadcast %604 : i32 to vector<8x1xi32>
    %682 = arith.cmpi slt, %681, %11 : vector<8x1xi32>
    %683 = vector.extract_strided_slice %605 {offsets = [8, 0], sizes = [8, 128], strides = [1, 1]} : vector<16x128xf32> to vector<8x128xf32>
    %684 = vector.shape_cast %682 : vector<8x1xi1> to vector<8x1xi1>
    %685 = vector.broadcast %684 : vector<8x1xi1> to vector<8x128xi1>
    %686 = arith.select %685, %673, %683 : vector<8x128xi1>, vector<8x128xf32>
    %c8_159 = arith.constant 8 : index
    %c0_160 = arith.constant 0 : index
    %687 = vector.load %arg11[%c8_159, %c0_160] : memref<16x128xf32, #tpu.memory_space<vmem>>, vector<8x128xf32>
    tpu.vector_store %arg11[%c8_159, %c0_160], %686 {strides = array<i32>} : memref<16x128xf32, #tpu.memory_space<vmem>>, vector<8x128xf32>,
    %c8_i32 = arith.constant 8 : i32
    %c0_161 = arith.constant 0 : index
    %c0_162 = arith.constant 0 : index
    %688 = vector.load %arg11[%c0_161, %c0_162] : memref<16x128xf32, #tpu.memory_space<vmem>>, vector<8x128xf32>
    %c8_163 = arith.constant 8 : index
    %c0_164 = arith.constant 0 : index
    %689 = vector.load %arg11[%c8_163, %c0_164] : memref<16x128xf32, #tpu.memory_space<vmem>>, vector<8x128xf32>
    %c0_165 = arith.constant 0 : index
    %c0_166 = arith.constant 0 : index
    %690 = vector.load %arg7[%c0_165, %c0_166] : memref<256x128xbf16, #tpu.memory_space<vmem>>, vector<256x128xbf16>
    %691 = arith.truncf %689 : vector<8x128xf32> to vector<8x128xbf16>
    %692 = vector.extract_strided_slice %690 {offsets = [0, 0], sizes = [128, 128], strides = [1, 1]} : vector<256x128xbf16> to vector<128x128xbf16>
    %cst_167 = arith.constant dense<0.000000e+00> : vector<8x128xf32>
    %693 = tpu.matmul %691, %692, %cst_167 {dimension_numbers = #tpu.dot_dimension_numbers<[1], [0], [0], [1], [0, 0, 1, 1], [], []>} : vector<8x128xbf16>, vector<128x128xbf16>, vector<8x128xf32> -> vector<8x128xf32>
    %694 = arith.truncf %688 : vector<8x128xf32> to vector<8x128xbf16>
    %695 = vector.extract_strided_slice %690 {offsets = [128, 0], sizes = [128, 128], strides = [1, 1]} : vector<256x128xbf16> to vector<128x128xbf16>
    %cst_168 = arith.constant dense<0.000000e+00> : vector<8x128xf32>
    %696 = tpu.matmul %694, %695, %cst_168 {dimension_numbers = #tpu.dot_dimension_numbers<[1], [0], [0], [1], [0, 0, 1, 1], [], []>} : vector<8x128xbf16>, vector<128x128xbf16>, vector<8x128xf32> -> vector<8x128xf32>
    %697 = arith.addf %693, %696 : vector<8x128xf32>
    %c0_169 = arith.constant 0 : index
    %c0_170 = arith.constant 0 : index
    %698 = vector.load %arg8[%c0_169, %c0_170] : memref<1x128xf32, #tpu.memory_space<vmem>>, vector<1x128xf32>
    %699 = vector.broadcast %698 : vector<1x128xf32> to vector<8x128xf32>
    %700 = arith.addf %697, %699 : vector<8x128xf32>
    %c0_171 = arith.constant 0 : index
    %c0_172 = arith.constant 0 : index
    %701 = vector.load %arg9[%c0_171, %c0_172] : memref<8x128xf32, #tpu.memory_space<vmem>>, vector<8x128xf32>
    tpu.vector_store %arg9[%c0_171, %c0_172], %700 {strides = array<i32>} : memref<8x128xf32, #tpu.memory_space<vmem>>, vector<8x128xf32>,
    return
  }
  func.func @transform_0(%arg0: i32) -> (i32, i32, i32, i32) {
    %c0_i32 = arith.constant 0 : i32
    %c0_i32_0 = arith.constant 0 : i32
    %c0_i32_1 = arith.constant 0 : i32
    %c0_i32_2 = arith.constant 0 : i32
    return %arg0, %c0_i32, %c0_i32_0, %c0_i32_1 : i32, i32, i32, i32
  }
  func.func @transform_1(%arg0: i32) -> (i32, i32) {
    %c0_i32 = arith.constant 0 : i32
    %c0_i32_0 = arith.constant 0 : i32
    return %arg0, %c0_i32 : i32, i32
  }
  func.func @transform_2(%arg0: i32) -> (i32, i32) {
    %c0_i32 = arith.constant 0 : i32
    %c0_i32_0 = arith.constant 0 : i32
    %c0_i32_1 = arith.constant 0 : i32
    return %c0_i32, %c0_i32_0 : i32, i32
  }
  func.func @transform_3(%arg0: i32) -> (i32, i32) {
    %c0_i32 = arith.constant 0 : i32
    %c0_i32_0 = arith.constant 0 : i32
    %c0_i32_1 = arith.constant 0 : i32
    return %c0_i32, %c0_i32_0 : i32, i32
  }
  func.func @transform_4(%arg0: i32) -> (i32, i32) {
    %c0_i32 = arith.constant 0 : i32
    %c0_i32_0 = arith.constant 0 : i32
    %c0_i32_1 = arith.constant 0 : i32
    return %c0_i32, %c0_i32_0 : i32, i32
  }
  func.func @transform_5(%arg0: i32) -> (i32, i32) {
    %c0_i32 = arith.constant 0 : i32
    %c0_i32_0 = arith.constant 0 : i32
    %c0_i32_1 = arith.constant 0 : i32
    return %c0_i32, %c0_i32_0 : i32, i32
  }
  func.func @transform_6(%arg0: i32) -> (i32, i32) {
    %c0_i32 = arith.constant 0 : i32
    %c0_i32_0 = arith.constant 0 : i32
    %c0_i32_1 = arith.constant 0 : i32
    return %c0_i32, %c0_i32_0 : i32, i32
  }
  func.func @transform_7(%arg0: i32) -> (i32, i32) {
    %c0_i32 = arith.constant 0 : i32
    %c0_i32_0 = arith.constant 0 : i32
    %c0_i32_1 = arith.constant 0 : i32
    return %c0_i32, %c0_i32_0 : i32, i32
  }
  func.func @transform_8(%arg0: i32) -> (i32, i32) {
    %c0_i32 = arith.constant 0 : i32
    %c0_i32_0 = arith.constant 0 : i32
    return %arg0, %c0_i32 : i32, i32
  }
}

module attributes {stable_mosaic.version = 11 : i64} {
  func.func @gru_fc_kernel(%arg0: i32, %arg1: memref<1x8x8x128xbf16, #tpu.memory_space<vmem>>, %arg2: memref<8x1xi32, #tpu.memory_space<vmem>>, %arg3: memref<128x768xbf16, #tpu.memory_space<vmem>>, %arg4: memref<1x768xf32, #tpu.memory_space<vmem>>, %arg5: memref<128x768xbf16, #tpu.memory_space<vmem>>, %arg6: memref<1x768xf32, #tpu.memory_space<vmem>>, %arg7: memref<256x128xbf16, #tpu.memory_space<vmem>>, %arg8: memref<1x128xf32, #tpu.memory_space<vmem>>, %arg9: memref<8x128xf32, #tpu.memory_space<vmem>>, %arg10: memref<8x8x768xbf16, #tpu.memory_space<vmem>>, %arg11: memref<16x128xf32, #tpu.memory_space<vmem>>) attributes {dimension_semantics = [#tpu.dimension_semantics<parallel>], iteration_bounds = array<i64: 1>, scalar_prefetch = 0 : i64, scratch_operands = 2 : i64, tpu.core_type = #tpu.core_type<tc>, window_params = [{transform_indices = @transform_0, window_bounds = array<i64: 1, 8, 8, 128>}, {transform_indices = @transform_1, window_bounds = array<i64: 8, 1>}, {pipeline_mode = #tpu.pipeline_mode<synchronous>, transform_indices = @transform_2, window_bounds = array<i64: 128, 768>}, {pipeline_mode = #tpu.pipeline_mode<synchronous>, transform_indices = @transform_3, window_bounds = array<i64: 1, 768>}, {pipeline_mode = #tpu.pipeline_mode<synchronous>, transform_indices = @transform_4, window_bounds = array<i64: 128, 768>}, {pipeline_mode = #tpu.pipeline_mode<synchronous>, transform_indices = @transform_5, window_bounds = array<i64: 1, 768>}, {pipeline_mode = #tpu.pipeline_mode<synchronous>, transform_indices = @transform_6, window_bounds = array<i64: 256, 128>}, {pipeline_mode = #tpu.pipeline_mode<synchronous>, transform_indices = @transform_7, window_bounds = array<i64: 1, 128>}, {transform_indices = @transform_8, window_bounds = array<i64: 8, 128>}]} {
    %c0 = arith.constant 0 : index
    %c0_0 = arith.constant 0 : index
    %0 = vector.load %arg3[%c0, %c0_0] : memref<128x768xbf16, #tpu.memory_space<vmem>>, vector<128x768xbf16>
    %c0_1 = arith.constant 0 : index
    %c0_2 = arith.constant 0 : index
    %1 = vector.load %arg4[%c0_1, %c0_2] : memref<1x768xf32, #tpu.memory_space<vmem>>, vector<1x768xf32>
    %c0_3 = arith.constant 0 : index
    %c0_4 = arith.constant 0 : index
    %c0_5 = arith.constant 0 : index
    %c0_6 = arith.constant 0 : index
    %2 = vector.load %arg1[%c0_3, %c0_4, %c0_5, %c0_6] : memref<1x8x8x128xbf16, #tpu.memory_space<vmem>>, vector<1x8x8x128xbf16>
    %3 = vector.shape_cast %2 : vector<1x8x8x128xbf16> to vector<8x8x128xbf16>
    %4 = vector.shape_cast %3 : vector<8x8x128xbf16> to vector<64x128xbf16>
    %cst = arith.constant dense<0.000000e+00> : vector<64x768xf32>
    %5 = tpu.matmul %4, %0, %cst {dimension_numbers = #tpu.dot_dimension_numbers<[1], [0], [0], [1], [0, 0, 1, 1], [], []>} : vector<64x128xbf16>, vector<128x768xbf16>, vector<64x768xf32> -> vector<64x768xf32>
    %6 = vector.broadcast %1 : vector<1x768xf32> to vector<64x768xf32>
    %7 = arith.addf %5, %6 : vector<64x768xf32>
    %8 = vector.shape_cast %7 : vector<64x768xf32> to vector<8x8x768xf32>
    %9 = arith.truncf %8 : vector<8x8x768xf32> to vector<8x8x768xbf16>
    %c0_7 = arith.constant 0 : index
    %c0_8 = arith.constant 0 : index
    %c0_9 = arith.constant 0 : index
    %10 = vector.load %arg10[%c0_7, %c0_8, %c0_9] : memref<8x8x768xbf16, #tpu.memory_space<vmem>>, vector<8x8x768xbf16>
    tpu.vector_store %arg10[%c0_7, %c0_8, %c0_9], %9 {strides = array<i32>} : memref<8x8x768xbf16, #tpu.memory_space<vmem>>, vector<8x8x768xbf16>,
    %c0_10 = arith.constant 0 : index
    %c0_11 = arith.constant 0 : index
    %11 = vector.load %arg2[%c0_10, %c0_11] : memref<8x1xi32, #tpu.memory_space<vmem>>, vector<8x1xi32>
    %c0_12 = arith.constant 0 : index
    %c0_13 = arith.constant 0 : index
    %12 = vector.load %arg5[%c0_12, %c0_13] : memref<128x768xbf16, #tpu.memory_space<vmem>>, vector<128x768xbf16>
    %c0_14 = arith.constant 0 : index
    %c0_15 = arith.constant 0 : index
    %13 = vector.load %arg6[%c0_14, %c0_15] : memref<1x768xf32, #tpu.memory_space<vmem>>, vector<1x768xf32>
    %cst_16 = arith.constant 0.000000e+00 : f32
    %14 = vector.broadcast %cst_16 : f32 to vector<16x128xf32>
    %c0_17 = arith.constant 0 : index
    %c0_18 = arith.constant 0 : index
    %15 = vector.load %arg11[%c0_17, %c0_18] : memref<16x128xf32, #tpu.memory_space<vmem>>, vector<16x128xf32>
    tpu.vector_store %arg11[%c0_17, %c0_18], %14 {strides = array<i32>} : memref<16x128xf32, #tpu.memory_space<vmem>>, vector<16x128xf32>,
    %c0_i32 = arith.constant 0 : i32
    %c7_i32 = arith.constant 7 : i32
    %16 = arith.subi %c7_i32, %c0_i32 : i32
    %c0_19 = arith.constant 0 : index
    %c0_20 = arith.constant 0 : index
    %17 = vector.load %arg11[%c0_19, %c0_20] : memref<16x128xf32, #tpu.memory_space<vmem>>, vector<16x128xf32>
    %18 = arith.truncf %17 : vector<16x128xf32> to vector<16x128xbf16>
    %cst_21 = arith.constant dense<0.000000e+00> : vector<16x768xf32>
    %19 = tpu.matmul %18, %12, %cst_21 {dimension_numbers = #tpu.dot_dimension_numbers<[1], [0], [0], [1], [0, 0, 1, 1], [], []>} : vector<16x128xbf16>, vector<128x768xbf16>, vector<16x768xf32> -> vector<16x768xf32>
    %20 = vector.broadcast %13 : vector<1x768xf32> to vector<16x768xf32>
    %21 = arith.addf %19, %20 : vector<16x768xf32>
    %22 = arith.index_cast %c0_i32 : i32 to index
    %c0_22 = arith.constant 0 : index
    %c0_23 = arith.constant 0 : index
    %23 = vector.load %arg10[%22, %c0_22, %c0_23] : memref<8x8x768xbf16, #tpu.memory_space<vmem>>, vector<1x8x384xbf16>
    %24 = vector.shape_cast %23 : vector<1x8x384xbf16> to vector<8x384xbf16>
    %25 = arith.extf %24 : vector<8x384xbf16> to vector<8x384xf32>
    %26 = arith.index_cast %16 : i32 to index
    %c0_24 = arith.constant 0 : index
    %c384 = arith.constant 384 : index
    %27 = vector.load %arg10[%26, %c0_24, %c384] : memref<8x8x768xbf16, #tpu.memory_space<vmem>>, vector<1x8x384xbf16>
    %28 = vector.shape_cast %27 : vector<1x8x384xbf16> to vector<8x384xbf16>
    %29 = arith.extf %28 : vector<8x384xbf16> to vector<8x384xf32>
    %30 = vector.extract_strided_slice %21 {offsets = [0, 0], sizes = [8, 384], strides = [1, 1]} : vector<16x768xf32> to vector<8x384xf32>
    %31 = vector.extract_strided_slice %17 {offsets = [0, 0], sizes = [8, 128], strides = [1, 1]} : vector<16x128xf32> to vector<8x128xf32>
    %32 = vector.extract_strided_slice %25 {offsets = [0, 0], sizes = [8, 128], strides = [1, 1]} : vector<8x384xf32> to vector<8x128xf32>
    %33 = vector.extract_strided_slice %30 {offsets = [0, 0], sizes = [8, 128], strides = [1, 1]} : vector<8x384xf32> to vector<8x128xf32>
    %34 = arith.addf %32, %33 : vector<8x128xf32>
    %35 = arith.negf %34 : vector<8x128xf32>
    %36 = math.exp %35 : vector<8x128xf32>
    %cst_25 = arith.constant 1.000000e+00 : f32
    %37 = vector.broadcast %cst_25 : f32 to vector<8x128xf32>
    %38 = arith.addf %37, %36 : vector<8x128xf32>
    %39 = arith.divf %37, %38 : vector<8x128xf32>
    %40 = vector.extract_strided_slice %25 {offsets = [0, 128], sizes = [8, 128], strides = [1, 1]} : vector<8x384xf32> to vector<8x128xf32>
    %41 = vector.extract_strided_slice %30 {offsets = [0, 128], sizes = [8, 128], strides = [1, 1]} : vector<8x384xf32> to vector<8x128xf32>
    %42 = arith.addf %40, %41 : vector<8x128xf32>
    %43 = arith.negf %42 : vector<8x128xf32>
    %44 = math.exp %43 : vector<8x128xf32>
    %cst_26 = arith.constant 1.000000e+00 : f32
    %45 = vector.broadcast %cst_26 : f32 to vector<8x128xf32>
    %46 = arith.addf %45, %44 : vector<8x128xf32>
    %47 = arith.divf %45, %46 : vector<8x128xf32>
    %48 = vector.extract_strided_slice %25 {offsets = [0, 256], sizes = [8, 128], strides = [1, 1]} : vector<8x384xf32> to vector<8x128xf32>
    %49 = vector.extract_strided_slice %30 {offsets = [0, 256], sizes = [8, 128], strides = [1, 1]} : vector<8x384xf32> to vector<8x128xf32>
    %50 = arith.mulf %39, %49 : vector<8x128xf32>
    %51 = arith.addf %48, %50 : vector<8x128xf32>
    %52 = math.tanh %51 : vector<8x128xf32>
    %cst_27 = arith.constant 1.000000e+00 : f32
    %53 = vector.broadcast %cst_27 : f32 to vector<8x128xf32>
    %54 = arith.subf %53, %47 : vector<8x128xf32>
    %55 = arith.mulf %54, %52 : vector<8x128xf32>
    %56 = arith.mulf %47, %31 : vector<8x128xf32>
    %57 = arith.addf %55, %56 : vector<8x128xf32>
    %58 = vector.extract_strided_slice %21 {offsets = [8, 384], sizes = [8, 384], strides = [1, 1]} : vector<16x768xf32> to vector<8x384xf32>
    %59 = vector.extract_strided_slice %17 {offsets = [8, 0], sizes = [8, 128], strides = [1, 1]} : vector<16x128xf32> to vector<8x128xf32>
    %60 = vector.extract_strided_slice %29 {offsets = [0, 0], sizes = [8, 128], strides = [1, 1]} : vector<8x384xf32> to vector<8x128xf32>
    %61 = vector.extract_strided_slice %58 {offsets = [0, 0], sizes = [8, 128], strides = [1, 1]} : vector<8x384xf32> to vector<8x128xf32>
    %62 = arith.addf %60, %61 : vector<8x128xf32>
    %63 = arith.negf %62 : vector<8x128xf32>
    %64 = math.exp %63 : vector<8x128xf32>
    %cst_28 = arith.constant 1.000000e+00 : f32
    %65 = vector.broadcast %cst_28 : f32 to vector<8x128xf32>
    %66 = arith.addf %65, %64 : vector<8x128xf32>
    %67 = arith.divf %65, %66 : vector<8x128xf32>
    %68 = vector.extract_strided_slice %29 {offsets = [0, 128], sizes = [8, 128], strides = [1, 1]} : vector<8x384xf32> to vector<8x128xf32>
    %69 = vector.extract_strided_slice %58 {offsets = [0, 128], sizes = [8, 128], strides = [1, 1]} : vector<8x384xf32> to vector<8x128xf32>
    %70 = arith.addf %68, %69 : vector<8x128xf32>
    %71 = arith.negf %70 : vector<8x128xf32>
    %72 = math.exp %71 : vector<8x128xf32>
    %cst_29 = arith.constant 1.000000e+00 : f32
    %73 = vector.broadcast %cst_29 : f32 to vector<8x128xf32>
    %74 = arith.addf %73, %72 : vector<8x128xf32>
    %75 = arith.divf %73, %74 : vector<8x128xf32>
    %76 = vector.extract_strided_slice %29 {offsets = [0, 256], sizes = [8, 128], strides = [1, 1]} : vector<8x384xf32> to vector<8x128xf32>
    %77 = vector.extract_strided_slice %58 {offsets = [0, 256], sizes = [8, 128], strides = [1, 1]} : vector<8x384xf32> to vector<8x128xf32>
    %78 = arith.mulf %67, %77 : vector<8x128xf32>
    %79 = arith.addf %76, %78 : vector<8x128xf32>
    %80 = math.tanh %79 : vector<8x128xf32>
    %cst_30 = arith.constant 1.000000e+00 : f32
    %81 = vector.broadcast %cst_30 : f32 to vector<8x128xf32>
    %82 = arith.subf %81, %75 : vector<8x128xf32>
    %83 = arith.mulf %82, %80 : vector<8x128xf32>
    %84 = arith.mulf %75, %59 : vector<8x128xf32>
    %85 = arith.addf %83, %84 : vector<8x128xf32>
    %86 = vector.broadcast %c0_i32 : i32 to vector<8x1xi32>
    %87 = arith.cmpi slt, %86, %11 : vector<8x1xi32>
    %88 = vector.extract_strided_slice %17 {offsets = [0, 0], sizes = [8, 128], strides = [1, 1]} : vector<16x128xf32> to vector<8x128xf32>
    %89 = vector.shape_cast %87 : vector<8x1xi1> to vector<8x1xi1>
    %90 = vector.broadcast %89 : vector<8x1xi1> to vector<8x128xi1>
    %91 = arith.select %90, %57, %88 : vector<8x128xi1>, vector<8x128xf32>
    %c0_31 = arith.constant 0 : index
    %c0_32 = arith.constant 0 : index
    %92 = vector.load %arg11[%c0_31, %c0_32] : memref<16x128xf32, #tpu.memory_space<vmem>>, vector<8x128xf32>
    tpu.vector_store %arg11[%c0_31, %c0_32], %91 {strides = array<i32>} : memref<16x128xf32, #tpu.memory_space<vmem>>, vector<8x128xf32>,
    %93 = vector.broadcast %16 : i32 to vector<8x1xi32>
    %94 = arith.cmpi slt, %93, %11 : vector<8x1xi32>
    %95 = vector.extract_strided_slice %17 {offsets = [8, 0], sizes = [8, 128], strides = [1, 1]} : vector<16x128xf32> to vector<8x128xf32>
    %96 = vector.shape_cast %94 : vector<8x1xi1> to vector<8x1xi1>
    %97 = vector.broadcast %96 : vector<8x1xi1> to vector<8x128xi1>
    %98 = arith.select %97, %85, %95 : vector<8x128xi1>, vector<8x128xf32>
    %c8 = arith.constant 8 : index
    %c0_33 = arith.constant 0 : index
    %99 = vector.load %arg11[%c8, %c0_33] : memref<16x128xf32, #tpu.memory_space<vmem>>, vector<8x128xf32>
    tpu.vector_store %arg11[%c8, %c0_33], %98 {strides = array<i32>} : memref<16x128xf32, #tpu.memory_space<vmem>>, vector<8x128xf32>,
    %c1_i32 = arith.constant 1 : i32
    %c7_i32_34 = arith.constant 7 : i32
    %100 = arith.subi %c7_i32_34, %c1_i32 : i32
    %c0_35 = arith.constant 0 : index
    %c0_36 = arith.constant 0 : index
    %101 = vector.load %arg11[%c0_35, %c0_36] : memref<16x128xf32, #tpu.memory_space<vmem>>, vector<16x128xf32>
    %102 = arith.truncf %101 : vector<16x128xf32> to vector<16x128xbf16>
    %cst_37 = arith.constant dense<0.000000e+00> : vector<16x768xf32>
    %103 = tpu.matmul %102, %12, %cst_37 {dimension_numbers = #tpu.dot_dimension_numbers<[1], [0], [0], [1], [0, 0, 1, 1], [], []>} : vector<16x128xbf16>, vector<128x768xbf16>, vector<16x768xf32> -> vector<16x768xf32>
    %104 = vector.broadcast %13 : vector<1x768xf32> to vector<16x768xf32>
    %105 = arith.addf %103, %104 : vector<16x768xf32>
    %106 = arith.index_cast %c1_i32 : i32 to index
    %c0_38 = arith.constant 0 : index
    %c0_39 = arith.constant 0 : index
    %107 = vector.load %arg10[%106, %c0_38, %c0_39] : memref<8x8x768xbf16, #tpu.memory_space<vmem>>, vector<1x8x384xbf16>
    %108 = vector.shape_cast %107 : vector<1x8x384xbf16> to vector<8x384xbf16>
    %109 = arith.extf %108 : vector<8x384xbf16> to vector<8x384xf32>
    %110 = arith.index_cast %100 : i32 to index
    %c0_40 = arith.constant 0 : index
    %c384_41 = arith.constant 384 : index
    %111 = vector.load %arg10[%110, %c0_40, %c384_41] : memref<8x8x768xbf16, #tpu.memory_space<vmem>>, vector<1x8x384xbf16>
    %112 = vector.shape_cast %111 : vector<1x8x384xbf16> to vector<8x384xbf16>
    %113 = arith.extf %112 : vector<8x384xbf16> to vector<8x384xf32>
    %114 = vector.extract_strided_slice %105 {offsets = [0, 0], sizes = [8, 384], strides = [1, 1]} : vector<16x768xf32> to vector<8x384xf32>
    %115 = vector.extract_strided_slice %101 {offsets = [0, 0], sizes = [8, 128], strides = [1, 1]} : vector<16x128xf32> to vector<8x128xf32>
    %116 = vector.extract_strided_slice %109 {offsets = [0, 0], sizes = [8, 128], strides = [1, 1]} : vector<8x384xf32> to vector<8x128xf32>
    %117 = vector.extract_strided_slice %114 {offsets = [0, 0], sizes = [8, 128], strides = [1, 1]} : vector<8x384xf32> to vector<8x128xf32>
    %118 = arith.addf %116, %117 : vector<8x128xf32>
    %119 = arith.negf %118 : vector<8x128xf32>
    %120 = math.exp %119 : vector<8x128xf32>
    %cst_42 = arith.constant 1.000000e+00 : f32
    %121 = vector.broadcast %cst_42 : f32 to vector<8x128xf32>
    %122 = arith.addf %121, %120 : vector<8x128xf32>
    %123 = arith.divf %121, %122 : vector<8x128xf32>
    %124 = vector.extract_strided_slice %109 {offsets = [0, 128], sizes = [8, 128], strides = [1, 1]} : vector<8x384xf32> to vector<8x128xf32>
    %125 = vector.extract_strided_slice %114 {offsets = [0, 128], sizes = [8, 128], strides = [1, 1]} : vector<8x384xf32> to vector<8x128xf32>
    %126 = arith.addf %124, %125 : vector<8x128xf32>
    %127 = arith.negf %126 : vector<8x128xf32>
    %128 = math.exp %127 : vector<8x128xf32>
    %cst_43 = arith.constant 1.000000e+00 : f32
    %129 = vector.broadcast %cst_43 : f32 to vector<8x128xf32>
    %130 = arith.addf %129, %128 : vector<8x128xf32>
    %131 = arith.divf %129, %130 : vector<8x128xf32>
    %132 = vector.extract_strided_slice %109 {offsets = [0, 256], sizes = [8, 128], strides = [1, 1]} : vector<8x384xf32> to vector<8x128xf32>
    %133 = vector.extract_strided_slice %114 {offsets = [0, 256], sizes = [8, 128], strides = [1, 1]} : vector<8x384xf32> to vector<8x128xf32>
    %134 = arith.mulf %123, %133 : vector<8x128xf32>
    %135 = arith.addf %132, %134 : vector<8x128xf32>
    %136 = math.tanh %135 : vector<8x128xf32>
    %cst_44 = arith.constant 1.000000e+00 : f32
    %137 = vector.broadcast %cst_44 : f32 to vector<8x128xf32>
    %138 = arith.subf %137, %131 : vector<8x128xf32>
    %139 = arith.mulf %138, %136 : vector<8x128xf32>
    %140 = arith.mulf %131, %115 : vector<8x128xf32>
    %141 = arith.addf %139, %140 : vector<8x128xf32>
    %142 = vector.extract_strided_slice %105 {offsets = [8, 384], sizes = [8, 384], strides = [1, 1]} : vector<16x768xf32> to vector<8x384xf32>
    %143 = vector.extract_strided_slice %101 {offsets = [8, 0], sizes = [8, 128], strides = [1, 1]} : vector<16x128xf32> to vector<8x128xf32>
    %144 = vector.extract_strided_slice %113 {offsets = [0, 0], sizes = [8, 128], strides = [1, 1]} : vector<8x384xf32> to vector<8x128xf32>
    %145 = vector.extract_strided_slice %142 {offsets = [0, 0], sizes = [8, 128], strides = [1, 1]} : vector<8x384xf32> to vector<8x128xf32>
    %146 = arith.addf %144, %145 : vector<8x128xf32>
    %147 = arith.negf %146 : vector<8x128xf32>
    %148 = math.exp %147 : vector<8x128xf32>
    %cst_45 = arith.constant 1.000000e+00 : f32
    %149 = vector.broadcast %cst_45 : f32 to vector<8x128xf32>
    %150 = arith.addf %149, %148 : vector<8x128xf32>
    %151 = arith.divf %149, %150 : vector<8x128xf32>
    %152 = vector.extract_strided_slice %113 {offsets = [0, 128], sizes = [8, 128], strides = [1, 1]} : vector<8x384xf32> to vector<8x128xf32>
    %153 = vector.extract_strided_slice %142 {offsets = [0, 128], sizes = [8, 128], strides = [1, 1]} : vector<8x384xf32> to vector<8x128xf32>
    %154 = arith.addf %152, %153 : vector<8x128xf32>
    %155 = arith.negf %154 : vector<8x128xf32>
    %156 = math.exp %155 : vector<8x128xf32>
    %cst_46 = arith.constant 1.000000e+00 : f32
    %157 = vector.broadcast %cst_46 : f32 to vector<8x128xf32>
    %158 = arith.addf %157, %156 : vector<8x128xf32>
    %159 = arith.divf %157, %158 : vector<8x128xf32>
    %160 = vector.extract_strided_slice %113 {offsets = [0, 256], sizes = [8, 128], strides = [1, 1]} : vector<8x384xf32> to vector<8x128xf32>
    %161 = vector.extract_strided_slice %142 {offsets = [0, 256], sizes = [8, 128], strides = [1, 1]} : vector<8x384xf32> to vector<8x128xf32>
    %162 = arith.mulf %151, %161 : vector<8x128xf32>
    %163 = arith.addf %160, %162 : vector<8x128xf32>
    %164 = math.tanh %163 : vector<8x128xf32>
    %cst_47 = arith.constant 1.000000e+00 : f32
    %165 = vector.broadcast %cst_47 : f32 to vector<8x128xf32>
    %166 = arith.subf %165, %159 : vector<8x128xf32>
    %167 = arith.mulf %166, %164 : vector<8x128xf32>
    %168 = arith.mulf %159, %143 : vector<8x128xf32>
    %169 = arith.addf %167, %168 : vector<8x128xf32>
    %170 = vector.broadcast %c1_i32 : i32 to vector<8x1xi32>
    %171 = arith.cmpi slt, %170, %11 : vector<8x1xi32>
    %172 = vector.extract_strided_slice %101 {offsets = [0, 0], sizes = [8, 128], strides = [1, 1]} : vector<16x128xf32> to vector<8x128xf32>
    %173 = vector.shape_cast %171 : vector<8x1xi1> to vector<8x1xi1>
    %174 = vector.broadcast %173 : vector<8x1xi1> to vector<8x128xi1>
    %175 = arith.select %174, %141, %172 : vector<8x128xi1>, vector<8x128xf32>
    %c0_48 = arith.constant 0 : index
    %c0_49 = arith.constant 0 : index
    %176 = vector.load %arg11[%c0_48, %c0_49] : memref<16x128xf32, #tpu.memory_space<vmem>>, vector<8x128xf32>
    tpu.vector_store %arg11[%c0_48, %c0_49], %175 {strides = array<i32>} : memref<16x128xf32, #tpu.memory_space<vmem>>, vector<8x128xf32>,
    %177 = vector.broadcast %100 : i32 to vector<8x1xi32>
    %178 = arith.cmpi slt, %177, %11 : vector<8x1xi32>
    %179 = vector.extract_strided_slice %101 {offsets = [8, 0], sizes = [8, 128], strides = [1, 1]} : vector<16x128xf32> to vector<8x128xf32>
    %180 = vector.shape_cast %178 : vector<8x1xi1> to vector<8x1xi1>
    %181 = vector.broadcast %180 : vector<8x1xi1> to vector<8x128xi1>
    %182 = arith.select %181, %169, %179 : vector<8x128xi1>, vector<8x128xf32>
    %c8_50 = arith.constant 8 : index
    %c0_51 = arith.constant 0 : index
    %183 = vector.load %arg11[%c8_50, %c0_51] : memref<16x128xf32, #tpu.memory_space<vmem>>, vector<8x128xf32>
    tpu.vector_store %arg11[%c8_50, %c0_51], %182 {strides = array<i32>} : memref<16x128xf32, #tpu.memory_space<vmem>>, vector<8x128xf32>,
    %c2_i32 = arith.constant 2 : i32
    %c7_i32_52 = arith.constant 7 : i32
    %184 = arith.subi %c7_i32_52, %c2_i32 : i32
    %c0_53 = arith.constant 0 : index
    %c0_54 = arith.constant 0 : index
    %185 = vector.load %arg11[%c0_53, %c0_54] : memref<16x128xf32, #tpu.memory_space<vmem>>, vector<16x128xf32>
    %186 = arith.truncf %185 : vector<16x128xf32> to vector<16x128xbf16>
    %cst_55 = arith.constant dense<0.000000e+00> : vector<16x768xf32>
    %187 = tpu.matmul %186, %12, %cst_55 {dimension_numbers = #tpu.dot_dimension_numbers<[1], [0], [0], [1], [0, 0, 1, 1], [], []>} : vector<16x128xbf16>, vector<128x768xbf16>, vector<16x768xf32> -> vector<16x768xf32>
    %188 = vector.broadcast %13 : vector<1x768xf32> to vector<16x768xf32>
    %189 = arith.addf %187, %188 : vector<16x768xf32>
    %190 = arith.index_cast %c2_i32 : i32 to index
    %c0_56 = arith.constant 0 : index
    %c0_57 = arith.constant 0 : index
    %191 = vector.load %arg10[%190, %c0_56, %c0_57] : memref<8x8x768xbf16, #tpu.memory_space<vmem>>, vector<1x8x384xbf16>
    %192 = vector.shape_cast %191 : vector<1x8x384xbf16> to vector<8x384xbf16>
    %193 = arith.extf %192 : vector<8x384xbf16> to vector<8x384xf32>
    %194 = arith.index_cast %184 : i32 to index
    %c0_58 = arith.constant 0 : index
    %c384_59 = arith.constant 384 : index
    %195 = vector.load %arg10[%194, %c0_58, %c384_59] : memref<8x8x768xbf16, #tpu.memory_space<vmem>>, vector<1x8x384xbf16>
    %196 = vector.shape_cast %195 : vector<1x8x384xbf16> to vector<8x384xbf16>
    %197 = arith.extf %196 : vector<8x384xbf16> to vector<8x384xf32>
    %198 = vector.extract_strided_slice %189 {offsets = [0, 0], sizes = [8, 384], strides = [1, 1]} : vector<16x768xf32> to vector<8x384xf32>
    %199 = vector.extract_strided_slice %185 {offsets = [0, 0], sizes = [8, 128], strides = [1, 1]} : vector<16x128xf32> to vector<8x128xf32>
    %200 = vector.extract_strided_slice %193 {offsets = [0, 0], sizes = [8, 128], strides = [1, 1]} : vector<8x384xf32> to vector<8x128xf32>
    %201 = vector.extract_strided_slice %198 {offsets = [0, 0], sizes = [8, 128], strides = [1, 1]} : vector<8x384xf32> to vector<8x128xf32>
    %202 = arith.addf %200, %201 : vector<8x128xf32>
    %203 = arith.negf %202 : vector<8x128xf32>
    %204 = math.exp %203 : vector<8x128xf32>
    %cst_60 = arith.constant 1.000000e+00 : f32
    %205 = vector.broadcast %cst_60 : f32 to vector<8x128xf32>
    %206 = arith.addf %205, %204 : vector<8x128xf32>
    %207 = arith.divf %205, %206 : vector<8x128xf32>
    %208 = vector.extract_strided_slice %193 {offsets = [0, 128], sizes = [8, 128], strides = [1, 1]} : vector<8x384xf32> to vector<8x128xf32>
    %209 = vector.extract_strided_slice %198 {offsets = [0, 128], sizes = [8, 128], strides = [1, 1]} : vector<8x384xf32> to vector<8x128xf32>
    %210 = arith.addf %208, %209 : vector<8x128xf32>
    %211 = arith.negf %210 : vector<8x128xf32>
    %212 = math.exp %211 : vector<8x128xf32>
    %cst_61 = arith.constant 1.000000e+00 : f32
    %213 = vector.broadcast %cst_61 : f32 to vector<8x128xf32>
    %214 = arith.addf %213, %212 : vector<8x128xf32>
    %215 = arith.divf %213, %214 : vector<8x128xf32>
    %216 = vector.extract_strided_slice %193 {offsets = [0, 256], sizes = [8, 128], strides = [1, 1]} : vector<8x384xf32> to vector<8x128xf32>
    %217 = vector.extract_strided_slice %198 {offsets = [0, 256], sizes = [8, 128], strides = [1, 1]} : vector<8x384xf32> to vector<8x128xf32>
    %218 = arith.mulf %207, %217 : vector<8x128xf32>
    %219 = arith.addf %216, %218 : vector<8x128xf32>
    %220 = math.tanh %219 : vector<8x128xf32>
    %cst_62 = arith.constant 1.000000e+00 : f32
    %221 = vector.broadcast %cst_62 : f32 to vector<8x128xf32>
    %222 = arith.subf %221, %215 : vector<8x128xf32>
    %223 = arith.mulf %222, %220 : vector<8x128xf32>
    %224 = arith.mulf %215, %199 : vector<8x128xf32>
    %225 = arith.addf %223, %224 : vector<8x128xf32>
    %226 = vector.extract_strided_slice %189 {offsets = [8, 384], sizes = [8, 384], strides = [1, 1]} : vector<16x768xf32> to vector<8x384xf32>
    %227 = vector.extract_strided_slice %185 {offsets = [8, 0], sizes = [8, 128], strides = [1, 1]} : vector<16x128xf32> to vector<8x128xf32>
    %228 = vector.extract_strided_slice %197 {offsets = [0, 0], sizes = [8, 128], strides = [1, 1]} : vector<8x384xf32> to vector<8x128xf32>
    %229 = vector.extract_strided_slice %226 {offsets = [0, 0], sizes = [8, 128], strides = [1, 1]} : vector<8x384xf32> to vector<8x128xf32>
    %230 = arith.addf %228, %229 : vector<8x128xf32>
    %231 = arith.negf %230 : vector<8x128xf32>
    %232 = math.exp %231 : vector<8x128xf32>
    %cst_63 = arith.constant 1.000000e+00 : f32
    %233 = vector.broadcast %cst_63 : f32 to vector<8x128xf32>
    %234 = arith.addf %233, %232 : vector<8x128xf32>
    %235 = arith.divf %233, %234 : vector<8x128xf32>
    %236 = vector.extract_strided_slice %197 {offsets = [0, 128], sizes = [8, 128], strides = [1, 1]} : vector<8x384xf32> to vector<8x128xf32>
    %237 = vector.extract_strided_slice %226 {offsets = [0, 128], sizes = [8, 128], strides = [1, 1]} : vector<8x384xf32> to vector<8x128xf32>
    %238 = arith.addf %236, %237 : vector<8x128xf32>
    %239 = arith.negf %238 : vector<8x128xf32>
    %240 = math.exp %239 : vector<8x128xf32>
    %cst_64 = arith.constant 1.000000e+00 : f32
    %241 = vector.broadcast %cst_64 : f32 to vector<8x128xf32>
    %242 = arith.addf %241, %240 : vector<8x128xf32>
    %243 = arith.divf %241, %242 : vector<8x128xf32>
    %244 = vector.extract_strided_slice %197 {offsets = [0, 256], sizes = [8, 128], strides = [1, 1]} : vector<8x384xf32> to vector<8x128xf32>
    %245 = vector.extract_strided_slice %226 {offsets = [0, 256], sizes = [8, 128], strides = [1, 1]} : vector<8x384xf32> to vector<8x128xf32>
    %246 = arith.mulf %235, %245 : vector<8x128xf32>
    %247 = arith.addf %244, %246 : vector<8x128xf32>
    %248 = math.tanh %247 : vector<8x128xf32>
    %cst_65 = arith.constant 1.000000e+00 : f32
    %249 = vector.broadcast %cst_65 : f32 to vector<8x128xf32>
    %250 = arith.subf %249, %243 : vector<8x128xf32>
    %251 = arith.mulf %250, %248 : vector<8x128xf32>
    %252 = arith.mulf %243, %227 : vector<8x128xf32>
    %253 = arith.addf %251, %252 : vector<8x128xf32>
    %254 = vector.broadcast %c2_i32 : i32 to vector<8x1xi32>
    %255 = arith.cmpi slt, %254, %11 : vector<8x1xi32>
    %256 = vector.extract_strided_slice %185 {offsets = [0, 0], sizes = [8, 128], strides = [1, 1]} : vector<16x128xf32> to vector<8x128xf32>
    %257 = vector.shape_cast %255 : vector<8x1xi1> to vector<8x1xi1>
    %258 = vector.broadcast %257 : vector<8x1xi1> to vector<8x128xi1>
    %259 = arith.select %258, %225, %256 : vector<8x128xi1>, vector<8x128xf32>
    %c0_66 = arith.constant 0 : index
    %c0_67 = arith.constant 0 : index
    %260 = vector.load %arg11[%c0_66, %c0_67] : memref<16x128xf32, #tpu.memory_space<vmem>>, vector<8x128xf32>
    tpu.vector_store %arg11[%c0_66, %c0_67], %259 {strides = array<i32>} : memref<16x128xf32, #tpu.memory_space<vmem>>, vector<8x128xf32>,
    %261 = vector.broadcast %184 : i32 to vector<8x1xi32>
    %262 = arith.cmpi slt, %261, %11 : vector<8x1xi32>
    %263 = vector.extract_strided_slice %185 {offsets = [8, 0], sizes = [8, 128], strides = [1, 1]} : vector<16x128xf32> to vector<8x128xf32>
    %264 = vector.shape_cast %262 : vector<8x1xi1> to vector<8x1xi1>
    %265 = vector.broadcast %264 : vector<8x1xi1> to vector<8x128xi1>
    %266 = arith.select %265, %253, %263 : vector<8x128xi1>, vector<8x128xf32>
    %c8_68 = arith.constant 8 : index
    %c0_69 = arith.constant 0 : index
    %267 = vector.load %arg11[%c8_68, %c0_69] : memref<16x128xf32, #tpu.memory_space<vmem>>, vector<8x128xf32>
    tpu.vector_store %arg11[%c8_68, %c0_69], %266 {strides = array<i32>} : memref<16x128xf32, #tpu.memory_space<vmem>>, vector<8x128xf32>,
    %c3_i32 = arith.constant 3 : i32
    %c7_i32_70 = arith.constant 7 : i32
    %268 = arith.subi %c7_i32_70, %c3_i32 : i32
    %c0_71 = arith.constant 0 : index
    %c0_72 = arith.constant 0 : index
    %269 = vector.load %arg11[%c0_71, %c0_72] : memref<16x128xf32, #tpu.memory_space<vmem>>, vector<16x128xf32>
    %270 = arith.truncf %269 : vector<16x128xf32> to vector<16x128xbf16>
    %cst_73 = arith.constant dense<0.000000e+00> : vector<16x768xf32>
    %271 = tpu.matmul %270, %12, %cst_73 {dimension_numbers = #tpu.dot_dimension_numbers<[1], [0], [0], [1], [0, 0, 1, 1], [], []>} : vector<16x128xbf16>, vector<128x768xbf16>, vector<16x768xf32> -> vector<16x768xf32>
    %272 = vector.broadcast %13 : vector<1x768xf32> to vector<16x768xf32>
    %273 = arith.addf %271, %272 : vector<16x768xf32>
    %274 = arith.index_cast %c3_i32 : i32 to index
    %c0_74 = arith.constant 0 : index
    %c0_75 = arith.constant 0 : index
    %275 = vector.load %arg10[%274, %c0_74, %c0_75] : memref<8x8x768xbf16, #tpu.memory_space<vmem>>, vector<1x8x384xbf16>
    %276 = vector.shape_cast %275 : vector<1x8x384xbf16> to vector<8x384xbf16>
    %277 = arith.extf %276 : vector<8x384xbf16> to vector<8x384xf32>
    %278 = arith.index_cast %268 : i32 to index
    %c0_76 = arith.constant 0 : index
    %c384_77 = arith.constant 384 : index
    %279 = vector.load %arg10[%278, %c0_76, %c384_77] : memref<8x8x768xbf16, #tpu.memory_space<vmem>>, vector<1x8x384xbf16>
    %280 = vector.shape_cast %279 : vector<1x8x384xbf16> to vector<8x384xbf16>
    %281 = arith.extf %280 : vector<8x384xbf16> to vector<8x384xf32>
    %282 = vector.extract_strided_slice %273 {offsets = [0, 0], sizes = [8, 384], strides = [1, 1]} : vector<16x768xf32> to vector<8x384xf32>
    %283 = vector.extract_strided_slice %269 {offsets = [0, 0], sizes = [8, 128], strides = [1, 1]} : vector<16x128xf32> to vector<8x128xf32>
    %284 = vector.extract_strided_slice %277 {offsets = [0, 0], sizes = [8, 128], strides = [1, 1]} : vector<8x384xf32> to vector<8x128xf32>
    %285 = vector.extract_strided_slice %282 {offsets = [0, 0], sizes = [8, 128], strides = [1, 1]} : vector<8x384xf32> to vector<8x128xf32>
    %286 = arith.addf %284, %285 : vector<8x128xf32>
    %287 = arith.negf %286 : vector<8x128xf32>
    %288 = math.exp %287 : vector<8x128xf32>
    %cst_78 = arith.constant 1.000000e+00 : f32
    %289 = vector.broadcast %cst_78 : f32 to vector<8x128xf32>
    %290 = arith.addf %289, %288 : vector<8x128xf32>
    %291 = arith.divf %289, %290 : vector<8x128xf32>
    %292 = vector.extract_strided_slice %277 {offsets = [0, 128], sizes = [8, 128], strides = [1, 1]} : vector<8x384xf32> to vector<8x128xf32>
    %293 = vector.extract_strided_slice %282 {offsets = [0, 128], sizes = [8, 128], strides = [1, 1]} : vector<8x384xf32> to vector<8x128xf32>
    %294 = arith.addf %292, %293 : vector<8x128xf32>
    %295 = arith.negf %294 : vector<8x128xf32>
    %296 = math.exp %295 : vector<8x128xf32>
    %cst_79 = arith.constant 1.000000e+00 : f32
    %297 = vector.broadcast %cst_79 : f32 to vector<8x128xf32>
    %298 = arith.addf %297, %296 : vector<8x128xf32>
    %299 = arith.divf %297, %298 : vector<8x128xf32>
    %300 = vector.extract_strided_slice %277 {offsets = [0, 256], sizes = [8, 128], strides = [1, 1]} : vector<8x384xf32> to vector<8x128xf32>
    %301 = vector.extract_strided_slice %282 {offsets = [0, 256], sizes = [8, 128], strides = [1, 1]} : vector<8x384xf32> to vector<8x128xf32>
    %302 = arith.mulf %291, %301 : vector<8x128xf32>
    %303 = arith.addf %300, %302 : vector<8x128xf32>
    %304 = math.tanh %303 : vector<8x128xf32>
    %cst_80 = arith.constant 1.000000e+00 : f32
    %305 = vector.broadcast %cst_80 : f32 to vector<8x128xf32>
    %306 = arith.subf %305, %299 : vector<8x128xf32>
    %307 = arith.mulf %306, %304 : vector<8x128xf32>
    %308 = arith.mulf %299, %283 : vector<8x128xf32>
    %309 = arith.addf %307, %308 : vector<8x128xf32>
    %310 = vector.extract_strided_slice %273 {offsets = [8, 384], sizes = [8, 384], strides = [1, 1]} : vector<16x768xf32> to vector<8x384xf32>
    %311 = vector.extract_strided_slice %269 {offsets = [8, 0], sizes = [8, 128], strides = [1, 1]} : vector<16x128xf32> to vector<8x128xf32>
    %312 = vector.extract_strided_slice %281 {offsets = [0, 0], sizes = [8, 128], strides = [1, 1]} : vector<8x384xf32> to vector<8x128xf32>
    %313 = vector.extract_strided_slice %310 {offsets = [0, 0], sizes = [8, 128], strides = [1, 1]} : vector<8x384xf32> to vector<8x128xf32>
    %314 = arith.addf %312, %313 : vector<8x128xf32>
    %315 = arith.negf %314 : vector<8x128xf32>
    %316 = math.exp %315 : vector<8x128xf32>
    %cst_81 = arith.constant 1.000000e+00 : f32
    %317 = vector.broadcast %cst_81 : f32 to vector<8x128xf32>
    %318 = arith.addf %317, %316 : vector<8x128xf32>
    %319 = arith.divf %317, %318 : vector<8x128xf32>
    %320 = vector.extract_strided_slice %281 {offsets = [0, 128], sizes = [8, 128], strides = [1, 1]} : vector<8x384xf32> to vector<8x128xf32>
    %321 = vector.extract_strided_slice %310 {offsets = [0, 128], sizes = [8, 128], strides = [1, 1]} : vector<8x384xf32> to vector<8x128xf32>
    %322 = arith.addf %320, %321 : vector<8x128xf32>
    %323 = arith.negf %322 : vector<8x128xf32>
    %324 = math.exp %323 : vector<8x128xf32>
    %cst_82 = arith.constant 1.000000e+00 : f32
    %325 = vector.broadcast %cst_82 : f32 to vector<8x128xf32>
    %326 = arith.addf %325, %324 : vector<8x128xf32>
    %327 = arith.divf %325, %326 : vector<8x128xf32>
    %328 = vector.extract_strided_slice %281 {offsets = [0, 256], sizes = [8, 128], strides = [1, 1]} : vector<8x384xf32> to vector<8x128xf32>
    %329 = vector.extract_strided_slice %310 {offsets = [0, 256], sizes = [8, 128], strides = [1, 1]} : vector<8x384xf32> to vector<8x128xf32>
    %330 = arith.mulf %319, %329 : vector<8x128xf32>
    %331 = arith.addf %328, %330 : vector<8x128xf32>
    %332 = math.tanh %331 : vector<8x128xf32>
    %cst_83 = arith.constant 1.000000e+00 : f32
    %333 = vector.broadcast %cst_83 : f32 to vector<8x128xf32>
    %334 = arith.subf %333, %327 : vector<8x128xf32>
    %335 = arith.mulf %334, %332 : vector<8x128xf32>
    %336 = arith.mulf %327, %311 : vector<8x128xf32>
    %337 = arith.addf %335, %336 : vector<8x128xf32>
    %338 = vector.broadcast %c3_i32 : i32 to vector<8x1xi32>
    %339 = arith.cmpi slt, %338, %11 : vector<8x1xi32>
    %340 = vector.extract_strided_slice %269 {offsets = [0, 0], sizes = [8, 128], strides = [1, 1]} : vector<16x128xf32> to vector<8x128xf32>
    %341 = vector.shape_cast %339 : vector<8x1xi1> to vector<8x1xi1>
    %342 = vector.broadcast %341 : vector<8x1xi1> to vector<8x128xi1>
    %343 = arith.select %342, %309, %340 : vector<8x128xi1>, vector<8x128xf32>
    %c0_84 = arith.constant 0 : index
    %c0_85 = arith.constant 0 : index
    %344 = vector.load %arg11[%c0_84, %c0_85] : memref<16x128xf32, #tpu.memory_space<vmem>>, vector<8x128xf32>
    tpu.vector_store %arg11[%c0_84, %c0_85], %343 {strides = array<i32>} : memref<16x128xf32, #tpu.memory_space<vmem>>, vector<8x128xf32>,
    %345 = vector.broadcast %268 : i32 to vector<8x1xi32>
    %346 = arith.cmpi slt, %345, %11 : vector<8x1xi32>
    %347 = vector.extract_strided_slice %269 {offsets = [8, 0], sizes = [8, 128], strides = [1, 1]} : vector<16x128xf32> to vector<8x128xf32>
    %348 = vector.shape_cast %346 : vector<8x1xi1> to vector<8x1xi1>
    %349 = vector.broadcast %348 : vector<8x1xi1> to vector<8x128xi1>
    %350 = arith.select %349, %337, %347 : vector<8x128xi1>, vector<8x128xf32>
    %c8_86 = arith.constant 8 : index
    %c0_87 = arith.constant 0 : index
    %351 = vector.load %arg11[%c8_86, %c0_87] : memref<16x128xf32, #tpu.memory_space<vmem>>, vector<8x128xf32>
    tpu.vector_store %arg11[%c8_86, %c0_87], %350 {strides = array<i32>} : memref<16x128xf32, #tpu.memory_space<vmem>>, vector<8x128xf32>,
    %c4_i32 = arith.constant 4 : i32
    %c7_i32_88 = arith.constant 7 : i32
    %352 = arith.subi %c7_i32_88, %c4_i32 : i32
    %c0_89 = arith.constant 0 : index
    %c0_90 = arith.constant 0 : index
    %353 = vector.load %arg11[%c0_89, %c0_90] : memref<16x128xf32, #tpu.memory_space<vmem>>, vector<16x128xf32>
    %354 = arith.truncf %353 : vector<16x128xf32> to vector<16x128xbf16>
    %cst_91 = arith.constant dense<0.000000e+00> : vector<16x768xf32>
    %355 = tpu.matmul %354, %12, %cst_91 {dimension_numbers = #tpu.dot_dimension_numbers<[1], [0], [0], [1], [0, 0, 1, 1], [], []>} : vector<16x128xbf16>, vector<128x768xbf16>, vector<16x768xf32> -> vector<16x768xf32>
    %356 = vector.broadcast %13 : vector<1x768xf32> to vector<16x768xf32>
    %357 = arith.addf %355, %356 : vector<16x768xf32>
    %358 = arith.index_cast %c4_i32 : i32 to index
    %c0_92 = arith.constant 0 : index
    %c0_93 = arith.constant 0 : index
    %359 = vector.load %arg10[%358, %c0_92, %c0_93] : memref<8x8x768xbf16, #tpu.memory_space<vmem>>, vector<1x8x384xbf16>
    %360 = vector.shape_cast %359 : vector<1x8x384xbf16> to vector<8x384xbf16>
    %361 = arith.extf %360 : vector<8x384xbf16> to vector<8x384xf32>
    %362 = arith.index_cast %352 : i32 to index
    %c0_94 = arith.constant 0 : index
    %c384_95 = arith.constant 384 : index
    %363 = vector.load %arg10[%362, %c0_94, %c384_95] : memref<8x8x768xbf16, #tpu.memory_space<vmem>>, vector<1x8x384xbf16>
    %364 = vector.shape_cast %363 : vector<1x8x384xbf16> to vector<8x384xbf16>
    %365 = arith.extf %364 : vector<8x384xbf16> to vector<8x384xf32>
    %366 = vector.extract_strided_slice %357 {offsets = [0, 0], sizes = [8, 384], strides = [1, 1]} : vector<16x768xf32> to vector<8x384xf32>
    %367 = vector.extract_strided_slice %353 {offsets = [0, 0], sizes = [8, 128], strides = [1, 1]} : vector<16x128xf32> to vector<8x128xf32>
    %368 = vector.extract_strided_slice %361 {offsets = [0, 0], sizes = [8, 128], strides = [1, 1]} : vector<8x384xf32> to vector<8x128xf32>
    %369 = vector.extract_strided_slice %366 {offsets = [0, 0], sizes = [8, 128], strides = [1, 1]} : vector<8x384xf32> to vector<8x128xf32>
    %370 = arith.addf %368, %369 : vector<8x128xf32>
    %371 = arith.negf %370 : vector<8x128xf32>
    %372 = math.exp %371 : vector<8x128xf32>
    %cst_96 = arith.constant 1.000000e+00 : f32
    %373 = vector.broadcast %cst_96 : f32 to vector<8x128xf32>
    %374 = arith.addf %373, %372 : vector<8x128xf32>
    %375 = arith.divf %373, %374 : vector<8x128xf32>
    %376 = vector.extract_strided_slice %361 {offsets = [0, 128], sizes = [8, 128], strides = [1, 1]} : vector<8x384xf32> to vector<8x128xf32>
    %377 = vector.extract_strided_slice %366 {offsets = [0, 128], sizes = [8, 128], strides = [1, 1]} : vector<8x384xf32> to vector<8x128xf32>
    %378 = arith.addf %376, %377 : vector<8x128xf32>
    %379 = arith.negf %378 : vector<8x128xf32>
    %380 = math.exp %379 : vector<8x128xf32>
    %cst_97 = arith.constant 1.000000e+00 : f32
    %381 = vector.broadcast %cst_97 : f32 to vector<8x128xf32>
    %382 = arith.addf %381, %380 : vector<8x128xf32>
    %383 = arith.divf %381, %382 : vector<8x128xf32>
    %384 = vector.extract_strided_slice %361 {offsets = [0, 256], sizes = [8, 128], strides = [1, 1]} : vector<8x384xf32> to vector<8x128xf32>
    %385 = vector.extract_strided_slice %366 {offsets = [0, 256], sizes = [8, 128], strides = [1, 1]} : vector<8x384xf32> to vector<8x128xf32>
    %386 = arith.mulf %375, %385 : vector<8x128xf32>
    %387 = arith.addf %384, %386 : vector<8x128xf32>
    %388 = math.tanh %387 : vector<8x128xf32>
    %cst_98 = arith.constant 1.000000e+00 : f32
    %389 = vector.broadcast %cst_98 : f32 to vector<8x128xf32>
    %390 = arith.subf %389, %383 : vector<8x128xf32>
    %391 = arith.mulf %390, %388 : vector<8x128xf32>
    %392 = arith.mulf %383, %367 : vector<8x128xf32>
    %393 = arith.addf %391, %392 : vector<8x128xf32>
    %394 = vector.extract_strided_slice %357 {offsets = [8, 384], sizes = [8, 384], strides = [1, 1]} : vector<16x768xf32> to vector<8x384xf32>
    %395 = vector.extract_strided_slice %353 {offsets = [8, 0], sizes = [8, 128], strides = [1, 1]} : vector<16x128xf32> to vector<8x128xf32>
    %396 = vector.extract_strided_slice %365 {offsets = [0, 0], sizes = [8, 128], strides = [1, 1]} : vector<8x384xf32> to vector<8x128xf32>
    %397 = vector.extract_strided_slice %394 {offsets = [0, 0], sizes = [8, 128], strides = [1, 1]} : vector<8x384xf32> to vector<8x128xf32>
    %398 = arith.addf %396, %397 : vector<8x128xf32>
    %399 = arith.negf %398 : vector<8x128xf32>
    %400 = math.exp %399 : vector<8x128xf32>
    %cst_99 = arith.constant 1.000000e+00 : f32
    %401 = vector.broadcast %cst_99 : f32 to vector<8x128xf32>
    %402 = arith.addf %401, %400 : vector<8x128xf32>
    %403 = arith.divf %401, %402 : vector<8x128xf32>
    %404 = vector.extract_strided_slice %365 {offsets = [0, 128], sizes = [8, 128], strides = [1, 1]} : vector<8x384xf32> to vector<8x128xf32>
    %405 = vector.extract_strided_slice %394 {offsets = [0, 128], sizes = [8, 128], strides = [1, 1]} : vector<8x384xf32> to vector<8x128xf32>
    %406 = arith.addf %404, %405 : vector<8x128xf32>
    %407 = arith.negf %406 : vector<8x128xf32>
    %408 = math.exp %407 : vector<8x128xf32>
    %cst_100 = arith.constant 1.000000e+00 : f32
    %409 = vector.broadcast %cst_100 : f32 to vector<8x128xf32>
    %410 = arith.addf %409, %408 : vector<8x128xf32>
    %411 = arith.divf %409, %410 : vector<8x128xf32>
    %412 = vector.extract_strided_slice %365 {offsets = [0, 256], sizes = [8, 128], strides = [1, 1]} : vector<8x384xf32> to vector<8x128xf32>
    %413 = vector.extract_strided_slice %394 {offsets = [0, 256], sizes = [8, 128], strides = [1, 1]} : vector<8x384xf32> to vector<8x128xf32>
    %414 = arith.mulf %403, %413 : vector<8x128xf32>
    %415 = arith.addf %412, %414 : vector<8x128xf32>
    %416 = math.tanh %415 : vector<8x128xf32>
    %cst_101 = arith.constant 1.000000e+00 : f32
    %417 = vector.broadcast %cst_101 : f32 to vector<8x128xf32>
    %418 = arith.subf %417, %411 : vector<8x128xf32>
    %419 = arith.mulf %418, %416 : vector<8x128xf32>
    %420 = arith.mulf %411, %395 : vector<8x128xf32>
    %421 = arith.addf %419, %420 : vector<8x128xf32>
    %422 = vector.broadcast %c4_i32 : i32 to vector<8x1xi32>
    %423 = arith.cmpi slt, %422, %11 : vector<8x1xi32>
    %424 = vector.extract_strided_slice %353 {offsets = [0, 0], sizes = [8, 128], strides = [1, 1]} : vector<16x128xf32> to vector<8x128xf32>
    %425 = vector.shape_cast %423 : vector<8x1xi1> to vector<8x1xi1>
    %426 = vector.broadcast %425 : vector<8x1xi1> to vector<8x128xi1>
    %427 = arith.select %426, %393, %424 : vector<8x128xi1>, vector<8x128xf32>
    %c0_102 = arith.constant 0 : index
    %c0_103 = arith.constant 0 : index
    %428 = vector.load %arg11[%c0_102, %c0_103] : memref<16x128xf32, #tpu.memory_space<vmem>>, vector<8x128xf32>
    tpu.vector_store %arg11[%c0_102, %c0_103], %427 {strides = array<i32>} : memref<16x128xf32, #tpu.memory_space<vmem>>, vector<8x128xf32>,
    %429 = vector.broadcast %352 : i32 to vector<8x1xi32>
    %430 = arith.cmpi slt, %429, %11 : vector<8x1xi32>
    %431 = vector.extract_strided_slice %353 {offsets = [8, 0], sizes = [8, 128], strides = [1, 1]} : vector<16x128xf32> to vector<8x128xf32>
    %432 = vector.shape_cast %430 : vector<8x1xi1> to vector<8x1xi1>
    %433 = vector.broadcast %432 : vector<8x1xi1> to vector<8x128xi1>
    %434 = arith.select %433, %421, %431 : vector<8x128xi1>, vector<8x128xf32>
    %c8_104 = arith.constant 8 : index
    %c0_105 = arith.constant 0 : index
    %435 = vector.load %arg11[%c8_104, %c0_105] : memref<16x128xf32, #tpu.memory_space<vmem>>, vector<8x128xf32>
    tpu.vector_store %arg11[%c8_104, %c0_105], %434 {strides = array<i32>} : memref<16x128xf32, #tpu.memory_space<vmem>>, vector<8x128xf32>,
    %c5_i32 = arith.constant 5 : i32
    %c7_i32_106 = arith.constant 7 : i32
    %436 = arith.subi %c7_i32_106, %c5_i32 : i32
    %c0_107 = arith.constant 0 : index
    %c0_108 = arith.constant 0 : index
    %437 = vector.load %arg11[%c0_107, %c0_108] : memref<16x128xf32, #tpu.memory_space<vmem>>, vector<16x128xf32>
    %438 = arith.truncf %437 : vector<16x128xf32> to vector<16x128xbf16>
    %cst_109 = arith.constant dense<0.000000e+00> : vector<16x768xf32>
    %439 = tpu.matmul %438, %12, %cst_109 {dimension_numbers = #tpu.dot_dimension_numbers<[1], [0], [0], [1], [0, 0, 1, 1], [], []>} : vector<16x128xbf16>, vector<128x768xbf16>, vector<16x768xf32> -> vector<16x768xf32>
    %440 = vector.broadcast %13 : vector<1x768xf32> to vector<16x768xf32>
    %441 = arith.addf %439, %440 : vector<16x768xf32>
    %442 = arith.index_cast %c5_i32 : i32 to index
    %c0_110 = arith.constant 0 : index
    %c0_111 = arith.constant 0 : index
    %443 = vector.load %arg10[%442, %c0_110, %c0_111] : memref<8x8x768xbf16, #tpu.memory_space<vmem>>, vector<1x8x384xbf16>
    %444 = vector.shape_cast %443 : vector<1x8x384xbf16> to vector<8x384xbf16>
    %445 = arith.extf %444 : vector<8x384xbf16> to vector<8x384xf32>
    %446 = arith.index_cast %436 : i32 to index
    %c0_112 = arith.constant 0 : index
    %c384_113 = arith.constant 384 : index
    %447 = vector.load %arg10[%446, %c0_112, %c384_113] : memref<8x8x768xbf16, #tpu.memory_space<vmem>>, vector<1x8x384xbf16>
    %448 = vector.shape_cast %447 : vector<1x8x384xbf16> to vector<8x384xbf16>
    %449 = arith.extf %448 : vector<8x384xbf16> to vector<8x384xf32>
    %450 = vector.extract_strided_slice %441 {offsets = [0, 0], sizes = [8, 384], strides = [1, 1]} : vector<16x768xf32> to vector<8x384xf32>
    %451 = vector.extract_strided_slice %437 {offsets = [0, 0], sizes = [8, 128], strides = [1, 1]} : vector<16x128xf32> to vector<8x128xf32>
    %452 = vector.extract_strided_slice %445 {offsets = [0, 0], sizes = [8, 128], strides = [1, 1]} : vector<8x384xf32> to vector<8x128xf32>
    %453 = vector.extract_strided_slice %450 {offsets = [0, 0], sizes = [8, 128], strides = [1, 1]} : vector<8x384xf32> to vector<8x128xf32>
    %454 = arith.addf %452, %453 : vector<8x128xf32>
    %455 = arith.negf %454 : vector<8x128xf32>
    %456 = math.exp %455 : vector<8x128xf32>
    %cst_114 = arith.constant 1.000000e+00 : f32
    %457 = vector.broadcast %cst_114 : f32 to vector<8x128xf32>
    %458 = arith.addf %457, %456 : vector<8x128xf32>
    %459 = arith.divf %457, %458 : vector<8x128xf32>
    %460 = vector.extract_strided_slice %445 {offsets = [0, 128], sizes = [8, 128], strides = [1, 1]} : vector<8x384xf32> to vector<8x128xf32>
    %461 = vector.extract_strided_slice %450 {offsets = [0, 128], sizes = [8, 128], strides = [1, 1]} : vector<8x384xf32> to vector<8x128xf32>
    %462 = arith.addf %460, %461 : vector<8x128xf32>
    %463 = arith.negf %462 : vector<8x128xf32>
    %464 = math.exp %463 : vector<8x128xf32>
    %cst_115 = arith.constant 1.000000e+00 : f32
    %465 = vector.broadcast %cst_115 : f32 to vector<8x128xf32>
    %466 = arith.addf %465, %464 : vector<8x128xf32>
    %467 = arith.divf %465, %466 : vector<8x128xf32>
    %468 = vector.extract_strided_slice %445 {offsets = [0, 256], sizes = [8, 128], strides = [1, 1]} : vector<8x384xf32> to vector<8x128xf32>
    %469 = vector.extract_strided_slice %450 {offsets = [0, 256], sizes = [8, 128], strides = [1, 1]} : vector<8x384xf32> to vector<8x128xf32>
    %470 = arith.mulf %459, %469 : vector<8x128xf32>
    %471 = arith.addf %468, %470 : vector<8x128xf32>
    %472 = math.tanh %471 : vector<8x128xf32>
    %cst_116 = arith.constant 1.000000e+00 : f32
    %473 = vector.broadcast %cst_116 : f32 to vector<8x128xf32>
    %474 = arith.subf %473, %467 : vector<8x128xf32>
    %475 = arith.mulf %474, %472 : vector<8x128xf32>
    %476 = arith.mulf %467, %451 : vector<8x128xf32>
    %477 = arith.addf %475, %476 : vector<8x128xf32>
    %478 = vector.extract_strided_slice %441 {offsets = [8, 384], sizes = [8, 384], strides = [1, 1]} : vector<16x768xf32> to vector<8x384xf32>
    %479 = vector.extract_strided_slice %437 {offsets = [8, 0], sizes = [8, 128], strides = [1, 1]} : vector<16x128xf32> to vector<8x128xf32>
    %480 = vector.extract_strided_slice %449 {offsets = [0, 0], sizes = [8, 128], strides = [1, 1]} : vector<8x384xf32> to vector<8x128xf32>
    %481 = vector.extract_strided_slice %478 {offsets = [0, 0], sizes = [8, 128], strides = [1, 1]} : vector<8x384xf32> to vector<8x128xf32>
    %482 = arith.addf %480, %481 : vector<8x128xf32>
    %483 = arith.negf %482 : vector<8x128xf32>
    %484 = math.exp %483 : vector<8x128xf32>
    %cst_117 = arith.constant 1.000000e+00 : f32
    %485 = vector.broadcast %cst_117 : f32 to vector<8x128xf32>
    %486 = arith.addf %485, %484 : vector<8x128xf32>
    %487 = arith.divf %485, %486 : vector<8x128xf32>
    %488 = vector.extract_strided_slice %449 {offsets = [0, 128], sizes = [8, 128], strides = [1, 1]} : vector<8x384xf32> to vector<8x128xf32>
    %489 = vector.extract_strided_slice %478 {offsets = [0, 128], sizes = [8, 128], strides = [1, 1]} : vector<8x384xf32> to vector<8x128xf32>
    %490 = arith.addf %488, %489 : vector<8x128xf32>
    %491 = arith.negf %490 : vector<8x128xf32>
    %492 = math.exp %491 : vector<8x128xf32>
    %cst_118 = arith.constant 1.000000e+00 : f32
    %493 = vector.broadcast %cst_118 : f32 to vector<8x128xf32>
    %494 = arith.addf %493, %492 : vector<8x128xf32>
    %495 = arith.divf %493, %494 : vector<8x128xf32>
    %496 = vector.extract_strided_slice %449 {offsets = [0, 256], sizes = [8, 128], strides = [1, 1]} : vector<8x384xf32> to vector<8x128xf32>
    %497 = vector.extract_strided_slice %478 {offsets = [0, 256], sizes = [8, 128], strides = [1, 1]} : vector<8x384xf32> to vector<8x128xf32>
    %498 = arith.mulf %487, %497 : vector<8x128xf32>
    %499 = arith.addf %496, %498 : vector<8x128xf32>
    %500 = math.tanh %499 : vector<8x128xf32>
    %cst_119 = arith.constant 1.000000e+00 : f32
    %501 = vector.broadcast %cst_119 : f32 to vector<8x128xf32>
    %502 = arith.subf %501, %495 : vector<8x128xf32>
    %503 = arith.mulf %502, %500 : vector<8x128xf32>
    %504 = arith.mulf %495, %479 : vector<8x128xf32>
    %505 = arith.addf %503, %504 : vector<8x128xf32>
    %506 = vector.broadcast %c5_i32 : i32 to vector<8x1xi32>
    %507 = arith.cmpi slt, %506, %11 : vector<8x1xi32>
    %508 = vector.extract_strided_slice %437 {offsets = [0, 0], sizes = [8, 128], strides = [1, 1]} : vector<16x128xf32> to vector<8x128xf32>
    %509 = vector.shape_cast %507 : vector<8x1xi1> to vector<8x1xi1>
    %510 = vector.broadcast %509 : vector<8x1xi1> to vector<8x128xi1>
    %511 = arith.select %510, %477, %508 : vector<8x128xi1>, vector<8x128xf32>
    %c0_120 = arith.constant 0 : index
    %c0_121 = arith.constant 0 : index
    %512 = vector.load %arg11[%c0_120, %c0_121] : memref<16x128xf32, #tpu.memory_space<vmem>>, vector<8x128xf32>
    tpu.vector_store %arg11[%c0_120, %c0_121], %511 {strides = array<i32>} : memref<16x128xf32, #tpu.memory_space<vmem>>, vector<8x128xf32>,
    %513 = vector.broadcast %436 : i32 to vector<8x1xi32>
    %514 = arith.cmpi slt, %513, %11 : vector<8x1xi32>
    %515 = vector.extract_strided_slice %437 {offsets = [8, 0], sizes = [8, 128], strides = [1, 1]} : vector<16x128xf32> to vector<8x128xf32>
    %516 = vector.shape_cast %514 : vector<8x1xi1> to vector<8x1xi1>
    %517 = vector.broadcast %516 : vector<8x1xi1> to vector<8x128xi1>
    %518 = arith.select %517, %505, %515 : vector<8x128xi1>, vector<8x128xf32>
    %c8_122 = arith.constant 8 : index
    %c0_123 = arith.constant 0 : index
    %519 = vector.load %arg11[%c8_122, %c0_123] : memref<16x128xf32, #tpu.memory_space<vmem>>, vector<8x128xf32>
    tpu.vector_store %arg11[%c8_122, %c0_123], %518 {strides = array<i32>} : memref<16x128xf32, #tpu.memory_space<vmem>>, vector<8x128xf32>,
    %c6_i32 = arith.constant 6 : i32
    %c7_i32_124 = arith.constant 7 : i32
    %520 = arith.subi %c7_i32_124, %c6_i32 : i32
    %c0_125 = arith.constant 0 : index
    %c0_126 = arith.constant 0 : index
    %521 = vector.load %arg11[%c0_125, %c0_126] : memref<16x128xf32, #tpu.memory_space<vmem>>, vector<16x128xf32>
    %522 = arith.truncf %521 : vector<16x128xf32> to vector<16x128xbf16>
    %cst_127 = arith.constant dense<0.000000e+00> : vector<16x768xf32>
    %523 = tpu.matmul %522, %12, %cst_127 {dimension_numbers = #tpu.dot_dimension_numbers<[1], [0], [0], [1], [0, 0, 1, 1], [], []>} : vector<16x128xbf16>, vector<128x768xbf16>, vector<16x768xf32> -> vector<16x768xf32>
    %524 = vector.broadcast %13 : vector<1x768xf32> to vector<16x768xf32>
    %525 = arith.addf %523, %524 : vector<16x768xf32>
    %526 = arith.index_cast %c6_i32 : i32 to index
    %c0_128 = arith.constant 0 : index
    %c0_129 = arith.constant 0 : index
    %527 = vector.load %arg10[%526, %c0_128, %c0_129] : memref<8x8x768xbf16, #tpu.memory_space<vmem>>, vector<1x8x384xbf16>
    %528 = vector.shape_cast %527 : vector<1x8x384xbf16> to vector<8x384xbf16>
    %529 = arith.extf %528 : vector<8x384xbf16> to vector<8x384xf32>
    %530 = arith.index_cast %520 : i32 to index
    %c0_130 = arith.constant 0 : index
    %c384_131 = arith.constant 384 : index
    %531 = vector.load %arg10[%530, %c0_130, %c384_131] : memref<8x8x768xbf16, #tpu.memory_space<vmem>>, vector<1x8x384xbf16>
    %532 = vector.shape_cast %531 : vector<1x8x384xbf16> to vector<8x384xbf16>
    %533 = arith.extf %532 : vector<8x384xbf16> to vector<8x384xf32>
    %534 = vector.extract_strided_slice %525 {offsets = [0, 0], sizes = [8, 384], strides = [1, 1]} : vector<16x768xf32> to vector<8x384xf32>
    %535 = vector.extract_strided_slice %521 {offsets = [0, 0], sizes = [8, 128], strides = [1, 1]} : vector<16x128xf32> to vector<8x128xf32>
    %536 = vector.extract_strided_slice %529 {offsets = [0, 0], sizes = [8, 128], strides = [1, 1]} : vector<8x384xf32> to vector<8x128xf32>
    %537 = vector.extract_strided_slice %534 {offsets = [0, 0], sizes = [8, 128], strides = [1, 1]} : vector<8x384xf32> to vector<8x128xf32>
    %538 = arith.addf %536, %537 : vector<8x128xf32>
    %539 = arith.negf %538 : vector<8x128xf32>
    %540 = math.exp %539 : vector<8x128xf32>
    %cst_132 = arith.constant 1.000000e+00 : f32
    %541 = vector.broadcast %cst_132 : f32 to vector<8x128xf32>
    %542 = arith.addf %541, %540 : vector<8x128xf32>
    %543 = arith.divf %541, %542 : vector<8x128xf32>
    %544 = vector.extract_strided_slice %529 {offsets = [0, 128], sizes = [8, 128], strides = [1, 1]} : vector<8x384xf32> to vector<8x128xf32>
    %545 = vector.extract_strided_slice %534 {offsets = [0, 128], sizes = [8, 128], strides = [1, 1]} : vector<8x384xf32> to vector<8x128xf32>
    %546 = arith.addf %544, %545 : vector<8x128xf32>
    %547 = arith.negf %546 : vector<8x128xf32>
    %548 = math.exp %547 : vector<8x128xf32>
    %cst_133 = arith.constant 1.000000e+00 : f32
    %549 = vector.broadcast %cst_133 : f32 to vector<8x128xf32>
    %550 = arith.addf %549, %548 : vector<8x128xf32>
    %551 = arith.divf %549, %550 : vector<8x128xf32>
    %552 = vector.extract_strided_slice %529 {offsets = [0, 256], sizes = [8, 128], strides = [1, 1]} : vector<8x384xf32> to vector<8x128xf32>
    %553 = vector.extract_strided_slice %534 {offsets = [0, 256], sizes = [8, 128], strides = [1, 1]} : vector<8x384xf32> to vector<8x128xf32>
    %554 = arith.mulf %543, %553 : vector<8x128xf32>
    %555 = arith.addf %552, %554 : vector<8x128xf32>
    %556 = math.tanh %555 : vector<8x128xf32>
    %cst_134 = arith.constant 1.000000e+00 : f32
    %557 = vector.broadcast %cst_134 : f32 to vector<8x128xf32>
    %558 = arith.subf %557, %551 : vector<8x128xf32>
    %559 = arith.mulf %558, %556 : vector<8x128xf32>
    %560 = arith.mulf %551, %535 : vector<8x128xf32>
    %561 = arith.addf %559, %560 : vector<8x128xf32>
    %562 = vector.extract_strided_slice %525 {offsets = [8, 384], sizes = [8, 384], strides = [1, 1]} : vector<16x768xf32> to vector<8x384xf32>
    %563 = vector.extract_strided_slice %521 {offsets = [8, 0], sizes = [8, 128], strides = [1, 1]} : vector<16x128xf32> to vector<8x128xf32>
    %564 = vector.extract_strided_slice %533 {offsets = [0, 0], sizes = [8, 128], strides = [1, 1]} : vector<8x384xf32> to vector<8x128xf32>
    %565 = vector.extract_strided_slice %562 {offsets = [0, 0], sizes = [8, 128], strides = [1, 1]} : vector<8x384xf32> to vector<8x128xf32>
    %566 = arith.addf %564, %565 : vector<8x128xf32>
    %567 = arith.negf %566 : vector<8x128xf32>
    %568 = math.exp %567 : vector<8x128xf32>
    %cst_135 = arith.constant 1.000000e+00 : f32
    %569 = vector.broadcast %cst_135 : f32 to vector<8x128xf32>
    %570 = arith.addf %569, %568 : vector<8x128xf32>
    %571 = arith.divf %569, %570 : vector<8x128xf32>
    %572 = vector.extract_strided_slice %533 {offsets = [0, 128], sizes = [8, 128], strides = [1, 1]} : vector<8x384xf32> to vector<8x128xf32>
    %573 = vector.extract_strided_slice %562 {offsets = [0, 128], sizes = [8, 128], strides = [1, 1]} : vector<8x384xf32> to vector<8x128xf32>
    %574 = arith.addf %572, %573 : vector<8x128xf32>
    %575 = arith.negf %574 : vector<8x128xf32>
    %576 = math.exp %575 : vector<8x128xf32>
    %cst_136 = arith.constant 1.000000e+00 : f32
    %577 = vector.broadcast %cst_136 : f32 to vector<8x128xf32>
    %578 = arith.addf %577, %576 : vector<8x128xf32>
    %579 = arith.divf %577, %578 : vector<8x128xf32>
    %580 = vector.extract_strided_slice %533 {offsets = [0, 256], sizes = [8, 128], strides = [1, 1]} : vector<8x384xf32> to vector<8x128xf32>
    %581 = vector.extract_strided_slice %562 {offsets = [0, 256], sizes = [8, 128], strides = [1, 1]} : vector<8x384xf32> to vector<8x128xf32>
    %582 = arith.mulf %571, %581 : vector<8x128xf32>
    %583 = arith.addf %580, %582 : vector<8x128xf32>
    %584 = math.tanh %583 : vector<8x128xf32>
    %cst_137 = arith.constant 1.000000e+00 : f32
    %585 = vector.broadcast %cst_137 : f32 to vector<8x128xf32>
    %586 = arith.subf %585, %579 : vector<8x128xf32>
    %587 = arith.mulf %586, %584 : vector<8x128xf32>
    %588 = arith.mulf %579, %563 : vector<8x128xf32>
    %589 = arith.addf %587, %588 : vector<8x128xf32>
    %590 = vector.broadcast %c6_i32 : i32 to vector<8x1xi32>
    %591 = arith.cmpi slt, %590, %11 : vector<8x1xi32>
    %592 = vector.extract_strided_slice %521 {offsets = [0, 0], sizes = [8, 128], strides = [1, 1]} : vector<16x128xf32> to vector<8x128xf32>
    %593 = vector.shape_cast %591 : vector<8x1xi1> to vector<8x1xi1>
    %594 = vector.broadcast %593 : vector<8x1xi1> to vector<8x128xi1>
    %595 = arith.select %594, %561, %592 : vector<8x128xi1>, vector<8x128xf32>
    %c0_138 = arith.constant 0 : index
    %c0_139 = arith.constant 0 : index
    %596 = vector.load %arg11[%c0_138, %c0_139] : memref<16x128xf32, #tpu.memory_space<vmem>>, vector<8x128xf32>
    tpu.vector_store %arg11[%c0_138, %c0_139], %595 {strides = array<i32>} : memref<16x128xf32, #tpu.memory_space<vmem>>, vector<8x128xf32>,
    %597 = vector.broadcast %520 : i32 to vector<8x1xi32>
    %598 = arith.cmpi slt, %597, %11 : vector<8x1xi32>
    %599 = vector.extract_strided_slice %521 {offsets = [8, 0], sizes = [8, 128], strides = [1, 1]} : vector<16x128xf32> to vector<8x128xf32>
    %600 = vector.shape_cast %598 : vector<8x1xi1> to vector<8x1xi1>
    %601 = vector.broadcast %600 : vector<8x1xi1> to vector<8x128xi1>
    %602 = arith.select %601, %589, %599 : vector<8x128xi1>, vector<8x128xf32>
    %c8_140 = arith.constant 8 : index
    %c0_141 = arith.constant 0 : index
    %603 = vector.load %arg11[%c8_140, %c0_141] : memref<16x128xf32, #tpu.memory_space<vmem>>, vector<8x128xf32>
    tpu.vector_store %arg11[%c8_140, %c0_141], %602 {strides = array<i32>} : memref<16x128xf32, #tpu.memory_space<vmem>>, vector<8x128xf32>,
    %c7_i32_142 = arith.constant 7 : i32
    %c7_i32_143 = arith.constant 7 : i32
    %604 = arith.subi %c7_i32_143, %c7_i32_142 : i32
    %c0_144 = arith.constant 0 : index
    %c0_145 = arith.constant 0 : index
    %605 = vector.load %arg11[%c0_144, %c0_145] : memref<16x128xf32, #tpu.memory_space<vmem>>, vector<16x128xf32>
    %606 = arith.truncf %605 : vector<16x128xf32> to vector<16x128xbf16>
    %cst_146 = arith.constant dense<0.000000e+00> : vector<16x768xf32>
    %607 = tpu.matmul %606, %12, %cst_146 {dimension_numbers = #tpu.dot_dimension_numbers<[1], [0], [0], [1], [0, 0, 1, 1], [], []>} : vector<16x128xbf16>, vector<128x768xbf16>, vector<16x768xf32> -> vector<16x768xf32>
    %608 = vector.broadcast %13 : vector<1x768xf32> to vector<16x768xf32>
    %609 = arith.addf %607, %608 : vector<16x768xf32>
    %610 = arith.index_cast %c7_i32_142 : i32 to index
    %c0_147 = arith.constant 0 : index
    %c0_148 = arith.constant 0 : index
    %611 = vector.load %arg10[%610, %c0_147, %c0_148] : memref<8x8x768xbf16, #tpu.memory_space<vmem>>, vector<1x8x384xbf16>
    %612 = vector.shape_cast %611 : vector<1x8x384xbf16> to vector<8x384xbf16>
    %613 = arith.extf %612 : vector<8x384xbf16> to vector<8x384xf32>
    %614 = arith.index_cast %604 : i32 to index
    %c0_149 = arith.constant 0 : index
    %c384_150 = arith.constant 384 : index
    %615 = vector.load %arg10[%614, %c0_149, %c384_150] : memref<8x8x768xbf16, #tpu.memory_space<vmem>>, vector<1x8x384xbf16>
    %616 = vector.shape_cast %615 : vector<1x8x384xbf16> to vector<8x384xbf16>
    %617 = arith.extf %616 : vector<8x384xbf16> to vector<8x384xf32>
    %618 = vector.extract_strided_slice %609 {offsets = [0, 0], sizes = [8, 384], strides = [1, 1]} : vector<16x768xf32> to vector<8x384xf32>
    %619 = vector.extract_strided_slice %605 {offsets = [0, 0], sizes = [8, 128], strides = [1, 1]} : vector<16x128xf32> to vector<8x128xf32>
    %620 = vector.extract_strided_slice %613 {offsets = [0, 0], sizes = [8, 128], strides = [1, 1]} : vector<8x384xf32> to vector<8x128xf32>
    %621 = vector.extract_strided_slice %618 {offsets = [0, 0], sizes = [8, 128], strides = [1, 1]} : vector<8x384xf32> to vector<8x128xf32>
    %622 = arith.addf %620, %621 : vector<8x128xf32>
    %623 = arith.negf %622 : vector<8x128xf32>
    %624 = math.exp %623 : vector<8x128xf32>
    %cst_151 = arith.constant 1.000000e+00 : f32
    %625 = vector.broadcast %cst_151 : f32 to vector<8x128xf32>
    %626 = arith.addf %625, %624 : vector<8x128xf32>
    %627 = arith.divf %625, %626 : vector<8x128xf32>
    %628 = vector.extract_strided_slice %613 {offsets = [0, 128], sizes = [8, 128], strides = [1, 1]} : vector<8x384xf32> to vector<8x128xf32>
    %629 = vector.extract_strided_slice %618 {offsets = [0, 128], sizes = [8, 128], strides = [1, 1]} : vector<8x384xf32> to vector<8x128xf32>
    %630 = arith.addf %628, %629 : vector<8x128xf32>
    %631 = arith.negf %630 : vector<8x128xf32>
    %632 = math.exp %631 : vector<8x128xf32>
    %cst_152 = arith.constant 1.000000e+00 : f32
    %633 = vector.broadcast %cst_152 : f32 to vector<8x128xf32>
    %634 = arith.addf %633, %632 : vector<8x128xf32>
    %635 = arith.divf %633, %634 : vector<8x128xf32>
    %636 = vector.extract_strided_slice %613 {offsets = [0, 256], sizes = [8, 128], strides = [1, 1]} : vector<8x384xf32> to vector<8x128xf32>
    %637 = vector.extract_strided_slice %618 {offsets = [0, 256], sizes = [8, 128], strides = [1, 1]} : vector<8x384xf32> to vector<8x128xf32>
    %638 = arith.mulf %627, %637 : vector<8x128xf32>
    %639 = arith.addf %636, %638 : vector<8x128xf32>
    %640 = math.tanh %639 : vector<8x128xf32>
    %cst_153 = arith.constant 1.000000e+00 : f32
    %641 = vector.broadcast %cst_153 : f32 to vector<8x128xf32>
    %642 = arith.subf %641, %635 : vector<8x128xf32>
    %643 = arith.mulf %642, %640 : vector<8x128xf32>
    %644 = arith.mulf %635, %619 : vector<8x128xf32>
    %645 = arith.addf %643, %644 : vector<8x128xf32>
    %646 = vector.extract_strided_slice %609 {offsets = [8, 384], sizes = [8, 384], strides = [1, 1]} : vector<16x768xf32> to vector<8x384xf32>
    %647 = vector.extract_strided_slice %605 {offsets = [8, 0], sizes = [8, 128], strides = [1, 1]} : vector<16x128xf32> to vector<8x128xf32>
    %648 = vector.extract_strided_slice %617 {offsets = [0, 0], sizes = [8, 128], strides = [1, 1]} : vector<8x384xf32> to vector<8x128xf32>
    %649 = vector.extract_strided_slice %646 {offsets = [0, 0], sizes = [8, 128], strides = [1, 1]} : vector<8x384xf32> to vector<8x128xf32>
    %650 = arith.addf %648, %649 : vector<8x128xf32>
    %651 = arith.negf %650 : vector<8x128xf32>
    %652 = math.exp %651 : vector<8x128xf32>
    %cst_154 = arith.constant 1.000000e+00 : f32
    %653 = vector.broadcast %cst_154 : f32 to vector<8x128xf32>
    %654 = arith.addf %653, %652 : vector<8x128xf32>
    %655 = arith.divf %653, %654 : vector<8x128xf32>
    %656 = vector.extract_strided_slice %617 {offsets = [0, 128], sizes = [8, 128], strides = [1, 1]} : vector<8x384xf32> to vector<8x128xf32>
    %657 = vector.extract_strided_slice %646 {offsets = [0, 128], sizes = [8, 128], strides = [1, 1]} : vector<8x384xf32> to vector<8x128xf32>
    %658 = arith.addf %656, %657 : vector<8x128xf32>
    %659 = arith.negf %658 : vector<8x128xf32>
    %660 = math.exp %659 : vector<8x128xf32>
    %cst_155 = arith.constant 1.000000e+00 : f32
    %661 = vector.broadcast %cst_155 : f32 to vector<8x128xf32>
    %662 = arith.addf %661, %660 : vector<8x128xf32>
    %663 = arith.divf %661, %662 : vector<8x128xf32>
    %664 = vector.extract_strided_slice %617 {offsets = [0, 256], sizes = [8, 128], strides = [1, 1]} : vector<8x384xf32> to vector<8x128xf32>
    %665 = vector.extract_strided_slice %646 {offsets = [0, 256], sizes = [8, 128], strides = [1, 1]} : vector<8x384xf32> to vector<8x128xf32>
    %666 = arith.mulf %655, %665 : vector<8x128xf32>
    %667 = arith.addf %664, %666 : vector<8x128xf32>
    %668 = math.tanh %667 : vector<8x128xf32>
    %cst_156 = arith.constant 1.000000e+00 : f32
    %669 = vector.broadcast %cst_156 : f32 to vector<8x128xf32>
    %670 = arith.subf %669, %663 : vector<8x128xf32>
    %671 = arith.mulf %670, %668 : vector<8x128xf32>
    %672 = arith.mulf %663, %647 : vector<8x128xf32>
    %673 = arith.addf %671, %672 : vector<8x128xf32>
    %674 = vector.broadcast %c7_i32_142 : i32 to vector<8x1xi32>
    %675 = arith.cmpi slt, %674, %11 : vector<8x1xi32>
    %676 = vector.extract_strided_slice %605 {offsets = [0, 0], sizes = [8, 128], strides = [1, 1]} : vector<16x128xf32> to vector<8x128xf32>
    %677 = vector.shape_cast %675 : vector<8x1xi1> to vector<8x1xi1>
    %678 = vector.broadcast %677 : vector<8x1xi1> to vector<8x128xi1>
    %679 = arith.select %678, %645, %676 : vector<8x128xi1>, vector<8x128xf32>
    %c0_157 = arith.constant 0 : index
    %c0_158 = arith.constant 0 : index
    %680 = vector.load %arg11[%c0_157, %c0_158] : memref<16x128xf32, #tpu.memory_space<vmem>>, vector<8x128xf32>
    tpu.vector_store %arg11[%c0_157, %c0_158], %679 {strides = array<i32>} : memref<16x128xf32, #tpu.memory_space<vmem>>, vector<8x128xf32>,
    %681 = vector.broadcast %604 : i32 to vector<8x1xi32>
    %682 = arith.cmpi slt, %681, %11 : vector<8x1xi32>
    %683 = vector.extract_strided_slice %605 {offsets = [8, 0], sizes = [8, 128], strides = [1, 1]} : vector<16x128xf32> to vector<8x128xf32>
    %684 = vector.shape_cast %682 : vector<8x1xi1> to vector<8x1xi1>
    %685 = vector.broadcast %684 : vector<8x1xi1> to vector<8x128xi1>
    %686 = arith.select %685, %673, %683 : vector<8x128xi1>, vector<8x128xf32>
    %c8_159 = arith.constant 8 : index
    %c0_160 = arith.constant 0 : index
    %687 = vector.load %arg11[%c8_159, %c0_160] : memref<16x128xf32, #tpu.memory_space<vmem>>, vector<8x128xf32>
    tpu.vector_store %arg11[%c8_159, %c0_160], %686 {strides = array<i32>} : memref<16x128xf32, #tpu.memory_space<vmem>>, vector<8x128xf32>,
    %c8_i32 = arith.constant 8 : i32
    %c0_161 = arith.constant 0 : index
    %c0_162 = arith.constant 0 : index
    %688 = vector.load %arg11[%c0_161, %c0_162] : memref<16x128xf32, #tpu.memory_space<vmem>>, vector<8x128xf32>
    %c8_163 = arith.constant 8 : index
    %c0_164 = arith.constant 0 : index
    %689 = vector.load %arg11[%c8_163, %c0_164] : memref<16x128xf32, #tpu.memory_space<vmem>>, vector<8x128xf32>
    %c0_165 = arith.constant 0 : index
    %c0_166 = arith.constant 0 : index
    %690 = vector.load %arg7[%c0_165, %c0_166] : memref<256x128xbf16, #tpu.memory_space<vmem>>, vector<256x128xbf16>
    %691 = arith.truncf %689 : vector<8x128xf32> to vector<8x128xbf16>
    %692 = vector.extract_strided_slice %690 {offsets = [0, 0], sizes = [128, 128], strides = [1, 1]} : vector<256x128xbf16> to vector<128x128xbf16>
    %cst_167 = arith.constant dense<0.000000e+00> : vector<8x128xf32>
    %693 = tpu.matmul %691, %692, %cst_167 {dimension_numbers = #tpu.dot_dimension_numbers<[1], [0], [0], [1], [0, 0, 1, 1], [], []>} : vector<8x128xbf16>, vector<128x128xbf16>, vector<8x128xf32> -> vector<8x128xf32>
    %694 = arith.truncf %688 : vector<8x128xf32> to vector<8x128xbf16>
    %695 = vector.extract_strided_slice %690 {offsets = [128, 0], sizes = [128, 128], strides = [1, 1]} : vector<256x128xbf16> to vector<128x128xbf16>
    %cst_168 = arith.constant dense<0.000000e+00> : vector<8x128xf32>
    %696 = tpu.matmul %694, %695, %cst_168 {dimension_numbers = #tpu.dot_dimension_numbers<[1], [0], [0], [1], [0, 0, 1, 1], [], []>} : vector<8x128xbf16>, vector<128x128xbf16>, vector<8x128xf32> -> vector<8x128xf32>
    %697 = arith.addf %693, %696 : vector<8x128xf32>
    %c0_169 = arith.constant 0 : index
    %c0_170 = arith.constant 0 : index
    %698 = vector.load %arg8[%c0_169, %c0_170] : memref<1x128xf32, #tpu.memory_space<vmem>>, vector<1x128xf32>
    %699 = vector.broadcast %698 : vector<1x128xf32> to vector<8x128xf32>
    %700 = arith.addf %697, %699 : vector<8x128xf32>
    %c0_171 = arith.constant 0 : index
    %c0_172 = arith.constant 0 : index
    %701 = vector.load %arg9[%c0_171, %c0_172] : memref<8x128xf32, #tpu.memory_space<vmem>>, vector<8x128xf32>
    tpu.vector_store %arg9[%c0_171, %c0_172], %700 {strides = array<i32>} : memref<8x128xf32, #tpu.memory_space<vmem>>, vector<8x128xf32>,
    return
  }
  func.func @transform_0(%arg0: i32) -> (i32, i32, i32, i32) {
    %c0_i32 = arith.constant 0 : i32
    %c0_i32_0 = arith.constant 0 : i32
    %c0_i32_1 = arith.constant 0 : i32
    %c0_i32_2 = arith.constant 0 : i32
    return %arg0, %c0_i32, %c0_i32_0, %c0_i32_1 : i32, i32, i32, i32
  }
  func.func @transform_1(%arg0: i32) -> (i32, i32) {
    %c0_i32 = arith.constant 0 : i32
    %c0_i32_0 = arith.constant 0 : i32
    return %arg0, %c0_i32 : i32, i32
  }
  func.func @transform_2(%arg0: i32) -> (i32, i32) {
    %c0_i32 = arith.constant 0 : i32
    %c0_i32_0 = arith.constant 0 : i32
    %c0_i32_1 = arith.constant 0 : i32
    return %c0_i32, %c0_i32_0 : i32, i32
  }
  func.func @transform_3(%arg0: i32) -> (i32, i32) {
    %c0_i32 = arith.constant 0 : i32
    %c0_i32_0 = arith.constant 0 : i32
    %c0_i32_1 = arith.constant 0 : i32
    return %c0_i32, %c0_i32_0 : i32, i32
  }
  func.func @transform_4(%arg0: i32) -> (i32, i32) {
    %c0_i32 = arith.constant 0 : i32
    %c0_i32_0 = arith.constant 0 : i32
    %c0_i32_1 = arith.constant 0 : i32
    return %c0_i32, %c0_i32_0 : i32, i32
  }
  func.func @transform_5(%arg0: i32) -> (i32, i32) {
    %c0_i32 = arith.constant 0 : i32
    %c0_i32_0 = arith.constant 0 : i32
    %c0_i32_1 = arith.constant 0 : i32
    return %c0_i32, %c0_i32_0 : i32, i32
  }
  func.func @transform_6(%arg0: i32) -> (i32, i32) {
    %c0_i32 = arith.constant 0 : i32
    %c0_i32_0 = arith.constant 0 : i32
    %c0_i32_1 = arith.constant 0 : i32
    return %c0_i32, %c0_i32_0 : i32, i32
  }
  func.func @transform_7(%arg0: i32) -> (i32, i32) {
    %c0_i32 = arith.constant 0 : i32
    %c0_i32_0 = arith.constant 0 : i32
    %c0_i32_1 = arith.constant 0 : i32
    return %c0_i32, %c0_i32_0 : i32, i32
  }
  func.func @transform_8(%arg0: i32) -> (i32, i32) {
    %c0_i32 = arith.constant 0 : i32
    %c0_i32_0 = arith.constant 0 : i32
    return %arg0, %c0_i32 : i32, i32
  }
}

</mosaic_0001>

<bundles_post_ra>
// kernel: tpu_custom_call.1
= control target key start
LH: loop header
LB: loop body
LE: loop exit
PB: predicated region body
PF: predicated region fallthrough
CT: control target
= control target key end

     0   :  { %13 = vsyncpa [#allocation5], 0  ;;  %s4879_s0 = inlined_call_operand.hbm [shape: bf16[1,8,8,128], index: 0, kind: input, shape index: {}]   ;;  %s4880_s1 = inlined_call_operand.vmem [shape: s32[8,1], index: 1, kind: input, shape index: {}]   ;;  %s4881_s2 = inlined_call_operand.hbm [shape: bf16[128,768], index: 2, kind: input, shape index: {}]   ;;  %s4882_s3 = inlined_call_operand.vmem [shape: f32[1,768], index: 3, kind: input, shape index: {}]   ;;  %s4883_s4 = inlined_call_operand.hbm [shape: bf16[128,768], index: 4, kind: input, shape index: {}]   ;;  %s4884_s5 = inlined_call_operand.vmem [shape: f32[1,768], index: 5, kind: input, shape index: {}]   ;;  %s4885_s6 = inlined_call_operand.hbm [shape: bf16[256,128], index: 6, kind: input, shape index: {}]   ;;  %s4886_s7 = inlined_call_operand.vmem [shape: f32[1,128], index: 7, kind: input, shape index: {}]   ;;  %s4887_s8 = inlined_call_operand.hbm [shape: f32[8,128], index: 8, kind: output, shape index: {}]  }
   0x1   :  { %14 = vsyncpa [#allocation8], 0 }
   0x2   :  { %15 = vsyncpa [#allocation11], 0 }
   0x3   :  { %16 = vsyncpa [#allocation6], 0  ;;  %s3747_s27 = smov [#allocation7]   ;;  %s3629_s9 = scalar_lea.hbm %s4881_s2, 6144 }
   0x4   :  { %s36_s28 = sshll.u32 %s3747_s27, 4  ;;  %p3630_p0 = scmp.ne.s32.totalorder %s4881_s2, %s3629_s9  ;;  %s37_s28 = int_to_ptr.vmem [resolvable:$true] %s36_s28 }
   0x5   :  { %p3633_p1 = scmp.lt.u32.totalorder %s3629_s9, %s4881_s2 }
   0x7   :  { %p3635_p2 = pnand %p3633_p1, %p3630_p0 }
   0x9   :  { %3638 = shalt.err (!%p3635_p2)
}
   0xa   :  { %s3639_s14 = scalar_lea.vmem %s37_s28, 6144  ;;  %p3644_p4 = scmp.lt.s32.totalorder %s37_s28, %s37_s28 }
   0xb   :  { %p3640_p3 = scmp.ne.s32.totalorder %s37_s28, %s3639_s14  ;;  %p3645_p5 = scmp.lt.s32.totalorder %s3639_s14, %s3639_s14 }
   0xd   :  { %p3646_p6 = por %p3645_p5, %p3644_p4 }
   0xf   :  { %p3647_p7 = pnand %p3646_p6, %p3640_p3 }
  0x11   :  { %3650 = shalt.err (!%p3647_p7)
}
  0x12   :  { %s3748_s15 = smov 384   ;;  %s3749_s16 = smov 24  }
  0x13   :  { %42 = dma.hbm_to_vmem [thread:$0]  %s4881_s2, 6144, %s37_s28, [#allocation8], %s3748_s15, %s3748_s15, %s3749_s16  }
  0x14   :  { %s3750_s19 = smov [#allocation4]   ;;  %s3651_s23 = scalar_lea.hbm %s4879_s0, 512 }
  0x15   :  { %s22_s20 = sshll.u32 %s3750_s19, 4  ;;  %p3652_p8 = scmp.ne.s32.totalorder %s4879_s0, %s3651_s23  ;;  %s23_s20 = int_to_ptr.vmem [resolvable:$true] %s22_s20 }
  0x16   :  { %p3655_p9 = scmp.lt.u32.totalorder %s3651_s23, %s4879_s0 }
  0x18   :  { %p3657_p10 = pnand %p3655_p9, %p3652_p8 }
  0x1a   :  { %3660 = shalt.err (!%p3657_p10)
}
  0x1b   :  { %s3661_s29 = scalar_lea.vmem %s23_s20, 512  ;;  %p3666_p12 = scmp.lt.s32.totalorder %s23_s20, %s23_s20 }
  0x1c   :  { %p3662_p11 = scmp.ne.s32.totalorder %s23_s20, %s3661_s29  ;;  %p3667_p13 = scmp.lt.s32.totalorder %s3661_s29, %s3661_s29 }
  0x1e   :  { %p3668_p0 = por %p3667_p13, %p3666_p12 }
  0x20   :  { %p3669_p1 = pnand %p3668_p0, %p3662_p11 }
  0x22   :  { %3672 = shalt.err (!%p3669_p1)
}
  0x23   :  { %s3751_s2 = smov 64   ;;  %s3752_s28 = smov 4  }
  0x24   :  { %28 = dma.hbm_to_vmem [thread:$0]  %s4879_s0, 512, %s23_s20, [#allocation5], %s3751_s2, %s3751_s2, %s3752_s28  }
  0x25   :  { %s3753_s10 = smov [#allocation9]   ;;  %s3754_s12 = smov [#allocation10]  }
  0x26   :  { %s50_s11 = sshll.u32 %s3753_s10, 4  ;;  %s64_s13 = sshll.u32 %s3754_s12, 4  ;;  %s51_s11 = int_to_ptr.vmem [resolvable:$true] %s50_s11  ;;  %s3835_s13 = int_to_ptr.vmem [resolvable:$true] %s64_s13 }
  0x27   :  { %s3673_s18 = scalar_lea.hbm %s4883_s4, 6144 }
  0x28   :  { %p3674_p2 = scmp.ne.s32.totalorder %s4883_s4, %s3673_s18  ;;  %p3677_p3 = scmp.lt.u32.totalorder %s3673_s18, %s4883_s4 }
  0x2a   :  { %p3679_p4 = pnand %p3677_p3, %p3674_p2 }
  0x2c   :  { %3682 = shalt.err (!%p3679_p4)
}
  0x2d   :  { %s3683_s0 = scalar_lea.vmem %s51_s11, 6144  ;;  %p3688_p6 = scmp.lt.s32.totalorder %s51_s11, %s51_s11 }
  0x2e   :  { %p3684_p5 = scmp.ne.s32.totalorder %s51_s11, %s3683_s0  ;;  %p3689_p7 = scmp.lt.s32.totalorder %s3683_s0, %s3683_s0 }
  0x30   :  { %p3690_p8 = por %p3689_p7, %p3688_p6 }
  0x32   :  { %p3691_p9 = pnand %p3690_p8, %p3684_p5 }
  0x34   :  { %3694 = shalt.err (!%p3691_p9)
}
  0x35   :  { %56 = dma.hbm_to_vmem [thread:$0]  %s4883_s4, 6144, %s51_s11, [#allocation8], %s3748_s15, %s3748_s15, %s3749_s16  }
  0x36   :  { %s3695_s27 = scalar_lea.hbm %s4885_s6, 2048 }
  0x37   :  { %p3696_p10 = scmp.ne.s32.totalorder %s4885_s6, %s3695_s27  ;;  %p3699_p11 = scmp.lt.u32.totalorder %s3695_s27, %s4885_s6 }
  0x39   :  { %p3701_p12 = pnand %p3699_p11, %p3696_p10 }
  0x3b   :  { %3704 = shalt.err (!%p3701_p12)
}
  0x3c   :  { %s3705_s12 = scalar_lea.vmem %s3835_s13, 2048  ;;  %p3710_p0 = scmp.lt.s32.totalorder %s3835_s13, %s3835_s13 }
  0x3d   :  { %p3706_p13 = scmp.ne.s32.totalorder %s3835_s13, %s3705_s12  ;;  %p3711_p1 = scmp.lt.s32.totalorder %s3705_s12, %s3705_s12 }
  0x3f   :  { %p3712_p2 = por %p3711_p1, %p3710_p0 }
  0x41   :  { %p3713_p3 = pnand %p3712_p2, %p3706_p13 }
  0x43   :  { %3716 = shalt.err (!%p3713_p3)
}
  0x44   :  { %70 = dma.hbm_to_vmem [thread:$0]  %s4885_s6, 2048, %s3835_s13, [#allocation11], %s3751_s2, %s3751_s2, %s3752_s28  }
  0x45   :  { %3739 = dma.done.wait [#allocation5], 512  }
  0x46   :  { %3740 = vsyncadd [#allocation5], 4294966784 }
  0x47   :  { %3741 = dma.done.wait [#allocation8], 12288  }
  0x48   :  { %3742 = vsyncadd [#allocation8], 4294955008 }
  0x49   :  { %3743 = dma.done.wait [#allocation11], 2048  }
  0x4a   :  { %3744 = vsyncadd [#allocation11], 4294965248  ;;  %v4891_v0 = vmov 0   ;;  %v3224_v1 = vld [vmem:[#allocation7 + $0x4] ss:$24 sps:$4 sm:$0xff]   ;;  %v3895_v44 = vld [vmem:[#allocation4 + $0x8] sm:$0xff]  }
  0x4b   :  { %470 = vmatprep.mubr.bf16.mxu0 %v4891_v0  ;;  %543 = vmatprep.mubr.bf16.mxu1 %v4891_v0  ;;  %v3226_v2 = vld [vmem:[#allocation7 + $0xc] ss:$24 sps:$4 sm:$0xff]   ;;  %v3228_v3 = vld [vmem:[#allocation7] ss:$24 sps:$4 sm:$0xff]   ;;  %v3232_v6 = vld [vmem:[#allocation7 + $0x3c] ss:$24 sps:$4 sm:$0xff]  }
  0x4c   :  { %3222 = vset.pattern.permute.xlu0 %v4891_v0  ;;  %3223 = vset.pattern.permute.xlu1 %v4891_v0  ;;  %v3229_v4 = vld [vmem:[#allocation7 + $0x8] ss:$24 sps:$4 sm:$0xff]   ;;  %v3230_v5 = vld [vmem:[#allocation7 + $0x34] ss:$24 sps:$4 sm:$0xff]   ;;  %v3235_v8 = vld [vmem:[#allocation7 + $0x38] ss:$24 sps:$4 sm:$0xff]  }
  0x4d   :  { %438 = vmatprep.subr.bf16.mxu0 %v3224_v1  ;;  %511 = vmatprep.subr.bf16.mxu1 %v3226_v2  ;;  %v3234_v7 = vld [vmem:[#allocation7 + $0x30] ss:$24 sps:$4 sm:$0xff]   ;;  %v3236_v9 = vld [vmem:[#allocation7 + $0x64] ss:$24 sps:$4 sm:$0xff]   ;;  %v3240_v11 = vld [vmem:[#allocation7 + $0x60] ss:$24 sps:$4 sm:$0xff]  }
  0x4e   :  { %439 = vmatpush1.bf16.msra.mxu0 %v3228_v3  ;;  %512 = vmatpush1.bf16.msra.mxu1 %v3229_v4  ;;  %v3238_v10 = vld [vmem:[#allocation7 + $0x6c] ss:$24 sps:$4 sm:$0xff]   ;;  %v3241_v12 = vld [vmem:[#allocation7 + $0x68] ss:$24 sps:$4 sm:$0xff]   ;;  %v3244_v14 = vld [vmem:[#allocation7 + $0x9c] ss:$24 sps:$4 sm:$0xff]  }
  0x4f   :  { %440 = vmatprep.subr.bf16.mxu0 %v3230_v5  ;;  %513 = vmatprep.subr.bf16.mxu1 %v3232_v6  ;;  %v3242_v13 = vld [vmem:[#allocation7 + $0x94] ss:$24 sps:$4 sm:$0xff]   ;;  %v3246_v15 = vld [vmem:[#allocation7 + $0x90] ss:$24 sps:$4 sm:$0xff]   ;;  %v3248_v17 = vld [vmem:[#allocation7 + $0xc4] ss:$24 sps:$4 sm:$0xff]  }
  0x50   :  { %v3247_v16 = vld [vmem:[#allocation7 + $0x98] ss:$24 sps:$4 sm:$0xff]   ;;  %v3250_v18 = vld [vmem:[#allocation7 + $0xcc] ss:$24 sps:$4 sm:$0xff]   ;;  %v3253_v20 = vld [vmem:[#allocation7 + $0xc8] ss:$24 sps:$4 sm:$0xff]  }
  0x51   :  { %v3252_v19 = vld [vmem:[#allocation7 + $0xc0] ss:$24 sps:$4 sm:$0xff]   ;;  %v3254_v21 = vld [vmem:[#allocation7 + $0xf4] ss:$24 sps:$4 sm:$0xff]   ;;  %v3258_v23 = vld [vmem:[#allocation7 + $0xf0] ss:$24 sps:$4 sm:$0xff]  }
  0x52   :  { %441 = vmatpush1.bf16.msra.mxu0 %v3234_v7  ;;  %514 = vmatpush1.bf16.msra.mxu1 %v3235_v8  ;;  %v3256_v22 = vld [vmem:[#allocation7 + $0xfc] ss:$24 sps:$4 sm:$0xff]   ;;  %v3259_v24 = vld [vmem:[#allocation7 + $0xf8] ss:$24 sps:$4 sm:$0xff]   ;;  %v3262_v26 = vld [vmem:[#allocation7 + $0x12c] ss:$24 sps:$4 sm:$0xff]  }
  0x53   :  { %442 = vmatprep.subr.bf16.mxu0 %v3236_v9  ;;  %515 = vmatprep.subr.bf16.mxu1 %v3238_v10  ;;  %v3260_v25 = vld [vmem:[#allocation7 + $0x124] ss:$24 sps:$4 sm:$0xff]   ;;  %v3264_v27 = vld [vmem:[#allocation7 + $0x120] ss:$24 sps:$4 sm:$0xff]   ;;  %v3266_v29 = vld [vmem:[#allocation7 + $0x154] ss:$24 sps:$4 sm:$0xff]  }
  0x54   :  { %v3265_v28 = vld [vmem:[#allocation7 + $0x128] ss:$24 sps:$4 sm:$0xff]   ;;  %v3268_v30 = vld [vmem:[#allocation7 + $0x15c] ss:$24 sps:$4 sm:$0xff]   ;;  %v3271_v32 = vld [vmem:[#allocation7 + $0x158] ss:$24 sps:$4 sm:$0xff]  }
  0x55   :  { %v3270_v31 = vld [vmem:[#allocation7 + $0x150] ss:$24 sps:$4 sm:$0xff]   ;;  %v3275_v33 = vld [vmem:[#allocation7 + $0x14] ss:$24 sps:$4 sm:$0xff]   ;;  %v3876_v34 = vld [vmem:[#allocation9 + $0x4] ss:$24 sps:$4 sm:$0xff]  }
  0x56   :  { %443 = vmatpush1.bf16.msra.mxu0 %v3240_v11  ;;  %516 = vmatpush1.bf16.msra.mxu1 %v3241_v12  ;;  %v3878_v35 = vld [vmem:[#allocation4] sm:$0xff]   ;;  %v3273_v36 = vld [vmem:[#allocation7 + $0x10] ss:$24 sps:$4 sm:$0xff]   ;;  %v3883_v39 = vld [vmem:[#allocation9 + $0x34] ss:$24 sps:$4 sm:$0xff]   ;;  %s3759_s13 = smov [#allocation12]  }
  0x57   :  { %444 = vmatprep.subr.bf16.mxu0 %v3242_v13  ;;  %517 = vmatprep.subr.bf16.mxu1 %v3244_v14  ;;  %v3880_v37 = vld [vmem:[#allocation9] ss:$24 sps:$4 sm:$0xff]   ;;  %v3281_v38 = vld [vmem:[#allocation7 + $0x44] ss:$24 sps:$4 sm:$0xff]   ;;  %v3888_v41 = vld [vmem:[#allocation9 + $0x30] ss:$24 sps:$4 sm:$0xff]  }
  0x58   :  { %v3279_v40 = vld [vmem:[#allocation7 + $0x40] ss:$24 sps:$4 sm:$0xff]   ;;  %v3288_v42 = vld [vmem:[#allocation7 + $0x74] ss:$24 sps:$4 sm:$0xff]   ;;  %v3891_v43 = vld [vmem:[#allocation9 + $0x64] ss:$24 sps:$4 sm:$0xff]  }
  0x59   :  { %v3286_v45 = vld [vmem:[#allocation7 + $0x70] ss:$24 sps:$4 sm:$0xff]   ;;  %v3897_v46 = vld [vmem:[#allocation9 + $0x60] ss:$24 sps:$4 sm:$0xff]   ;;  %v3294_v47 = vld [vmem:[#allocation7 + $0xa4] ss:$24 sps:$4 sm:$0xff]  }
  0x5a   :  { %445 = vmatpush1.bf16.msra.mxu0 %v3246_v15  ;;  %518 = vmatpush1.bf16.msra.mxu1 %v3247_v16  ;;  %v3901_v48 = vld [vmem:[#allocation9 + $0x94] ss:$24 sps:$4 sm:$0xff]   ;;  %v3292_v49 = vld [vmem:[#allocation7 + $0xa0] ss:$24 sps:$4 sm:$0xff]   ;;  %v3905_v50 = vld [vmem:[#allocation9 + $0x90] ss:$24 sps:$4 sm:$0xff]  }
  0x5b   :  { %446 = vmatprep.subr.bf16.mxu0 %v3248_v17  ;;  %519 = vmatprep.subr.bf16.mxu1 %v3250_v18  ;;  %v3301_v51 = vld [vmem:[#allocation7 + $0xd4] ss:$24 sps:$4 sm:$0xff]   ;;  %v3909_v52 = vld [vmem:[#allocation9 + $0xc4] ss:$24 sps:$4 sm:$0xff]   ;;  %v3299_v54 = vld [vmem:[#allocation7 + $0xd0] ss:$24 sps:$4 sm:$0xff]  }
  0x5c   :  { %v3913_v53 = vld [vmem:[#allocation4 + $0x10] sm:$0xff]   ;;  %v3915_v55 = vld [vmem:[#allocation9 + $0xc0] ss:$24 sps:$4 sm:$0xff]   ;;  %v3307_v56 = vld [vmem:[#allocation7 + $0x104] ss:$24 sps:$4 sm:$0xff]   ;;  %v3756_v13 = vmov 0.0|0.0  }
  0x5d   :  { %v3919_v57 = vld [vmem:[#allocation9 + $0xf4] ss:$24 sps:$4 sm:$0xff]   ;;  %v3305_v58 = vld [vmem:[#allocation7 + $0x100] ss:$24 sps:$4 sm:$0xff]   ;;  %v3923_v59 = vld [vmem:[#allocation9 + $0xf0] ss:$24 sps:$4 sm:$0xff]  }
  0x5e   :  { %447 = vmatpush1.bf16.msra.mxu0 %v3252_v19  ;;  %520 = vmatpush1.bf16.msra.mxu1 %v3253_v20  ;;  %v3314_v60 = vld [vmem:[#allocation7 + $0x134] ss:$24 sps:$4 sm:$0xff]   ;;  %v3927_v61 = vld [vmem:[#allocation9 + $0x124] ss:$24 sps:$4 sm:$0xff]   ;;  %v3312_v63 = vld [vmem:[#allocation7 + $0x130] ss:$24 sps:$4 sm:$0xff]  }
  0x5f   :  { %448 = vmatprep.subr.bf16.mxu0 %v3254_v21  ;;  %521 = vmatprep.subr.bf16.mxu1 %v3256_v22  ;;  %v3931_v62 = vld [vmem:[#allocation4 + $0x18] sm:$0xff]   ;;  %v3937_v3 = vld [vmem:[#allocation9 + $0x154] ss:$24 sps:$4 sm:$0xff]   ;;  %v3941_v5 = vld [vmem:[#allocation9 + $0x150] ss:$24 sps:$4 sm:$0xff]   ;;  %s2934_s14 = sshll.u32 %s3759_s13, 4  ;;  %s2935_s14 = int_to_ptr.vmem [resolvable:$true] %s2934_s14 }
  0x60   :  { %v3933_v1 = vld [vmem:[#allocation9 + $0x120] ss:$24 sps:$4 sm:$0xff]   ;;  %v3320_v2 = vld [vmem:[#allocation7 + $0x164] ss:$24 sps:$4 sm:$0xff]   ;;  %v3947_v7 = vld [vmem:[#allocation9 + $0x14] ss:$24 sps:$4 sm:$0xff]   ;;  %p3722_p5 = scmp.lt.s32.totalorder %s2935_s14, %s2935_s14 }
  0x61   :  { %v3318_v4 = vld [vmem:[#allocation7 + $0x160] ss:$24 sps:$4 sm:$0xff]   ;;  %v3944_v6 = vld [vmem:[#allocation9 + $0xc] ss:$24 sps:$4 sm:$0xff]   ;;  %v3954_v9 = vld [vmem:[#allocation9 + $0x10] ss:$24 sps:$4 sm:$0xff]  }
  0x62   :  { %449 = vmatpush1.bf16.msra.mxu0 %v3258_v23  ;;  %522 = vmatpush1.bf16.msra.mxu1 %v3259_v24  ;;  %v3951_v8 = vld [vmem:[#allocation9 + $0x8] ss:$24 sps:$4 sm:$0xff]   ;;  %v3957_v10 = vld [vmem:[#allocation9 + $0x3c] ss:$24 sps:$4 sm:$0xff]   ;;  %v3960_v11 = vld [vmem:[#allocation9 + $0x38] ss:$24 sps:$4 sm:$0xff]  }
  0x63   :  { %450 = vmatprep.subr.bf16.mxu0 %v3260_v25  ;;  %523 = vmatprep.subr.bf16.mxu1 %v3262_v26  ;;  %v3962_v12 = vld [vmem:[#allocation9 + $0x44] ss:$24 sps:$4 sm:$0xff]   ;;  %v3968_v15 = vld [vmem:[#allocation9 + $0x40] ss:$24 sps:$4 sm:$0xff]   ;;  %v3972_v16 = vld [vmem:[#allocation9 + $0x74] ss:$24 sps:$4 sm:$0xff]  }
  0x64   :  { %v3966_v14 = vld [vmem:[#allocation9 + $0x6c] ss:$24 sps:$4 sm:$0xff]   ;;  %v3984_v18 = vld [vmem:[#allocation9 + $0x68] ss:$24 sps:$4 sm:$0xff]   ;;  %v3994_v23 = vld [vmem:[#allocation9 + $0x9c] ss:$24 sps:$4 sm:$0xff]  }
  0x65   :  { %v3977_v17 = vld [vmem:[%s4880_s1] sm:$0xff]  ;;  %v3987_v19 = vld [vmem:[#allocation9 + $0x70] ss:$24 sps:$4 sm:$0xff]   ;;  %s3717_s17 = scalar_lea.vmem %s2935_s14, 128 }
  0x66   :  { %451 = vmatpush1.bf16.msra.mxu0 %v3264_v27  ;;  %524 = vmatpush1.bf16.msra.mxu1 %v3265_v28  ;;  %vm1375_vm0 = vcmp.gt.s32.totalorder %v3977_v17, 0  ;;  %vm1383_vm1 = vcmp.gt.s32.totalorder %v3977_v17, 7  ;;  %vm1767_vm2 = vcmp.gt.s32.totalorder %v3977_v17, 2  ;;  %vm1963_vm3 = vcmp.gt.s32.totalorder %v3977_v17, 3  ;;  %v3998_v24 = vld [vmem:[#allocation9 + $0xa4] ss:$24 sps:$4 sm:$0xff]   ;;  %p3718_p4 = scmp.ne.s32.totalorder %s2935_s14, %s3717_s17  ;;  %p3723_p6 = scmp.lt.s32.totalorder %s3717_s17, %s3717_s17 }
  0x67   :  { %452 = vmatprep.subr.bf16.mxu0 %v3266_v29  ;;  %525 = vmatprep.subr.bf16.mxu1 %v3268_v30  ;;  %v1376_v20 = vsel %vm1375_vm0, 1, %v4891_v0  ;;  %v1384_v21 = vsel %vm1383_vm1, 1, %v4891_v0  ;;  %v1768_v22 = vsel %vm1767_vm2, 1, %v4891_v0  ;;  %v4002_v25 = vld [vmem:[#allocation9 + $0x98] ss:$24 sps:$4 sm:$0xff]   ;;  %vm1571_vm4 = vcmp.gt.s32.totalorder %v3977_v17, 1 }
  0x68   :  { %1378 = vperm.xlu0 %3222, %v1376_v20   ;;  %v4004_v26 = vld [vmem:[#allocation9 + $0xa0] ss:$24 sps:$4 sm:$0xff]   ;;  %v4007_v27 = vld [vmem:[#allocation9 + $0xcc] ss:$24 sps:$4 sm:$0xff]   ;;  %v4018_v30 = vld [vmem:[#allocation9 + $0xd0] ss:$24 sps:$4 sm:$0xff]   ;;  %p3724_p7 = por %p3723_p6, %p3722_p5 }
  0x69   :  { %v4009_v28 = vld [vmem:[#allocation9 + $0xd4] ss:$24 sps:$4 sm:$0xff]   ;;  %v4015_v29 = vld [vmem:[#allocation9 + $0xc8] ss:$24 sps:$4 sm:$0xff]   ;;  %vm1579_vm5 = vcmp.gt.s32.totalorder %v3977_v17, 6  ;;  %vm1775_vm6 = vcmp.gt.s32.totalorder %v3977_v17, 5 }
  0x6a   :  { %453 = vmatpush1.bf16.msra.mxu0 %v3270_v31  ;;  %526 = vmatpush1.bf16.msra.mxu1 %v3271_v32  ;;  %v1964_v31 = vsel %vm1963_vm3, 1, %v4891_v0  ;;  %v4026_v32 = vld [vmem:[#allocation9 + $0xfc] ss:$24 sps:$4 sm:$0xff]   ;;  %vm1971_vm7 = vcmp.gt.s32.totalorder %v3977_v17, 4  ;;  %vm3758_vm1 = vmmov 0   ;;  %p3725_p8 = pnand %p3724_p7, %p3718_p4 }
  0x6b   :  { %584 = vmatprep.subr.bf16.mxu0 %v3275_v33  ;;  %1199 = vmatprep.subr.bf16.mxu1 %v3876_v34  ;;  %v4029_v33 = vld [vmem:[#allocation9 + $0x104] ss:$24 sps:$4 sm:$0xff]  }
  0x6c   :  { %1386 = vperm.xlu0 %3222, %v1384_v21  }
  0x6d   :  { %471 = vmatmul.mubr.bf16.vlgmr.msra.gmra.mrb[0].mxu0 %v3878_v35  ;;  %544 = vmatmul.mubr.bf16.vlgmr.msra.gmra.mrb[0].mxu1 %v3878_v35 }
  0x6e   :  { %585 = vmatpush1.bf16.msra.mxu0 %v3273_v36  ;;  %1200 = vmatpush1.bf16.msra.mxu1 %v3880_v37  ;;  %v4036_v36 = vld [vmem:[#allocation9 + $0x100] ss:$24 sps:$4 sm:$0xff]  }
  0x6f   :  { %586 = vmatprep.subr.bf16.mxu0 %v3281_v38  ;;  %1201 = vmatprep.subr.bf16.mxu1 %v3883_v39  ;;  %v4040_v38 = vld [vmem:[#allocation9 + $0x12c] ss:$24 sps:$4 sm:$0xff]  }
  0x70   :  { %480 = vmatprep.mubr.bf16.mxu0 %v4891_v0  ;;  %553 = vmatprep.mubr.bf16.mxu1 %v4891_v0  ;;  %4945 = vst [vmem:[#allocation17_spill] sm:$0xff] %v4040_v38 }
  0x71   :  { %1770 = vperm.xlu0 %3222, %v1768_v22  }
  0x72   :  { %587 = vmatpush1.bf16.msra.mxu0 %v3279_v40  ;;  %1202 = vmatpush1.bf16.msra.mxu1 %v3888_v41  ;;  %v4042_v40 = vld [vmem:[#allocation9 + $0x134] ss:$24 sps:$4 sm:$0xff]  }
  0x73   :  { %588 = vmatprep.subr.bf16.mxu0 %v3288_v42  ;;  %1203 = vmatprep.subr.bf16.mxu1 %v3891_v43  ;;  %v4046_v42 = vld [vmem:[#allocation9 + $0x128] ss:$24 sps:$4 sm:$0xff]  }
  0x74   :  { %4946 = vst [vmem:[#allocation18_spill] sm:$0xff] %v4046_v42 }
  0x75   :  { %481 = vmatmul.mubr.bf16.gmra.mrb[4].mxu0 %v3895_v44  ;;  %554 = vmatmul.mubr.bf16.gmra.mrb[4].mxu1 %v3895_v44 }
  0x76   :  { %589 = vmatpush1.bf16.msra.mxu0 %v3286_v45  ;;  %1204 = vmatpush1.bf16.msra.mxu1 %v3897_v46  ;;  %v4052_v45 = vld [vmem:[#allocation9 + $0x15c] ss:$24 sps:$4 sm:$0xff]  }
  0x77   :  { %590 = vmatprep.subr.bf16.mxu0 %v3294_v47  ;;  %1205 = vmatprep.subr.bf16.mxu1 %v3901_v48  ;;  %4947 = vst [vmem:[#allocation19_spill] sm:$0xff] %v4052_v45  ;;  %v4055_v47 = vld [vmem:[#allocation9 + $0x164] ss:$24 sps:$4 sm:$0xff]  }
  0x78   :  { %490 = vmatprep.mubr.bf16.mxu0 %v4891_v0  ;;  %563 = vmatprep.mubr.bf16.mxu1 %v4891_v0 }
  0x79   :  { %1966 = vperm.xlu0 %3222, %v1964_v31  }
  0x7a   :  { %591 = vmatpush1.bf16.msra.mxu0 %v3292_v49  ;;  %1206 = vmatpush1.bf16.msra.mxu1 %v3905_v50  ;;  %v4059_v49 = vld [vmem:[#allocation9 + $0x158] ss:$24 sps:$4 sm:$0xff]  }
  0x7b   :  { %592 = vmatprep.subr.bf16.mxu0 %v3301_v51  ;;  %1207 = vmatprep.subr.bf16.mxu1 %v3909_v52  ;;  %4948 = vst [vmem:[#allocation20_spill] sm:$0xff] %v4059_v49  ;;  %v4062_v51 = vld [vmem:[#allocation9 + $0x160] ss:$24 sps:$4 sm:$0xff]  }
  0x7d   :  { %491 = vmatmul.mubr.bf16.gmra.mrb[8].mxu0 %v3913_v53  ;;  %564 = vmatmul.mubr.bf16.gmra.mrb[8].mxu1 %v3913_v53 }
  0x7e   :  { %593 = vmatpush1.bf16.msra.mxu0 %v3299_v54  ;;  %1208 = vmatpush1.bf16.msra.mxu1 %v3915_v55 }
  0x7f   :  { %594 = vmatprep.subr.bf16.mxu0 %v3307_v56  ;;  %1209 = vmatprep.subr.bf16.mxu1 %v3919_v57 }
  0x80   :  { %500 = vmatprep.mubr.bf16.mxu0 %v4891_v0  ;;  %573 = vmatprep.mubr.bf16.mxu1 %v4891_v0 }
  0x82   :  { %595 = vmatpush1.bf16.msra.mxu0 %v3305_v58  ;;  %1210 = vmatpush1.bf16.msra.mxu1 %v3923_v59 }
  0x83   :  { %596 = vmatprep.subr.bf16.mxu0 %v3314_v60  ;;  %1211 = vmatprep.subr.bf16.mxu1 %v3927_v61 }
  0x85   :  { %501 = vmatmul.mubr.bf16.gmra.mrb[12].mxu0 %v3931_v62  ;;  %574 = vmatmul.mubr.bf16.gmra.mrb[12].mxu1 %v3931_v62 }
  0x86   :  { %597 = vmatpush1.bf16.msra.mxu0 %v3312_v63  ;;  %1212 = vmatpush1.bf16.msra.mxu1 %v3933_v1 }
  0x87   :  { %598 = vmatprep.subr.bf16.mxu0 %v3320_v2  ;;  %1213 = vmatprep.subr.bf16.mxu1 %v3937_v3 }
  0x88   :  { %616 = vmatprep.mubr.bf16.mxu0 %v4891_v0  ;;  %1231 = vmatprep.mubr.bf16.mxu1 %v4891_v0 }
  0x8a   :  { %599 = vmatpush1.bf16.msra.mxu0 %v3318_v4  ;;  %1214 = vmatpush1.bf16.msra.mxu1 %v3941_v5 }
  0x8b   :  { %1240 = vmatprep.subr.bf16.mxu0 %v3944_v6  ;;  %1281 = vmatprep.subr.bf16.mxu1 %v3947_v7 }
  0x8d   :  { %617 = vmatmul.mubr.bf16.vlgmr.msra.gmra.mrb[16].mxu0 %v3878_v35  ;;  %1232 = vmatmul.mubr.bf16.vlgmr.msra.gmra.mrb[16].mxu1 %v3756_v13  ;;  %v4033_v35 = vld [vmem:[#allocation9 + $0xf8] ss:$24 sps:$4 sm:$0xff]  }
  0x8e   :  { %1241 = vmatpush1.bf16.msra.mxu0 %v3951_v8  ;;  %1282 = vmatpush1.bf16.msra.mxu1 %v3954_v9 }
  0x8f   :  { %1242 = vmatprep.subr.bf16.mxu0 %v3957_v10  ;;  %626 = vmatprep.mubr.bf16.mxu0 %v4891_v0 }
  0x90   :  { %1283 = vmatprep.subr.bf16.mxu1 %v3962_v12  ;;  %1313 = vmatprep.mubr.bf16.mxu1 %v4891_v0 }
  0x92   :  { %1243 = vmatpush1.bf16.msra.mxu0 %v3960_v11  ;;  %1284 = vmatpush1.bf16.msra.mxu1 %v3968_v15 }
  0x93   :  { %1244 = vmatprep.subr.bf16.mxu0 %v3966_v14  ;;  %1285 = vmatprep.subr.bf16.mxu1 %v3972_v16 }
  0x95   :  { %627 = vmatmul.mubr.bf16.gmra.mrb[20].mxu0 %v3895_v44  ;;  %v4049_v44 = vld [vmem:[#allocation9 + $0x130] ss:$24 sps:$4 sm:$0xff]  }
  0x96   :  { %1245 = vmatpush1.bf16.msra.mxu0 %v3984_v18  ;;  %1286 = vmatpush1.bf16.msra.mxu1 %v3987_v19 }
  0x97   :  { %1246 = vmatprep.subr.bf16.mxu0 %v3994_v23  ;;  %636 = vmatprep.mubr.bf16.mxu0 %v4891_v0 }
  0x98   :  { %1287 = vmatprep.subr.bf16.mxu1 %v3998_v24 }
  0x9a   :  { %1247 = vmatpush1.bf16.msra.mxu0 %v4002_v25  ;;  %1288 = vmatpush1.bf16.msra.mxu1 %v4004_v26 }
  0x9b   :  { %1248 = vmatprep.subr.bf16.mxu0 %v4007_v27  ;;  %1289 = vmatprep.subr.bf16.mxu1 %v4009_v28 }
  0x9d   :  { %637 = vmatmul.mubr.bf16.gmra.mrb[24].mxu0 %v3913_v53 }
  0x9e   :  { %1249 = vmatpush1.bf16.msra.mxu0 %v4015_v29  ;;  %1290 = vmatpush1.bf16.msra.mxu1 %v4018_v30 }
  0x9f   :  { %1250 = vmatprep.subr.bf16.mxu0 %v4026_v32  ;;  %646 = vmatprep.mubr.bf16.mxu0 %v4891_v0 }
  0xa0   :  { %1291 = vmatprep.subr.bf16.mxu1 %v4029_v33 }
  0xa2   :  { %1251 = vmatpush1.bf16.msra.mxu0 %v4033_v35  ;;  %1292 = vmatpush1.bf16.msra.mxu1 %v4036_v36 }
  0xa3   :  { %1252 = vmatprep.subr.bf16.mxu0 %v4040_v38  ;;  %1293 = vmatprep.subr.bf16.mxu1 %v4042_v40 }
  0xa5   :  { %647 = vmatmul.mubr.bf16.gmra.mrb[28].mxu0 %v3931_v62 }
  0xa6   :  { %1253 = vmatpush1.bf16.msra.mxu0 %v4046_v42  ;;  %1294 = vmatpush1.bf16.msra.mxu1 %v4049_v44 }
  0xa7   :  { %1254 = vmatprep.subr.bf16.mxu0 %v4052_v45  ;;  %1272 = vmatprep.mubr.bf16.mxu0 %v4891_v0 }
  0xa8   :  { %1295 = vmatprep.subr.bf16.mxu1 %v4055_v47 }
  0xaa   :  { %1255 = vmatpush1.bf16.msra.mxu0 %v4059_v49  ;;  %1296 = vmatpush1.bf16.msra.mxu1 %v4062_v51 }
  0xab   :  { %1394 = vmatprep.subr.bf16.mxu0 %v3876_v34  ;;  %1435 = vmatprep.subr.bf16.mxu1 %v3944_v6 }
  0xad   :  { %1273 = vmatmul.mubr.bf16.vlgmr.msra.gmra.mrb[32].mxu0 %v3756_v13  ;;  %1314 = vmatmul.mubr.bf16.vlgmr.msra.gmra.mrb[20].mxu1 %v3756_v13 }
  0xae   :  { %1395 = vmatpush1.bf16.msra.mxu0 %v3880_v37  ;;  %1436 = vmatpush1.bf16.msra.mxu1 %v3951_v8  ;;  %v144_v37 = vlaneseq }
  0xaf   :  { %1396 = vmatprep.subr.bf16.mxu0 %v3883_v39  ;;  %1437 = vmatprep.subr.bf16.mxu1 %v3957_v10 }
  0xb0   :  { %1426 = vmatprep.mubr.bf16.mxu0 %v4891_v0  ;;  %1467 = vmatprep.mubr.bf16.mxu1 %v4891_v0  ;;  %v4107_v39 = vshrl.u32 %v144_v37, 7 }
  0xb2   :  { %1397 = vmatpush1.bf16.msra.mxu0 %v3888_v41  ;;  %1438 = vmatpush1.bf16.msra.mxu1 %v3960_v11  ;;  %v4893_v41 = vsub.s32 0, %v4107_v39 }
  0xb3   :  { %1398 = vmatprep.subr.bf16.mxu0 %v3891_v43  ;;  %1439 = vmatprep.subr.bf16.mxu1 %v3966_v14  ;;  %v4889_v43 = vsub.s32 2, %v4107_v39 }
  0xb6   :  { %1399 = vmatpush1.bf16.msra.mxu0 %v3897_v46  ;;  %1440 = vmatpush1.bf16.msra.mxu1 %v3984_v18  ;;  %v4114_v46 = vld [vmem:[%s4882_s3] sm:$0x3f] }
  0xb7   :  { %1400 = vmatprep.subr.bf16.mxu0 %v3901_v48  ;;  %1441 = vmatprep.subr.bf16.mxu1 %v3994_v23  ;;  %v4890_v48 = vsub.s32 1, %v4107_v39  ;;  %v4126_v53 = vrot.slane %v4114_v46, %v4889_v43 }
  0xb9   :  { %v4131_v54 = vrot.slane %v4114_v46, %v4890_v48 }
  0xba   :  { %1401 = vmatpush1.bf16.msra.mxu0 %v3905_v50  ;;  %1442 = vmatpush1.bf16.msra.mxu1 %v4002_v25  ;;  %v4888_v50 = vsub.s32 3, %v4107_v39 }
  0xbb   :  { %1402 = vmatprep.subr.bf16.mxu0 %v3909_v52  ;;  %1443 = vmatprep.subr.bf16.mxu1 %v4007_v27 }
  0xbc   :  { %v4136_v56 = vrot.slane %v4114_v46, %v4888_v50 }
  0xbe   :  { %1403 = vmatpush1.bf16.msra.mxu0 %v3915_v55  ;;  %1444 = vmatpush1.bf16.msra.mxu1 %v4015_v29 }
  0xbf   :  { %1404 = vmatprep.subr.bf16.mxu0 %v3919_v57  ;;  %1445 = vmatprep.subr.bf16.mxu1 %v4026_v32 }
  0xc2   :  { %1405 = vmatpush1.bf16.msra.mxu0 %v3923_v59  ;;  %1446 = vmatpush1.bf16.msra.mxu1 %v4033_v35 }
  0xc3   :  { %1406 = vmatprep.subr.bf16.mxu0 %v3927_v61  ;;  %1447 = vmatprep.subr.bf16.mxu1 %v4040_v38 }
  0xc6   :  { %1407 = vmatpush1.bf16.msra.mxu0 %v3933_v1  ;;  %1448 = vmatpush1.bf16.msra.mxu1 %v4046_v42 }
  0xc7   :  { %1408 = vmatprep.subr.bf16.mxu0 %v3937_v3  ;;  %1449 = vmatprep.subr.bf16.mxu1 %v4052_v45 }
  0xca   :  { %1409 = vmatpush1.bf16.msra.mxu0 %v3941_v5  ;;  %1450 = vmatpush1.bf16.msra.mxu1 %v4059_v49 }
  0xcb   :  { %1476 = vmatprep.subr.bf16.mxu0 %v3947_v7  ;;  %1590 = vmatprep.subr.bf16.mxu1 %v3876_v34  ;;  %v4121_v34 = vrot.slane %v4114_v46, %v4893_v41 }
 0x140   :  { %v472_v58 = vpop.f32.mrb[0].mxu0  ;;  %v545_v60 = vpop.f32.mrb[0].mxu1 }
 0x141   :  { %v473_v62 = vadd.f32 %v472_v58, %v4121_v34  ;;  %v474_v63 = vpop.f32.mrb[1].mxu0  ;;  %v546_v2 = vadd.f32 %v545_v60, %v4126_v53  ;;  %v547_v4 = vpop.f32.mrb[1].mxu1 }
 0x142   :  { %v475_v13 = vadd.f32 %v474_v63, %v4131_v54  ;;  %v476_v20 = vpop.f32.mrb[2].mxu0  ;;  %v548_v21 = vadd.f32 %v547_v4, %v4136_v56  ;;  %v549_v22 = vpop.f32.mrb[2].mxu1 }
 0x143   :  { %v477_v31 = vadd.f32 %v476_v20, %v4121_v34  ;;  %v478_v37 = vpop.f32.mrb[3].mxu0  ;;  %v550_v50 = vadd.f32 %v549_v22, %v4126_v53  ;;  %v551_v43 = vpop.f32.mrb[3].mxu1 }
 0x144   :  { %v4144_v48 = vpack.c.bf16 %v475_v13, %v473_v62  ;;  %v479_v58 = vadd.f32 %v478_v37, %v4131_v54  ;;  %v3119_v0 = vpack.c.bf16 %v548_v21, %v546_v2  ;;  %v552_v60 = vadd.f32 %v551_v43, %v4136_v56 }
 0x146   :  { %v4148_v41 = vpack.c.bf16 %v479_v58, %v477_v31  ;;  %850 = vst [vmem:[#allocation2 + $0x8] sm:$0xff] %v3119_v0  ;;  %v3122_v63 = vpack.c.bf16 %v552_v60, %v550_v50 }
 0x148   :  { %4949 = vst [vmem:[#allocation21_spill] sm:$0xff] %v4148_v41  ;;  %v482_v49 = vpop.f32.mrb[4].mxu0  ;;  %853 = vst [vmem:[#allocation2 + $0x20] sm:$0xff] %v3122_v63  ;;  %v555_v4 = vpop.f32.mrb[4].mxu1 }
 0x149   :  { %v483_v20 = vadd.f32 %v482_v49, %v4121_v34  ;;  %v484_v45 = vpop.f32.mrb[5].mxu0  ;;  %v556_v22 = vadd.f32 %v555_v4, %v4126_v53  ;;  %v557_v42 = vpop.f32.mrb[5].mxu1 }
 0x14a   :  { %v485_v62 = vadd.f32 %v484_v45, %v4131_v54  ;;  %v486_v13 = vpop.f32.mrb[6].mxu0  ;;  %v558_v2 = vadd.f32 %v557_v42, %v4136_v56  ;;  %v559_v21 = vpop.f32.mrb[6].mxu1 }
 0x14b   :  { %v487_v43 = vadd.f32 %v486_v13, %v4121_v34  ;;  %v488_v31 = vpop.f32.mrb[7].mxu0  ;;  %v560_v0 = vadd.f32 %v559_v21, %v4126_v53  ;;  %v561_v50 = vpop.f32.mrb[7].mxu1 }
 0x14c   :  { %v4156_v37 = vpack.c.bf16 %v485_v62, %v483_v20  ;;  %v489_v49 = vadd.f32 %v488_v31, %v4131_v54  ;;  %v3125_v58 = vpack.c.bf16 %v558_v2, %v556_v22  ;;  %v562_v60 = vadd.f32 %v561_v50, %v4136_v56 }
 0x14e   :  { %4950 = vst [vmem:[#allocation22_spill] sm:$0xff] %v4156_v37  ;;  %v3127_v63 = vpack.c.bf16 %v489_v49, %v487_v43  ;;  %856 = vst [vmem:[#allocation2 + $0x38] sm:$0xff] %v3125_v58  ;;  %v3128_v45 = vpack.c.bf16 %v562_v60, %v560_v0 }
 0x150   :  { %858 = vst [vmem:[#allocation2 + $0x48] sm:$0xff] %v3127_v63  ;;  %v492_v4 = vpop.f32.mrb[8].mxu0  ;;  %859 = vst [vmem:[#allocation2 + $0x50] sm:$0xff] %v3128_v45  ;;  %v565_v42 = vpop.f32.mrb[8].mxu1 }
 0x151   :  { %v493_v13 = vadd.f32 %v492_v4, %v4121_v34  ;;  %v494_v41 = vpop.f32.mrb[9].mxu0  ;;  %v566_v21 = vadd.f32 %v565_v42, %v4126_v53  ;;  %v567_v38 = vpop.f32.mrb[9].mxu1 }
 0x152   :  { %v495_v20 = vadd.f32 %v494_v41, %v4131_v54  ;;  %v496_v62 = vpop.f32.mrb[10].mxu0  ;;  %v568_v22 = vadd.f32 %v567_v38, %v4136_v56  ;;  %v569_v2 = vpop.f32.mrb[10].mxu1 }
 0x153   :  { %v497_v43 = vadd.f32 %v496_v62, %v4121_v34  ;;  %v498_v31 = vpop.f32.mrb[11].mxu0  ;;  %v570_v0 = vadd.f32 %v569_v2, %v4126_v53  ;;  %v571_v50 = vpop.f32.mrb[11].mxu1 }
 0x154   :  { %v3130_v49 = vpack.c.bf16 %v495_v20, %v493_v13  ;;  %v499_v58 = vadd.f32 %v498_v31, %v4131_v54  ;;  %v3131_v60 = vpack.c.bf16 %v568_v22, %v566_v21  ;;  %v572_v63 = vadd.f32 %v571_v50, %v4136_v56  ;;  %v4176_v31 = vld [vmem:[%s4884_s5] sm:$0x3f] }
 0x155   :  { %v162_v13 = vsub.s32 4, %v4107_v39 }
 0x156   :  { %861 = vst [vmem:[#allocation2 + $0x60] sm:$0xff] %v3130_v49  ;;  %v3133_v45 = vpack.c.bf16 %v499_v58, %v497_v43  ;;  %862 = vst [vmem:[#allocation2 + $0x68] sm:$0xff] %v3131_v60  ;;  %v3134_v41 = vpack.c.bf16 %v572_v63, %v570_v0  ;;  %v4904_v0 = vsub.s32 5, %v4107_v39 }
 0x158   :  { %864 = vst [vmem:[#allocation2 + $0x78] sm:$0xff] %v3133_v45  ;;  %v502_v4 = vpop.f32.mrb[12].mxu0  ;;  %865 = vst [vmem:[#allocation2 + $0x80] sm:$0xff] %v3134_v41  ;;  %v575_v38 = vpop.f32.mrb[12].mxu1 }
 0x159   :  { %v503_v42 = vadd.f32 %v502_v4, %v4121_v34  ;;  %v504_v62 = vpop.f32.mrb[13].mxu0  ;;  %v576_v2 = vadd.f32 %v575_v38, %v4126_v53  ;;  %v577_v37 = vpop.f32.mrb[13].mxu1  ;;  %v4188_v4 = vrot.slane %v4114_v46, %v162_v13  ;;  %v4953_v38 = vmov 0  }
 0x15a   :  { %v505_v21 = vadd.f32 %v504_v62, %v4131_v54  ;;  %v506_v20 = vpop.f32.mrb[14].mxu0  ;;  %v578_v22 = vadd.f32 %v577_v37, %v4136_v56  ;;  %v579_v43 = vpop.f32.mrb[14].mxu1  ;;  %v1572_v62 = vsel %vm1571_vm4, 1, %v4953_v38 }
 0x15b   :  { %v507_v50 = vadd.f32 %v506_v20, %v4121_v34  ;;  %v508_v49 = vpop.f32.mrb[15].mxu0  ;;  %v580_v58 = vadd.f32 %v579_v43, %v4126_v53  ;;  %v581_v60 = vpop.f32.mrb[15].mxu1  ;;  %v4951_v34 = vsub.s32 0, %v4107_v39  ;;  %1574 = vperm.xlu1 %3223, %v1572_v62  }
 0x15c   :  { %v3136_v63 = vpack.c.bf16 %v505_v21, %v503_v42  ;;  %v509_v37 = vadd.f32 %v508_v49, %v4131_v54  ;;  %v3137_v45 = vpack.c.bf16 %v578_v22, %v576_v2  ;;  %v582_v41 = vadd.f32 %v581_v60, %v4136_v56 }
 0x15d   :  { %v4193_v53 = vrot.slane %v4176_v31, %v4951_v34  ;;  %v4199_v54 = vrot.slane %v4114_v46, %v4904_v0  ;;  %v4954_v56 = vsub.s32 1, %v4107_v39  ;;  %v1580_v21 = vsel %vm1579_vm5, 1, %v4953_v38 }
 0x15e   :  { %867 = vst [vmem:[#allocation2 + $0x90] sm:$0xff] %v3136_v63  ;;  %v3139_v20 = vpack.c.bf16 %v509_v37, %v507_v50  ;;  %868 = vst [vmem:[#allocation2 + $0x98] sm:$0xff] %v3137_v45  ;;  %v3140_v42 = vpack.c.bf16 %v582_v41, %v580_v58  ;;  %v1324_v46 = vunpack.c.l.bf16 %v4144_v48  ;;  %v1325_v45 = vunpack.c.h.bf16 %v4144_v48 }
 0x15f   :  { %4952 = vst [vmem:[#allocation23_spill] sm:$0xff] %v4193_v53  ;;  %v4204_v2 = vrot.slane %v4176_v31, %v4954_v56  ;;  %1582 = vperm.xlu1 %3223, %v1580_v21   ;;  %v1972_v21 = vsel %vm1971_vm7, 1, %v4953_v38 }
 0x160   :  { %870 = vst [vmem:[#allocation2 + $0xa8] sm:$0xff] %v3139_v20  ;;  %871 = vst [vmem:[#allocation2 + $0xb0] sm:$0xff] %v3140_v42  ;;  %v618_v22 = vpop.f32.mrb[16].mxu0  ;;  %v1233_v43 = vpop.f32.mrb[16].mxu1 }
 0x161   :  { %4955 = vst [vmem:[#allocation24_spill] sm:$0xff] %v4204_v2  ;;  %v619_v50 = vadd.f32 %v618_v22, %v4188_v4  ;;  %v1234_v49 = vadd.f32 %v1233_v43, %v4193_v53  ;;  %v620_v58 = vpop.f32.mrb[17].mxu0  ;;  %v1235_v60 = vpop.f32.mrb[17].mxu1  ;;  %v1776_v22 = vsel %vm1775_vm6, 1, %v4953_v38 }
 0x162   :  { %v621_v63 = vadd.f32 %v620_v58, %v4199_v54  ;;  %v1236_v37 = vadd.f32 %v1235_v60, %v4204_v2  ;;  %v622_v41 = vpop.f32.mrb[18].mxu0  ;;  %v1237_v34 = vpop.f32.mrb[18].mxu1 }
 0x163   :  { %v1333_v62 = vadd.f32 %v1324_v46, %v1234_v49  ;;  %v623_v20 = vadd.f32 %v622_v41, %v4188_v4  ;;  %v624_v42 = vpop.f32.mrb[19].mxu0  ;;  %v1238_v56 = vpop.f32.mrb[19].mxu1  ;;  %1778 = vperm.xlu1 %3223, %v1776_v22  }
 0x164   :  { %v3120_v43 = vpack.c.bf16 %v621_v63, %v619_v50  ;;  %v1340_v0 = vadd.f32 %v1325_v45, %v1236_v37  ;;  %v625_v58 = vadd.f32 %v624_v42, %v4199_v54 }
 0x165   :  { %v3069_v60 = vmul.f32 -1.442695, %v1333_v62 }
 0x166   :  { %851 = vst [vmem:[#allocation2 + $0x10] sm:$0xff] %v3120_v43  ;;  %v3123_v48 = vpack.c.bf16 %v625_v58, %v623_v20 }
 0x167   :  { %3388 = vpow2.f32 %v3069_v60  ;;  %1974 = vperm.xlu1 %3223, %v1972_v21   ;;  %v3070_v60 = vmul.f32 -1.442695, %v1340_v0 }
 0x168   :  { %854 = vst [vmem:[#allocation2 + $0x28] sm:$0xff] %v3123_v48  ;;  %v628_v49 = vpop.f32.mrb[20].mxu0 }
 0x169   :  { %v629_v46 = vadd.f32 %v628_v49, %v4188_v4  ;;  %v630_v41 = vpop.f32.mrb[21].mxu0  ;;  %3390 = vpow2.f32 %v3070_v60 }
 0x16a   :  { %v631_v34 = vadd.f32 %v630_v41, %v4199_v54  ;;  %v632_v50 = vpop.f32.mrb[22].mxu0 }
 0x16b   :  { %v633_v63 = vadd.f32 %v632_v50, %v4188_v4  ;;  %v634_v37 = vpop.f32.mrb[23].mxu0 }
 0x16c   :  { %v3126_v17 = vpack.c.bf16 %v631_v34, %v629_v46  ;;  %v635_v45 = vadd.f32 %v634_v37, %v4199_v54 }
 0x16e   :  { %857 = vst [vmem:[#allocation2 + $0x40] sm:$0xff] %v3126_v17  ;;  %v3129_v62 = vpack.c.bf16 %v635_v45, %v633_v63 }
 0x170   :  { %860 = vst [vmem:[#allocation2 + $0x58] sm:$0xff] %v3129_v62  ;;  %v638_v20 = vpop.f32.mrb[24].mxu0 }
 0x171   :  { %v3389_v42 = vpop.eup %3388  ;;  %v639_v56 = vadd.f32 %v638_v20, %v4188_v4  ;;  %v640_v22 = vpop.f32.mrb[25].mxu0 }
 0x172   :  { %v641_v43 = vadd.f32 %v640_v22, %v4199_v54  ;;  %v642_v58 = vpop.f32.mrb[26].mxu0  ;;  %v1337_v49 = vadd.f32 1.0, %v3389_v42 }
 0x173   :  { %v643_v48 = vadd.f32 %v642_v58, %v4188_v4  ;;  %v644_v21 = vpop.f32.mrb[27].mxu0 }
 0x174   :  { %v3132_v41 = vpack.c.bf16 %v641_v43, %v639_v56  ;;  %v645_v46 = vadd.f32 %v644_v21, %v4199_v54  ;;  %3392 = vrcp.f32 %v1337_v49  ;;  %v4956_v56 = vsub.s32 2, %v4107_v39 }
 0x176   :  { %863 = vst [vmem:[#allocation2 + $0x70] sm:$0xff] %v3132_v41  ;;  %v3135_v34 = vpack.c.bf16 %v645_v46, %v643_v48  ;;  %v4236_v22 = vrot.slane %v4176_v31, %v4956_v56  ;;  %v3391_v48 = vpop.eup %3390 }
 0x178   :  { %866 = vst [vmem:[#allocation2 + $0x88] sm:$0xff] %v3135_v34  ;;  %v648_v50 = vpop.f32.mrb[28].mxu0  ;;  %4957 = vst [vmem:[#allocation25_spill] sm:$0xff] %v4236_v22 }
 0x179   :  { %v649_v63 = vadd.f32 %v648_v50, %v4188_v4  ;;  %v650_v37 = vpop.f32.mrb[29].mxu0 }
 0x17a   :  { %v651_v17 = vadd.f32 %v650_v37, %v4199_v54  ;;  %v652_v45 = vpop.f32.mrb[30].mxu0  ;;  %v1344_v37 = vadd.f32 1.0, %v3391_v48 }
 0x17b   :  { %v653_v0 = vadd.f32 %v652_v45, %v4188_v4  ;;  %v654_v62 = vpop.f32.mrb[31].mxu0 }
 0x17c   :  { %v3138_v20 = vpack.c.bf16 %v651_v17, %v649_v63  ;;  %v655_v42 = vadd.f32 %v654_v62, %v4199_v54  ;;  %v4958_v17 = vsub.s32 3, %v4107_v39  ;;  %3394 = vrcp.f32 %v1344_v37 }
 0x17e   :  { %869 = vst [vmem:[#allocation2 + $0xa0] sm:$0xff] %v3138_v20  ;;  %v3141_v43 = vpack.c.bf16 %v655_v42, %v653_v0  ;;  %v3393_v4 = vpop.eup %3392  ;;  %v4242_v45 = vrot.slane %v4176_v31, %v4958_v17  ;;  %v4247_v0 = vrot.slane %v4176_v31, %v162_v13 }
 0x180   :  { %872 = vst [vmem:[#allocation2 + $0xb8] sm:$0xff] %v3141_v43  ;;  %v1274_v58 = vpop.f32.mrb[32].mxu0  ;;  %v1315_v60 = vpop.f32.mrb[20].mxu1 }
 0x181   :  { %v1275_v21 = vadd.f32 %v1274_v58, %v4236_v22  ;;  %v1276_v49 = vpop.f32.mrb[33].mxu0  ;;  %v1316_v41 = vpop.f32.mrb[21].mxu1 }
 0x182   :  { %v1277_v46 = vpop.f32.mrb[34].mxu0  ;;  %v1317_v34 = vpop.f32.mrb[22].mxu1 }
 0x183   :  { %v1347_v50 = vmul.f32 %v3393_v4, %v1275_v21  ;;  %v1278_v54 = vpop.f32.mrb[35].mxu0  ;;  %v1319_v63 = vpop.f32.mrb[23].mxu1  ;;  %v1318_v58 = vadd.f32 %v1317_v34, %v4247_v0 }
 0x184   :  { %v1279_v56 = vadd.f32 %v1278_v54, %v4242_v45 }
 0x186   :  { %v3395_v46 = vpop.eup %3394 }
 0x187   :  { %v1323_v62 = vld [vmem:[#allocation2 + $0x8] ss:$180 sps:$4 sm:$0xff]   ;;  %v1328_v20 = vld [vmem:[#allocation2 + $0xb4] sm:$0xff]  ;;  %v1350_v13 = vsub.f32 1.0, %v3395_v46  ;;  %v1352_v37 = vmul.f32 0.0, %v3395_v46 }
 0x188   :  { %v1326_v42 = vunpack.c.l.bf16 %v1323_v62  ;;  %v1330_v43 = vunpack.c.l.bf16 %v1328_v20  ;;  %v1331_v60 = vunpack.c.h.bf16 %v1328_v20  ;;  %v4287_v46 = vld [vmem:[#allocation9 + $0x34] ss:$24 sps:$4 sm:$0xff]  }
 0x18a   :  { %v1348_v48 = vadd.f32 %v1347_v50, %v1326_v42  ;;  %v1354_v21 = vadd.f32 %v1330_v43, %v1279_v56  ;;  %v1361_v41 = vadd.f32 %v1331_v60, %v1318_v58  ;;  %v4959_v50 = vsub.s32 5, %v4107_v39 }
 0x18b   :  { %v1332_v58 = vunpack.c.h.bf16 %v1323_v62 }
 0x18c   :  { %3396 = vtanh.f32 %v1348_v48  ;;  %v3071_v49 = vmul.f32 -1.442695, %v1354_v21  ;;  %v3072_v4 = vmul.f32 -1.442695, %v1361_v41  ;;  %v4256_v20 = vrot.slane %v4176_v31, %v4959_v50 }
 0x18e   :  { %3398 = vpow2.f32 %v3071_v49  ;;  %v1320_v56 = vadd.f32 %v1319_v63, %v4256_v20 }
 0x18f   :  { %3400 = vpow2.f32 %v3072_v4  ;;  %v4284_v4 = vld [vmem:[#allocation9] ss:$24 sps:$4 sm:$0xff]  }
 0x196   :  { %v3397_v17 = vpop.eup %3396 }
 0x197   :  { %v1351_v22 = vmul.f32 %v3397_v17, %v1350_v13  ;;  %v4293_v13 = vld [vmem:[#allocation9 + $0x30] ss:$24 sps:$4 sm:$0xff]   ;;  %v4304_v17 = vld [vmem:[#allocation9 + $0x94] ss:$24 sps:$4 sm:$0xff]  }
 0x198   :  { %v3399_v2 = vpop.eup %3398 }
 0x199   :  { %v1358_v53 = vadd.f32 1.0, %v3399_v2  ;;  %v4251_v54 = vadd.f32 %v1352_v37, %v1351_v22  ;;  %v3401_v34 = vpop.eup %3400  ;;  %v4259_v2 = vpop.permute.xlu0 %1378 }
 0x19a   :  { %v1365_v42 = vadd.f32 1.0, %v3401_v34  ;;  %4960 = vst [vmem:[#allocation26_spill] sm:$0xff] %v4259_v2  ;;  %vm1380_vm9 = vcmp.eq.s32.totalorder %v4259_v2, 1 }
 0x19b   :  { %3402 = vrcp.f32 %v1358_v53 }
 0x19c   :  { %3404 = vrcp.f32 %v1365_v42 }
 0x19d   :  { %v4261_v39 = vpop.permute.xlu0 %1386 }
 0x19e   :  { %4961 = vst [vmem:[#allocation27_spill] sm:$0xff] %v4261_v39  ;;  %vm1388_vm8 = vcmp.eq.s32.totalorder %v4261_v39, 1 }
 0x19f   :  { %vm4273_vm10 = vmpackc.low %vm1388_vm8, %vm1380_vm9 }
 0x1a5   :  { %v3403_v43 = vpop.eup %3402 }
 0x1a6   :  { %v1368_v60 = vmul.f32 %v3403_v43, %v1320_v56  ;;  %v3405_v21 = vpop.eup %3404 }
 0x1a7   :  { %v1371_v22 = vsub.f32 1.0, %v3405_v21  ;;  %v1373_v41 = vmul.f32 0.0, %v3405_v21 }
 0x1a8   :  { %v1369_v48 = vadd.f32 %v1368_v60, %v1332_v58 }
 0x1aa   :  { %3406 = vtanh.f32 %v1369_v48 }
 0x1b4   :  { %v3407_v53 = vpop.eup %3406 }
 0x1b5   :  { %v1372_v49 = vmul.f32 %v3407_v53, %v1371_v22 }
 0x1b7   :  { %v4263_v31 = vadd.f32 %v1373_v41, %v1372_v49  ;;  %v1519_v41 = vld [vmem:[#allocation2 + $0x20] ss:$132 sps:$4 sm:$0xff]  }
 0x1b9   :  { %v3143_v63 = vpack.c.bf16 %v4263_v31, %v4251_v54 }
 0x1bb   :  { %3144 = vmatmul.mubr.msk.bf16.vlgmr.msra.gmra.mrb[36].mxu0 %vm4273_vm10, %v3143_v63  ;;  %3147 = vmatmul.mubr.msk.bf16.vlgmr.msra.gmra.mrb[24].mxu1 %vm4273_vm10, %v3143_v63 }
 0x1bc   :  { %1477 = vmatpush1.bf16.msra.mxu0 %v3954_v9  ;;  %1508 = vmatprep.mubr.bf16.mxu0 %v4953_v38  ;;  %v4296_v9 = vld [vmem:[#allocation9 + $0x64] ss:$24 sps:$4 sm:$0xff]  }
 0x1bd   :  { %1478 = vmatprep.subr.bf16.mxu0 %v3962_v12  ;;  %1591 = vmatpush1.bf16.msra.mxu1 %v4284_v4  ;;  %v4301_v12 = vld [vmem:[#allocation9 + $0x60] ss:$24 sps:$4 sm:$0xff]  }
 0x1be   :  { %1592 = vmatprep.subr.bf16.mxu1 %v4287_v46  ;;  %1622 = vmatprep.mubr.bf16.mxu1 %v4953_v38 }
 0x1c0   :  { %1479 = vmatpush1.bf16.msra.mxu0 %v3968_v15  ;;  %v4309_v15 = vld [vmem:[#allocation9 + $0x90] ss:$24 sps:$4 sm:$0xff]  }
 0x1c1   :  { %1480 = vmatprep.subr.bf16.mxu0 %v3972_v16  ;;  %1593 = vmatpush1.bf16.msra.mxu1 %v4293_v13  ;;  %v4971_v16 = vld [vmem:[#allocation24_spill] sm:$0xff] }
 0x1c2   :  { %1594 = vmatprep.subr.bf16.mxu1 %v4296_v9 }
 0x1c4   :  { %1481 = vmatpush1.bf16.msra.mxu0 %v3987_v19 }
 0x1c5   :  { %1482 = vmatprep.subr.bf16.mxu0 %v3998_v24  ;;  %1595 = vmatpush1.bf16.msra.mxu1 %v4301_v12 }
 0x1c6   :  { %1596 = vmatprep.subr.bf16.mxu1 %v4304_v17 }
 0x1c8   :  { %1483 = vmatpush1.bf16.msra.mxu0 %v4004_v26 }
 0x1c9   :  { %1484 = vmatprep.subr.bf16.mxu0 %v4009_v28  ;;  %1597 = vmatpush1.bf16.msra.mxu1 %v4309_v15 }
 0x1ca   :  { %1598 = vmatprep.subr.bf16.mxu1 %v3909_v52  ;;  %v4964_v52 = vld [vmem:[#allocation17_spill] sm:$0xff] }
 0x1cc   :  { %1485 = vmatpush1.bf16.msra.mxu0 %v4018_v30 }
 0x1cd   :  { %1486 = vmatprep.subr.bf16.mxu0 %v4029_v33  ;;  %1599 = vmatpush1.bf16.msra.mxu1 %v3915_v55  ;;  %v4965_v55 = vld [vmem:[#allocation18_spill] sm:$0xff] }
 0x1ce   :  { %1600 = vmatprep.subr.bf16.mxu1 %v3919_v57  ;;  %v4966_v57 = vld [vmem:[#allocation19_spill] sm:$0xff] }
 0x1d0   :  { %1487 = vmatpush1.bf16.msra.mxu0 %v4036_v36 }
 0x1d1   :  { %1488 = vmatprep.subr.bf16.mxu0 %v4042_v40  ;;  %1601 = vmatpush1.bf16.msra.mxu1 %v3923_v59  ;;  %v4967_v59 = vld [vmem:[#allocation20_spill] sm:$0xff] }
 0x1d2   :  { %1602 = vmatprep.subr.bf16.mxu1 %v3927_v61  ;;  %v4347_v61 = vld [vmem:[#allocation9 + $0x4] ss:$24 sps:$4 sm:$0xff]  }
 0x1d3   :  { %4968 = vst [vmem:[#allocation17_spill] sm:$0xff] %v4347_v61 }
 0x1d4   :  { %1489 = vmatpush1.bf16.msra.mxu0 %v4049_v44 }
 0x1d5   :  { %1490 = vmatprep.subr.bf16.mxu0 %v4055_v47  ;;  %1603 = vmatpush1.bf16.msra.mxu1 %v3933_v1 }
 0x1d6   :  { %1604 = vmatprep.subr.bf16.mxu1 %v3937_v3 }
 0x1d8   :  { %1491 = vmatpush1.bf16.msra.mxu0 %v4062_v51 }
 0x1d9   :  { %1631 = vmatprep.subr.bf16.mxu0 %v3944_v6  ;;  %1605 = vmatpush1.bf16.msra.mxu1 %v3941_v5  ;;  %v4969_v5 = vld [vmem:[#allocation23_spill] sm:$0xff] }
 0x1da   :  { %1672 = vmatprep.subr.bf16.mxu1 %v3947_v7  ;;  %v4970_v7 = vld [vmem:[#allocation21_spill] sm:$0xff] }
 0x1db   :  { %3150 = vmatmul.mubr.msk.bf16.vlgmr.msra.gmra.mrb[40].mxu0 %vm4273_vm10, %v3143_v63  ;;  %v1521_v19 = vunpack.c.h.bf16 %v4970_v7  ;;  %v4972_v63 = vld [vmem:[#allocation25_spill] sm:$0xff] }
 0x1dc   :  { %1632 = vmatpush1.bf16.msra.mxu0 %v3951_v8  ;;  %1663 = vmatprep.mubr.bf16.mxu0 %v4953_v38  ;;  %v1520_v8 = vunpack.c.l.bf16 %v4970_v7  ;;  %v1381_v7 = vsel %vm1380_vm9, %v4251_v54, 0.0  ;;  %v4361_v54 = vpop.permute.xlu1 %1574 }
 0x1dd   :  { %1633 = vmatprep.subr.bf16.mxu0 %v3957_v10  ;;  %4973 = vst [vmem:[#allocation18_spill] sm:$0xff] %v4361_v54  ;;  %vm1576_vm11 = vcmp.eq.s32.totalorder %v4361_v54, 1 }
 0x1e0   :  { %1634 = vmatpush1.bf16.msra.mxu0 %v3960_v11 }
 0x1e1   :  { %1635 = vmatprep.subr.bf16.mxu0 %v3966_v14  ;;  %v1524_v14 = vld [vmem:[#allocation2 + $0x9c] sm:$0xff] }
 0x1e2   :  { %v1526_v50 = vunpack.c.l.bf16 %v1524_v14 }
 0x1e4   :  { %1636 = vmatpush1.bf16.msra.mxu0 %v3984_v18 }
 0x1e5   :  { %1637 = vmatprep.subr.bf16.mxu0 %v3994_v23 }
 0x1e8   :  { %1638 = vmatpush1.bf16.msra.mxu0 %v4002_v25 }
 0x1e9   :  { %1639 = vmatprep.subr.bf16.mxu0 %v4007_v27 }
 0x1ec   :  { %1640 = vmatpush1.bf16.msra.mxu0 %v4015_v29 }
 0x1ed   :  { %1641 = vmatprep.subr.bf16.mxu0 %v4026_v32 }
 0x1f0   :  { %1642 = vmatpush1.bf16.msra.mxu0 %v4033_v35 }
 0x1f1   :  { %1643 = vmatprep.subr.bf16.mxu0 %v4964_v52 }
 0x1f4   :  { %1644 = vmatpush1.bf16.msra.mxu0 %v4965_v55 }
 0x1f5   :  { %1645 = vmatprep.subr.bf16.mxu0 %v4966_v57 }
 0x1f8   :  { %1646 = vmatpush1.bf16.msra.mxu0 %v4967_v59 }
 0x1f9   :  { %1786 = vmatprep.subr.bf16.mxu0 %v4347_v61 }
 0x28e   :  { %v1428_v1 = vpop.f32.mrb[36].mxu0  ;;  %v1469_v3 = vpop.f32.mrb[24].mxu1 }
 0x28f   :  { %v1429_v6 = vadd.f32 %v1428_v1, %v4969_v5  ;;  %v1430_v10 = vpop.f32.mrb[37].mxu0  ;;  %v1471_v11 = vpop.f32.mrb[25].mxu1  ;;  %v1470_v62 = vadd.f32 %v1469_v3, %v4972_v63 }
 0x290   :  { %v1431_v18 = vadd.f32 %v1430_v10, %v4971_v16  ;;  %v1432_v23 = vpop.f32.mrb[38].mxu0  ;;  %v1472_v24 = vpop.f32.mrb[26].mxu1 }
 0x291   :  { %v1529_v25 = vadd.f32 %v1520_v8, %v1429_v6  ;;  %v1433_v27 = vpop.f32.mrb[39].mxu0  ;;  %v1473_v29 = vpop.f32.mrb[27].mxu1  ;;  %v1522_v8 = vunpack.c.l.bf16 %v1519_v41 }
 0x292   :  { %v1536_v37 = vadd.f32 %v1521_v19, %v1431_v18  ;;  %v1474_v34 = vadd.f32 %v1473_v29, %v4242_v45  ;;  %v1527_v27 = vunpack.c.h.bf16 %v1524_v14 }
 0x293   :  { %v3073_v42 = vmul.f32 -1.442695, %v1529_v25 }
 0x294   :  { %v3074_v56 = vmul.f32 -1.442695, %v1536_v37  ;;  %v1550_v43 = vadd.f32 %v1526_v50, %v1474_v34 }
 0x295   :  { %3408 = vpow2.f32 %v3073_v42 }
 0x296   :  { %3410 = vpow2.f32 %v3074_v56  ;;  %v3075_v58 = vmul.f32 -1.442695, %v1550_v43 }
 0x298   :  { %3412 = vpow2.f32 %v3075_v58 }
 0x29f   :  { %v3409_v60 = vpop.eup %3408 }
 0x2a0   :  { %v3411_v48 = vpop.eup %3410  ;;  %v1533_v21 = vadd.f32 1.0, %v3409_v60 }
 0x2a1   :  { %v1540_v22 = vadd.f32 1.0, %v3411_v48  ;;  %v1528_v48 = vunpack.c.h.bf16 %v1519_v41 }
 0x2a2   :  { %v3413_v53 = vpop.eup %3412  ;;  %3414 = vrcp.f32 %v1533_v21 }
 0x2a3   :  { %3416 = vrcp.f32 %v1540_v22  ;;  %v1554_v49 = vadd.f32 1.0, %v3413_v53 }
 0x2a5   :  { %3418 = vrcp.f32 %v1554_v49 }
 0x2ac   :  { %v3415_v1 = vpop.eup %3414 }
 0x2ad   :  { %v3417_v6 = vpop.eup %3416  ;;  %v1543_v10 = vmul.f32 %v3415_v1, %v1470_v62  ;;  %v1389_v62 = vsel %vm1388_vm8, %v4263_v31, 0.0  ;;  %v4384_v31 = vld [vmem:[#allocation9 + $0x44] ss:$24 sps:$4 sm:$0xff]  }
 0x2ae   :  { %v1510_v11 = vpop.f32.mrb[40].mxu0  ;;  %v1548_v18 = vmul.f32 %v3417_v6, %v1381_v7  ;;  %v1546_v56 = vsub.f32 1.0, %v3417_v6 }
 0x2af   :  { %v1544_v19 = vadd.f32 %v1543_v10, %v1522_v8  ;;  %v1511_v23 = vpop.f32.mrb[41].mxu0  ;;  %v3419_v37 = vpop.eup %3418 }
 0x2b0   :  { %v1512_v24 = vpop.f32.mrb[42].mxu0  ;;  %v4371_v11 = vpop.permute.xlu1 %1582  ;;  %v4390_v23 = vld [vmem:[#allocation9 + $0x40] ss:$24 sps:$4 sm:$0xff]  }
 0x2b1   :  { %3420 = vtanh.f32 %v1544_v19  ;;  %v1513_v25 = vadd.f32 %v1512_v24, %v4247_v0  ;;  %v1514_v29 = vpop.f32.mrb[43].mxu0  ;;  %4974 = vst [vmem:[#allocation19_spill] sm:$0xff] %v4371_v11  ;;  %vm1584_vm12 = vcmp.eq.s32.totalorder %v4371_v11, 1  ;;  %v4380_v19 = vld [vmem:[#allocation9 + $0x10] ss:$24 sps:$4 sm:$0xff]  }
 0x2b2   :  { %v1515_v3 = vadd.f32 %v1514_v29, %v4256_v20  ;;  %v4393_v24 = vld [vmem:[#allocation9 + $0x74] ss:$24 sps:$4 sm:$0xff]   ;;  %v4409_v29 = vld [vmem:[#allocation9 + $0xc4] ss:$24 sps:$4 sm:$0xff]  }
 0x2b3   :  { %v1557_v34 = vadd.f32 %v1527_v27, %v1513_v25  ;;  %v4398_v25 = vld [vmem:[#allocation9 + $0x70] ss:$24 sps:$4 sm:$0xff]   ;;  %v4401_v27 = vld [vmem:[#allocation9 + $0xa4] ss:$24 sps:$4 sm:$0xff]  }
 0x2b4   :  { %v1564_v50 = vmul.f32 %v3419_v37, %v1515_v3  ;;  %v4414_v3 = vld [vmem:[#allocation9 + $0xc0] ss:$24 sps:$4 sm:$0xff]   ;;  %v4417_v37 = vld [vmem:[#allocation9 + $0xf4] ss:$24 sps:$4 sm:$0xff]  }
 0x2b5   :  { %v3076_v42 = vmul.f32 -1.442695, %v1557_v34  ;;  %v4453_v34 = vld [vmem:[#allocation9 + $0x38] ss:$24 sps:$4 sm:$0xff]  }
 0x2b6   :  { %v1565_v53 = vadd.f32 %v1564_v50, %v1528_v48  ;;  %4975 = vst [vmem:[#allocation20_spill] sm:$0xff] %v4453_v34  ;;  %v4456_v50 = vld [vmem:[#allocation9 + $0x6c] ss:$24 sps:$4 sm:$0xff]  }
 0x2b7   :  { %3422 = vpow2.f32 %v3076_v42  ;;  %4976 = vst [vmem:[#allocation21_spill] sm:$0xff] %v4456_v50  ;;  %v4459_v42 = vld [vmem:[#allocation9 + $0x68] ss:$24 sps:$4 sm:$0xff]  }
 0x2b8   :  { %4977 = vst [vmem:[#allocation24_spill] sm:$0xff] %v4459_v42 }
 0x2bb   :  { %v3421_v43 = vpop.eup %3420 }
 0x2bc   :  { %v1547_v58 = vmul.f32 %v3421_v43, %v1546_v56  ;;  %v4462_v56 = vld [vmem:[#allocation9 + $0x9c] ss:$24 sps:$4 sm:$0xff]   ;;  %v4465_v43 = vld [vmem:[#allocation9 + $0x98] ss:$24 sps:$4 sm:$0xff]  }
 0x2bd   :  { %4978 = vst [vmem:[#allocation25_spill] sm:$0xff] %v4462_v56  ;;  %4979 = vst [vmem:[#allocation28_spill] sm:$0xff] %v4465_v43 }
 0x2be   :  { %v1549_v60 = vadd.f32 %v1548_v18, %v1547_v58  ;;  %v4468_v58 = vld [vmem:[#allocation9 + $0xcc] ss:$24 sps:$4 sm:$0xff]  }
 0x2bf   :  { %4980 = vst [vmem:[#allocation29_spill] sm:$0xff] %v4468_v58 }
 0x2c0   :  { %v4366_v14 = vsel %vm1576_vm11, %v1549_v60, %v1381_v7  ;;  %v4471_v60 = vld [vmem:[#allocation9 + $0xc8] ss:$24 sps:$4 sm:$0xff]  }
 0x2c1   :  { %v3423_v21 = vpop.eup %3422  ;;  %4981 = vst [vmem:[#allocation30_spill] sm:$0xff] %v4471_v60 }
 0x2c2   :  { %v1561_v22 = vadd.f32 1.0, %v3423_v21 }
 0x2c4   :  { %3424 = vrcp.f32 %v1561_v22 }
 0x2c5   :  { %3426 = vtanh.f32 %v1565_v53  ;;  %v4982_v53 = vld [vmem:[#allocation22_spill] sm:$0xff] }
 0x2ce   :  { %v3425_v49 = vpop.eup %3424 }
 0x2cf   :  { %v1567_v1 = vsub.f32 1.0, %v3425_v49  ;;  %v1569_v6 = vmul.f32 %v3425_v49, %v1389_v62  ;;  %v3427_v8 = vpop.eup %3426  ;;  %v1716_v49 = vunpack.c.l.bf16 %v4982_v53 }
 0x2d1   :  { %v1568_v10 = vmul.f32 %v3427_v8, %v1567_v1  ;;  %v1720_v1 = vld [vmem:[#allocation2 + $0x84] sm:$0xff] }
 0x2d3   :  { %v1570_v41 = vadd.f32 %v1569_v6, %v1568_v10 }
 0x2d5   :  { %v4376_v7 = vsel %vm1584_vm12, %v1570_v41, %v1389_v62 }
 0x2d6   :  { %v1589_v18 = vpack.c.bf16 %v4376_v7, %v4366_v14 }
 0x2d8   :  { %1623 = vmatmul.mubr.bf16.vlgmr.msra.gmra.mrb[28].mxu1 %v1589_v18  ;;  %1664 = vmatmul.mubr.bf16.vlgmr.msra.gmra.mrb[44].mxu0 %v1589_v18 }
 0x2d9   :  { %1673 = vmatpush1.bf16.msra.mxu1 %v4380_v19  ;;  %1704 = vmatprep.mubr.bf16.mxu1 %v4953_v38 }
 0x2da   :  { %1674 = vmatprep.subr.bf16.mxu1 %v4384_v31  ;;  %1787 = vmatpush1.bf16.msra.mxu0 %v4284_v4 }
 0x2db   :  { %1788 = vmatprep.subr.bf16.mxu0 %v4287_v46  ;;  %1818 = vmatprep.mubr.bf16.mxu0 %v4953_v38 }
 0x2dd   :  { %1675 = vmatpush1.bf16.msra.mxu1 %v4390_v23 }
 0x2de   :  { %1676 = vmatprep.subr.bf16.mxu1 %v4393_v24  ;;  %1789 = vmatpush1.bf16.msra.mxu0 %v4293_v13 }
 0x2df   :  { %1790 = vmatprep.subr.bf16.mxu0 %v4296_v9 }
 0x2e1   :  { %1677 = vmatpush1.bf16.msra.mxu1 %v4398_v25 }
 0x2e2   :  { %1678 = vmatprep.subr.bf16.mxu1 %v4401_v27  ;;  %1791 = vmatpush1.bf16.msra.mxu0 %v4301_v12 }
 0x2e3   :  { %1792 = vmatprep.subr.bf16.mxu0 %v4304_v17 }
 0x2e5   :  { %1679 = vmatpush1.bf16.msra.mxu1 %v4004_v26  ;;  %v4422_v26 = vld [vmem:[#allocation9 + $0xf0] ss:$24 sps:$4 sm:$0xff]  }
 0x2e6   :  { %1680 = vmatprep.subr.bf16.mxu1 %v4009_v28  ;;  %1793 = vmatpush1.bf16.msra.mxu0 %v4309_v15  ;;  %v4425_v28 = vld [vmem:[#allocation9 + $0x124] ss:$24 sps:$4 sm:$0xff]  }
 0x2e7   :  { %1794 = vmatprep.subr.bf16.mxu0 %v4409_v29 }
 0x2e9   :  { %1681 = vmatpush1.bf16.msra.mxu1 %v4018_v30  ;;  %v4430_v30 = vld [vmem:[#allocation9 + $0x120] ss:$24 sps:$4 sm:$0xff]  }
 0x2ea   :  { %1682 = vmatprep.subr.bf16.mxu1 %v4029_v33  ;;  %1795 = vmatpush1.bf16.msra.mxu0 %v4414_v3  ;;  %v4433_v33 = vld [vmem:[#allocation9 + $0x154] ss:$24 sps:$4 sm:$0xff]  }
 0x2eb   :  { %1796 = vmatprep.subr.bf16.mxu0 %v4417_v37 }
 0x2ed   :  { %1683 = vmatpush1.bf16.msra.mxu1 %v4036_v36  ;;  %v4437_v36 = vld [vmem:[#allocation9 + $0xc] ss:$24 sps:$4 sm:$0xff]  }
 0x2ee   :  { %1684 = vmatprep.subr.bf16.mxu1 %v4042_v40  ;;  %1797 = vmatpush1.bf16.msra.mxu0 %v4422_v26  ;;  %v4440_v40 = vld [vmem:[#allocation9 + $0x150] ss:$24 sps:$4 sm:$0xff]  }
 0x2ef   :  { %1798 = vmatprep.subr.bf16.mxu0 %v4425_v28 }
 0x2f1   :  { %1685 = vmatpush1.bf16.msra.mxu1 %v4049_v44  ;;  %v4443_v44 = vld [vmem:[#allocation9 + $0x14] ss:$24 sps:$4 sm:$0xff]  }
 0x2f2   :  { %1686 = vmatprep.subr.bf16.mxu1 %v4055_v47  ;;  %1799 = vmatpush1.bf16.msra.mxu0 %v4430_v30  ;;  %v4446_v47 = vld [vmem:[#allocation9 + $0x8] ss:$24 sps:$4 sm:$0xff]  }
 0x2f3   :  { %1800 = vmatprep.subr.bf16.mxu0 %v4433_v33 }
 0x2f5   :  { %1687 = vmatpush1.bf16.msra.mxu1 %v4062_v51  ;;  %v4450_v51 = vld [vmem:[#allocation9 + $0x3c] ss:$24 sps:$4 sm:$0xff]  }
 0x2f6   :  { %1827 = vmatprep.subr.bf16.mxu1 %v4437_v36  ;;  %1801 = vmatpush1.bf16.msra.mxu0 %v4440_v40 }
 0x2f7   :  { %1868 = vmatprep.subr.bf16.mxu0 %v4443_v44 }
 0x2f8   :  { %1705 = vmatmul.mubr.bf16.vlgmr.msra.gmra.mrb[32].mxu1 %v1589_v18  ;;  %v1722_v18 = vunpack.c.l.bf16 %v1720_v1 }
 0x2f9   :  { %1828 = vmatpush1.bf16.msra.mxu1 %v4446_v47  ;;  %1859 = vmatprep.mubr.bf16.mxu1 %v4953_v38 }
 0x2fa   :  { %1829 = vmatprep.subr.bf16.mxu1 %v4450_v51 }
 0x2fd   :  { %1830 = vmatpush1.bf16.msra.mxu1 %v4453_v34 }
 0x2fe   :  { %1831 = vmatprep.subr.bf16.mxu1 %v4456_v50 }
 0x301   :  { %1832 = vmatpush1.bf16.msra.mxu1 %v4459_v42 }
 0x302   :  { %1833 = vmatprep.subr.bf16.mxu1 %v4462_v56 }
 0x305   :  { %1834 = vmatpush1.bf16.msra.mxu1 %v4465_v43 }
 0x306   :  { %1835 = vmatprep.subr.bf16.mxu1 %v4468_v58 }
 0x309   :  { %1836 = vmatpush1.bf16.msra.mxu1 %v4471_v60 }
 0x30a   :  { %1837 = vmatprep.subr.bf16.mxu1 %v4026_v32 }
 0x30d   :  { %1838 = vmatpush1.bf16.msra.mxu1 %v4033_v35 }
 0x30e   :  { %1839 = vmatprep.subr.bf16.mxu1 %v4964_v52  ;;  %v1717_v52 = vunpack.c.h.bf16 %v4982_v53 }
 0x311   :  { %1840 = vmatpush1.bf16.msra.mxu1 %v4965_v55 }
 0x312   :  { %1841 = vmatprep.subr.bf16.mxu1 %v4966_v57 }
 0x315   :  { %1842 = vmatpush1.bf16.msra.mxu1 %v4967_v59 }
 0x316   :  { %1982 = vmatprep.subr.bf16.mxu1 %v4347_v61 }
 0x3ab   :  { %v1624_v48 = vpop.f32.mrb[28].mxu1  ;;  %v1665_v21 = vpop.f32.mrb[44].mxu0 }
 0x3ac   :  { %v1625_v22 = vadd.f32 %v1624_v48, %v4969_v5  ;;  %v1626_v62 = vpop.f32.mrb[29].mxu1  ;;  %v1667_v32 = vpop.f32.mrb[45].mxu0 }
 0x3ad   :  { %v1627_v35 = vadd.f32 %v1626_v62, %v4971_v16  ;;  %v1628_v55 = vpop.f32.mrb[30].mxu1  ;;  %v1668_v6 = vpop.f32.mrb[46].mxu0 }
 0x3ae   :  { %v1725_v57 = vadd.f32 %v1716_v49, %v1625_v22  ;;  %v1629_v8 = vpop.f32.mrb[31].mxu1  ;;  %v1669_v59 = vpop.f32.mrb[47].mxu0  ;;  %v1715_v49 = vld [vmem:[#allocation2 + $0x38] ss:$84 sps:$4 sm:$0xff]  }
 0x3af   :  { %v1732_v10 = vadd.f32 %v1717_v52, %v1627_v35  ;;  %v1670_v41 = vadd.f32 %v1669_v59, %v4242_v45  ;;  %v1666_v35 = vadd.f32 %v1665_v21, %v4972_v63  ;;  %v1718_v6 = vunpack.c.l.bf16 %v1715_v49 }
 0x3b0   :  { %v3077_v2 = vmul.f32 -1.442695, %v1725_v57 }
 0x3b1   :  { %v1746_v48 = vadd.f32 %v1722_v18, %v1670_v41  ;;  %v3078_v54 = vmul.f32 -1.442695, %v1732_v10  ;;  %v1723_v10 = vunpack.c.h.bf16 %v1720_v1 }
 0x3b2   :  { %3428 = vpow2.f32 %v3077_v2 }
 0x3b3   :  { %v3079_v39 = vmul.f32 -1.442695, %v1746_v48 }
 0x3b5   :  { %3430 = vpow2.f32 %v3079_v39 }
 0x3b6   :  { %3432 = vpow2.f32 %v3078_v54 }
 0x3bc   :  { %v3429_v32 = vpop.eup %3428 }
 0x3bd   :  { %v1729_v62 = vadd.f32 1.0, %v3429_v32 }
 0x3bf   :  { %v3431_v11 = vpop.eup %3430  ;;  %3434 = vrcp.f32 %v1729_v62 }
 0x3c0   :  { %v1750_v53 = vadd.f32 1.0, %v3431_v11  ;;  %v3433_v55 = vpop.eup %3432 }
 0x3c1   :  { %v1736_v22 = vadd.f32 1.0, %v3433_v55 }
 0x3c2   :  { %3436 = vrcp.f32 %v1750_v53 }
 0x3c3   :  { %3438 = vrcp.f32 %v1736_v22 }
 0x3c9   :  { %v3435_v52 = vpop.eup %3434 }
 0x3ca   :  { %v1739_v57 = vmul.f32 %v3435_v52, %v1666_v35 }
 0x3cb   :  { %v1706_v2 = vpop.f32.mrb[32].mxu1 }
 0x3cc   :  { %v1740_v8 = vadd.f32 %v1739_v57, %v1718_v6  ;;  %v1707_v59 = vpop.f32.mrb[33].mxu1  ;;  %v3437_v18 = vpop.eup %3436  ;;  %v1724_v6 = vunpack.c.h.bf16 %v1715_v49 }
 0x3cd   :  { %v1708_v39 = vpop.f32.mrb[34].mxu1  ;;  %v3439_v21 = vpop.eup %3438 }
 0x3ce   :  { %3440 = vtanh.f32 %v1740_v8  ;;  %v1709_v54 = vadd.f32 %v1708_v39, %v4247_v0  ;;  %v1710_v41 = vpop.f32.mrb[35].mxu1  ;;  %v1742_v53 = vsub.f32 1.0, %v3439_v21  ;;  %v1744_v35 = vmul.f32 %v3439_v21, %v4366_v14  ;;  %v4534_v21 = vld [vmem:[#allocation9 + $0x104] ss:$24 sps:$4 sm:$0xff]  }
 0x3cf   :  { %v1711_v11 = vadd.f32 %v1710_v41, %v4256_v20  ;;  %v4491_v41 = vpop.permute.xlu0 %1770 }
 0x3d0   :  { %v1753_v48 = vadd.f32 %v1723_v10, %v1709_v54  ;;  %4983 = vst [vmem:[#allocation22_spill] sm:$0xff] %v4491_v41  ;;  %vm1772_vm13 = vcmp.eq.s32.totalorder %v4491_v41, 1 }
 0x3d1   :  { %v1760_v32 = vmul.f32 %v3437_v18, %v1711_v11  ;;  %v4493_v11 = vpop.permute.xlu1 %1778 }
 0x3d2   :  { %v3080_v62 = vmul.f32 -1.442695, %v1753_v48  ;;  %4984 = vst [vmem:[#allocation31_spill] sm:$0xff] %v4493_v11  ;;  %vm1780_vm14 = vcmp.eq.s32.totalorder %v4493_v11, 1 }
 0x3d3   :  { %v1761_v8 = vadd.f32 %v1760_v32, %v1724_v6  ;;  %v4571_v6 = vld [vmem:[#allocation9 + $0xfc] ss:$24 sps:$4 sm:$0xff]  }
 0x3d4   :  { %3442 = vpow2.f32 %v3080_v62  ;;  %v4531_v62 = vld [vmem:[#allocation9 + $0xd0] ss:$24 sps:$4 sm:$0xff]   ;;  %4985 = vst [vmem:[#allocation32_spill] sm:$0xff] %v4571_v6 }
 0x3d8   :  { %v3441_v55 = vpop.eup %3440 }
 0x3d9   :  { %v1743_v22 = vmul.f32 %v3441_v55, %v1742_v53  ;;  %v4539_v53 = vld [vmem:[#allocation9 + $0x100] ss:$24 sps:$4 sm:$0xff]   ;;  %v4542_v55 = vld [vmem:[#allocation9 + $0x134] ss:$24 sps:$4 sm:$0xff]  }
 0x3db   :  { %v1745_v52 = vadd.f32 %v1744_v35, %v1743_v22  ;;  %v4547_v22 = vld [vmem:[#allocation9 + $0x130] ss:$24 sps:$4 sm:$0xff]   ;;  %v4550_v35 = vld [vmem:[#allocation9 + $0x164] ss:$24 sps:$4 sm:$0xff]  }
 0x3dd   :  { %v4500_v49 = vsel %vm1772_vm13, %v1745_v52, %v4366_v14  ;;  %v4523_v14 = vld [vmem:[#allocation9 + $0xa0] ss:$24 sps:$4 sm:$0xff]  }
 0x3de   :  { %v3443_v57 = vpop.eup %3442  ;;  %v4555_v52 = vld [vmem:[#allocation9 + $0x160] ss:$24 sps:$4 sm:$0xff]  }
 0x3df   :  { %v1757_v2 = vadd.f32 1.0, %v3443_v57  ;;  %v4574_v57 = vld [vmem:[#allocation9 + $0xf8] ss:$24 sps:$4 sm:$0xff]  }
 0x3e0   :  { %4986 = vst [vmem:[#allocation33_spill] sm:$0xff] %v4574_v57 }
 0x3e1   :  { %3444 = vrcp.f32 %v1757_v2  ;;  %v4577_v2 = vld [vmem:[#allocation9 + $0x12c] ss:$24 sps:$4 sm:$0xff]  }
 0x3e2   :  { %3446 = vtanh.f32 %v1761_v8  ;;  %4987 = vst [vmem:[#allocation34_spill] sm:$0xff] %v4577_v2  ;;  %v4580_v8 = vld [vmem:[#allocation9 + $0x128] ss:$24 sps:$4 sm:$0xff]  }
 0x3e3   :  { %4988 = vst [vmem:[#allocation35_spill] sm:$0xff] %v4580_v8 }
 0x3eb   :  { %v3445_v1 = vpop.eup %3444 }
 0x3ec   :  { %v1763_v59 = vsub.f32 1.0, %v3445_v1  ;;  %v3447_v39 = vpop.eup %3446  ;;  %v1765_v10 = vmul.f32 %v3445_v1, %v4376_v7  ;;  %v4583_v1 = vld [vmem:[#allocation9 + $0x15c] ss:$24 sps:$4 sm:$0xff]  }
 0x3ed   :  { %4989 = vst [vmem:[#allocation36_spill] sm:$0xff] %v4583_v1 }
 0x3ee   :  { %v1764_v54 = vmul.f32 %v3447_v39, %v1763_v59  ;;  %v4586_v59 = vld [vmem:[#allocation9 + $0x158] ss:$24 sps:$4 sm:$0xff]   ;;  %v1910_v39 = vld [vmem:[#allocation2 + $0x48] sm:$0xff] }
 0x3ef   :  { %4990 = vst [vmem:[#allocation37_spill] sm:$0xff] %v4586_v59 }
 0x3f0   :  { %v1766_v18 = vadd.f32 %v1765_v10, %v1764_v54 }
 0x3f2   :  { %v4505_v48 = vsel %vm1780_vm14, %v1766_v18, %v4376_v7  ;;  %v4526_v7 = vld [vmem:[#allocation9 + $0xd4] ss:$24 sps:$4 sm:$0xff]  }
 0x3f3   :  { %v1785_v32 = vpack.c.bf16 %v4505_v48, %v4500_v49 }
 0x3f5   :  { %1819 = vmatmul.mubr.bf16.vlgmr.msra.gmra.mrb[48].mxu0 %v1785_v32  ;;  %1860 = vmatmul.mubr.bf16.vlgmr.msra.gmra.mrb[36].mxu1 %v1785_v32 }
 0x3f6   :  { %1869 = vmatpush1.bf16.msra.mxu0 %v4380_v19  ;;  %1900 = vmatprep.mubr.bf16.mxu0 %v4953_v38 }
 0x3f7   :  { %1870 = vmatprep.subr.bf16.mxu0 %v4384_v31  ;;  %1983 = vmatpush1.bf16.msra.mxu1 %v4284_v4 }
 0x3f8   :  { %1984 = vmatprep.subr.bf16.mxu1 %v4287_v46  ;;  %2014 = vmatprep.mubr.bf16.mxu1 %v4953_v38 }
 0x3fa   :  { %1871 = vmatpush1.bf16.msra.mxu0 %v4390_v23 }
 0x3fb   :  { %1872 = vmatprep.subr.bf16.mxu0 %v4393_v24  ;;  %1985 = vmatpush1.bf16.msra.mxu1 %v4293_v13 }
 0x3fc   :  { %1986 = vmatprep.subr.bf16.mxu1 %v4296_v9 }
 0x3fe   :  { %1873 = vmatpush1.bf16.msra.mxu0 %v4398_v25 }
 0x3ff   :  { %1874 = vmatprep.subr.bf16.mxu0 %v4401_v27  ;;  %1987 = vmatpush1.bf16.msra.mxu1 %v4301_v12 }
 0x400   :  { %1988 = vmatprep.subr.bf16.mxu1 %v4304_v17 }
 0x402   :  { %1875 = vmatpush1.bf16.msra.mxu0 %v4523_v14 }
 0x403   :  { %1876 = vmatprep.subr.bf16.mxu0 %v4526_v7  ;;  %1989 = vmatpush1.bf16.msra.mxu1 %v4309_v15 }
 0x404   :  { %1990 = vmatprep.subr.bf16.mxu1 %v4409_v29 }
 0x406   :  { %1877 = vmatpush1.bf16.msra.mxu0 %v4531_v62 }
 0x407   :  { %1878 = vmatprep.subr.bf16.mxu0 %v4534_v21  ;;  %1991 = vmatpush1.bf16.msra.mxu1 %v4414_v3 }
 0x408   :  { %1992 = vmatprep.subr.bf16.mxu1 %v4417_v37 }
 0x40a   :  { %1879 = vmatpush1.bf16.msra.mxu0 %v4539_v53 }
 0x40b   :  { %1880 = vmatprep.subr.bf16.mxu0 %v4542_v55  ;;  %1993 = vmatpush1.bf16.msra.mxu1 %v4422_v26 }
 0x40c   :  { %1994 = vmatprep.subr.bf16.mxu1 %v4425_v28 }
 0x40e   :  { %1881 = vmatpush1.bf16.msra.mxu0 %v4547_v22 }
 0x40f   :  { %1882 = vmatprep.subr.bf16.mxu0 %v4550_v35  ;;  %1995 = vmatpush1.bf16.msra.mxu1 %v4430_v30 }
 0x410   :  { %1996 = vmatprep.subr.bf16.mxu1 %v4433_v33 }
 0x412   :  { %1883 = vmatpush1.bf16.msra.mxu0 %v4555_v52 }
 0x413   :  { %2023 = vmatprep.subr.bf16.mxu0 %v4437_v36  ;;  %1997 = vmatpush1.bf16.msra.mxu1 %v4440_v40 }
 0x414   :  { %2064 = vmatprep.subr.bf16.mxu1 %v4443_v44 }
 0x415   :  { %1901 = vmatmul.mubr.bf16.vlgmr.msra.gmra.mrb[52].mxu0 %v1785_v32  ;;  %v1912_v32 = vunpack.c.l.bf16 %v1910_v39 }
 0x416   :  { %2024 = vmatpush1.bf16.msra.mxu0 %v4446_v47  ;;  %2055 = vmatprep.mubr.bf16.mxu0 %v4953_v38 }
 0x417   :  { %2025 = vmatprep.subr.bf16.mxu0 %v4450_v51 }
 0x41a   :  { %2026 = vmatpush1.bf16.msra.mxu0 %v4453_v34 }
 0x41b   :  { %2027 = vmatprep.subr.bf16.mxu0 %v4456_v50 }
 0x41e   :  { %2028 = vmatpush1.bf16.msra.mxu0 %v4459_v42 }
 0x41f   :  { %2029 = vmatprep.subr.bf16.mxu0 %v4462_v56 }
 0x422   :  { %2030 = vmatpush1.bf16.msra.mxu0 %v4465_v43  ;;  %v1913_v43 = vunpack.c.h.bf16 %v1910_v39  ;;  %v1911_v39 = vld [vmem:[#allocation2 + $0x50] ss:$36 sps:$4 sm:$0xff]  }
 0x423   :  { %2031 = vmatprep.subr.bf16.mxu0 %v4468_v58 }
 0x426   :  { %2032 = vmatpush1.bf16.msra.mxu0 %v4471_v60 }
 0x427   :  { %2033 = vmatprep.subr.bf16.mxu0 %v4571_v6 }
 0x42a   :  { %2034 = vmatpush1.bf16.msra.mxu0 %v4574_v57 }
 0x42b   :  { %2035 = vmatprep.subr.bf16.mxu0 %v4577_v2  ;;  %v1916_v2 = vld [vmem:[#allocation2 + $0x6c] sm:$0xff] }
 0x42e   :  { %2036 = vmatpush1.bf16.msra.mxu0 %v4580_v8 }
 0x42f   :  { %2037 = vmatprep.subr.bf16.mxu0 %v4583_v1 }
 0x432   :  { %2038 = vmatpush1.bf16.msra.mxu0 %v4586_v59 }
 0x433   :  { %2164 = vmatprep.subr.bf16.mxu0 %v4347_v61  ;;  %v1918_v61 = vunpack.c.l.bf16 %v1916_v2 }
 0x4c8   :  { %v1820_v54 = vpop.f32.mrb[48].mxu0  ;;  %v1861_v10 = vpop.f32.mrb[36].mxu1 }
 0x4c9   :  { %v1821_v18 = vadd.f32 %v1820_v54, %v4969_v5  ;;  %v1822_v41 = vpop.f32.mrb[49].mxu0  ;;  %v1863_v11 = vpop.f32.mrb[37].mxu1 }
 0x4ca   :  { %v1823_v8 = vadd.f32 %v1822_v41, %v4971_v16  ;;  %v1824_v57 = vpop.f32.mrb[50].mxu0  ;;  %v1864_v6 = vpop.f32.mrb[38].mxu1 }
 0x4cb   :  { %v1921_v1 = vadd.f32 %v1912_v32, %v1821_v18  ;;  %v1825_v60 = vpop.f32.mrb[51].mxu0  ;;  %v1865_v58 = vpop.f32.mrb[39].mxu1 }
 0x4cc   :  { %v1866_v59 = vadd.f32 %v1865_v58, %v4242_v45  ;;  %v1928_v42 = vadd.f32 %v1913_v43, %v1823_v8  ;;  %v1862_v58 = vadd.f32 %v1861_v10, %v4972_v63  ;;  %v1919_v8 = vunpack.c.h.bf16 %v1916_v2 }
 0x4cd   :  { %v3081_v56 = vmul.f32 -1.442695, %v1921_v1  ;;  %v1914_v1 = vunpack.c.l.bf16 %v1911_v39 }
 0x4ce   :  { %v1942_v50 = vadd.f32 %v1918_v61, %v1866_v59  ;;  %v3082_v5 = vmul.f32 -1.442695, %v1928_v42 }
 0x4cf   :  { %3448 = vpow2.f32 %v3081_v56 }
 0x4d0   :  { %v3083_v54 = vmul.f32 -1.442695, %v1942_v50 }
 0x4d2   :  { %3450 = vpow2.f32 %v3083_v54 }
 0x4d3   :  { %3452 = vpow2.f32 %v3082_v5 }
 0x4d9   :  { %v3449_v11 = vpop.eup %3448 }
 0x4da   :  { %v1925_v34 = vadd.f32 1.0, %v3449_v11 }
 0x4dc   :  { %v3451_v41 = vpop.eup %3450  ;;  %3454 = vrcp.f32 %v1925_v34 }
 0x4dd   :  { %v1946_v6 = vadd.f32 1.0, %v3451_v41  ;;  %v3453_v57 = vpop.eup %3452 }
 0x4de   :  { %v1932_v60 = vadd.f32 1.0, %v3453_v57 }
 0x4df   :  { %3456 = vrcp.f32 %v1946_v6 }
 0x4e0   :  { %3458 = vrcp.f32 %v1932_v60 }
 0x4e6   :  { %v3455_v18 = vpop.eup %3454 }
 0x4e7   :  { %v1935_v43 = vmul.f32 %v3455_v18, %v1862_v58 }
 0x4e8   :  { %v1902_v61 = vpop.f32.mrb[52].mxu0 }
 0x4e9   :  { %v1936_v50 = vadd.f32 %v1935_v43, %v1914_v1  ;;  %v1903_v42 = vpop.f32.mrb[53].mxu0  ;;  %v3457_v32 = vpop.eup %3456  ;;  %v1920_v1 = vunpack.c.h.bf16 %v1911_v39 }
 0x4ea   :  { %v1904_v56 = vpop.f32.mrb[54].mxu0  ;;  %v3459_v10 = vpop.eup %3458 }
 0x4eb   :  { %3460 = vtanh.f32 %v1936_v50  ;;  %v1905_v5 = vadd.f32 %v1904_v56, %v4247_v0  ;;  %v1906_v34 = vpop.f32.mrb[55].mxu0  ;;  %v1938_v6 = vsub.f32 1.0, %v3459_v10  ;;  %v1940_v58 = vmul.f32 %v3459_v10, %v4500_v49  ;;  %v5001_v10 = vld [vmem:[#allocation35_spill] sm:$0xff] }
 0x4ec   :  { %v1907_v59 = vadd.f32 %v1906_v34, %v4256_v20 }
 0x4ed   :  { %v1949_v54 = vadd.f32 %v1919_v8, %v1905_v5  ;;  %v4597_v5 = vpop.permute.xlu0 %1966  ;;  %v4599_v8 = vpop.permute.xlu1 %1974 }
 0x4ee   :  { %v1956_v11 = vmul.f32 %v3457_v32, %v1907_v59  ;;  %vm1968_vm15 = vcmp.eq.s32.totalorder %v4597_v5, 1  ;;  %vm1976_vm0 = vcmp.eq.s32.totalorder %v4599_v8, 1  ;;  %v4693_v8 = vld [vmem:[#allocation9 + $0x34] ss:$24 sps:$4 sm:$0xff]   ;;  %v4699_v5 = vld [vmem:[#allocation9 + $0x30] ss:$24 sps:$4 sm:$0xff]  }
 0x4ef   :  { %v3084_v41 = vmul.f32 -1.442695, %v1949_v54 }
 0x4f0   :  { %v1957_v50 = vadd.f32 %v1956_v11, %v1920_v1 }
 0x4f1   :  { %3462 = vpow2.f32 %v3084_v41  ;;  %v5000_v41 = vld [vmem:[#allocation34_spill] sm:$0xff] }
 0x4f5   :  { %v3461_v57 = vpop.eup %3460 }
 0x4f6   :  { %v1939_v60 = vmul.f32 %v3461_v57, %v1938_v6  ;;  %v5002_v6 = vld [vmem:[#allocation36_spill] sm:$0xff]  ;;  %v5003_v57 = vld [vmem:[#allocation37_spill] sm:$0xff] }
 0x4f8   :  { %v1941_v18 = vadd.f32 %v1940_v58, %v1939_v60  ;;  %v5004_v60 = vld [vmem:[#allocation17_spill] sm:$0xff]  ;;  %v2105_v58 = vld [vmem:[#allocation2 + $0x60] sm:$0xff] }
 0x4fa   :  { %v4607_v39 = vsel %vm1968_vm15, %v1941_v18, %v4500_v49  ;;  %v4998_v49 = vld [vmem:[#allocation32_spill] sm:$0xff] }
 0x4fb   :  { %v3463_v43 = vpop.eup %3462 }
 0x4fc   :  { %v1953_v61 = vadd.f32 1.0, %v3463_v43  ;;  %v5005_v43 = vld [vmem:[#allocation23_spill] sm:$0xff] }
 0x4fe   :  { %3464 = vrcp.f32 %v1953_v61 }
 0x4ff   :  { %3466 = vtanh.f32 %v1957_v50  ;;  %v2107_v50 = vunpack.c.l.bf16 %v2105_v58 }
 0x508   :  { %v3465_v2 = vpop.eup %3464 }
 0x509   :  { %v1959_v42 = vsub.f32 1.0, %v3465_v2  ;;  %v3467_v56 = vpop.eup %3466  ;;  %v1961_v59 = vmul.f32 %v3465_v2, %v4505_v48 }
 0x50b   :  { %v1960_v34 = vmul.f32 %v3467_v56, %v1959_v42  ;;  %v2110_v56 = vld [vmem:[#allocation2 + $0x54] sm:$0xff] }
 0x50d   :  { %v1962_v32 = vadd.f32 %v1961_v59, %v1960_v34 }
 0x50f   :  { %v4612_v54 = vsel %vm1976_vm0, %v1962_v32, %v4505_v48  ;;  %v4999_v48 = vld [vmem:[#allocation33_spill] sm:$0xff] }
 0x510   :  { %v1981_v11 = vpack.c.bf16 %v4612_v54, %v4607_v39 }
 0x512   :  { %2015 = vmatmul.mubr.bf16.vlgmr.msra.gmra.mrb[40].mxu1 %v1981_v11  ;;  %2056 = vmatmul.mubr.bf16.vlgmr.msra.gmra.mrb[56].mxu0 %v1981_v11 }
 0x513   :  { %2065 = vmatpush1.bf16.msra.mxu1 %v4380_v19  ;;  %2096 = vmatprep.mubr.bf16.mxu1 %v4953_v38 }
 0x514   :  { %2066 = vmatprep.subr.bf16.mxu1 %v4384_v31  ;;  %2165 = vmatpush1.bf16.msra.mxu0 %v4284_v4  ;;  %v4991_v4 = vld [vmem:[#allocation20_spill] sm:$0xff] }
 0x515   :  { %2166 = vmatprep.subr.bf16.mxu0 %v4287_v46  ;;  %2196 = vmatprep.mubr.bf16.mxu0 %v4953_v38  ;;  %v4992_v46 = vld [vmem:[#allocation21_spill] sm:$0xff] }
 0x517   :  { %2067 = vmatpush1.bf16.msra.mxu1 %v4390_v23 }
 0x518   :  { %2068 = vmatprep.subr.bf16.mxu1 %v4393_v24  ;;  %2167 = vmatpush1.bf16.msra.mxu0 %v4293_v13  ;;  %v4993_v13 = vld [vmem:[#allocation24_spill] sm:$0xff] }
 0x519   :  { %2168 = vmatprep.subr.bf16.mxu0 %v4296_v9  ;;  %v4994_v9 = vld [vmem:[#allocation25_spill] sm:$0xff] }
 0x51b   :  { %2069 = vmatpush1.bf16.msra.mxu1 %v4398_v25 }
 0x51c   :  { %2070 = vmatprep.subr.bf16.mxu1 %v4401_v27  ;;  %2169 = vmatpush1.bf16.msra.mxu0 %v4301_v12  ;;  %v4995_v12 = vld [vmem:[#allocation28_spill] sm:$0xff] }
 0x51d   :  { %2170 = vmatprep.subr.bf16.mxu0 %v4304_v17  ;;  %v4996_v17 = vld [vmem:[#allocation29_spill] sm:$0xff] }
 0x51f   :  { %2071 = vmatpush1.bf16.msra.mxu1 %v4523_v14 }
 0x520   :  { %2072 = vmatprep.subr.bf16.mxu1 %v4526_v7  ;;  %2171 = vmatpush1.bf16.msra.mxu0 %v4309_v15  ;;  %v4997_v15 = vld [vmem:[#allocation30_spill] sm:$0xff] }
 0x521   :  { %2172 = vmatprep.subr.bf16.mxu0 %v4409_v29 }
 0x523   :  { %2073 = vmatpush1.bf16.msra.mxu1 %v4531_v62 }
 0x524   :  { %2074 = vmatprep.subr.bf16.mxu1 %v4534_v21  ;;  %2173 = vmatpush1.bf16.msra.mxu0 %v4414_v3 }
 0x525   :  { %2174 = vmatprep.subr.bf16.mxu0 %v4417_v37 }
 0x527   :  { %2075 = vmatpush1.bf16.msra.mxu1 %v4539_v53 }
 0x528   :  { %2076 = vmatprep.subr.bf16.mxu1 %v4542_v55  ;;  %2175 = vmatpush1.bf16.msra.mxu0 %v4422_v26 }
 0x529   :  { %2176 = vmatprep.subr.bf16.mxu0 %v4425_v28 }
 0x52b   :  { %2077 = vmatpush1.bf16.msra.mxu1 %v4547_v22 }
 0x52c   :  { %2078 = vmatprep.subr.bf16.mxu1 %v4550_v35  ;;  %2177 = vmatpush1.bf16.msra.mxu0 %v4430_v30 }
 0x52d   :  { %2178 = vmatprep.subr.bf16.mxu0 %v4433_v33 }
 0x52f   :  { %2079 = vmatpush1.bf16.msra.mxu1 %v4555_v52 }
 0x530   :  { %2205 = vmatprep.subr.bf16.mxu1 %v4437_v36  ;;  %2179 = vmatpush1.bf16.msra.mxu0 %v4440_v40 }
 0x531   :  { %2246 = vmatprep.subr.bf16.mxu0 %v4443_v44 }
 0x532   :  { %2097 = vmatmul.mubr.bf16.vlgmr.msra.gmra.mrb[44].mxu1 %v1981_v11 }
 0x533   :  { %2206 = vmatpush1.bf16.msra.mxu1 %v4446_v47  ;;  %2237 = vmatprep.mubr.bf16.mxu1 %v4953_v38 }
 0x534   :  { %2207 = vmatprep.subr.bf16.mxu1 %v4450_v51 }
 0x537   :  { %2208 = vmatpush1.bf16.msra.mxu1 %v4991_v4 }
 0x538   :  { %2209 = vmatprep.subr.bf16.mxu1 %v4992_v46 }
 0x53b   :  { %2210 = vmatpush1.bf16.msra.mxu1 %v4993_v13 }
 0x53c   :  { %2211 = vmatprep.subr.bf16.mxu1 %v4994_v9 }
 0x53f   :  { %2212 = vmatpush1.bf16.msra.mxu1 %v4995_v12 }
 0x540   :  { %2213 = vmatprep.subr.bf16.mxu1 %v4996_v17 }
 0x543   :  { %2214 = vmatpush1.bf16.msra.mxu1 %v4997_v15 }
 0x544   :  { %2215 = vmatprep.subr.bf16.mxu1 %v4998_v49 }
 0x547   :  { %2216 = vmatpush1.bf16.msra.mxu1 %v4999_v48 }
 0x548   :  { %2217 = vmatprep.subr.bf16.mxu1 %v5000_v41  ;;  %v2108_v41 = vunpack.c.h.bf16 %v2105_v58  ;;  %v2106_v58 = vld [vmem:[#allocation2 + $0x5c] ss:$12 sps:$4 sm:$0xff]  }
 0x54b   :  { %2218 = vmatpush1.bf16.msra.mxu1 %v5001_v10 }
 0x54c   :  { %2219 = vmatprep.subr.bf16.mxu1 %v5002_v6 }
 0x54f   :  { %2220 = vmatpush1.bf16.msra.mxu1 %v5003_v57 }
 0x550   :  { %2346 = vmatprep.subr.bf16.mxu1 %v5004_v60  ;;  %v2112_v60 = vunpack.c.l.bf16 %v2110_v56 }
 0x5e5   :  { %v2016_v18 = vpop.f32.mrb[40].mxu1  ;;  %v2057_v1 = vpop.f32.mrb[56].mxu0 }
 0x5e6   :  { %v2017_v61 = vadd.f32 %v2016_v18, %v5005_v43  ;;  %v2018_v2 = vpop.f32.mrb[41].mxu1  ;;  %v2059_v42 = vpop.f32.mrb[57].mxu0 }
 0x5e7   :  { %v2019_v34 = vadd.f32 %v2018_v2, %v4971_v16  ;;  %v2020_v59 = vpop.f32.mrb[42].mxu1  ;;  %v2060_v32 = vpop.f32.mrb[58].mxu0 }
 0x5e8   :  { %v2115_v11 = vadd.f32 %v2107_v50, %v2017_v61  ;;  %v2021_v10 = vpop.f32.mrb[43].mxu1  ;;  %v2061_v6 = vpop.f32.mrb[59].mxu0  ;;  %v2109_v32 = vunpack.c.h.bf16 %v2106_v58 }
 0x5e9   :  { %v2062_v57 = vadd.f32 %v2061_v6, %v4242_v45  ;;  %v2122_v49 = vadd.f32 %v2108_v41, %v2019_v34  ;;  %v2058_v6 = vadd.f32 %v2057_v1, %v4972_v63  ;;  %v2113_v34 = vunpack.c.h.bf16 %v2110_v56 }
 0x5ea   :  { %v3085_v48 = vmul.f32 -1.442695, %v2115_v11 }
 0x5eb   :  { %v2136_v15 = vadd.f32 %v2112_v60, %v2062_v57  ;;  %v3086_v43 = vmul.f32 -1.442695, %v2122_v49 }
 0x5ec   :  { %3468 = vpow2.f32 %v3085_v48 }
 0x5ed   :  { %v3087_v18 = vmul.f32 -1.442695, %v2136_v15 }
 0x5ef   :  { %3470 = vpow2.f32 %v3087_v18 }
 0x5f0   :  { %3472 = vpow2.f32 %v3086_v43 }
 0x5f6   :  { %v3469_v42 = vpop.eup %3468 }
 0x5f7   :  { %v2119_v17 = vadd.f32 1.0, %v3469_v42 }
 0x5f9   :  { %v3471_v2 = vpop.eup %3470  ;;  %3474 = vrcp.f32 %v2119_v17 }
 0x5fa   :  { %v2140_v59 = vadd.f32 1.0, %v3471_v2  ;;  %v3473_v61 = vpop.eup %3472 }
 0x5fb   :  { %v2126_v10 = vadd.f32 1.0, %v3473_v61 }
 0x5fc   :  { %3476 = vrcp.f32 %v2140_v59 }
 0x5fd   :  { %3478 = vrcp.f32 %v2126_v10 }
 0x603   :  { %v3475_v50 = vpop.eup %3474 }
 0x604   :  { %v2129_v41 = vmul.f32 %v3475_v50, %v2058_v6 }
 0x605   :  { %v2098_v48 = vpop.f32.mrb[44].mxu1 }
 0x606   :  { %v2130_v15 = vadd.f32 %v2129_v41, %v2109_v32  ;;  %v2099_v49 = vpop.f32.mrb[45].mxu1  ;;  %v3477_v60 = vpop.eup %3476  ;;  %v2114_v32 = vunpack.c.l.bf16 %v2106_v58 }
 0x607   :  { %v2100_v57 = vpop.f32.mrb[46].mxu1  ;;  %v3479_v1 = vpop.eup %3478 }
 0x608   :  { %3480 = vtanh.f32 %v2130_v15  ;;  %v2101_v43 = vadd.f32 %v2100_v57, %v4247_v0  ;;  %v2102_v17 = vpop.f32.mrb[47].mxu1  ;;  %v2132_v59 = vsub.f32 1.0, %v3479_v1  ;;  %v2134_v6 = vmul.f32 %v3479_v1, %v4607_v39 }
 0x609   :  { %v2103_v11 = vadd.f32 %v2102_v17, %v4256_v20 }
 0x60a   :  { %v2143_v18 = vadd.f32 %v2113_v34, %v2101_v43 }
 0x60b   :  { %v2150_v42 = vmul.f32 %v3477_v60, %v2103_v11 }
 0x60c   :  { %v3088_v2 = vmul.f32 -1.442695, %v2143_v18  ;;  %v4690_v18 = vld [vmem:[#allocation9] ss:$24 sps:$4 sm:$0xff]  }
 0x60d   :  { %v2151_v15 = vadd.f32 %v2150_v42, %v2114_v32 }
 0x60e   :  { %3482 = vpow2.f32 %v3088_v2 }
 0x612   :  { %v3481_v61 = vpop.eup %3480 }
 0x613   :  { %v2133_v10 = vmul.f32 %v3481_v61, %v2132_v59 }
 0x615   :  { %v2135_v50 = vadd.f32 %v2134_v6, %v2133_v10 }
 0x617   :  { %v4678_v11 = vsel %vm1976_vm0, %v2135_v50, %v4607_v39  ;;  %v4710_v39 = vld [vmem:[#allocation9 + $0x94] ss:$24 sps:$4 sm:$0xff]  }
 0x618   :  { %v3483_v41 = vpop.eup %3482 }
 0x619   :  { %v2147_v48 = vadd.f32 1.0, %v3483_v41 }
 0x61b   :  { %3484 = vrcp.f32 %v2147_v48 }
 0x61c   :  { %3486 = vtanh.f32 %v2151_v15 }
 0x625   :  { %v3485_v56 = vpop.eup %3484 }
 0x626   :  { %v2153_v49 = vsub.f32 1.0, %v3485_v56  ;;  %v3487_v57 = vpop.eup %3486  ;;  %v2155_v34 = vmul.f32 %v3485_v56, %v4612_v54 }
 0x628   :  { %v2154_v43 = vmul.f32 %v3487_v57, %v2153_v49 }
 0x62a   :  { %v2156_v17 = vadd.f32 %v2155_v34, %v2154_v43 }
 0x62c   :  { %v4683_v58 = vsel %vm1968_vm15, %v2156_v17, %v4612_v54  ;;  %v2288_v17 = vld [vmem:[#allocation2 + $0x44] ss:$60 sps:$4 sm:$0xff]  }
 0x62d   :  { %v2163_v60 = vpack.c.bf16 %v4683_v58, %v4678_v11 }
 0x62f   :  { %2197 = vmatmul.mubr.bf16.vlgmr.msra.gmra.mrb[60].mxu0 %v2163_v60  ;;  %2238 = vmatmul.mubr.bf16.vlgmr.msra.gmra.mrb[48].mxu1 %v2163_v60 }
 0x630   :  { %2247 = vmatpush1.bf16.msra.mxu0 %v4380_v19  ;;  %2278 = vmatprep.mubr.bf16.mxu0 %v4953_v38  ;;  %v4702_v19 = vld [vmem:[#allocation9 + $0x64] ss:$24 sps:$4 sm:$0xff]  }
 0x631   :  { %2248 = vmatprep.subr.bf16.mxu0 %v4384_v31  ;;  %2347 = vmatpush1.bf16.msra.mxu1 %v4690_v18  ;;  %v4707_v31 = vld [vmem:[#allocation9 + $0x60] ss:$24 sps:$4 sm:$0xff]  }
 0x632   :  { %2348 = vmatprep.subr.bf16.mxu1 %v4693_v8  ;;  %2378 = vmatprep.mubr.bf16.mxu1 %v4953_v38 }
 0x634   :  { %2249 = vmatpush1.bf16.msra.mxu0 %v4390_v23  ;;  %v4715_v23 = vld [vmem:[#allocation9 + $0x90] ss:$24 sps:$4 sm:$0xff]  }
 0x635   :  { %2250 = vmatprep.subr.bf16.mxu0 %v4393_v24  ;;  %2349 = vmatpush1.bf16.msra.mxu1 %v4699_v5  ;;  %v5006_v24 = vld [vmem:[#allocation29_spill] sm:$0xff] }
 0x636   :  { %2350 = vmatprep.subr.bf16.mxu1 %v4702_v19 }
 0x638   :  { %2251 = vmatpush1.bf16.msra.mxu0 %v4398_v25  ;;  %v5007_v25 = vld [vmem:[#allocation30_spill] sm:$0xff] }
 0x639   :  { %2252 = vmatprep.subr.bf16.mxu0 %v4401_v27  ;;  %2351 = vmatpush1.bf16.msra.mxu1 %v4707_v31  ;;  %v5008_v27 = vld [vmem:[#allocation32_spill] sm:$0xff] }
 0x63a   :  { %2352 = vmatprep.subr.bf16.mxu1 %v4710_v39 }
 0x63c   :  { %2253 = vmatpush1.bf16.msra.mxu0 %v4523_v14 }
 0x63d   :  { %2254 = vmatprep.subr.bf16.mxu0 %v4526_v7  ;;  %2353 = vmatpush1.bf16.msra.mxu1 %v4715_v23 }
 0x63e   :  { %2354 = vmatprep.subr.bf16.mxu1 %v4409_v29  ;;  %v5009_v29 = vld [vmem:[#allocation33_spill] sm:$0xff] }
 0x640   :  { %2255 = vmatpush1.bf16.msra.mxu0 %v4531_v62 }
 0x641   :  { %2256 = vmatprep.subr.bf16.mxu0 %v4534_v21  ;;  %2355 = vmatpush1.bf16.msra.mxu1 %v4414_v3  ;;  %v5010_v3 = vld [vmem:[#allocation34_spill] sm:$0xff] }
 0x642   :  { %2356 = vmatprep.subr.bf16.mxu1 %v4417_v37  ;;  %v5011_v37 = vld [vmem:[#allocation35_spill] sm:$0xff] }
 0x644   :  { %2257 = vmatpush1.bf16.msra.mxu0 %v4539_v53 }
 0x645   :  { %2258 = vmatprep.subr.bf16.mxu0 %v4542_v55  ;;  %2357 = vmatpush1.bf16.msra.mxu1 %v4422_v26  ;;  %v5012_v26 = vld [vmem:[#allocation36_spill] sm:$0xff] }
 0x646   :  { %2358 = vmatprep.subr.bf16.mxu1 %v4425_v28  ;;  %v5013_v28 = vld [vmem:[#allocation37_spill] sm:$0xff] }
 0x648   :  { %2259 = vmatpush1.bf16.msra.mxu0 %v4547_v22 }
 0x649   :  { %2260 = vmatprep.subr.bf16.mxu0 %v4550_v35  ;;  %2359 = vmatpush1.bf16.msra.mxu1 %v4430_v30  ;;  %v3603_v30 = vld [vmem:[#allocation9 + $0x4] ss:$24 sps:$4 sm:$0xff]  }
 0x64a   :  { %2360 = vmatprep.subr.bf16.mxu1 %v4433_v33  ;;  %v2287_v33 = vld [vmem:[#allocation2 + $0x78] sm:$0xff] }
 0x64b   :  { %v2290_v59 = vunpack.c.h.bf16 %v2287_v33 }
 0x64c   :  { %2261 = vmatpush1.bf16.msra.mxu0 %v4555_v52 }
 0x64d   :  { %2387 = vmatprep.subr.bf16.mxu0 %v4437_v36  ;;  %2361 = vmatpush1.bf16.msra.mxu1 %v4440_v40 }
 0x64e   :  { %2428 = vmatprep.subr.bf16.mxu1 %v4443_v44  ;;  %v5014_v44 = vld [vmem:[#allocation23_spill] sm:$0xff] }
 0x64f   :  { %2279 = vmatmul.mubr.bf16.vlgmr.msra.gmra.mrb[64].mxu0 %v2163_v60 }
 0x650   :  { %2388 = vmatpush1.bf16.msra.mxu0 %v4446_v47  ;;  %2419 = vmatprep.mubr.bf16.mxu0 %v4953_v38 }
 0x651   :  { %2389 = vmatprep.subr.bf16.mxu0 %v4450_v51  ;;  %v2289_v51 = vunpack.c.l.bf16 %v2287_v33 }
 0x654   :  { %2390 = vmatpush1.bf16.msra.mxu0 %v4991_v4 }
 0x655   :  { %2391 = vmatprep.subr.bf16.mxu0 %v4992_v46  ;;  %v2292_v46 = vld [vmem:[#allocation2 + $0x3c] sm:$0xff] }
 0x656   :  { %v2294_v10 = vunpack.c.l.bf16 %v2292_v46 }
 0x658   :  { %2392 = vmatpush1.bf16.msra.mxu0 %v4993_v13 }
 0x659   :  { %2393 = vmatprep.subr.bf16.mxu0 %v4994_v9 }
 0x65c   :  { %2394 = vmatpush1.bf16.msra.mxu0 %v4995_v12 }
 0x65d   :  { %2395 = vmatprep.subr.bf16.mxu0 %v5006_v24 }
 0x660   :  { %2396 = vmatpush1.bf16.msra.mxu0 %v5007_v25  ;;  %v2291_v25 = vunpack.c.h.bf16 %v2288_v17 }
 0x661   :  { %2397 = vmatprep.subr.bf16.mxu0 %v5008_v27 }
 0x664   :  { %2398 = vmatpush1.bf16.msra.mxu0 %v5009_v29 }
 0x665   :  { %2399 = vmatprep.subr.bf16.mxu0 %v5010_v3 }
 0x668   :  { %2400 = vmatpush1.bf16.msra.mxu0 %v5011_v37 }
 0x669   :  { %2401 = vmatprep.subr.bf16.mxu0 %v5012_v26 }
 0x66c   :  { %2402 = vmatpush1.bf16.msra.mxu0 %v5013_v28 }
 0x66d   :  { %2528 = vmatprep.subr.bf16.mxu0 %v3603_v30 }
 0x702   :  { %v2198_v36 = vpop.f32.mrb[60].mxu0  ;;  %v2239_v40 = vpop.f32.mrb[48].mxu1 }
 0x703   :  { %v2199_v47 = vadd.f32 %v2198_v36, %v5014_v44  ;;  %v2200_v54 = vpop.f32.mrb[61].mxu0  ;;  %v2241_v4 = vpop.f32.mrb[49].mxu1  ;;  %v2240_v60 = vadd.f32 %v2239_v40, %v4972_v63 }
 0x704   :  { %v2201_v13 = vadd.f32 %v2200_v54, %v4971_v16  ;;  %v2202_v9 = vpop.f32.mrb[62].mxu0  ;;  %v2242_v12 = vpop.f32.mrb[50].mxu1  ;;  %v2295_v4 = vunpack.c.h.bf16 %v2292_v46 }
 0x705   :  { %v2297_v42 = vadd.f32 %v2289_v51, %v2199_v47  ;;  %v2203_v2 = vpop.f32.mrb[63].mxu0  ;;  %v2243_v1 = vpop.f32.mrb[51].mxu1 }
 0x706   :  { %v2244_v61 = vadd.f32 %v2243_v1, %v4242_v45  ;;  %v2304_v50 = vadd.f32 %v2290_v59, %v2201_v13 }
 0x707   :  { %v3089_v6 = vmul.f32 -1.442695, %v2297_v42 }
 0x708   :  { %v2318_v32 = vadd.f32 %v2294_v10, %v2244_v61  ;;  %v3090_v48 = vmul.f32 -1.442695, %v2304_v50 }
 0x709   :  { %3488 = vpow2.f32 %v3089_v6 }
 0x70a   :  { %v3091_v41 = vmul.f32 -1.442695, %v2318_v32  ;;  %v2296_v32 = vunpack.c.l.bf16 %v2288_v17 }
 0x70c   :  { %3490 = vpow2.f32 %v3091_v41 }
 0x70d   :  { %3492 = vpow2.f32 %v3090_v48 }
 0x713   :  { %v3489_v15 = vpop.eup %3488 }
 0x714   :  { %v2301_v56 = vadd.f32 1.0, %v3489_v15 }
 0x716   :  { %v3491_v49 = vpop.eup %3490  ;;  %3494 = vrcp.f32 %v2301_v56 }
 0x717   :  { %v2322_v57 = vadd.f32 1.0, %v3491_v49  ;;  %v3493_v43 = vpop.eup %3492 }
 0x718   :  { %v2308_v34 = vadd.f32 1.0, %v3493_v43 }
 0x719   :  { %3496 = vrcp.f32 %v2322_v57 }
 0x71a   :  { %3498 = vrcp.f32 %v2308_v34 }
 0x720   :  { %v3495_v24 = vpop.eup %3494 }
 0x721   :  { %v2311_v30 = vmul.f32 %v3495_v24, %v2240_v60 }
 0x722   :  { %v2280_v33 = vpop.f32.mrb[64].mxu0 }
 0x723   :  { %v2312_v36 = vadd.f32 %v2311_v30, %v2291_v25  ;;  %v2281_v47 = vpop.f32.mrb[65].mxu0  ;;  %v3497_v12 = vpop.eup %3496  ;;  %v4771_v33 = vld [vmem:[#allocation9 + $0x10] ss:$24 sps:$4 sm:$0xff]  }
 0x724   :  { %v2282_v51 = vpop.f32.mrb[66].mxu0  ;;  %v3499_v40 = vpop.eup %3498  ;;  %v4789_v47 = vld [vmem:[#allocation9 + $0x70] ss:$24 sps:$4 sm:$0xff]  }
 0x725   :  { %3500 = vtanh.f32 %v2312_v36  ;;  %v2283_v54 = vadd.f32 %v2282_v51, %v4247_v0  ;;  %v2284_v13 = vpop.f32.mrb[67].mxu0  ;;  %v2314_v59 = vsub.f32 1.0, %v3499_v40  ;;  %v2316_v6 = vmul.f32 %v3499_v40, %v4678_v11  ;;  %v4775_v36 = vld [vmem:[#allocation9 + $0x44] ss:$24 sps:$4 sm:$0xff]   ;;  %v3616_v51 = vld [vmem:[#allocation9 + $0x154] ss:$24 sps:$4 sm:$0xff]  }
 0x726   :  { %v2285_v9 = vadd.f32 %v2284_v13, %v4256_v20  ;;  %v3619_v13 = vld [vmem:[#allocation9 + $0x14] ss:$24 sps:$4 sm:$0xff]  }
 0x727   :  { %v2325_v42 = vadd.f32 %v2295_v4, %v2283_v54  ;;  %v3617_v54 = vld [vmem:[#allocation9 + $0xc] ss:$24 sps:$4 sm:$0xff]   ;;  %v3618_v4 = vld [vmem:[#allocation9 + $0x150] ss:$24 sps:$4 sm:$0xff]   ;;  %v3625_v40 = vld [vmem:[#allocation9 + $0x9c] ss:$24 sps:$4 sm:$0xff]  }
 0x728   :  { %v2332_v2 = vmul.f32 %v3497_v12, %v2285_v9  ;;  %v3620_v9 = vld [vmem:[#allocation9 + $0x8] ss:$24 sps:$4 sm:$0xff]   ;;  %v3621_v12 = vld [vmem:[#allocation9 + $0x3c] ss:$24 sps:$4 sm:$0xff]  }
 0x729   :  { %v3092_v1 = vmul.f32 -1.442695, %v2325_v42  ;;  %v3622_v42 = vld [vmem:[#allocation9 + $0x38] ss:$24 sps:$4 sm:$0xff]  }
 0x72a   :  { %v2333_v15 = vadd.f32 %v2332_v2, %v2296_v32  ;;  %v3623_v2 = vld [vmem:[#allocation9 + $0x6c] ss:$24 sps:$4 sm:$0xff]  }
 0x72b   :  { %3502 = vpow2.f32 %v3092_v1  ;;  %v3624_v1 = vld [vmem:[#allocation9 + $0x68] ss:$24 sps:$4 sm:$0xff]  }
 0x72f   :  { %v3501_v61 = vpop.eup %3500 }
 0x730   :  { %v2315_v10 = vmul.f32 %v3501_v61, %v2314_v59  ;;  %v3626_v59 = vld [vmem:[#allocation9 + $0x98] ss:$24 sps:$4 sm:$0xff]   ;;  %v3627_v61 = vld [vmem:[#allocation9 + $0xcc] ss:$24 sps:$4 sm:$0xff]  }
 0x732   :  { %v2317_v50 = vadd.f32 %v2316_v6, %v2315_v10  ;;  %v3628_v10 = vld [vmem:[#allocation9 + $0xc8] ss:$24 sps:$4 sm:$0xff]   ;;  %v2469_v6 = vld [vmem:[#allocation2 + $0x90] sm:$0xff] }
 0x734   :  { %v4762_v24 = vsel %vm1780_vm14, %v2317_v50, %v4678_v11  ;;  %v4781_v11 = vld [vmem:[#allocation9 + $0x40] ss:$24 sps:$4 sm:$0xff]  }
 0x735   :  { %v3503_v41 = vpop.eup %3502 }
 0x736   :  { %v2329_v48 = vadd.f32 1.0, %v3503_v41 }
 0x738   :  { %3504 = vrcp.f32 %v2329_v48  ;;  %v2471_v48 = vunpack.c.l.bf16 %v2469_v6 }
 0x739   :  { %3506 = vtanh.f32 %v2333_v15 }
 0x742   :  { %v3505_v46 = vpop.eup %3504 }
 0x743   :  { %v2335_v56 = vsub.f32 1.0, %v3505_v46  ;;  %v3507_v49 = vpop.eup %3506  ;;  %v2337_v43 = vmul.f32 %v3505_v46, %v4683_v58 }
 0x745   :  { %v2336_v57 = vmul.f32 %v3507_v49, %v2335_v56  ;;  %v2474_v56 = vld [vmem:[#allocation2 + $0x24] sm:$0xff] }
 0x747   :  { %v2338_v34 = vadd.f32 %v2337_v43, %v2336_v57  ;;  %v2472_v43 = vunpack.c.h.bf16 %v2469_v6 }
 0x749   :  { %v4767_v17 = vsel %vm1772_vm13, %v2338_v34, %v4683_v58  ;;  %v4784_v58 = vld [vmem:[#allocation9 + $0x74] ss:$24 sps:$4 sm:$0xff]  }
 0x74a   :  { %v2345_v30 = vpack.c.bf16 %v4767_v17, %v4762_v24 }
 0x74c   :  { %2379 = vmatmul.mubr.bf16.vlgmr.msra.gmra.mrb[52].mxu1 %v2345_v30  ;;  %2420 = vmatmul.mubr.bf16.vlgmr.msra.gmra.mrb[68].mxu0 %v2345_v30 }
 0x74d   :  { %2429 = vmatpush1.bf16.msra.mxu1 %v4771_v33  ;;  %2460 = vmatprep.mubr.bf16.mxu1 %v4953_v38 }
 0x74e   :  { %2430 = vmatprep.subr.bf16.mxu1 %v4775_v36  ;;  %2529 = vmatpush1.bf16.msra.mxu0 %v4690_v18  ;;  %v4792_v18 = vld [vmem:[#allocation9 + $0xa4] ss:$24 sps:$4 sm:$0xff]  }
 0x74f   :  { %2530 = vmatprep.subr.bf16.mxu0 %v4693_v8  ;;  %2560 = vmatprep.mubr.bf16.mxu0 %v4953_v38  ;;  %v3610_v8 = vld [vmem:[#allocation9 + $0xc4] ss:$24 sps:$4 sm:$0xff]  }
 0x751   :  { %2431 = vmatpush1.bf16.msra.mxu1 %v4781_v11 }
 0x752   :  { %2432 = vmatprep.subr.bf16.mxu1 %v4784_v58  ;;  %2531 = vmatpush1.bf16.msra.mxu0 %v4699_v5  ;;  %v3611_v5 = vld [vmem:[#allocation9 + $0xc0] ss:$24 sps:$4 sm:$0xff]  }
 0x753   :  { %2532 = vmatprep.subr.bf16.mxu0 %v4702_v19  ;;  %v3612_v19 = vld [vmem:[#allocation9 + $0xf4] ss:$24 sps:$4 sm:$0xff]  }
 0x755   :  { %2433 = vmatpush1.bf16.msra.mxu1 %v4789_v47 }
 0x756   :  { %2434 = vmatprep.subr.bf16.mxu1 %v4792_v18  ;;  %2533 = vmatpush1.bf16.msra.mxu0 %v4707_v31  ;;  %v3613_v31 = vld [vmem:[#allocation9 + $0xf0] ss:$24 sps:$4 sm:$0xff]  }
 0x757   :  { %2534 = vmatprep.subr.bf16.mxu0 %v4710_v39  ;;  %v3614_v39 = vld [vmem:[#allocation9 + $0x124] ss:$24 sps:$4 sm:$0xff]  }
 0x759   :  { %2435 = vmatpush1.bf16.msra.mxu1 %v4523_v14 }
 0x75a   :  { %2436 = vmatprep.subr.bf16.mxu1 %v4526_v7  ;;  %2535 = vmatpush1.bf16.msra.mxu0 %v4715_v23  ;;  %v3615_v23 = vld [vmem:[#allocation9 + $0x120] ss:$24 sps:$4 sm:$0xff]  }
 0x75b   :  { %2536 = vmatprep.subr.bf16.mxu0 %v3610_v8 }
 0x75d   :  { %2437 = vmatpush1.bf16.msra.mxu1 %v4531_v62 }
 0x75e   :  { %2438 = vmatprep.subr.bf16.mxu1 %v4534_v21  ;;  %2537 = vmatpush1.bf16.msra.mxu0 %v3611_v5 }
 0x75f   :  { %2538 = vmatprep.subr.bf16.mxu0 %v3612_v19 }
 0x761   :  { %2439 = vmatpush1.bf16.msra.mxu1 %v4539_v53 }
 0x762   :  { %2440 = vmatprep.subr.bf16.mxu1 %v4542_v55  ;;  %2539 = vmatpush1.bf16.msra.mxu0 %v3613_v31 }
 0x763   :  { %2540 = vmatprep.subr.bf16.mxu0 %v3614_v39 }
 0x765   :  { %2441 = vmatpush1.bf16.msra.mxu1 %v4547_v22 }
 0x766   :  { %2442 = vmatprep.subr.bf16.mxu1 %v4550_v35  ;;  %2541 = vmatpush1.bf16.msra.mxu0 %v3615_v23 }
 0x767   :  { %2542 = vmatprep.subr.bf16.mxu0 %v3616_v51 }
 0x769   :  { %2443 = vmatpush1.bf16.msra.mxu1 %v4555_v52 }
 0x76a   :  { %2569 = vmatprep.subr.bf16.mxu1 %v3617_v54  ;;  %2543 = vmatpush1.bf16.msra.mxu0 %v3618_v4  ;;  %v2470_v54 = vld [vmem:[#allocation2 + $0x2c] ss:$108 sps:$4 sm:$0xff]  }
 0x76b   :  { %2610 = vmatprep.subr.bf16.mxu0 %v3619_v13 }
 0x76c   :  { %2461 = vmatmul.mubr.bf16.vlgmr.msra.gmra.mrb[56].mxu1 %v2345_v30 }
 0x76d   :  { %2570 = vmatpush1.bf16.msra.mxu1 %v3620_v9  ;;  %2601 = vmatprep.mubr.bf16.mxu1 %v4953_v38  ;;  %v2473_v9 = vunpack.c.h.bf16 %v2470_v54 }
 0x76e   :  { %2571 = vmatprep.subr.bf16.mxu1 %v3621_v12 }
 0x771   :  { %2572 = vmatpush1.bf16.msra.mxu1 %v3622_v42 }
 0x772   :  { %2573 = vmatprep.subr.bf16.mxu1 %v3623_v2 }
 0x775   :  { %2574 = vmatpush1.bf16.msra.mxu1 %v3624_v1 }
 0x776   :  { %2575 = vmatprep.subr.bf16.mxu1 %v3625_v40 }
 0x779   :  { %2576 = vmatpush1.bf16.msra.mxu1 %v3626_v59 }
 0x77a   :  { %2577 = vmatprep.subr.bf16.mxu1 %v3627_v61  ;;  %v2477_v61 = vunpack.c.h.bf16 %v2474_v56 }
 0x77d   :  { %2578 = vmatpush1.bf16.msra.mxu1 %v3628_v10 }
 0x77e   :  { %2579 = vmatprep.subr.bf16.mxu1 %v5008_v27 }
 0x781   :  { %2580 = vmatpush1.bf16.msra.mxu1 %v5009_v29 }
 0x782   :  { %2581 = vmatprep.subr.bf16.mxu1 %v5010_v3 }
 0x785   :  { %2582 = vmatpush1.bf16.msra.mxu1 %v5011_v37 }
 0x786   :  { %2583 = vmatprep.subr.bf16.mxu1 %v5012_v26 }
 0x789   :  { %2584 = vmatpush1.bf16.msra.mxu1 %v5013_v28  ;;  %v2476_v28 = vunpack.c.l.bf16 %v2474_v56 }
 0x81f   :  { %v2380_v50 = vpop.f32.mrb[52].mxu1  ;;  %v2421_v32 = vpop.f32.mrb[68].mxu0 }
 0x820   :  { %v2381_v41 = vadd.f32 %v2380_v50, %v5014_v44  ;;  %v2382_v15 = vpop.f32.mrb[53].mxu1  ;;  %v2423_v46 = vpop.f32.mrb[69].mxu0  ;;  %v2422_v4 = vadd.f32 %v2421_v32, %v4972_v63 }
 0x821   :  { %v2383_v27 = vadd.f32 %v2382_v15, %v4971_v16  ;;  %v2384_v29 = vpop.f32.mrb[54].mxu1  ;;  %v2424_v49 = vpop.f32.mrb[70].mxu0 }
 0x822   :  { %v2479_v3 = vadd.f32 %v2471_v48, %v2381_v41  ;;  %v2385_v57 = vpop.f32.mrb[55].mxu1  ;;  %v2425_v37 = vpop.f32.mrb[71].mxu0 }
 0x823   :  { %v2426_v26 = vadd.f32 %v2425_v37, %v4242_v45  ;;  %v2486_v60 = vadd.f32 %v2472_v43, %v2383_v27  ;;  %v2478_v57 = vunpack.c.l.bf16 %v2470_v54 }
 0x824   :  { %v3093_v34 = vmul.f32 -1.442695, %v2479_v3 }
 0x825   :  { %v2500_v25 = vadd.f32 %v2476_v28, %v2426_v26  ;;  %v3094_v8 = vmul.f32 -1.442695, %v2486_v60 }
 0x826   :  { %3508 = vpow2.f32 %v3093_v34 }
 0x827   :  { %v3095_v30 = vmul.f32 -1.442695, %v2500_v25 }
 0x829   :  { %3510 = vpow2.f32 %v3095_v30 }
 0x82a   :  { %3512 = vpow2.f32 %v3094_v8 }
 0x830   :  { %v3509_v5 = vpop.eup %3508 }
 0x831   :  { %v2483_v19 = vadd.f32 1.0, %v3509_v5 }
 0x833   :  { %v3511_v31 = vpop.eup %3510  ;;  %3514 = vrcp.f32 %v2483_v19 }
 0x834   :  { %v2504_v39 = vadd.f32 1.0, %v3511_v31  ;;  %v3513_v23 = vpop.eup %3512 }
 0x835   :  { %v2490_v51 = vadd.f32 1.0, %v3513_v23 }
 0x836   :  { %3516 = vrcp.f32 %v2504_v39 }
 0x837   :  { %3518 = vrcp.f32 %v2490_v51 }
 0x83d   :  { %v3515_v13 = vpop.eup %3514 }
 0x83e   :  { %v2493_v12 = vmul.f32 %v3515_v13, %v2422_v4 }
 0x83f   :  { %v2462_v42 = vpop.f32.mrb[56].mxu1 }
 0x840   :  { %v2494_v2 = vadd.f32 %v2493_v12, %v2473_v9  ;;  %v2463_v1 = vpop.f32.mrb[57].mxu1  ;;  %v3517_v50 = vpop.eup %3516  ;;  %v2656_v12 = vld [vmem:[#allocation2 + $0xc] sm:$0xff] }
 0x841   :  { %v2464_v40 = vpop.f32.mrb[58].mxu1  ;;  %v3519_v32 = vpop.eup %3518 }
 0x842   :  { %3520 = vtanh.f32 %v2494_v2  ;;  %v2465_v59 = vadd.f32 %v2464_v40, %v4247_v0  ;;  %v2466_v10 = vpop.f32.mrb[59].mxu1  ;;  %v2496_v46 = vsub.f32 1.0, %v3519_v32  ;;  %v2498_v49 = vmul.f32 %v3519_v32, %v4762_v24 }
 0x843   :  { %v2467_v6 = vadd.f32 %v2466_v10, %v4256_v20 }
 0x844   :  { %v2507_v41 = vadd.f32 %v2477_v61, %v2465_v59 }
 0x845   :  { %v2514_v48 = vmul.f32 %v3517_v50, %v2467_v6  ;;  %v2658_v50 = vunpack.c.l.bf16 %v2656_v12 }
 0x846   :  { %v3096_v15 = vmul.f32 -1.442695, %v2507_v41 }
 0x847   :  { %v2515_v26 = vadd.f32 %v2514_v48, %v2478_v57  ;;  %v2652_v57 = vld [vmem:[#allocation2 + $0x14] ss:$156 sps:$4 sm:$0xff]  }
 0x848   :  { %3522 = vpow2.f32 %v3096_v15 }
 0x84c   :  { %v3521_v27 = vpop.eup %3520 }
 0x84d   :  { %v2497_v29 = vmul.f32 %v3521_v27, %v2496_v46 }
 0x84f   :  { %v2499_v3 = vadd.f32 %v2498_v49, %v2497_v29 }
 0x851   :  { %v4825_v5 = vsel %vm1584_vm12, %v2499_v3, %v4762_v24  ;;  %v3757_v24 = vmov 0.0  }
 0x852   :  { %v3523_v37 = vpop.eup %3522  ;;  %3169 = vmatprep.subr.bf16.mxu1 %v3757_v24 }
 0x853   :  { %v2511_v43 = vadd.f32 1.0, %v3523_v37 }
 0x855   :  { %3524 = vrcp.f32 %v2511_v43  ;;  %v2655_v43 = vunpack.c.h.bf16 %v2652_v57 }
 0x856   :  { %3526 = vtanh.f32 %v2515_v26 }
 0x85f   :  { %v3525_v56 = vpop.eup %3524 }
 0x860   :  { %v2517_v28 = vsub.f32 1.0, %v3525_v56  ;;  %v3527_v34 = vpop.eup %3526  ;;  %v2519_v25 = vmul.f32 %v3525_v56, %v4767_v17 }
 0x862   :  { %v2518_v60 = vmul.f32 %v3527_v34, %v2517_v28 }
 0x864   :  { %v2520_v30 = vadd.f32 %v2519_v25, %v2518_v60 }
 0x866   :  { %v4830_v31 = vsel %vm1576_vm11, %v2520_v30, %v4767_v17  ;;  %v3382_v17 = vld [vmem:[#allocation10 + $0x10] sm:$0xff]   ;;  %v2659_v30 = vunpack.c.h.bf16 %v2656_v12 }
 0x867   :  { %v2527_v39 = vpack.c.bf16 %v4830_v31, %v4825_v5 }
 0x869   :  { %2561 = vmatmul.mubr.bf16.vlgmr.msra.gmra.mrb[72].mxu0 %v2527_v39  ;;  %2602 = vmatmul.mubr.bf16.vlgmr.msra.gmra.mrb[60].mxu1 %v2527_v39 }
 0x86a   :  { %2611 = vmatpush1.bf16.msra.mxu0 %v4771_v33  ;;  %2642 = vmatprep.mubr.bf16.mxu0 %v4953_v38  ;;  %v3372_v38 = vld [vmem:[#allocation10 + $0x40] sm:$0xff]   ;;  %v3383_v33 = vld [vmem:[#allocation10 + $0x18] sm:$0xff]  }
 0x86b   :  { %2612 = vmatprep.subr.bf16.mxu0 %v4775_v36  ;;  %3170 = vmatpush3.bf16.msra.mxu1 %v3372_v38  ;;  %v3384_v36 = vld [vmem:[#allocation10 + $0x20] sm:$0xff]  }
 0x86c   :  { %3171 = vmatprep.subr.bf16.mxu1 %v3757_v24  ;;  %3185 = vmatprep.mubr.msk.bf16.mxu1 %vm3758_vm1, %v3757_v24 }
 0x86e   :  { %2613 = vmatpush1.bf16.msra.mxu0 %v4781_v11  ;;  %v3385_v11 = vld [vmem:[#allocation10 + $0x28] sm:$0xff]  }
 0x86f   :  { %2614 = vmatprep.subr.bf16.mxu0 %v4784_v58  ;;  %v3386_v58 = vld [vmem:[#allocation10 + $0x30] sm:$0xff]  }
 0x872   :  { %2615 = vmatpush1.bf16.msra.mxu0 %v4789_v47  ;;  %v3387_v47 = vld [vmem:[#allocation10 + $0x38] sm:$0xff]  }
 0x873   :  { %2616 = vmatprep.subr.bf16.mxu0 %v4792_v18  ;;  %v2651_v18 = vld [vmem:[#allocation2 + $0xa8] sm:$0xff] }
 0x874   :  { %v2653_v4 = vunpack.c.l.bf16 %v2651_v18  ;;  %v2654_v10 = vunpack.c.h.bf16 %v2651_v18 }
 0x876   :  { %2617 = vmatpush1.bf16.msra.mxu0 %v4523_v14  ;;  %v3373_v14 = vld [vmem:[#allocation10 + $0x48] sm:$0xff]  }
 0x877   :  { %2618 = vmatprep.subr.bf16.mxu0 %v4526_v7  ;;  %3172 = vmatpush3.bf16.msra.mxu1 %v3373_v14  ;;  %v3374_v7 = vld [vmem:[#allocation10 + $0x50] sm:$0xff]  }
 0x878   :  { %3173 = vmatprep.subr.bf16.mxu1 %v3757_v24 }
 0x87a   :  { %2619 = vmatpush1.bf16.msra.mxu0 %v4531_v62  ;;  %v3375_v62 = vld [vmem:[#allocation10 + $0x58] sm:$0xff]  }
 0x87b   :  { %2620 = vmatprep.subr.bf16.mxu0 %v4534_v21  ;;  %3174 = vmatpush3.bf16.msra.mxu1 %v3374_v7  ;;  %v3376_v21 = vld [vmem:[#allocation10 + $0x60] sm:$0xff]  }
 0x87c   :  { %3175 = vmatprep.subr.bf16.mxu1 %v3757_v24 }
 0x87e   :  { %2621 = vmatpush1.bf16.msra.mxu0 %v4539_v53  ;;  %v3377_v53 = vld [vmem:[#allocation10 + $0x68] sm:$0xff]  }
 0x87f   :  { %2622 = vmatprep.subr.bf16.mxu0 %v4542_v55  ;;  %3176 = vmatpush3.bf16.msra.mxu1 %v3375_v62  ;;  %v3378_v55 = vld [vmem:[#allocation10] sm:$0xff]  }
 0x880   :  { %3177 = vmatprep.subr.bf16.mxu1 %v3757_v24 }
 0x882   :  { %2623 = vmatpush1.bf16.msra.mxu0 %v4547_v22  ;;  %v3379_v22 = vld [vmem:[#allocation10 + $0x70] sm:$0xff]  }
 0x883   :  { %2624 = vmatprep.subr.bf16.mxu0 %v4550_v35  ;;  %3178 = vmatpush3.bf16.msra.mxu1 %v3376_v21  ;;  %v3380_v35 = vld [vmem:[#allocation10 + $0x8] sm:$0xff]  }
 0x884   :  { %3179 = vmatprep.subr.bf16.mxu1 %v3757_v24 }
 0x886   :  { %2625 = vmatpush1.bf16.msra.mxu0 %v4555_v52  ;;  %v3381_v52 = vld [vmem:[#allocation10 + $0x78] sm:$0xff]  }
 0x887   :  { %3189 = vmatprep.subr.bf16.mxu0 %v3757_v24  ;;  %3180 = vmatpush3.bf16.msra.mxu1 %v3377_v53 }
 0x888   :  { %3181 = vmatprep.subr.bf16.mxu1 %v3757_v24 }
 0x889   :  { %2643 = vmatmul.mubr.bf16.vlgmr.msra.gmra.mrb[76].mxu0 %v2527_v39 }
 0x88a   :  { %3190 = vmatpush3.bf16.msra.mxu0 %v3378_v55  ;;  %3205 = vmatprep.mubr.msk.bf16.mxu0 %vm3758_vm1, %v3757_v24 }
 0x88b   :  { %3191 = vmatprep.subr.bf16.mxu0 %v3757_v24  ;;  %3182 = vmatpush3.bf16.msra.mxu1 %v3379_v22  ;;  %v2660_v22 = vunpack.c.l.bf16 %v2652_v57 }
 0x88c   :  { %3183 = vmatprep.subr.bf16.mxu1 %v3757_v24 }
 0x88e   :  { %3192 = vmatpush3.bf16.msra.mxu0 %v3380_v35 }
 0x88f   :  { %3193 = vmatprep.subr.bf16.mxu0 %v3757_v24  ;;  %3184 = vmatpush3.bf16.msra.mxu1 %v3381_v52 }
 0x892   :  { %3194 = vmatpush3.bf16.msra.mxu0 %v3382_v17 }
 0x893   :  { %3195 = vmatprep.subr.bf16.mxu0 %v3757_v24 }
 0x896   :  { %3196 = vmatpush3.bf16.msra.mxu0 %v3383_v33 }
 0x897   :  { %3197 = vmatprep.subr.bf16.mxu0 %v3757_v24 }
 0x89a   :  { %3198 = vmatpush3.bf16.msra.mxu0 %v3384_v36 }
 0x89b   :  { %3199 = vmatprep.subr.bf16.mxu0 %v3757_v24 }
 0x89e   :  { %3200 = vmatpush3.bf16.msra.mxu0 %v3385_v11 }
 0x89f   :  { %3201 = vmatprep.subr.bf16.mxu0 %v3757_v24 }
 0x8a2   :  { %3202 = vmatpush3.bf16.msra.mxu0 %v3386_v58 }
 0x8a3   :  { %3203 = vmatprep.subr.bf16.mxu0 %v3757_v24 }
 0x8a6   :  { %3204 = vmatpush3.bf16.msra.mxu0 %v3387_v47 }
 0x93c   :  { %v2562_v23 = vpop.f32.mrb[72].mxu0  ;;  %v2603_v51 = vpop.f32.mrb[60].mxu1 }
 0x93d   :  { %v2563_v54 = vadd.f32 %v2562_v23, %v5014_v44  ;;  %v2564_v13 = vpop.f32.mrb[73].mxu0  ;;  %v2605_v9 = vpop.f32.mrb[61].mxu1 }
 0x93e   :  { %v2565_v42 = vadd.f32 %v2564_v13, %v4971_v16  ;;  %v2566_v2 = vpop.f32.mrb[74].mxu0  ;;  %v2606_v1 = vpop.f32.mrb[62].mxu1 }
 0x93f   :  { %v2661_v40 = vadd.f32 %v2653_v4, %v2563_v54  ;;  %v2567_v59 = vpop.f32.mrb[75].mxu0  ;;  %v2607_v61 = vpop.f32.mrb[63].mxu1  ;;  %v3117_v2 = vld [vmem:[%s4886_s7] ss:$0 sm:$0xff] }
 0x940   :  { %v2608_v6 = vadd.f32 %v2607_v61, %v4242_v45  ;;  %v2668_v48 = vadd.f32 %v2654_v10, %v2565_v42  ;;  %v2604_v45 = vadd.f32 %v2603_v51, %v4972_v63 }
 0x941   :  { %v3097_v41 = vmul.f32 -1.442695, %v2661_v40 }
 0x942   :  { %v2682_v15 = vadd.f32 %v2658_v50, %v2608_v6  ;;  %v3098_v32 = vmul.f32 -1.442695, %v2668_v48 }
 0x943   :  { %3528 = vpow2.f32 %v3097_v41 }
 0x944   :  { %v3099_v44 = vmul.f32 -1.442695, %v2682_v15 }
 0x946   :  { %3530 = vpow2.f32 %v3099_v44 }
 0x947   :  { %3532 = vpow2.f32 %v3098_v32 }
 0x94d   :  { %v3529_v46 = vpop.eup %3528 }
 0x94e   :  { %v2665_v27 = vadd.f32 1.0, %v3529_v46 }
 0x950   :  { %v3531_v16 = vpop.eup %3530  ;;  %3534 = vrcp.f32 %v2665_v27 }
 0x951   :  { %v2686_v29 = vadd.f32 1.0, %v3531_v16  ;;  %v3533_v49 = vpop.eup %3532 }
 0x952   :  { %v2672_v3 = vadd.f32 1.0, %v3533_v49 }
 0x953   :  { %3536 = vrcp.f32 %v2686_v29 }
 0x954   :  { %3538 = vrcp.f32 %v2672_v3 }
 0x95a   :  { %v3535_v37 = vpop.eup %3534 }
 0x95b   :  { %v2675_v26 = vmul.f32 %v3535_v37, %v2604_v45 }
 0x95c   :  { %v2644_v56 = vpop.f32.mrb[76].mxu0 }
 0x95d   :  { %v2676_v28 = vadd.f32 %v2675_v26, %v2655_v43  ;;  %v2645_v34 = vpop.f32.mrb[77].mxu0  ;;  %v3537_v39 = vpop.eup %3536 }
 0x95e   :  { %v2646_v60 = vpop.f32.mrb[78].mxu0  ;;  %v3539_v63 = vpop.eup %3538 }
 0x95f   :  { %3540 = vtanh.f32 %v2676_v28  ;;  %v2647_v25 = vadd.f32 %v2646_v60, %v4247_v0  ;;  %v2648_v8 = vpop.f32.mrb[79].mxu0  ;;  %v2678_v7 = vsub.f32 1.0, %v3539_v63  ;;  %v2680_v53 = vmul.f32 %v3539_v63, %v4825_v5 }
 0x960   :  { %v2649_v19 = vadd.f32 %v2648_v8, %v4256_v20 }
 0x961   :  { %v2689_v38 = vadd.f32 %v2659_v30, %v2647_v25 }
 0x962   :  { %v2696_v24 = vmul.f32 %v3537_v39, %v2649_v19 }
 0x963   :  { %v3100_v14 = vmul.f32 -1.442695, %v2689_v38 }
 0x964   :  { %v2697_v33 = vadd.f32 %v2696_v24, %v2660_v22 }
 0x965   :  { %3542 = vpow2.f32 %v3100_v14 }
 0x969   :  { %v3541_v62 = vpop.eup %3540 }
 0x96a   :  { %v2679_v21 = vmul.f32 %v3541_v62, %v2678_v7 }
 0x96c   :  { %v2681_v55 = vadd.f32 %v2680_v53, %v2679_v21 }
 0x96e   :  { %v2703_v0 = vsel %vm1388_vm8, %v2681_v55, %v4825_v5 }
 0x96f   :  { %v3543_v52 = vpop.eup %3542  ;;  %v2742_v17 = vpack.c.bf16 %v2703_v0, %v2703_v0 }
 0x970   :  { %v2693_v20 = vadd.f32 1.0, %v3543_v52 }
 0x971   :  { %3186 = vmatmul.mubr.bf16.vlgmr.msra.gmra.mrb[64].mxu1 %v2742_v17 }
 0x972   :  { %3544 = vrcp.f32 %v2693_v20 }
 0x973   :  { %3546 = vtanh.f32 %v2697_v33 }
 0x97c   :  { %v3545_v36 = vpop.eup %3544 }
 0x97d   :  { %v2699_v11 = vsub.f32 1.0, %v3545_v36  ;;  %v3547_v58 = vpop.eup %3546  ;;  %v2701_v18 = vmul.f32 %v3545_v36, %v4830_v31 }
 0x97f   :  { %v2700_v47 = vmul.f32 %v3547_v58, %v2699_v11 }
 0x981   :  { %v2702_v23 = vadd.f32 %v2701_v18, %v2700_v47 }
 0x983   :  { %v2705_v54 = vsel %vm1380_vm9, %v2702_v23, %v4830_v31 }
 0x984   :  { %v2741_v4 = vpack.c.bf16 %v2705_v54, %v2705_v54 }
 0x986   :  { %3206 = vmatmul.mubr.bf16.vlgmr.msra.gmra.mrb[80].mxu0 %v2741_v4 }
 0xa44   :  { %v2825_v5 = vpop.f32.mrb[64].mxu1 }
 0xa45   :  { %v3187_v13 = vpop.f32.mrb[65].mxu1 }
 0xa46   :  { %v2828_v9 = vpop.f32.mrb[66].mxu1 }
 0xa47   :  { %v3188_v12 = vpop.f32.mrb[67].mxu1 }
 0xa59   :  { %v2913_v42 = vpop.f32.mrb[80].mxu0 }
 0xa5a   :  { %v2914_v1 = vadd.f32 %v2913_v42, %v2825_v5  ;;  %v3207_v40 = vpop.f32.mrb[81].mxu0 }
 0xa5b   :  { %v2916_v59 = vpop.f32.mrb[82].mxu0 }
 0xa5c   :  { %v2926_v61 = vadd.f32 %v3117_v2, %v2914_v1  ;;  %v3208_v10 = vpop.f32.mrb[83].mxu0 }
 0xa5e   :  { %2927 = vst [vmem:[#allocation12] sm:$0xff] %v2926_v61 }
 0xa5f   :  { %3728 = shalt.err (!%p3725_p8)
}
 0xa60   :  { %s3729_s7 = scalar_lea.hbm %s4887_s8, 128 }
 0xa61   :  { %p3730_p9 = scmp.ne.s32.totalorder %s4887_s8, %s3729_s7  ;;  %p3733_p10 = scmp.lt.u32.totalorder %s3729_s7, %s4887_s8 }
 0xa63   :  { %p3735_p11 = pnand %p3733_p10, %p3730_p9 }
 0xa65   :  { %3738 = shalt.err (!%p3735_p11)
}
 0xa66   :  { %2937 = dma.vmem_to_hbm [thread:$0]  %s2935_s14, 128, %s4887_s8, [#allocation6]  }
 0xa67   :  { %3745 = dma.done.wait [#allocation6], 128  }
 0xa68   :  { %3746 = vsyncadd [#allocation6], 4294967168 }
 0xa69   :  { %2941 = vsyncpa [#allocation5], 1 }
 0xa6a   :  { %2942 = vsyncpa [#allocation8], 1 }
 0xa6b   :  { %2943 = vsyncpa [#allocation11], 1 }
 0xa6c   :  { %2944 = vsyncpa [#allocation6], 1 }

// kernel: tpu_custom_call.1
= control target key start
LH: loop header
LB: loop body
LE: loop exit
PB: predicated region body
PF: predicated region fallthrough
CT: control target
= control target key end

     0   :  { %13 = vsyncpa [#allocation5], 0  ;;  %s4879_s0 = inlined_call_operand.hbm [shape: bf16[1,8,8,128], index: 0, kind: input, shape index: {}]   ;;  %s4880_s1 = inlined_call_operand.vmem [shape: s32[8,1], index: 1, kind: input, shape index: {}]   ;;  %s4881_s2 = inlined_call_operand.hbm [shape: bf16[128,768], index: 2, kind: input, shape index: {}]   ;;  %s4882_s3 = inlined_call_operand.vmem [shape: f32[1,768], index: 3, kind: input, shape index: {}]   ;;  %s4883_s4 = inlined_call_operand.hbm [shape: bf16[128,768], index: 4, kind: input, shape index: {}]   ;;  %s4884_s5 = inlined_call_operand.vmem [shape: f32[1,768], index: 5, kind: input, shape index: {}]   ;;  %s4885_s6 = inlined_call_operand.hbm [shape: bf16[256,128], index: 6, kind: input, shape index: {}]   ;;  %s4886_s7 = inlined_call_operand.vmem [shape: f32[1,128], index: 7, kind: input, shape index: {}]   ;;  %s4887_s8 = inlined_call_operand.hbm [shape: f32[8,128], index: 8, kind: output, shape index: {}]  }
   0x1   :  { %14 = vsyncpa [#allocation8], 0 }
   0x2   :  { %15 = vsyncpa [#allocation11], 0 }
   0x3   :  { %16 = vsyncpa [#allocation6], 0  ;;  %s3747_s27 = smov [#allocation7]   ;;  %s3629_s9 = scalar_lea.hbm %s4881_s2, 6144 }
   0x4   :  { %s36_s28 = sshll.u32 %s3747_s27, 4  ;;  %p3630_p0 = scmp.ne.s32.totalorder %s4881_s2, %s3629_s9  ;;  %s37_s28 = int_to_ptr.vmem [resolvable:$true] %s36_s28 }
   0x5   :  { %p3633_p1 = scmp.lt.u32.totalorder %s3629_s9, %s4881_s2 }
   0x7   :  { %p3635_p2 = pnand %p3633_p1, %p3630_p0 }
   0x9   :  { %3638 = shalt.err (!%p3635_p2)
}
   0xa   :  { %s3639_s14 = scalar_lea.vmem %s37_s28, 6144  ;;  %p3644_p4 = scmp.lt.s32.totalorder %s37_s28, %s37_s28 }
   0xb   :  { %p3640_p3 = scmp.ne.s32.totalorder %s37_s28, %s3639_s14  ;;  %p3645_p5 = scmp.lt.s32.totalorder %s3639_s14, %s3639_s14 }
   0xd   :  { %p3646_p6 = por %p3645_p5, %p3644_p4 }
   0xf   :  { %p3647_p7 = pnand %p3646_p6, %p3640_p3 }
  0x11   :  { %3650 = shalt.err (!%p3647_p7)
}
  0x12   :  { %s3748_s15 = smov 384   ;;  %s3749_s16 = smov 24  }
  0x13   :  { %42 = dma.hbm_to_vmem [thread:$0]  %s4881_s2, 6144, %s37_s28, [#allocation8], %s3748_s15, %s3748_s15, %s3749_s16  }
  0x14   :  { %s3750_s19 = smov [#allocation4]   ;;  %s3651_s23 = scalar_lea.hbm %s4879_s0, 512 }
  0x15   :  { %s22_s20 = sshll.u32 %s3750_s19, 4  ;;  %p3652_p8 = scmp.ne.s32.totalorder %s4879_s0, %s3651_s23  ;;  %s23_s20 = int_to_ptr.vmem [resolvable:$true] %s22_s20 }
  0x16   :  { %p3655_p9 = scmp.lt.u32.totalorder %s3651_s23, %s4879_s0 }
  0x18   :  { %p3657_p10 = pnand %p3655_p9, %p3652_p8 }
  0x1a   :  { %3660 = shalt.err (!%p3657_p10)
}
  0x1b   :  { %s3661_s29 = scalar_lea.vmem %s23_s20, 512  ;;  %p3666_p12 = scmp.lt.s32.totalorder %s23_s20, %s23_s20 }
  0x1c   :  { %p3662_p11 = scmp.ne.s32.totalorder %s23_s20, %s3661_s29  ;;  %p3667_p13 = scmp.lt.s32.totalorder %s3661_s29, %s3661_s29 }
  0x1e   :  { %p3668_p0 = por %p3667_p13, %p3666_p12 }
  0x20   :  { %p3669_p1 = pnand %p3668_p0, %p3662_p11 }
  0x22   :  { %3672 = shalt.err (!%p3669_p1)
}
  0x23   :  { %s3751_s2 = smov 64   ;;  %s3752_s28 = smov 4  }
  0x24   :  { %28 = dma.hbm_to_vmem [thread:$0]  %s4879_s0, 512, %s23_s20, [#allocation5], %s3751_s2, %s3751_s2, %s3752_s28  }
  0x25   :  { %s3753_s10 = smov [#allocation9]   ;;  %s3754_s12 = smov [#allocation10]  }
  0x26   :  { %s50_s11 = sshll.u32 %s3753_s10, 4  ;;  %s64_s13 = sshll.u32 %s3754_s12, 4  ;;  %s51_s11 = int_to_ptr.vmem [resolvable:$true] %s50_s11  ;;  %s3835_s13 = int_to_ptr.vmem [resolvable:$true] %s64_s13 }
  0x27   :  { %s3673_s18 = scalar_lea.hbm %s4883_s4, 6144 }
  0x28   :  { %p3674_p2 = scmp.ne.s32.totalorder %s4883_s4, %s3673_s18  ;;  %p3677_p3 = scmp.lt.u32.totalorder %s3673_s18, %s4883_s4 }
  0x2a   :  { %p3679_p4 = pnand %p3677_p3, %p3674_p2 }
  0x2c   :  { %3682 = shalt.err (!%p3679_p4)
}
  0x2d   :  { %s3683_s0 = scalar_lea.vmem %s51_s11, 6144  ;;  %p3688_p6 = scmp.lt.s32.totalorder %s51_s11, %s51_s11 }
  0x2e   :  { %p3684_p5 = scmp.ne.s32.totalorder %s51_s11, %s3683_s0  ;;  %p3689_p7 = scmp.lt.s32.totalorder %s3683_s0, %s3683_s0 }
  0x30   :  { %p3690_p8 = por %p3689_p7, %p3688_p6 }
  0x32   :  { %p3691_p9 = pnand %p3690_p8, %p3684_p5 }
  0x34   :  { %3694 = shalt.err (!%p3691_p9)
}
  0x35   :  { %56 = dma.hbm_to_vmem [thread:$0]  %s4883_s4, 6144, %s51_s11, [#allocation8], %s3748_s15, %s3748_s15, %s3749_s16  }
  0x36   :  { %s3695_s27 = scalar_lea.hbm %s4885_s6, 2048 }
  0x37   :  { %p3696_p10 = scmp.ne.s32.totalorder %s4885_s6, %s3695_s27  ;;  %p3699_p11 = scmp.lt.u32.totalorder %s3695_s27, %s4885_s6 }
  0x39   :  { %p3701_p12 = pnand %p3699_p11, %p3696_p10 }
  0x3b   :  { %3704 = shalt.err (!%p3701_p12)
}
  0x3c   :  { %s3705_s12 = scalar_lea.vmem %s3835_s13, 2048  ;;  %p3710_p0 = scmp.lt.s32.totalorder %s3835_s13, %s3835_s13 }
  0x3d   :  { %p3706_p13 = scmp.ne.s32.totalorder %s3835_s13, %s3705_s12  ;;  %p3711_p1 = scmp.lt.s32.totalorder %s3705_s12, %s3705_s12 }
  0x3f   :  { %p3712_p2 = por %p3711_p1, %p3710_p0 }
  0x41   :  { %p3713_p3 = pnand %p3712_p2, %p3706_p13 }
  0x43   :  { %3716 = shalt.err (!%p3713_p3)
}
  0x44   :  { %70 = dma.hbm_to_vmem [thread:$0]  %s4885_s6, 2048, %s3835_s13, [#allocation11], %s3751_s2, %s3751_s2, %s3752_s28  }
  0x45   :  { %3739 = dma.done.wait [#allocation5], 512  }
  0x46   :  { %3740 = vsyncadd [#allocation5], 4294966784 }
  0x47   :  { %3741 = dma.done.wait [#allocation8], 12288  }
  0x48   :  { %3742 = vsyncadd [#allocation8], 4294955008 }
  0x49   :  { %3743 = dma.done.wait [#allocation11], 2048  }
  0x4a   :  { %3744 = vsyncadd [#allocation11], 4294965248  ;;  %v4891_v0 = vmov 0   ;;  %v3224_v1 = vld [vmem:[#allocation7 + $0x4] ss:$24 sps:$4 sm:$0xff]   ;;  %v3895_v44 = vld [vmem:[#allocation4 + $0x8] sm:$0xff]  }
  0x4b   :  { %470 = vmatprep.mubr.bf16.mxu0 %v4891_v0  ;;  %543 = vmatprep.mubr.bf16.mxu1 %v4891_v0  ;;  %v3226_v2 = vld [vmem:[#allocation7 + $0xc] ss:$24 sps:$4 sm:$0xff]   ;;  %v3228_v3 = vld [vmem:[#allocation7] ss:$24 sps:$4 sm:$0xff]   ;;  %v3232_v6 = vld [vmem:[#allocation7 + $0x3c] ss:$24 sps:$4 sm:$0xff]  }
  0x4c   :  { %3222 = vset.pattern.permute.xlu0 %v4891_v0  ;;  %3223 = vset.pattern.permute.xlu1 %v4891_v0  ;;  %v3229_v4 = vld [vmem:[#allocation7 + $0x8] ss:$24 sps:$4 sm:$0xff]   ;;  %v3230_v5 = vld [vmem:[#allocation7 + $0x34] ss:$24 sps:$4 sm:$0xff]   ;;  %v3235_v8 = vld [vmem:[#allocation7 + $0x38] ss:$24 sps:$4 sm:$0xff]  }
  0x4d   :  { %438 = vmatprep.subr.bf16.mxu0 %v3224_v1  ;;  %511 = vmatprep.subr.bf16.mxu1 %v3226_v2  ;;  %v3234_v7 = vld [vmem:[#allocation7 + $0x30] ss:$24 sps:$4 sm:$0xff]   ;;  %v3236_v9 = vld [vmem:[#allocation7 + $0x64] ss:$24 sps:$4 sm:$0xff]   ;;  %v3240_v11 = vld [vmem:[#allocation7 + $0x60] ss:$24 sps:$4 sm:$0xff]  }
  0x4e   :  { %439 = vmatpush1.bf16.msra.mxu0 %v3228_v3  ;;  %512 = vmatpush1.bf16.msra.mxu1 %v3229_v4  ;;  %v3238_v10 = vld [vmem:[#allocation7 + $0x6c] ss:$24 sps:$4 sm:$0xff]   ;;  %v3241_v12 = vld [vmem:[#allocation7 + $0x68] ss:$24 sps:$4 sm:$0xff]   ;;  %v3244_v14 = vld [vmem:[#allocation7 + $0x9c] ss:$24 sps:$4 sm:$0xff]  }
  0x4f   :  { %440 = vmatprep.subr.bf16.mxu0 %v3230_v5  ;;  %513 = vmatprep.subr.bf16.mxu1 %v3232_v6  ;;  %v3242_v13 = vld [vmem:[#allocation7 + $0x94] ss:$24 sps:$4 sm:$0xff]   ;;  %v3246_v15 = vld [vmem:[#allocation7 + $0x90] ss:$24 sps:$4 sm:$0xff]   ;;  %v3248_v17 = vld [vmem:[#allocation7 + $0xc4] ss:$24 sps:$4 sm:$0xff]  }
  0x50   :  { %v3247_v16 = vld [vmem:[#allocation7 + $0x98] ss:$24 sps:$4 sm:$0xff]   ;;  %v3250_v18 = vld [vmem:[#allocation7 + $0xcc] ss:$24 sps:$4 sm:$0xff]   ;;  %v3253_v20 = vld [vmem:[#allocation7 + $0xc8] ss:$24 sps:$4 sm:$0xff]  }
  0x51   :  { %v3252_v19 = vld [vmem:[#allocation7 + $0xc0] ss:$24 sps:$4 sm:$0xff]   ;;  %v3254_v21 = vld [vmem:[#allocation7 + $0xf4] ss:$24 sps:$4 sm:$0xff]   ;;  %v3258_v23 = vld [vmem:[#allocation7 + $0xf0] ss:$24 sps:$4 sm:$0xff]  }
  0x52   :  { %441 = vmatpush1.bf16.msra.mxu0 %v3234_v7  ;;  %514 = vmatpush1.bf16.msra.mxu1 %v3235_v8  ;;  %v3256_v22 = vld [vmem:[#allocation7 + $0xfc] ss:$24 sps:$4 sm:$0xff]   ;;  %v3259_v24 = vld [vmem:[#allocation7 + $0xf8] ss:$24 sps:$4 sm:$0xff]   ;;  %v3262_v26 = vld [vmem:[#allocation7 + $0x12c] ss:$24 sps:$4 sm:$0xff]  }
  0x53   :  { %442 = vmatprep.subr.bf16.mxu0 %v3236_v9  ;;  %515 = vmatprep.subr.bf16.mxu1 %v3238_v10  ;;  %v3260_v25 = vld [vmem:[#allocation7 + $0x124] ss:$24 sps:$4 sm:$0xff]   ;;  %v3264_v27 = vld [vmem:[#allocation7 + $0x120] ss:$24 sps:$4 sm:$0xff]   ;;  %v3266_v29 = vld [vmem:[#allocation7 + $0x154] ss:$24 sps:$4 sm:$0xff]  }
  0x54   :  { %v3265_v28 = vld [vmem:[#allocation7 + $0x128] ss:$24 sps:$4 sm:$0xff]   ;;  %v3268_v30 = vld [vmem:[#allocation7 + $0x15c] ss:$24 sps:$4 sm:$0xff]   ;;  %v3271_v32 = vld [vmem:[#allocation7 + $0x158] ss:$24 sps:$4 sm:$0xff]  }
  0x55   :  { %v3270_v31 = vld [vmem:[#allocation7 + $0x150] ss:$24 sps:$4 sm:$0xff]   ;;  %v3275_v33 = vld [vmem:[#allocation7 + $0x14] ss:$24 sps:$4 sm:$0xff]   ;;  %v3876_v34 = vld [vmem:[#allocation9 + $0x4] ss:$24 sps:$4 sm:$0xff]  }
  0x56   :  { %443 = vmatpush1.bf16.msra.mxu0 %v3240_v11  ;;  %516 = vmatpush1.bf16.msra.mxu1 %v3241_v12  ;;  %v3878_v35 = vld [vmem:[#allocation4] sm:$0xff]   ;;  %v3273_v36 = vld [vmem:[#allocation7 + $0x10] ss:$24 sps:$4 sm:$0xff]   ;;  %v3883_v39 = vld [vmem:[#allocation9 + $0x34] ss:$24 sps:$4 sm:$0xff]   ;;  %s3759_s13 = smov [#allocation12]  }
  0x57   :  { %444 = vmatprep.subr.bf16.mxu0 %v3242_v13  ;;  %517 = vmatprep.subr.bf16.mxu1 %v3244_v14  ;;  %v3880_v37 = vld [vmem:[#allocation9] ss:$24 sps:$4 sm:$0xff]   ;;  %v3281_v38 = vld [vmem:[#allocation7 + $0x44] ss:$24 sps:$4 sm:$0xff]   ;;  %v3888_v41 = vld [vmem:[#allocation9 + $0x30] ss:$24 sps:$4 sm:$0xff]  }
  0x58   :  { %v3279_v40 = vld [vmem:[#allocation7 + $0x40] ss:$24 sps:$4 sm:$0xff]   ;;  %v3288_v42 = vld [vmem:[#allocation7 + $0x74] ss:$24 sps:$4 sm:$0xff]   ;;  %v3891_v43 = vld [vmem:[#allocation9 + $0x64] ss:$24 sps:$4 sm:$0xff]  }
  0x59   :  { %v3286_v45 = vld [vmem:[#allocation7 + $0x70] ss:$24 sps:$4 sm:$0xff]   ;;  %v3897_v46 = vld [vmem:[#allocation9 + $0x60] ss:$24 sps:$4 sm:$0xff]   ;;  %v3294_v47 = vld [vmem:[#allocation7 + $0xa4] ss:$24 sps:$4 sm:$0xff]  }
  0x5a   :  { %445 = vmatpush1.bf16.msra.mxu0 %v3246_v15  ;;  %518 = vmatpush1.bf16.msra.mxu1 %v3247_v16  ;;  %v3901_v48 = vld [vmem:[#allocation9 + $0x94] ss:$24 sps:$4 sm:$0xff]   ;;  %v3292_v49 = vld [vmem:[#allocation7 + $0xa0] ss:$24 sps:$4 sm:$0xff]   ;;  %v3905_v50 = vld [vmem:[#allocation9 + $0x90] ss:$24 sps:$4 sm:$0xff]  }
  0x5b   :  { %446 = vmatprep.subr.bf16.mxu0 %v3248_v17  ;;  %519 = vmatprep.subr.bf16.mxu1 %v3250_v18  ;;  %v3301_v51 = vld [vmem:[#allocation7 + $0xd4] ss:$24 sps:$4 sm:$0xff]   ;;  %v3909_v52 = vld [vmem:[#allocation9 + $0xc4] ss:$24 sps:$4 sm:$0xff]   ;;  %v3299_v54 = vld [vmem:[#allocation7 + $0xd0] ss:$24 sps:$4 sm:$0xff]  }
  0x5c   :  { %v3913_v53 = vld [vmem:[#allocation4 + $0x10] sm:$0xff]   ;;  %v3915_v55 = vld [vmem:[#allocation9 + $0xc0] ss:$24 sps:$4 sm:$0xff]   ;;  %v3307_v56 = vld [vmem:[#allocation7 + $0x104] ss:$24 sps:$4 sm:$0xff]   ;;  %v3756_v13 = vmov 0.0|0.0  }
  0x5d   :  { %v3919_v57 = vld [vmem:[#allocation9 + $0xf4] ss:$24 sps:$4 sm:$0xff]   ;;  %v3305_v58 = vld [vmem:[#allocation7 + $0x100] ss:$24 sps:$4 sm:$0xff]   ;;  %v3923_v59 = vld [vmem:[#allocation9 + $0xf0] ss:$24 sps:$4 sm:$0xff]  }
  0x5e   :  { %447 = vmatpush1.bf16.msra.mxu0 %v3252_v19  ;;  %520 = vmatpush1.bf16.msra.mxu1 %v3253_v20  ;;  %v3314_v60 = vld [vmem:[#allocation7 + $0x134] ss:$24 sps:$4 sm:$0xff]   ;;  %v3927_v61 = vld [vmem:[#allocation9 + $0x124] ss:$24 sps:$4 sm:$0xff]   ;;  %v3312_v63 = vld [vmem:[#allocation7 + $0x130] ss:$24 sps:$4 sm:$0xff]  }
  0x5f   :  { %448 = vmatprep.subr.bf16.mxu0 %v3254_v21  ;;  %521 = vmatprep.subr.bf16.mxu1 %v3256_v22  ;;  %v3931_v62 = vld [vmem:[#allocation4 + $0x18] sm:$0xff]   ;;  %v3937_v3 = vld [vmem:[#allocation9 + $0x154] ss:$24 sps:$4 sm:$0xff]   ;;  %v3941_v5 = vld [vmem:[#allocation9 + $0x150] ss:$24 sps:$4 sm:$0xff]   ;;  %s2934_s14 = sshll.u32 %s3759_s13, 4  ;;  %s2935_s14 = int_to_ptr.vmem [resolvable:$true] %s2934_s14 }
  0x60   :  { %v3933_v1 = vld [vmem:[#allocation9 + $0x120] ss:$24 sps:$4 sm:$0xff]   ;;  %v3320_v2 = vld [vmem:[#allocation7 + $0x164] ss:$24 sps:$4 sm:$0xff]   ;;  %v3947_v7 = vld [vmem:[#allocation9 + $0x14] ss:$24 sps:$4 sm:$0xff]   ;;  %p3722_p5 = scmp.lt.s32.totalorder %s2935_s14, %s2935_s14 }
  0x61   :  { %v3318_v4 = vld [vmem:[#allocation7 + $0x160] ss:$24 sps:$4 sm:$0xff]   ;;  %v3944_v6 = vld [vmem:[#allocation9 + $0xc] ss:$24 sps:$4 sm:$0xff]   ;;  %v3954_v9 = vld [vmem:[#allocation9 + $0x10] ss:$24 sps:$4 sm:$0xff]  }
  0x62   :  { %449 = vmatpush1.bf16.msra.mxu0 %v3258_v23  ;;  %522 = vmatpush1.bf16.msra.mxu1 %v3259_v24  ;;  %v3951_v8 = vld [vmem:[#allocation9 + $0x8] ss:$24 sps:$4 sm:$0xff]   ;;  %v3957_v10 = vld [vmem:[#allocation9 + $0x3c] ss:$24 sps:$4 sm:$0xff]   ;;  %v3960_v11 = vld [vmem:[#allocation9 + $0x38] ss:$24 sps:$4 sm:$0xff]  }
  0x63   :  { %450 = vmatprep.subr.bf16.mxu0 %v3260_v25  ;;  %523 = vmatprep.subr.bf16.mxu1 %v3262_v26  ;;  %v3962_v12 = vld [vmem:[#allocation9 + $0x44] ss:$24 sps:$4 sm:$0xff]   ;;  %v3968_v15 = vld [vmem:[#allocation9 + $0x40] ss:$24 sps:$4 sm:$0xff]   ;;  %v3972_v16 = vld [vmem:[#allocation9 + $0x74] ss:$24 sps:$4 sm:$0xff]  }
  0x64   :  { %v3966_v14 = vld [vmem:[#allocation9 + $0x6c] ss:$24 sps:$4 sm:$0xff]   ;;  %v3984_v18 = vld [vmem:[#allocation9 + $0x68] ss:$24 sps:$4 sm:$0xff]   ;;  %v3994_v23 = vld [vmem:[#allocation9 + $0x9c] ss:$24 sps:$4 sm:$0xff]  }
  0x65   :  { %v3977_v17 = vld [vmem:[%s4880_s1] sm:$0xff]  ;;  %v3987_v19 = vld [vmem:[#allocation9 + $0x70] ss:$24 sps:$4 sm:$0xff]   ;;  %s3717_s17 = scalar_lea.vmem %s2935_s14, 128 }
  0x66   :  { %451 = vmatpush1.bf16.msra.mxu0 %v3264_v27  ;;  %524 = vmatpush1.bf16.msra.mxu1 %v3265_v28  ;;  %vm1375_vm0 = vcmp.gt.s32.totalorder %v3977_v17, 0  ;;  %vm1383_vm1 = vcmp.gt.s32.totalorder %v3977_v17, 7  ;;  %vm1767_vm2 = vcmp.gt.s32.totalorder %v3977_v17, 2  ;;  %vm1963_vm3 = vcmp.gt.s32.totalorder %v3977_v17, 3  ;;  %v3998_v24 = vld [vmem:[#allocation9 + $0xa4] ss:$24 sps:$4 sm:$0xff]   ;;  %p3718_p4 = scmp.ne.s32.totalorder %s2935_s14, %s3717_s17  ;;  %p3723_p6 = scmp.lt.s32.totalorder %s3717_s17, %s3717_s17 }
  0x67   :  { %452 = vmatprep.subr.bf16.mxu0 %v3266_v29  ;;  %525 = vmatprep.subr.bf16.mxu1 %v3268_v30  ;;  %v1376_v20 = vsel %vm1375_vm0, 1, %v4891_v0  ;;  %v1384_v21 = vsel %vm1383_vm1, 1, %v4891_v0  ;;  %v1768_v22 = vsel %vm1767_vm2, 1, %v4891_v0  ;;  %v4002_v25 = vld [vmem:[#allocation9 + $0x98] ss:$24 sps:$4 sm:$0xff]   ;;  %vm1571_vm4 = vcmp.gt.s32.totalorder %v3977_v17, 1 }
  0x68   :  { %1378 = vperm.xlu0 %3222, %v1376_v20   ;;  %v4004_v26 = vld [vmem:[#allocation9 + $0xa0] ss:$24 sps:$4 sm:$0xff]   ;;  %v4007_v27 = vld [vmem:[#allocation9 + $0xcc] ss:$24 sps:$4 sm:$0xff]   ;;  %v4018_v30 = vld [vmem:[#allocation9 + $0xd0] ss:$24 sps:$4 sm:$0xff]   ;;  %p3724_p7 = por %p3723_p6, %p3722_p5 }
  0x69   :  { %v4009_v28 = vld [vmem:[#allocation9 + $0xd4] ss:$24 sps:$4 sm:$0xff]   ;;  %v4015_v29 = vld [vmem:[#allocation9 + $0xc8] ss:$24 sps:$4 sm:$0xff]   ;;  %vm1579_vm5 = vcmp.gt.s32.totalorder %v3977_v17, 6  ;;  %vm1775_vm6 = vcmp.gt.s32.totalorder %v3977_v17, 5 }
  0x6a   :  { %453 = vmatpush1.bf16.msra.mxu0 %v3270_v31  ;;  %526 = vmatpush1.bf16.msra.mxu1 %v3271_v32  ;;  %v1964_v31 = vsel %vm1963_vm3, 1, %v4891_v0  ;;  %v4026_v32 = vld [vmem:[#allocation9 + $0xfc] ss:$24 sps:$4 sm:$0xff]   ;;  %vm1971_vm7 = vcmp.gt.s32.totalorder %v3977_v17, 4  ;;  %vm3758_vm1 = vmmov 0   ;;  %p3725_p8 = pnand %p3724_p7, %p3718_p4 }
  0x6b   :  { %584 = vmatprep.subr.bf16.mxu0 %v3275_v33  ;;  %1199 = vmatprep.subr.bf16.mxu1 %v3876_v34  ;;  %v4029_v33 = vld [vmem:[#allocation9 + $0x104] ss:$24 sps:$4 sm:$0xff]  }
  0x6c   :  { %1386 = vperm.xlu0 %3222, %v1384_v21  }
  0x6d   :  { %471 = vmatmul.mubr.bf16.vlgmr.msra.gmra.mrb[0].mxu0 %v3878_v35  ;;  %544 = vmatmul.mubr.bf16.vlgmr.msra.gmra.mrb[0].mxu1 %v3878_v35 }
  0x6e   :  { %585 = vmatpush1.bf16.msra.mxu0 %v3273_v36  ;;  %1200 = vmatpush1.bf16.msra.mxu1 %v3880_v37  ;;  %v4036_v36 = vld [vmem:[#allocation9 + $0x100] ss:$24 sps:$4 sm:$0xff]  }
  0x6f   :  { %586 = vmatprep.subr.bf16.mxu0 %v3281_v38  ;;  %1201 = vmatprep.subr.bf16.mxu1 %v3883_v39  ;;  %v4040_v38 = vld [vmem:[#allocation9 + $0x12c] ss:$24 sps:$4 sm:$0xff]  }
  0x70   :  { %480 = vmatprep.mubr.bf16.mxu0 %v4891_v0  ;;  %553 = vmatprep.mubr.bf16.mxu1 %v4891_v0  ;;  %4945 = vst [vmem:[#allocation17_spill] sm:$0xff] %v4040_v38 }
  0x71   :  { %1770 = vperm.xlu0 %3222, %v1768_v22  }
  0x72   :  { %587 = vmatpush1.bf16.msra.mxu0 %v3279_v40  ;;  %1202 = vmatpush1.bf16.msra.mxu1 %v3888_v41  ;;  %v4042_v40 = vld [vmem:[#allocation9 + $0x134] ss:$24 sps:$4 sm:$0xff]  }
  0x73   :  { %588 = vmatprep.subr.bf16.mxu0 %v3288_v42  ;;  %1203 = vmatprep.subr.bf16.mxu1 %v3891_v43  ;;  %v4046_v42 = vld [vmem:[#allocation9 + $0x128] ss:$24 sps:$4 sm:$0xff]  }
  0x74   :  { %4946 = vst [vmem:[#allocation18_spill] sm:$0xff] %v4046_v42 }
  0x75   :  { %481 = vmatmul.mubr.bf16.gmra.mrb[4].mxu0 %v3895_v44  ;;  %554 = vmatmul.mubr.bf16.gmra.mrb[4].mxu1 %v3895_v44 }
  0x76   :  { %589 = vmatpush1.bf16.msra.mxu0 %v3286_v45  ;;  %1204 = vmatpush1.bf16.msra.mxu1 %v3897_v46  ;;  %v4052_v45 = vld [vmem:[#allocation9 + $0x15c] ss:$24 sps:$4 sm:$0xff]  }
  0x77   :  { %590 = vmatprep.subr.bf16.mxu0 %v3294_v47  ;;  %1205 = vmatprep.subr.bf16.mxu1 %v3901_v48  ;;  %4947 = vst [vmem:[#allocation19_spill] sm:$0xff] %v4052_v45  ;;  %v4055_v47 = vld [vmem:[#allocation9 + $0x164] ss:$24 sps:$4 sm:$0xff]  }
  0x78   :  { %490 = vmatprep.mubr.bf16.mxu0 %v4891_v0  ;;  %563 = vmatprep.mubr.bf16.mxu1 %v4891_v0 }
  0x79   :  { %1966 = vperm.xlu0 %3222, %v1964_v31  }
  0x7a   :  { %591 = vmatpush1.bf16.msra.mxu0 %v3292_v49  ;;  %1206 = vmatpush1.bf16.msra.mxu1 %v3905_v50  ;;  %v4059_v49 = vld [vmem:[#allocation9 + $0x158] ss:$24 sps:$4 sm:$0xff]  }
  0x7b   :  { %592 = vmatprep.subr.bf16.mxu0 %v3301_v51  ;;  %1207 = vmatprep.subr.bf16.mxu1 %v3909_v52  ;;  %4948 = vst [vmem:[#allocation20_spill] sm:$0xff] %v4059_v49  ;;  %v4062_v51 = vld [vmem:[#allocation9 + $0x160] ss:$24 sps:$4 sm:$0xff]  }
  0x7d   :  { %491 = vmatmul.mubr.bf16.gmra.mrb[8].mxu0 %v3913_v53  ;;  %564 = vmatmul.mubr.bf16.gmra.mrb[8].mxu1 %v3913_v53 }
  0x7e   :  { %593 = vmatpush1.bf16.msra.mxu0 %v3299_v54  ;;  %1208 = vmatpush1.bf16.msra.mxu1 %v3915_v55 }
  0x7f   :  { %594 = vmatprep.subr.bf16.mxu0 %v3307_v56  ;;  %1209 = vmatprep.subr.bf16.mxu1 %v3919_v57 }
  0x80   :  { %500 = vmatprep.mubr.bf16.mxu0 %v4891_v0  ;;  %573 = vmatprep.mubr.bf16.mxu1 %v4891_v0 }
  0x82   :  { %595 = vmatpush1.bf16.msra.mxu0 %v3305_v58  ;;  %1210 = vmatpush1.bf16.msra.mxu1 %v3923_v59 }
  0x83   :  { %596 = vmatprep.subr.bf16.mxu0 %v3314_v60  ;;  %1211 = vmatprep.subr.bf16.mxu1 %v3927_v61 }
  0x85   :  { %501 = vmatmul.mubr.bf16.gmra.mrb[12].mxu0 %v3931_v62  ;;  %574 = vmatmul.mubr.bf16.gmra.mrb[12].mxu1 %v3931_v62 }
  0x86   :  { %597 = vmatpush1.bf16.msra.mxu0 %v3312_v63  ;;  %1212 = vmatpush1.bf16.msra.mxu1 %v3933_v1 }
  0x87   :  { %598 = vmatprep.subr.bf16.mxu0 %v3320_v2  ;;  %1213 = vmatprep.subr.bf16.mxu1 %v3937_v3 }
  0x88   :  { %616 = vmatprep.mubr.bf16.mxu0 %v4891_v0  ;;  %1231 = vmatprep.mubr.bf16.mxu1 %v4891_v0 }
  0x8a   :  { %599 = vmatpush1.bf16.msra.mxu0 %v3318_v4  ;;  %1214 = vmatpush1.bf16.msra.mxu1 %v3941_v5 }
  0x8b   :  { %1240 = vmatprep.subr.bf16.mxu0 %v3944_v6  ;;  %1281 = vmatprep.subr.bf16.mxu1 %v3947_v7 }
  0x8d   :  { %617 = vmatmul.mubr.bf16.vlgmr.msra.gmra.mrb[16].mxu0 %v3878_v35  ;;  %1232 = vmatmul.mubr.bf16.vlgmr.msra.gmra.mrb[16].mxu1 %v3756_v13  ;;  %v4033_v35 = vld [vmem:[#allocation9 + $0xf8] ss:$24 sps:$4 sm:$0xff]  }
  0x8e   :  { %1241 = vmatpush1.bf16.msra.mxu0 %v3951_v8  ;;  %1282 = vmatpush1.bf16.msra.mxu1 %v3954_v9 }
  0x8f   :  { %1242 = vmatprep.subr.bf16.mxu0 %v3957_v10  ;;  %626 = vmatprep.mubr.bf16.mxu0 %v4891_v0 }
  0x90   :  { %1283 = vmatprep.subr.bf16.mxu1 %v3962_v12  ;;  %1313 = vmatprep.mubr.bf16.mxu1 %v4891_v0 }
  0x92   :  { %1243 = vmatpush1.bf16.msra.mxu0 %v3960_v11  ;;  %1284 = vmatpush1.bf16.msra.mxu1 %v3968_v15 }
  0x93   :  { %1244 = vmatprep.subr.bf16.mxu0 %v3966_v14  ;;  %1285 = vmatprep.subr.bf16.mxu1 %v3972_v16 }
  0x95   :  { %627 = vmatmul.mubr.bf16.gmra.mrb[20].mxu0 %v3895_v44  ;;  %v4049_v44 = vld [vmem:[#allocation9 + $0x130] ss:$24 sps:$4 sm:$0xff]  }
  0x96   :  { %1245 = vmatpush1.bf16.msra.mxu0 %v3984_v18  ;;  %1286 = vmatpush1.bf16.msra.mxu1 %v3987_v19 }
  0x97   :  { %1246 = vmatprep.subr.bf16.mxu0 %v3994_v23  ;;  %636 = vmatprep.mubr.bf16.mxu0 %v4891_v0 }
  0x98   :  { %1287 = vmatprep.subr.bf16.mxu1 %v3998_v24 }
  0x9a   :  { %1247 = vmatpush1.bf16.msra.mxu0 %v4002_v25  ;;  %1288 = vmatpush1.bf16.msra.mxu1 %v4004_v26 }
  0x9b   :  { %1248 = vmatprep.subr.bf16.mxu0 %v4007_v27  ;;  %1289 = vmatprep.subr.bf16.mxu1 %v4009_v28 }
  0x9d   :  { %637 = vmatmul.mubr.bf16.gmra.mrb[24].mxu0 %v3913_v53 }
  0x9e   :  { %1249 = vmatpush1.bf16.msra.mxu0 %v4015_v29  ;;  %1290 = vmatpush1.bf16.msra.mxu1 %v4018_v30 }
  0x9f   :  { %1250 = vmatprep.subr.bf16.mxu0 %v4026_v32  ;;  %646 = vmatprep.mubr.bf16.mxu0 %v4891_v0 }
  0xa0   :  { %1291 = vmatprep.subr.bf16.mxu1 %v4029_v33 }
  0xa2   :  { %1251 = vmatpush1.bf16.msra.mxu0 %v4033_v35  ;;  %1292 = vmatpush1.bf16.msra.mxu1 %v4036_v36 }
  0xa3   :  { %1252 = vmatprep.subr.bf16.mxu0 %v4040_v38  ;;  %1293 = vmatprep.subr.bf16.mxu1 %v4042_v40 }
  0xa5   :  { %647 = vmatmul.mubr.bf16.gmra.mrb[28].mxu0 %v3931_v62 }
  0xa6   :  { %1253 = vmatpush1.bf16.msra.mxu0 %v4046_v42  ;;  %1294 = vmatpush1.bf16.msra.mxu1 %v4049_v44 }
  0xa7   :  { %1254 = vmatprep.subr.bf16.mxu0 %v4052_v45  ;;  %1272 = vmatprep.mubr.bf16.mxu0 %v4891_v0 }
  0xa8   :  { %1295 = vmatprep.subr.bf16.mxu1 %v4055_v47 }
  0xaa   :  { %1255 = vmatpush1.bf16.msra.mxu0 %v4059_v49  ;;  %1296 = vmatpush1.bf16.msra.mxu1 %v4062_v51 }
  0xab   :  { %1394 = vmatprep.subr.bf16.mxu0 %v3876_v34  ;;  %1435 = vmatprep.subr.bf16.mxu1 %v3944_v6 }
  0xad   :  { %1273 = vmatmul.mubr.bf16.vlgmr.msra.gmra.mrb[32].mxu0 %v3756_v13  ;;  %1314 = vmatmul.mubr.bf16.vlgmr.msra.gmra.mrb[20].mxu1 %v3756_v13 }
  0xae   :  { %1395 = vmatpush1.bf16.msra.mxu0 %v3880_v37  ;;  %1436 = vmatpush1.bf16.msra.mxu1 %v3951_v8  ;;  %v144_v37 = vlaneseq }
  0xaf   :  { %1396 = vmatprep.subr.bf16.mxu0 %v3883_v39  ;;  %1437 = vmatprep.subr.bf16.mxu1 %v3957_v10 }
  0xb0   :  { %1426 = vmatprep.mubr.bf16.mxu0 %v4891_v0  ;;  %1467 = vmatprep.mubr.bf16.mxu1 %v4891_v0  ;;  %v4107_v39 = vshrl.u32 %v144_v37, 7 }
  0xb2   :  { %1397 = vmatpush1.bf16.msra.mxu0 %v3888_v41  ;;  %1438 = vmatpush1.bf16.msra.mxu1 %v3960_v11  ;;  %v4893_v41 = vsub.s32 0, %v4107_v39 }
  0xb3   :  { %1398 = vmatprep.subr.bf16.mxu0 %v3891_v43  ;;  %1439 = vmatprep.subr.bf16.mxu1 %v3966_v14  ;;  %v4889_v43 = vsub.s32 2, %v4107_v39 }
  0xb6   :  { %1399 = vmatpush1.bf16.msra.mxu0 %v3897_v46  ;;  %1440 = vmatpush1.bf16.msra.mxu1 %v3984_v18  ;;  %v4114_v46 = vld [vmem:[%s4882_s3] sm:$0x3f] }
  0xb7   :  { %1400 = vmatprep.subr.bf16.mxu0 %v3901_v48  ;;  %1441 = vmatprep.subr.bf16.mxu1 %v3994_v23  ;;  %v4890_v48 = vsub.s32 1, %v4107_v39  ;;  %v4126_v53 = vrot.slane %v4114_v46, %v4889_v43 }
  0xb9   :  { %v4131_v54 = vrot.slane %v4114_v46, %v4890_v48 }
  0xba   :  { %1401 = vmatpush1.bf16.msra.mxu0 %v3905_v50  ;;  %1442 = vmatpush1.bf16.msra.mxu1 %v4002_v25  ;;  %v4888_v50 = vsub.s32 3, %v4107_v39 }
  0xbb   :  { %1402 = vmatprep.subr.bf16.mxu0 %v3909_v52  ;;  %1443 = vmatprep.subr.bf16.mxu1 %v4007_v27 }
  0xbc   :  { %v4136_v56 = vrot.slane %v4114_v46, %v4888_v50 }
  0xbe   :  { %1403 = vmatpush1.bf16.msra.mxu0 %v3915_v55  ;;  %1444 = vmatpush1.bf16.msra.mxu1 %v4015_v29 }
  0xbf   :  { %1404 = vmatprep.subr.bf16.mxu0 %v3919_v57  ;;  %1445 = vmatprep.subr.bf16.mxu1 %v4026_v32 }
  0xc2   :  { %1405 = vmatpush1.bf16.msra.mxu0 %v3923_v59  ;;  %1446 = vmatpush1.bf16.msra.mxu1 %v4033_v35 }
  0xc3   :  { %1406 = vmatprep.subr.bf16.mxu0 %v3927_v61  ;;  %1447 = vmatprep.subr.bf16.mxu1 %v4040_v38 }
  0xc6   :  { %1407 = vmatpush1.bf16.msra.mxu0 %v3933_v1  ;;  %1448 = vmatpush1.bf16.msra.mxu1 %v4046_v42 }
  0xc7   :  { %1408 = vmatprep.subr.bf16.mxu0 %v3937_v3  ;;  %1449 = vmatprep.subr.bf16.mxu1 %v4052_v45 }
  0xca   :  { %1409 = vmatpush1.bf16.msra.mxu0 %v3941_v5  ;;  %1450 = vmatpush1.bf16.msra.mxu1 %v4059_v49 }
  0xcb   :  { %1476 = vmatprep.subr.bf16.mxu0 %v3947_v7  ;;  %1590 = vmatprep.subr.bf16.mxu1 %v3876_v34  ;;  %v4121_v34 = vrot.slane %v4114_v46, %v4893_v41 }
 0x140   :  { %v472_v58 = vpop.f32.mrb[0].mxu0  ;;  %v545_v60 = vpop.f32.mrb[0].mxu1 }
 0x141   :  { %v473_v62 = vadd.f32 %v472_v58, %v4121_v34  ;;  %v474_v63 = vpop.f32.mrb[1].mxu0  ;;  %v546_v2 = vadd.f32 %v545_v60, %v4126_v53  ;;  %v547_v4 = vpop.f32.mrb[1].mxu1 }
 0x142   :  { %v475_v13 = vadd.f32 %v474_v63, %v4131_v54  ;;  %v476_v20 = vpop.f32.mrb[2].mxu0  ;;  %v548_v21 = vadd.f32 %v547_v4, %v4136_v56  ;;  %v549_v22 = vpop.f32.mrb[2].mxu1 }
 0x143   :  { %v477_v31 = vadd.f32 %v476_v20, %v4121_v34  ;;  %v478_v37 = vpop.f32.mrb[3].mxu0  ;;  %v550_v50 = vadd.f32 %v549_v22, %v4126_v53  ;;  %v551_v43 = vpop.f32.mrb[3].mxu1 }
 0x144   :  { %v4144_v48 = vpack.c.bf16 %v475_v13, %v473_v62  ;;  %v479_v58 = vadd.f32 %v478_v37, %v4131_v54  ;;  %v3119_v0 = vpack.c.bf16 %v548_v21, %v546_v2  ;;  %v552_v60 = vadd.f32 %v551_v43, %v4136_v56 }
 0x146   :  { %v4148_v41 = vpack.c.bf16 %v479_v58, %v477_v31  ;;  %850 = vst [vmem:[#allocation2 + $0x8] sm:$0xff] %v3119_v0  ;;  %v3122_v63 = vpack.c.bf16 %v552_v60, %v550_v50 }
 0x148   :  { %4949 = vst [vmem:[#allocation21_spill] sm:$0xff] %v4148_v41  ;;  %v482_v49 = vpop.f32.mrb[4].mxu0  ;;  %853 = vst [vmem:[#allocation2 + $0x20] sm:$0xff] %v3122_v63  ;;  %v555_v4 = vpop.f32.mrb[4].mxu1 }
 0x149   :  { %v483_v20 = vadd.f32 %v482_v49, %v4121_v34  ;;  %v484_v45 = vpop.f32.mrb[5].mxu0  ;;  %v556_v22 = vadd.f32 %v555_v4, %v4126_v53  ;;  %v557_v42 = vpop.f32.mrb[5].mxu1 }
 0x14a   :  { %v485_v62 = vadd.f32 %v484_v45, %v4131_v54  ;;  %v486_v13 = vpop.f32.mrb[6].mxu0  ;;  %v558_v2 = vadd.f32 %v557_v42, %v4136_v56  ;;  %v559_v21 = vpop.f32.mrb[6].mxu1 }
 0x14b   :  { %v487_v43 = vadd.f32 %v486_v13, %v4121_v34  ;;  %v488_v31 = vpop.f32.mrb[7].mxu0  ;;  %v560_v0 = vadd.f32 %v559_v21, %v4126_v53  ;;  %v561_v50 = vpop.f32.mrb[7].mxu1 }
 0x14c   :  { %v4156_v37 = vpack.c.bf16 %v485_v62, %v483_v20  ;;  %v489_v49 = vadd.f32 %v488_v31, %v4131_v54  ;;  %v3125_v58 = vpack.c.bf16 %v558_v2, %v556_v22  ;;  %v562_v60 = vadd.f32 %v561_v50, %v4136_v56 }
 0x14e   :  { %4950 = vst [vmem:[#allocation22_spill] sm:$0xff] %v4156_v37  ;;  %v3127_v63 = vpack.c.bf16 %v489_v49, %v487_v43  ;;  %856 = vst [vmem:[#allocation2 + $0x38] sm:$0xff] %v3125_v58  ;;  %v3128_v45 = vpack.c.bf16 %v562_v60, %v560_v0 }
 0x150   :  { %858 = vst [vmem:[#allocation2 + $0x48] sm:$0xff] %v3127_v63  ;;  %v492_v4 = vpop.f32.mrb[8].mxu0  ;;  %859 = vst [vmem:[#allocation2 + $0x50] sm:$0xff] %v3128_v45  ;;  %v565_v42 = vpop.f32.mrb[8].mxu1 }
 0x151   :  { %v493_v13 = vadd.f32 %v492_v4, %v4121_v34  ;;  %v494_v41 = vpop.f32.mrb[9].mxu0  ;;  %v566_v21 = vadd.f32 %v565_v42, %v4126_v53  ;;  %v567_v38 = vpop.f32.mrb[9].mxu1 }
 0x152   :  { %v495_v20 = vadd.f32 %v494_v41, %v4131_v54  ;;  %v496_v62 = vpop.f32.mrb[10].mxu0  ;;  %v568_v22 = vadd.f32 %v567_v38, %v4136_v56  ;;  %v569_v2 = vpop.f32.mrb[10].mxu1 }
 0x153   :  { %v497_v43 = vadd.f32 %v496_v62, %v4121_v34  ;;  %v498_v31 = vpop.f32.mrb[11].mxu0  ;;  %v570_v0 = vadd.f32 %v569_v2, %v4126_v53  ;;  %v571_v50 = vpop.f32.mrb[11].mxu1 }
 0x154   :  { %v3130_v49 = vpack.c.bf16 %v495_v20, %v493_v13  ;;  %v499_v58 = vadd.f32 %v498_v31, %v4131_v54  ;;  %v3131_v60 = vpack.c.bf16 %v568_v22, %v566_v21  ;;  %v572_v63 = vadd.f32 %v571_v50, %v4136_v56  ;;  %v4176_v31 = vld [vmem:[%s4884_s5] sm:$0x3f] }
 0x155   :  { %v162_v13 = vsub.s32 4, %v4107_v39 }
 0x156   :  { %861 = vst [vmem:[#allocation2 + $0x60] sm:$0xff] %v3130_v49  ;;  %v3133_v45 = vpack.c.bf16 %v499_v58, %v497_v43  ;;  %862 = vst [vmem:[#allocation2 + $0x68] sm:$0xff] %v3131_v60  ;;  %v3134_v41 = vpack.c.bf16 %v572_v63, %v570_v0  ;;  %v4904_v0 = vsub.s32 5, %v4107_v39 }
 0x158   :  { %864 = vst [vmem:[#allocation2 + $0x78] sm:$0xff] %v3133_v45  ;;  %v502_v4 = vpop.f32.mrb[12].mxu0  ;;  %865 = vst [vmem:[#allocation2 + $0x80] sm:$0xff] %v3134_v41  ;;  %v575_v38 = vpop.f32.mrb[12].mxu1 }
 0x159   :  { %v503_v42 = vadd.f32 %v502_v4, %v4121_v34  ;;  %v504_v62 = vpop.f32.mrb[13].mxu0  ;;  %v576_v2 = vadd.f32 %v575_v38, %v4126_v53  ;;  %v577_v37 = vpop.f32.mrb[13].mxu1  ;;  %v4188_v4 = vrot.slane %v4114_v46, %v162_v13  ;;  %v4953_v38 = vmov 0  }
 0x15a   :  { %v505_v21 = vadd.f32 %v504_v62, %v4131_v54  ;;  %v506_v20 = vpop.f32.mrb[14].mxu0  ;;  %v578_v22 = vadd.f32 %v577_v37, %v4136_v56  ;;  %v579_v43 = vpop.f32.mrb[14].mxu1  ;;  %v1572_v62 = vsel %vm1571_vm4, 1, %v4953_v38 }
 0x15b   :  { %v507_v50 = vadd.f32 %v506_v20, %v4121_v34  ;;  %v508_v49 = vpop.f32.mrb[15].mxu0  ;;  %v580_v58 = vadd.f32 %v579_v43, %v4126_v53  ;;  %v581_v60 = vpop.f32.mrb[15].mxu1  ;;  %v4951_v34 = vsub.s32 0, %v4107_v39  ;;  %1574 = vperm.xlu1 %3223, %v1572_v62  }
 0x15c   :  { %v3136_v63 = vpack.c.bf16 %v505_v21, %v503_v42  ;;  %v509_v37 = vadd.f32 %v508_v49, %v4131_v54  ;;  %v3137_v45 = vpack.c.bf16 %v578_v22, %v576_v2  ;;  %v582_v41 = vadd.f32 %v581_v60, %v4136_v56 }
 0x15d   :  { %v4193_v53 = vrot.slane %v4176_v31, %v4951_v34  ;;  %v4199_v54 = vrot.slane %v4114_v46, %v4904_v0  ;;  %v4954_v56 = vsub.s32 1, %v4107_v39  ;;  %v1580_v21 = vsel %vm1579_vm5, 1, %v4953_v38 }
 0x15e   :  { %867 = vst [vmem:[#allocation2 + $0x90] sm:$0xff] %v3136_v63  ;;  %v3139_v20 = vpack.c.bf16 %v509_v37, %v507_v50  ;;  %868 = vst [vmem:[#allocation2 + $0x98] sm:$0xff] %v3137_v45  ;;  %v3140_v42 = vpack.c.bf16 %v582_v41, %v580_v58  ;;  %v1324_v46 = vunpack.c.l.bf16 %v4144_v48  ;;  %v1325_v45 = vunpack.c.h.bf16 %v4144_v48 }
 0x15f   :  { %4952 = vst [vmem:[#allocation23_spill] sm:$0xff] %v4193_v53  ;;  %v4204_v2 = vrot.slane %v4176_v31, %v4954_v56  ;;  %1582 = vperm.xlu1 %3223, %v1580_v21   ;;  %v1972_v21 = vsel %vm1971_vm7, 1, %v4953_v38 }
 0x160   :  { %870 = vst [vmem:[#allocation2 + $0xa8] sm:$0xff] %v3139_v20  ;;  %871 = vst [vmem:[#allocation2 + $0xb0] sm:$0xff] %v3140_v42  ;;  %v618_v22 = vpop.f32.mrb[16].mxu0  ;;  %v1233_v43 = vpop.f32.mrb[16].mxu1 }
 0x161   :  { %4955 = vst [vmem:[#allocation24_spill] sm:$0xff] %v4204_v2  ;;  %v619_v50 = vadd.f32 %v618_v22, %v4188_v4  ;;  %v1234_v49 = vadd.f32 %v1233_v43, %v4193_v53  ;;  %v620_v58 = vpop.f32.mrb[17].mxu0  ;;  %v1235_v60 = vpop.f32.mrb[17].mxu1  ;;  %v1776_v22 = vsel %vm1775_vm6, 1, %v4953_v38 }
 0x162   :  { %v621_v63 = vadd.f32 %v620_v58, %v4199_v54  ;;  %v1236_v37 = vadd.f32 %v1235_v60, %v4204_v2  ;;  %v622_v41 = vpop.f32.mrb[18].mxu0  ;;  %v1237_v34 = vpop.f32.mrb[18].mxu1 }
 0x163   :  { %v1333_v62 = vadd.f32 %v1324_v46, %v1234_v49  ;;  %v623_v20 = vadd.f32 %v622_v41, %v4188_v4  ;;  %v624_v42 = vpop.f32.mrb[19].mxu0  ;;  %v1238_v56 = vpop.f32.mrb[19].mxu1  ;;  %1778 = vperm.xlu1 %3223, %v1776_v22  }
 0x164   :  { %v3120_v43 = vpack.c.bf16 %v621_v63, %v619_v50  ;;  %v1340_v0 = vadd.f32 %v1325_v45, %v1236_v37  ;;  %v625_v58 = vadd.f32 %v624_v42, %v4199_v54 }
 0x165   :  { %v3069_v60 = vmul.f32 -1.442695, %v1333_v62 }
 0x166   :  { %851 = vst [vmem:[#allocation2 + $0x10] sm:$0xff] %v3120_v43  ;;  %v3123_v48 = vpack.c.bf16 %v625_v58, %v623_v20 }
 0x167   :  { %3388 = vpow2.f32 %v3069_v60  ;;  %1974 = vperm.xlu1 %3223, %v1972_v21   ;;  %v3070_v60 = vmul.f32 -1.442695, %v1340_v0 }
 0x168   :  { %854 = vst [vmem:[#allocation2 + $0x28] sm:$0xff] %v3123_v48  ;;  %v628_v49 = vpop.f32.mrb[20].mxu0 }
 0x169   :  { %v629_v46 = vadd.f32 %v628_v49, %v4188_v4  ;;  %v630_v41 = vpop.f32.mrb[21].mxu0  ;;  %3390 = vpow2.f32 %v3070_v60 }
 0x16a   :  { %v631_v34 = vadd.f32 %v630_v41, %v4199_v54  ;;  %v632_v50 = vpop.f32.mrb[22].mxu0 }
 0x16b   :  { %v633_v63 = vadd.f32 %v632_v50, %v4188_v4  ;;  %v634_v37 = vpop.f32.mrb[23].mxu0 }
 0x16c   :  { %v3126_v17 = vpack.c.bf16 %v631_v34, %v629_v46  ;;  %v635_v45 = vadd.f32 %v634_v37, %v4199_v54 }
 0x16e   :  { %857 = vst [vmem:[#allocation2 + $0x40] sm:$0xff] %v3126_v17  ;;  %v3129_v62 = vpack.c.bf16 %v635_v45, %v633_v63 }
 0x170   :  { %860 = vst [vmem:[#allocation2 + $0x58] sm:$0xff] %v3129_v62  ;;  %v638_v20 = vpop.f32.mrb[24].mxu0 }
 0x171   :  { %v3389_v42 = vpop.eup %3388  ;;  %v639_v56 = vadd.f32 %v638_v20, %v4188_v4  ;;  %v640_v22 = vpop.f32.mrb[25].mxu0 }
 0x172   :  { %v641_v43 = vadd.f32 %v640_v22, %v4199_v54  ;;  %v642_v58 = vpop.f32.mrb[26].mxu0  ;;  %v1337_v49 = vadd.f32 1.0, %v3389_v42 }
 0x173   :  { %v643_v48 = vadd.f32 %v642_v58, %v4188_v4  ;;  %v644_v21 = vpop.f32.mrb[27].mxu0 }
 0x174   :  { %v3132_v41 = vpack.c.bf16 %v641_v43, %v639_v56  ;;  %v645_v46 = vadd.f32 %v644_v21, %v4199_v54  ;;  %3392 = vrcp.f32 %v1337_v49  ;;  %v4956_v56 = vsub.s32 2, %v4107_v39 }
 0x176   :  { %863 = vst [vmem:[#allocation2 + $0x70] sm:$0xff] %v3132_v41  ;;  %v3135_v34 = vpack.c.bf16 %v645_v46, %v643_v48  ;;  %v4236_v22 = vrot.slane %v4176_v31, %v4956_v56  ;;  %v3391_v48 = vpop.eup %3390 }
 0x178   :  { %866 = vst [vmem:[#allocation2 + $0x88] sm:$0xff] %v3135_v34  ;;  %v648_v50 = vpop.f32.mrb[28].mxu0  ;;  %4957 = vst [vmem:[#allocation25_spill] sm:$0xff] %v4236_v22 }
 0x179   :  { %v649_v63 = vadd.f32 %v648_v50, %v4188_v4  ;;  %v650_v37 = vpop.f32.mrb[29].mxu0 }
 0x17a   :  { %v651_v17 = vadd.f32 %v650_v37, %v4199_v54  ;;  %v652_v45 = vpop.f32.mrb[30].mxu0  ;;  %v1344_v37 = vadd.f32 1.0, %v3391_v48 }
 0x17b   :  { %v653_v0 = vadd.f32 %v652_v45, %v4188_v4  ;;  %v654_v62 = vpop.f32.mrb[31].mxu0 }
 0x17c   :  { %v3138_v20 = vpack.c.bf16 %v651_v17, %v649_v63  ;;  %v655_v42 = vadd.f32 %v654_v62, %v4199_v54  ;;  %v4958_v17 = vsub.s32 3, %v4107_v39  ;;  %3394 = vrcp.f32 %v1344_v37 }
 0x17e   :  { %869 = vst [vmem:[#allocation2 + $0xa0] sm:$0xff] %v3138_v20  ;;  %v3141_v43 = vpack.c.bf16 %v655_v42, %v653_v0  ;;  %v3393_v4 = vpop.eup %3392  ;;  %v4242_v45 = vrot.slane %v4176_v31, %v4958_v17  ;;  %v4247_v0 = vrot.slane %v4176_v31, %v162_v13 }
 0x180   :  { %872 = vst [vmem:[#allocation2 + $0xb8] sm:$0xff] %v3141_v43  ;;  %v1274_v58 = vpop.f32.mrb[32].mxu0  ;;  %v1315_v60 = vpop.f32.mrb[20].mxu1 }
 0x181   :  { %v1275_v21 = vadd.f32 %v1274_v58, %v4236_v22  ;;  %v1276_v49 = vpop.f32.mrb[33].mxu0  ;;  %v1316_v41 = vpop.f32.mrb[21].mxu1 }
 0x182   :  { %v1277_v46 = vpop.f32.mrb[34].mxu0  ;;  %v1317_v34 = vpop.f32.mrb[22].mxu1 }
 0x183   :  { %v1347_v50 = vmul.f32 %v3393_v4, %v1275_v21  ;;  %v1278_v54 = vpop.f32.mrb[35].mxu0  ;;  %v1319_v63 = vpop.f32.mrb[23].mxu1  ;;  %v1318_v58 = vadd.f32 %v1317_v34, %v4247_v0 }
 0x184   :  { %v1279_v56 = vadd.f32 %v1278_v54, %v4242_v45 }
 0x186   :  { %v3395_v46 = vpop.eup %3394 }
 0x187   :  { %v1323_v62 = vld [vmem:[#allocation2 + $0x8] ss:$180 sps:$4 sm:$0xff]   ;;  %v1328_v20 = vld [vmem:[#allocation2 + $0xb4] sm:$0xff]  ;;  %v1350_v13 = vsub.f32 1.0, %v3395_v46  ;;  %v1352_v37 = vmul.f32 0.0, %v3395_v46 }
 0x188   :  { %v1326_v42 = vunpack.c.l.bf16 %v1323_v62  ;;  %v1330_v43 = vunpack.c.l.bf16 %v1328_v20  ;;  %v1331_v60 = vunpack.c.h.bf16 %v1328_v20  ;;  %v4287_v46 = vld [vmem:[#allocation9 + $0x34] ss:$24 sps:$4 sm:$0xff]  }
 0x18a   :  { %v1348_v48 = vadd.f32 %v1347_v50, %v1326_v42  ;;  %v1354_v21 = vadd.f32 %v1330_v43, %v1279_v56  ;;  %v1361_v41 = vadd.f32 %v1331_v60, %v1318_v58  ;;  %v4959_v50 = vsub.s32 5, %v4107_v39 }
 0x18b   :  { %v1332_v58 = vunpack.c.h.bf16 %v1323_v62 }
 0x18c   :  { %3396 = vtanh.f32 %v1348_v48  ;;  %v3071_v49 = vmul.f32 -1.442695, %v1354_v21  ;;  %v3072_v4 = vmul.f32 -1.442695, %v1361_v41  ;;  %v4256_v20 = vrot.slane %v4176_v31, %v4959_v50 }
 0x18e   :  { %3398 = vpow2.f32 %v3071_v49  ;;  %v1320_v56 = vadd.f32 %v1319_v63, %v4256_v20 }
 0x18f   :  { %3400 = vpow2.f32 %v3072_v4  ;;  %v4284_v4 = vld [vmem:[#allocation9] ss:$24 sps:$4 sm:$0xff]  }
 0x196   :  { %v3397_v17 = vpop.eup %3396 }
 0x197   :  { %v1351_v22 = vmul.f32 %v3397_v17, %v1350_v13  ;;  %v4293_v13 = vld [vmem:[#allocation9 + $0x30] ss:$24 sps:$4 sm:$0xff]   ;;  %v4304_v17 = vld [vmem:[#allocation9 + $0x94] ss:$24 sps:$4 sm:$0xff]  }
 0x198   :  { %v3399_v2 = vpop.eup %3398 }
 0x199   :  { %v1358_v53 = vadd.f32 1.0, %v3399_v2  ;;  %v4251_v54 = vadd.f32 %v1352_v37, %v1351_v22  ;;  %v3401_v34 = vpop.eup %3400  ;;  %v4259_v2 = vpop.permute.xlu0 %1378 }
 0x19a   :  { %v1365_v42 = vadd.f32 1.0, %v3401_v34  ;;  %4960 = vst [vmem:[#allocation26_spill] sm:$0xff] %v4259_v2  ;;  %vm1380_vm9 = vcmp.eq.s32.totalorder %v4259_v2, 1 }
 0x19b   :  { %3402 = vrcp.f32 %v1358_v53 }
 0x19c   :  { %3404 = vrcp.f32 %v1365_v42 }
 0x19d   :  { %v4261_v39 = vpop.permute.xlu0 %1386 }
 0x19e   :  { %4961 = vst [vmem:[#allocation27_spill] sm:$0xff] %v4261_v39  ;;  %vm1388_vm8 = vcmp.eq.s32.totalorder %v4261_v39, 1 }
 0x19f   :  { %vm4273_vm10 = vmpackc.low %vm1388_vm8, %vm1380_vm9 }
 0x1a5   :  { %v3403_v43 = vpop.eup %3402 }
 0x1a6   :  { %v1368_v60 = vmul.f32 %v3403_v43, %v1320_v56  ;;  %v3405_v21 = vpop.eup %3404 }
 0x1a7   :  { %v1371_v22 = vsub.f32 1.0, %v3405_v21  ;;  %v1373_v41 = vmul.f32 0.0, %v3405_v21 }
 0x1a8   :  { %v1369_v48 = vadd.f32 %v1368_v60, %v1332_v58 }
 0x1aa   :  { %3406 = vtanh.f32 %v1369_v48 }
 0x1b4   :  { %v3407_v53 = vpop.eup %3406 }
 0x1b5   :  { %v1372_v49 = vmul.f32 %v3407_v53, %v1371_v22 }
 0x1b7   :  { %v4263_v31 = vadd.f32 %v1373_v41, %v1372_v49  ;;  %v1519_v41 = vld [vmem:[#allocation2 + $0x20] ss:$132 sps:$4 sm:$0xff]  }
 0x1b9   :  { %v3143_v63 = vpack.c.bf16 %v4263_v31, %v4251_v54 }
 0x1bb   :  { %3144 = vmatmul.mubr.msk.bf16.vlgmr.msra.gmra.mrb[36].mxu0 %vm4273_vm10, %v3143_v63  ;;  %3147 = vmatmul.mubr.msk.bf16.vlgmr.msra.gmra.mrb[24].mxu1 %vm4273_vm10, %v3143_v63 }
 0x1bc   :  { %1477 = vmatpush1.bf16.msra.mxu0 %v3954_v9  ;;  %1508 = vmatprep.mubr.bf16.mxu0 %v4953_v38  ;;  %v4296_v9 = vld [vmem:[#allocation9 + $0x64] ss:$24 sps:$4 sm:$0xff]  }
 0x1bd   :  { %1478 = vmatprep.subr.bf16.mxu0 %v3962_v12  ;;  %1591 = vmatpush1.bf16.msra.mxu1 %v4284_v4  ;;  %v4301_v12 = vld [vmem:[#allocation9 + $0x60] ss:$24 sps:$4 sm:$0xff]  }
 0x1be   :  { %1592 = vmatprep.subr.bf16.mxu1 %v4287_v46  ;;  %1622 = vmatprep.mubr.bf16.mxu1 %v4953_v38 }
 0x1c0   :  { %1479 = vmatpush1.bf16.msra.mxu0 %v3968_v15  ;;  %v4309_v15 = vld [vmem:[#allocation9 + $0x90] ss:$24 sps:$4 sm:$0xff]  }
 0x1c1   :  { %1480 = vmatprep.subr.bf16.mxu0 %v3972_v16  ;;  %1593 = vmatpush1.bf16.msra.mxu1 %v4293_v13  ;;  %v4971_v16 = vld [vmem:[#allocation24_spill] sm:$0xff] }
 0x1c2   :  { %1594 = vmatprep.subr.bf16.mxu1 %v4296_v9 }
 0x1c4   :  { %1481 = vmatpush1.bf16.msra.mxu0 %v3987_v19 }
 0x1c5   :  { %1482 = vmatprep.subr.bf16.mxu0 %v3998_v24  ;;  %1595 = vmatpush1.bf16.msra.mxu1 %v4301_v12 }
 0x1c6   :  { %1596 = vmatprep.subr.bf16.mxu1 %v4304_v17 }
 0x1c8   :  { %1483 = vmatpush1.bf16.msra.mxu0 %v4004_v26 }
 0x1c9   :  { %1484 = vmatprep.subr.bf16.mxu0 %v4009_v28  ;;  %1597 = vmatpush1.bf16.msra.mxu1 %v4309_v15 }
 0x1ca   :  { %1598 = vmatprep.subr.bf16.mxu1 %v3909_v52  ;;  %v4964_v52 = vld [vmem:[#allocation17_spill] sm:$0xff] }
 0x1cc   :  { %1485 = vmatpush1.bf16.msra.mxu0 %v4018_v30 }
 0x1cd   :  { %1486 = vmatprep.subr.bf16.mxu0 %v4029_v33  ;;  %1599 = vmatpush1.bf16.msra.mxu1 %v3915_v55  ;;  %v4965_v55 = vld [vmem:[#allocation18_spill] sm:$0xff] }
 0x1ce   :  { %1600 = vmatprep.subr.bf16.mxu1 %v3919_v57  ;;  %v4966_v57 = vld [vmem:[#allocation19_spill] sm:$0xff] }
 0x1d0   :  { %1487 = vmatpush1.bf16.msra.mxu0 %v4036_v36 }
 0x1d1   :  { %1488 = vmatprep.subr.bf16.mxu0 %v4042_v40  ;;  %1601 = vmatpush1.bf16.msra.mxu1 %v3923_v59  ;;  %v4967_v59 = vld [vmem:[#allocation20_spill] sm:$0xff] }
 0x1d2   :  { %1602 = vmatprep.subr.bf16.mxu1 %v3927_v61  ;;  %v4347_v61 = vld [vmem:[#allocation9 + $0x4] ss:$24 sps:$4 sm:$0xff]  }
 0x1d3   :  { %4968 = vst [vmem:[#allocation17_spill] sm:$0xff] %v4347_v61 }
 0x1d4   :  { %1489 = vmatpush1.bf16.msra.mxu0 %v4049_v44 }
 0x1d5   :  { %1490 = vmatprep.subr.bf16.mxu0 %v4055_v47  ;;  %1603 = vmatpush1.bf16.msra.mxu1 %v3933_v1 }
 0x1d6   :  { %1604 = vmatprep.subr.bf16.mxu1 %v3937_v3 }
 0x1d8   :  { %1491 = vmatpush1.bf16.msra.mxu0 %v4062_v51 }
 0x1d9   :  { %1631 = vmatprep.subr.bf16.mxu0 %v3944_v6  ;;  %1605 = vmatpush1.bf16.msra.mxu1 %v3941_v5  ;;  %v4969_v5 = vld [vmem:[#allocation23_spill] sm:$0xff] }
 0x1da   :  { %1672 = vmatprep.subr.bf16.mxu1 %v3947_v7  ;;  %v4970_v7 = vld [vmem:[#allocation21_spill] sm:$0xff] }
 0x1db   :  { %3150 = vmatmul.mubr.msk.bf16.vlgmr.msra.gmra.mrb[40].mxu0 %vm4273_vm10, %v3143_v63  ;;  %v1521_v19 = vunpack.c.h.bf16 %v4970_v7  ;;  %v4972_v63 = vld [vmem:[#allocation25_spill] sm:$0xff] }
 0x1dc   :  { %1632 = vmatpush1.bf16.msra.mxu0 %v3951_v8  ;;  %1663 = vmatprep.mubr.bf16.mxu0 %v4953_v38  ;;  %v1520_v8 = vunpack.c.l.bf16 %v4970_v7  ;;  %v1381_v7 = vsel %vm1380_vm9, %v4251_v54, 0.0  ;;  %v4361_v54 = vpop.permute.xlu1 %1574 }
 0x1dd   :  { %1633 = vmatprep.subr.bf16.mxu0 %v3957_v10  ;;  %4973 = vst [vmem:[#allocation18_spill] sm:$0xff] %v4361_v54  ;;  %vm1576_vm11 = vcmp.eq.s32.totalorder %v4361_v54, 1 }
 0x1e0   :  { %1634 = vmatpush1.bf16.msra.mxu0 %v3960_v11 }
 0x1e1   :  { %1635 = vmatprep.subr.bf16.mxu0 %v3966_v14  ;;  %v1524_v14 = vld [vmem:[#allocation2 + $0x9c] sm:$0xff] }
 0x1e2   :  { %v1526_v50 = vunpack.c.l.bf16 %v1524_v14 }
 0x1e4   :  { %1636 = vmatpush1.bf16.msra.mxu0 %v3984_v18 }
 0x1e5   :  { %1637 = vmatprep.subr.bf16.mxu0 %v3994_v23 }
 0x1e8   :  { %1638 = vmatpush1.bf16.msra.mxu0 %v4002_v25 }
 0x1e9   :  { %1639 = vmatprep.subr.bf16.mxu0 %v4007_v27 }
 0x1ec   :  { %1640 = vmatpush1.bf16.msra.mxu0 %v4015_v29 }
 0x1ed   :  { %1641 = vmatprep.subr.bf16.mxu0 %v4026_v32 }
 0x1f0   :  { %1642 = vmatpush1.bf16.msra.mxu0 %v4033_v35 }
 0x1f1   :  { %1643 = vmatprep.subr.bf16.mxu0 %v4964_v52 }
 0x1f4   :  { %1644 = vmatpush1.bf16.msra.mxu0 %v4965_v55 }
 0x1f5   :  { %1645 = vmatprep.subr.bf16.mxu0 %v4966_v57 }
 0x1f8   :  { %1646 = vmatpush1.bf16.msra.mxu0 %v4967_v59 }
 0x1f9   :  { %1786 = vmatprep.subr.bf16.mxu0 %v4347_v61 }
 0x28e   :  { %v1428_v1 = vpop.f32.mrb[36].mxu0  ;;  %v1469_v3 = vpop.f32.mrb[24].mxu1 }
 0x28f   :  { %v1429_v6 = vadd.f32 %v1428_v1, %v4969_v5  ;;  %v1430_v10 = vpop.f32.mrb[37].mxu0  ;;  %v1471_v11 = vpop.f32.mrb[25].mxu1  ;;  %v1470_v62 = vadd.f32 %v1469_v3, %v4972_v63 }
 0x290   :  { %v1431_v18 = vadd.f32 %v1430_v10, %v4971_v16  ;;  %v1432_v23 = vpop.f32.mrb[38].mxu0  ;;  %v1472_v24 = vpop.f32.mrb[26].mxu1 }
 0x291   :  { %v1529_v25 = vadd.f32 %v1520_v8, %v1429_v6  ;;  %v1433_v27 = vpop.f32.mrb[39].mxu0  ;;  %v1473_v29 = vpop.f32.mrb[27].mxu1  ;;  %v1522_v8 = vunpack.c.l.bf16 %v1519_v41 }
 0x292   :  { %v1536_v37 = vadd.f32 %v1521_v19, %v1431_v18  ;;  %v1474_v34 = vadd.f32 %v1473_v29, %v4242_v45  ;;  %v1527_v27 = vunpack.c.h.bf16 %v1524_v14 }
 0x293   :  { %v3073_v42 = vmul.f32 -1.442695, %v1529_v25 }
 0x294   :  { %v3074_v56 = vmul.f32 -1.442695, %v1536_v37  ;;  %v1550_v43 = vadd.f32 %v1526_v50, %v1474_v34 }
 0x295   :  { %3408 = vpow2.f32 %v3073_v42 }
 0x296   :  { %3410 = vpow2.f32 %v3074_v56  ;;  %v3075_v58 = vmul.f32 -1.442695, %v1550_v43 }
 0x298   :  { %3412 = vpow2.f32 %v3075_v58 }
 0x29f   :  { %v3409_v60 = vpop.eup %3408 }
 0x2a0   :  { %v3411_v48 = vpop.eup %3410  ;;  %v1533_v21 = vadd.f32 1.0, %v3409_v60 }
 0x2a1   :  { %v1540_v22 = vadd.f32 1.0, %v3411_v48  ;;  %v1528_v48 = vunpack.c.h.bf16 %v1519_v41 }
 0x2a2   :  { %v3413_v53 = vpop.eup %3412  ;;  %3414 = vrcp.f32 %v1533_v21 }
 0x2a3   :  { %3416 = vrcp.f32 %v1540_v22  ;;  %v1554_v49 = vadd.f32 1.0, %v3413_v53 }
 0x2a5   :  { %3418 = vrcp.f32 %v1554_v49 }
 0x2ac   :  { %v3415_v1 = vpop.eup %3414 }
 0x2ad   :  { %v3417_v6 = vpop.eup %3416  ;;  %v1543_v10 = vmul.f32 %v3415_v1, %v1470_v62  ;;  %v1389_v62 = vsel %vm1388_vm8, %v4263_v31, 0.0  ;;  %v4384_v31 = vld [vmem:[#allocation9 + $0x44] ss:$24 sps:$4 sm:$0xff]  }
 0x2ae   :  { %v1510_v11 = vpop.f32.mrb[40].mxu0  ;;  %v1548_v18 = vmul.f32 %v3417_v6, %v1381_v7  ;;  %v1546_v56 = vsub.f32 1.0, %v3417_v6 }
 0x2af   :  { %v1544_v19 = vadd.f32 %v1543_v10, %v1522_v8  ;;  %v1511_v23 = vpop.f32.mrb[41].mxu0  ;;  %v3419_v37 = vpop.eup %3418 }
 0x2b0   :  { %v1512_v24 = vpop.f32.mrb[42].mxu0  ;;  %v4371_v11 = vpop.permute.xlu1 %1582  ;;  %v4390_v23 = vld [vmem:[#allocation9 + $0x40] ss:$24 sps:$4 sm:$0xff]  }
 0x2b1   :  { %3420 = vtanh.f32 %v1544_v19  ;;  %v1513_v25 = vadd.f32 %v1512_v24, %v4247_v0  ;;  %v1514_v29 = vpop.f32.mrb[43].mxu0  ;;  %4974 = vst [vmem:[#allocation19_spill] sm:$0xff] %v4371_v11  ;;  %vm1584_vm12 = vcmp.eq.s32.totalorder %v4371_v11, 1  ;;  %v4380_v19 = vld [vmem:[#allocation9 + $0x10] ss:$24 sps:$4 sm:$0xff]  }
 0x2b2   :  { %v1515_v3 = vadd.f32 %v1514_v29, %v4256_v20  ;;  %v4393_v24 = vld [vmem:[#allocation9 + $0x74] ss:$24 sps:$4 sm:$0xff]   ;;  %v4409_v29 = vld [vmem:[#allocation9 + $0xc4] ss:$24 sps:$4 sm:$0xff]  }
 0x2b3   :  { %v1557_v34 = vadd.f32 %v1527_v27, %v1513_v25  ;;  %v4398_v25 = vld [vmem:[#allocation9 + $0x70] ss:$24 sps:$4 sm:$0xff]   ;;  %v4401_v27 = vld [vmem:[#allocation9 + $0xa4] ss:$24 sps:$4 sm:$0xff]  }
 0x2b4   :  { %v1564_v50 = vmul.f32 %v3419_v37, %v1515_v3  ;;  %v4414_v3 = vld [vmem:[#allocation9 + $0xc0] ss:$24 sps:$4 sm:$0xff]   ;;  %v4417_v37 = vld [vmem:[#allocation9 + $0xf4] ss:$24 sps:$4 sm:$0xff]  }
 0x2b5   :  { %v3076_v42 = vmul.f32 -1.442695, %v1557_v34  ;;  %v4453_v34 = vld [vmem:[#allocation9 + $0x38] ss:$24 sps:$4 sm:$0xff]  }
 0x2b6   :  { %v1565_v53 = vadd.f32 %v1564_v50, %v1528_v48  ;;  %4975 = vst [vmem:[#allocation20_spill] sm:$0xff] %v4453_v34  ;;  %v4456_v50 = vld [vmem:[#allocation9 + $0x6c] ss:$24 sps:$4 sm:$0xff]  }
 0x2b7   :  { %3422 = vpow2.f32 %v3076_v42  ;;  %4976 = vst [vmem:[#allocation21_spill] sm:$0xff] %v4456_v50  ;;  %v4459_v42 = vld [vmem:[#allocation9 + $0x68] ss:$24 sps:$4 sm:$0xff]  }
 0x2b8   :  { %4977 = vst [vmem:[#allocation24_spill] sm:$0xff] %v4459_v42 }
 0x2bb   :  { %v3421_v43 = vpop.eup %3420 }
 0x2bc   :  { %v1547_v58 = vmul.f32 %v3421_v43, %v1546_v56  ;;  %v4462_v56 = vld [vmem:[#allocation9 + $0x9c] ss:$24 sps:$4 sm:$0xff]   ;;  %v4465_v43 = vld [vmem:[#allocation9 + $0x98] ss:$24 sps:$4 sm:$0xff]  }
 0x2bd   :  { %4978 = vst [vmem:[#allocation25_spill] sm:$0xff] %v4462_v56  ;;  %4979 = vst [vmem:[#allocation28_spill] sm:$0xff] %v4465_v43 }
 0x2be   :  { %v1549_v60 = vadd.f32 %v1548_v18, %v1547_v58  ;;  %v4468_v58 = vld [vmem:[#allocation9 + $0xcc] ss:$24 sps:$4 sm:$0xff]  }
 0x2bf   :  { %4980 = vst [vmem:[#allocation29_spill] sm:$0xff] %v4468_v58 }
 0x2c0   :  { %v4366_v14 = vsel %vm1576_vm11, %v1549_v60, %v1381_v7  ;;  %v4471_v60 = vld [vmem:[#allocation9 + $0xc8] ss:$24 sps:$4 sm:$0xff]  }
 0x2c1   :  { %v3423_v21 = vpop.eup %3422  ;;  %4981 = vst [vmem:[#allocation30_spill] sm:$0xff] %v4471_v60 }
 0x2c2   :  { %v1561_v22 = vadd.f32 1.0, %v3423_v21 }
 0x2c4   :  { %3424 = vrcp.f32 %v1561_v22 }
 0x2c5   :  { %3426 = vtanh.f32 %v1565_v53  ;;  %v4982_v53 = vld [vmem:[#allocation22_spill] sm:$0xff] }
 0x2ce   :  { %v3425_v49 = vpop.eup %3424 }
 0x2cf   :  { %v1567_v1 = vsub.f32 1.0, %v3425_v49  ;;  %v1569_v6 = vmul.f32 %v3425_v49, %v1389_v62  ;;  %v3427_v8 = vpop.eup %3426  ;;  %v1716_v49 = vunpack.c.l.bf16 %v4982_v53 }
 0x2d1   :  { %v1568_v10 = vmul.f32 %v3427_v8, %v1567_v1  ;;  %v1720_v1 = vld [vmem:[#allocation2 + $0x84] sm:$0xff] }
 0x2d3   :  { %v1570_v41 = vadd.f32 %v1569_v6, %v1568_v10 }
 0x2d5   :  { %v4376_v7 = vsel %vm1584_vm12, %v1570_v41, %v1389_v62 }
 0x2d6   :  { %v1589_v18 = vpack.c.bf16 %v4376_v7, %v4366_v14 }
 0x2d8   :  { %1623 = vmatmul.mubr.bf16.vlgmr.msra.gmra.mrb[28].mxu1 %v1589_v18  ;;  %1664 = vmatmul.mubr.bf16.vlgmr.msra.gmra.mrb[44].mxu0 %v1589_v18 }
 0x2d9   :  { %1673 = vmatpush1.bf16.msra.mxu1 %v4380_v19  ;;  %1704 = vmatprep.mubr.bf16.mxu1 %v4953_v38 }
 0x2da   :  { %1674 = vmatprep.subr.bf16.mxu1 %v4384_v31  ;;  %1787 = vmatpush1.bf16.msra.mxu0 %v4284_v4 }
 0x2db   :  { %1788 = vmatprep.subr.bf16.mxu0 %v4287_v46  ;;  %1818 = vmatprep.mubr.bf16.mxu0 %v4953_v38 }
 0x2dd   :  { %1675 = vmatpush1.bf16.msra.mxu1 %v4390_v23 }
 0x2de   :  { %1676 = vmatprep.subr.bf16.mxu1 %v4393_v24  ;;  %1789 = vmatpush1.bf16.msra.mxu0 %v4293_v13 }
 0x2df   :  { %1790 = vmatprep.subr.bf16.mxu0 %v4296_v9 }
 0x2e1   :  { %1677 = vmatpush1.bf16.msra.mxu1 %v4398_v25 }
 0x2e2   :  { %1678 = vmatprep.subr.bf16.mxu1 %v4401_v27  ;;  %1791 = vmatpush1.bf16.msra.mxu0 %v4301_v12 }
 0x2e3   :  { %1792 = vmatprep.subr.bf16.mxu0 %v4304_v17 }
 0x2e5   :  { %1679 = vmatpush1.bf16.msra.mxu1 %v4004_v26  ;;  %v4422_v26 = vld [vmem:[#allocation9 + $0xf0] ss:$24 sps:$4 sm:$0xff]  }
 0x2e6   :  { %1680 = vmatprep.subr.bf16.mxu1 %v4009_v28  ;;  %1793 = vmatpush1.bf16.msra.mxu0 %v4309_v15  ;;  %v4425_v28 = vld [vmem:[#allocation9 + $0x124] ss:$24 sps:$4 sm:$0xff]  }
 0x2e7   :  { %1794 = vmatprep.subr.bf16.mxu0 %v4409_v29 }
 0x2e9   :  { %1681 = vmatpush1.bf16.msra.mxu1 %v4018_v30  ;;  %v4430_v30 = vld [vmem:[#allocation9 + $0x120] ss:$24 sps:$4 sm:$0xff]  }
 0x2ea   :  { %1682 = vmatprep.subr.bf16.mxu1 %v4029_v33  ;;  %1795 = vmatpush1.bf16.msra.mxu0 %v4414_v3  ;;  %v4433_v33 = vld [vmem:[#allocation9 + $0x154] ss:$24 sps:$4 sm:$0xff]  }
 0x2eb   :  { %1796 = vmatprep.subr.bf16.mxu0 %v4417_v37 }
 0x2ed   :  { %1683 = vmatpush1.bf16.msra.mxu1 %v4036_v36  ;;  %v4437_v36 = vld [vmem:[#allocation9 + $0xc] ss:$24 sps:$4 sm:$0xff]  }
 0x2ee   :  { %1684 = vmatprep.subr.bf16.mxu1 %v4042_v40  ;;  %1797 = vmatpush1.bf16.msra.mxu0 %v4422_v26  ;;  %v4440_v40 = vld [vmem:[#allocation9 + $0x150] ss:$24 sps:$4 sm:$0xff]  }
 0x2ef   :  { %1798 = vmatprep.subr.bf16.mxu0 %v4425_v28 }
 0x2f1   :  { %1685 = vmatpush1.bf16.msra.mxu1 %v4049_v44  ;;  %v4443_v44 = vld [vmem:[#allocation9 + $0x14] ss:$24 sps:$4 sm:$0xff]  }
 0x2f2   :  { %1686 = vmatprep.subr.bf16.mxu1 %v4055_v47  ;;  %1799 = vmatpush1.bf16.msra.mxu0 %v4430_v30  ;;  %v4446_v47 = vld [vmem:[#allocation9 + $0x8] ss:$24 sps:$4 sm:$0xff]  }
 0x2f3   :  { %1800 = vmatprep.subr.bf16.mxu0 %v4433_v33 }
 0x2f5   :  { %1687 = vmatpush1.bf16.msra.mxu1 %v4062_v51  ;;  %v4450_v51 = vld [vmem:[#allocation9 + $0x3c] ss:$24 sps:$4 sm:$0xff]  }
 0x2f6   :  { %1827 = vmatprep.subr.bf16.mxu1 %v4437_v36  ;;  %1801 = vmatpush1.bf16.msra.mxu0 %v4440_v40 }
 0x2f7   :  { %1868 = vmatprep.subr.bf16.mxu0 %v4443_v44 }
 0x2f8   :  { %1705 = vmatmul.mubr.bf16.vlgmr.msra.gmra.mrb[32].mxu1 %v1589_v18  ;;  %v1722_v18 = vunpack.c.l.bf16 %v1720_v1 }
 0x2f9   :  { %1828 = vmatpush1.bf16.msra.mxu1 %v4446_v47  ;;  %1859 = vmatprep.mubr.bf16.mxu1 %v4953_v38 }
 0x2fa   :  { %1829 = vmatprep.subr.bf16.mxu1 %v4450_v51 }
 0x2fd   :  { %1830 = vmatpush1.bf16.msra.mxu1 %v4453_v34 }
 0x2fe   :  { %1831 = vmatprep.subr.bf16.mxu1 %v4456_v50 }
 0x301   :  { %1832 = vmatpush1.bf16.msra.mxu1 %v4459_v42 }
 0x302   :  { %1833 = vmatprep.subr.bf16.mxu1 %v4462_v56 }
 0x305   :  { %1834 = vmatpush1.bf16.msra.mxu1 %v4465_v43 }
 0x306   :  { %1835 = vmatprep.subr.bf16.mxu1 %v4468_v58 }
 0x309   :  { %1836 = vmatpush1.bf16.msra.mxu1 %v4471_v60 }
 0x30a   :  { %1837 = vmatprep.subr.bf16.mxu1 %v4026_v32 }
 0x30d   :  { %1838 = vmatpush1.bf16.msra.mxu1 %v4033_v35 }
 0x30e   :  { %1839 = vmatprep.subr.bf16.mxu1 %v4964_v52  ;;  %v1717_v52 = vunpack.c.h.bf16 %v4982_v53 }
 0x311   :  { %1840 = vmatpush1.bf16.msra.mxu1 %v4965_v55 }
 0x312   :  { %1841 = vmatprep.subr.bf16.mxu1 %v4966_v57 }
 0x315   :  { %1842 = vmatpush1.bf16.msra.mxu1 %v4967_v59 }
 0x316   :  { %1982 = vmatprep.subr.bf16.mxu1 %v4347_v61 }
 0x3ab   :  { %v1624_v48 = vpop.f32.mrb[28].mxu1  ;;  %v1665_v21 = vpop.f32.mrb[44].mxu0 }
 0x3ac   :  { %v1625_v22 = vadd.f32 %v1624_v48, %v4969_v5  ;;  %v1626_v62 = vpop.f32.mrb[29].mxu1  ;;  %v1667_v32 = vpop.f32.mrb[45].mxu0 }
 0x3ad   :  { %v1627_v35 = vadd.f32 %v1626_v62, %v4971_v16  ;;  %v1628_v55 = vpop.f32.mrb[30].mxu1  ;;  %v1668_v6 = vpop.f32.mrb[46].mxu0 }
 0x3ae   :  { %v1725_v57 = vadd.f32 %v1716_v49, %v1625_v22  ;;  %v1629_v8 = vpop.f32.mrb[31].mxu1  ;;  %v1669_v59 = vpop.f32.mrb[47].mxu0  ;;  %v1715_v49 = vld [vmem:[#allocation2 + $0x38] ss:$84 sps:$4 sm:$0xff]  }
 0x3af   :  { %v1732_v10 = vadd.f32 %v1717_v52, %v1627_v35  ;;  %v1670_v41 = vadd.f32 %v1669_v59, %v4242_v45  ;;  %v1666_v35 = vadd.f32 %v1665_v21, %v4972_v63  ;;  %v1718_v6 = vunpack.c.l.bf16 %v1715_v49 }
 0x3b0   :  { %v3077_v2 = vmul.f32 -1.442695, %v1725_v57 }
 0x3b1   :  { %v1746_v48 = vadd.f32 %v1722_v18, %v1670_v41  ;;  %v3078_v54 = vmul.f32 -1.442695, %v1732_v10  ;;  %v1723_v10 = vunpack.c.h.bf16 %v1720_v1 }
 0x3b2   :  { %3428 = vpow2.f32 %v3077_v2 }
 0x3b3   :  { %v3079_v39 = vmul.f32 -1.442695, %v1746_v48 }
 0x3b5   :  { %3430 = vpow2.f32 %v3079_v39 }
 0x3b6   :  { %3432 = vpow2.f32 %v3078_v54 }
 0x3bc   :  { %v3429_v32 = vpop.eup %3428 }
 0x3bd   :  { %v1729_v62 = vadd.f32 1.0, %v3429_v32 }
 0x3bf   :  { %v3431_v11 = vpop.eup %3430  ;;  %3434 = vrcp.f32 %v1729_v62 }
 0x3c0   :  { %v1750_v53 = vadd.f32 1.0, %v3431_v11  ;;  %v3433_v55 = vpop.eup %3432 }
 0x3c1   :  { %v1736_v22 = vadd.f32 1.0, %v3433_v55 }
 0x3c2   :  { %3436 = vrcp.f32 %v1750_v53 }
 0x3c3   :  { %3438 = vrcp.f32 %v1736_v22 }
 0x3c9   :  { %v3435_v52 = vpop.eup %3434 }
 0x3ca   :  { %v1739_v57 = vmul.f32 %v3435_v52, %v1666_v35 }
 0x3cb   :  { %v1706_v2 = vpop.f32.mrb[32].mxu1 }
 0x3cc   :  { %v1740_v8 = vadd.f32 %v1739_v57, %v1718_v6  ;;  %v1707_v59 = vpop.f32.mrb[33].mxu1  ;;  %v3437_v18 = vpop.eup %3436  ;;  %v1724_v6 = vunpack.c.h.bf16 %v1715_v49 }
 0x3cd   :  { %v1708_v39 = vpop.f32.mrb[34].mxu1  ;;  %v3439_v21 = vpop.eup %3438 }
 0x3ce   :  { %3440 = vtanh.f32 %v1740_v8  ;;  %v1709_v54 = vadd.f32 %v1708_v39, %v4247_v0  ;;  %v1710_v41 = vpop.f32.mrb[35].mxu1  ;;  %v1742_v53 = vsub.f32 1.0, %v3439_v21  ;;  %v1744_v35 = vmul.f32 %v3439_v21, %v4366_v14  ;;  %v4534_v21 = vld [vmem:[#allocation9 + $0x104] ss:$24 sps:$4 sm:$0xff]  }
 0x3cf   :  { %v1711_v11 = vadd.f32 %v1710_v41, %v4256_v20  ;;  %v4491_v41 = vpop.permute.xlu0 %1770 }
 0x3d0   :  { %v1753_v48 = vadd.f32 %v1723_v10, %v1709_v54  ;;  %4983 = vst [vmem:[#allocation22_spill] sm:$0xff] %v4491_v41  ;;  %vm1772_vm13 = vcmp.eq.s32.totalorder %v4491_v41, 1 }
 0x3d1   :  { %v1760_v32 = vmul.f32 %v3437_v18, %v1711_v11  ;;  %v4493_v11 = vpop.permute.xlu1 %1778 }
 0x3d2   :  { %v3080_v62 = vmul.f32 -1.442695, %v1753_v48  ;;  %4984 = vst [vmem:[#allocation31_spill] sm:$0xff] %v4493_v11  ;;  %vm1780_vm14 = vcmp.eq.s32.totalorder %v4493_v11, 1 }
 0x3d3   :  { %v1761_v8 = vadd.f32 %v1760_v32, %v1724_v6  ;;  %v4571_v6 = vld [vmem:[#allocation9 + $0xfc] ss:$24 sps:$4 sm:$0xff]  }
 0x3d4   :  { %3442 = vpow2.f32 %v3080_v62  ;;  %v4531_v62 = vld [vmem:[#allocation9 + $0xd0] ss:$24 sps:$4 sm:$0xff]   ;;  %4985 = vst [vmem:[#allocation32_spill] sm:$0xff] %v4571_v6 }
 0x3d8   :  { %v3441_v55 = vpop.eup %3440 }
 0x3d9   :  { %v1743_v22 = vmul.f32 %v3441_v55, %v1742_v53  ;;  %v4539_v53 = vld [vmem:[#allocation9 + $0x100] ss:$24 sps:$4 sm:$0xff]   ;;  %v4542_v55 = vld [vmem:[#allocation9 + $0x134] ss:$24 sps:$4 sm:$0xff]  }
 0x3db   :  { %v1745_v52 = vadd.f32 %v1744_v35, %v1743_v22  ;;  %v4547_v22 = vld [vmem:[#allocation9 + $0x130] ss:$24 sps:$4 sm:$0xff]   ;;  %v4550_v35 = vld [vmem:[#allocation9 + $0x164] ss:$24 sps:$4 sm:$0xff]  }
 0x3dd   :  { %v4500_v49 = vsel %vm1772_vm13, %v1745_v52, %v4366_v14  ;;  %v4523_v14 = vld [vmem:[#allocation9 + $0xa0] ss:$24 sps:$4 sm:$0xff]  }
 0x3de   :  { %v3443_v57 = vpop.eup %3442  ;;  %v4555_v52 = vld [vmem:[#allocation9 + $0x160] ss:$24 sps:$4 sm:$0xff]  }
 0x3df   :  { %v1757_v2 = vadd.f32 1.0, %v3443_v57  ;;  %v4574_v57 = vld [vmem:[#allocation9 + $0xf8] ss:$24 sps:$4 sm:$0xff]  }
 0x3e0   :  { %4986 = vst [vmem:[#allocation33_spill] sm:$0xff] %v4574_v57 }
 0x3e1   :  { %3444 = vrcp.f32 %v1757_v2  ;;  %v4577_v2 = vld [vmem:[#allocation9 + $0x12c] ss:$24 sps:$4 sm:$0xff]  }
 0x3e2   :  { %3446 = vtanh.f32 %v1761_v8  ;;  %4987 = vst [vmem:[#allocation34_spill] sm:$0xff] %v4577_v2  ;;  %v4580_v8 = vld [vmem:[#allocation9 + $0x128] ss:$24 sps:$4 sm:$0xff]  }
 0x3e3   :  { %4988 = vst [vmem:[#allocation35_spill] sm:$0xff] %v4580_v8 }
 0x3eb   :  { %v3445_v1 = vpop.eup %3444 }
 0x3ec   :  { %v1763_v59 = vsub.f32 1.0, %v3445_v1  ;;  %v3447_v39 = vpop.eup %3446  ;;  %v1765_v10 = vmul.f32 %v3445_v1, %v4376_v7  ;;  %v4583_v1 = vld [vmem:[#allocation9 + $0x15c] ss:$24 sps:$4 sm:$0xff]  }
 0x3ed   :  { %4989 = vst [vmem:[#allocation36_spill] sm:$0xff] %v4583_v1 }
 0x3ee   :  { %v1764_v54 = vmul.f32 %v3447_v39, %v1763_v59  ;;  %v4586_v59 = vld [vmem:[#allocation9 + $0x158] ss:$24 sps:$4 sm:$0xff]   ;;  %v1910_v39 = vld [vmem:[#allocation2 + $0x48] sm:$0xff] }
 0x3ef   :  { %4990 = vst [vmem:[#allocation37_spill] sm:$0xff] %v4586_v59 }
 0x3f0   :  { %v1766_v18 = vadd.f32 %v1765_v10, %v1764_v54 }
 0x3f2   :  { %v4505_v48 = vsel %vm1780_vm14, %v1766_v18, %v4376_v7  ;;  %v4526_v7 = vld [vmem:[#allocation9 + $0xd4] ss:$24 sps:$4 sm:$0xff]  }
 0x3f3   :  { %v1785_v32 = vpack.c.bf16 %v4505_v48, %v4500_v49 }
 0x3f5   :  { %1819 = vmatmul.mubr.bf16.vlgmr.msra.gmra.mrb[48].mxu0 %v1785_v32  ;;  %1860 = vmatmul.mubr.bf16.vlgmr.msra.gmra.mrb[36].mxu1 %v1785_v32 }
 0x3f6   :  { %1869 = vmatpush1.bf16.msra.mxu0 %v4380_v19  ;;  %1900 = vmatprep.mubr.bf16.mxu0 %v4953_v38 }
 0x3f7   :  { %1870 = vmatprep.subr.bf16.mxu0 %v4384_v31  ;;  %1983 = vmatpush1.bf16.msra.mxu1 %v4284_v4 }
 0x3f8   :  { %1984 = vmatprep.subr.bf16.mxu1 %v4287_v46  ;;  %2014 = vmatprep.mubr.bf16.mxu1 %v4953_v38 }
 0x3fa   :  { %1871 = vmatpush1.bf16.msra.mxu0 %v4390_v23 }
 0x3fb   :  { %1872 = vmatprep.subr.bf16.mxu0 %v4393_v24  ;;  %1985 = vmatpush1.bf16.msra.mxu1 %v4293_v13 }
 0x3fc   :  { %1986 = vmatprep.subr.bf16.mxu1 %v4296_v9 }
 0x3fe   :  { %1873 = vmatpush1.bf16.msra.mxu0 %v4398_v25 }
 0x3ff   :  { %1874 = vmatprep.subr.bf16.mxu0 %v4401_v27  ;;  %1987 = vmatpush1.bf16.msra.mxu1 %v4301_v12 }
 0x400   :  { %1988 = vmatprep.subr.bf16.mxu1 %v4304_v17 }
 0x402   :  { %1875 = vmatpush1.bf16.msra.mxu0 %v4523_v14 }
 0x403   :  { %1876 = vmatprep.subr.bf16.mxu0 %v4526_v7  ;;  %1989 = vmatpush1.bf16.msra.mxu1 %v4309_v15 }
 0x404   :  { %1990 = vmatprep.subr.bf16.mxu1 %v4409_v29 }
 0x406   :  { %1877 = vmatpush1.bf16.msra.mxu0 %v4531_v62 }
 0x407   :  { %1878 = vmatprep.subr.bf16.mxu0 %v4534_v21  ;;  %1991 = vmatpush1.bf16.msra.mxu1 %v4414_v3 }
 0x408   :  { %1992 = vmatprep.subr.bf16.mxu1 %v4417_v37 }
 0x40a   :  { %1879 = vmatpush1.bf16.msra.mxu0 %v4539_v53 }
 0x40b   :  { %1880 = vmatprep.subr.bf16.mxu0 %v4542_v55  ;;  %1993 = vmatpush1.bf16.msra.mxu1 %v4422_v26 }
 0x40c   :  { %1994 = vmatprep.subr.bf16.mxu1 %v4425_v28 }
 0x40e   :  { %1881 = vmatpush1.bf16.msra.mxu0 %v4547_v22 }
 0x40f   :  { %1882 = vmatprep.subr.bf16.mxu0 %v4550_v35  ;;  %1995 = vmatpush1.bf16.msra.mxu1 %v4430_v30 }
 0x410   :  { %1996 = vmatprep.subr.bf16.mxu1 %v4433_v33 }
 0x412   :  { %1883 = vmatpush1.bf16.msra.mxu0 %v4555_v52 }
 0x413   :  { %2023 = vmatprep.subr.bf16.mxu0 %v4437_v36  ;;  %1997 = vmatpush1.bf16.msra.mxu1 %v4440_v40 }
 0x414   :  { %2064 = vmatprep.subr.bf16.mxu1 %v4443_v44 }
 0x415   :  { %1901 = vmatmul.mubr.bf16.vlgmr.msra.gmra.mrb[52].mxu0 %v1785_v32  ;;  %v1912_v32 = vunpack.c.l.bf16 %v1910_v39 }
 0x416   :  { %2024 = vmatpush1.bf16.msra.mxu0 %v4446_v47  ;;  %2055 = vmatprep.mubr.bf16.mxu0 %v4953_v38 }
 0x417   :  { %2025 = vmatprep.subr.bf16.mxu0 %v4450_v51 }
 0x41a   :  { %2026 = vmatpush1.bf16.msra.mxu0 %v4453_v34 }
 0x41b   :  { %2027 = vmatprep.subr.bf16.mxu0 %v4456_v50 }
 0x41e   :  { %2028 = vmatpush1.bf16.msra.mxu0 %v4459_v42 }
 0x41f   :  { %2029 = vmatprep.subr.bf16.mxu0 %v4462_v56 }
 0x422   :  { %2030 = vmatpush1.bf16.msra.mxu0 %v4465_v43  ;;  %v1913_v43 = vunpack.c.h.bf16 %v1910_v39  ;;  %v1911_v39 = vld [vmem:[#allocation2 + $0x50] ss:$36 sps:$4 sm:$0xff]  }
 0x423   :  { %2031 = vmatprep.subr.bf16.mxu0 %v4468_v58 }
 0x426   :  { %2032 = vmatpush1.bf16.msra.mxu0 %v4471_v60 }
 0x427   :  { %2033 = vmatprep.subr.bf16.mxu0 %v4571_v6 }
 0x42a   :  { %2034 = vmatpush1.bf16.msra.mxu0 %v4574_v57 }
 0x42b   :  { %2035 = vmatprep.subr.bf16.mxu0 %v4577_v2  ;;  %v1916_v2 = vld [vmem:[#allocation2 + $0x6c] sm:$0xff] }
 0x42e   :  { %2036 = vmatpush1.bf16.msra.mxu0 %v4580_v8 }
 0x42f   :  { %2037 = vmatprep.subr.bf16.mxu0 %v4583_v1 }
 0x432   :  { %2038 = vmatpush1.bf16.msra.mxu0 %v4586_v59 }
 0x433   :  { %2164 = vmatprep.subr.bf16.mxu0 %v4347_v61  ;;  %v1918_v61 = vunpack.c.l.bf16 %v1916_v2 }
 0x4c8   :  { %v1820_v54 = vpop.f32.mrb[48].mxu0  ;;  %v1861_v10 = vpop.f32.mrb[36].mxu1 }
 0x4c9   :  { %v1821_v18 = vadd.f32 %v1820_v54, %v4969_v5  ;;  %v1822_v41 = vpop.f32.mrb[49].mxu0  ;;  %v1863_v11 = vpop.f32.mrb[37].mxu1 }
 0x4ca   :  { %v1823_v8 = vadd.f32 %v1822_v41, %v4971_v16  ;;  %v1824_v57 = vpop.f32.mrb[50].mxu0  ;;  %v1864_v6 = vpop.f32.mrb[38].mxu1 }
 0x4cb   :  { %v1921_v1 = vadd.f32 %v1912_v32, %v1821_v18  ;;  %v1825_v60 = vpop.f32.mrb[51].mxu0  ;;  %v1865_v58 = vpop.f32.mrb[39].mxu1 }
 0x4cc   :  { %v1866_v59 = vadd.f32 %v1865_v58, %v4242_v45  ;;  %v1928_v42 = vadd.f32 %v1913_v43, %v1823_v8  ;;  %v1862_v58 = vadd.f32 %v1861_v10, %v4972_v63  ;;  %v1919_v8 = vunpack.c.h.bf16 %v1916_v2 }
 0x4cd   :  { %v3081_v56 = vmul.f32 -1.442695, %v1921_v1  ;;  %v1914_v1 = vunpack.c.l.bf16 %v1911_v39 }
 0x4ce   :  { %v1942_v50 = vadd.f32 %v1918_v61, %v1866_v59  ;;  %v3082_v5 = vmul.f32 -1.442695, %v1928_v42 }
 0x4cf   :  { %3448 = vpow2.f32 %v3081_v56 }
 0x4d0   :  { %v3083_v54 = vmul.f32 -1.442695, %v1942_v50 }
 0x4d2   :  { %3450 = vpow2.f32 %v3083_v54 }
 0x4d3   :  { %3452 = vpow2.f32 %v3082_v5 }
 0x4d9   :  { %v3449_v11 = vpop.eup %3448 }
 0x4da   :  { %v1925_v34 = vadd.f32 1.0, %v3449_v11 }
 0x4dc   :  { %v3451_v41 = vpop.eup %3450  ;;  %3454 = vrcp.f32 %v1925_v34 }
 0x4dd   :  { %v1946_v6 = vadd.f32 1.0, %v3451_v41  ;;  %v3453_v57 = vpop.eup %3452 }
 0x4de   :  { %v1932_v60 = vadd.f32 1.0, %v3453_v57 }
 0x4df   :  { %3456 = vrcp.f32 %v1946_v6 }
 0x4e0   :  { %3458 = vrcp.f32 %v1932_v60 }
 0x4e6   :  { %v3455_v18 = vpop.eup %3454 }
 0x4e7   :  { %v1935_v43 = vmul.f32 %v3455_v18, %v1862_v58 }
 0x4e8   :  { %v1902_v61 = vpop.f32.mrb[52].mxu0 }
 0x4e9   :  { %v1936_v50 = vadd.f32 %v1935_v43, %v1914_v1  ;;  %v1903_v42 = vpop.f32.mrb[53].mxu0  ;;  %v3457_v32 = vpop.eup %3456  ;;  %v1920_v1 = vunpack.c.h.bf16 %v1911_v39 }
 0x4ea   :  { %v1904_v56 = vpop.f32.mrb[54].mxu0  ;;  %v3459_v10 = vpop.eup %3458 }
 0x4eb   :  { %3460 = vtanh.f32 %v1936_v50  ;;  %v1905_v5 = vadd.f32 %v1904_v56, %v4247_v0  ;;  %v1906_v34 = vpop.f32.mrb[55].mxu0  ;;  %v1938_v6 = vsub.f32 1.0, %v3459_v10  ;;  %v1940_v58 = vmul.f32 %v3459_v10, %v4500_v49  ;;  %v5001_v10 = vld [vmem:[#allocation35_spill] sm:$0xff] }
 0x4ec   :  { %v1907_v59 = vadd.f32 %v1906_v34, %v4256_v20 }
 0x4ed   :  { %v1949_v54 = vadd.f32 %v1919_v8, %v1905_v5  ;;  %v4597_v5 = vpop.permute.xlu0 %1966  ;;  %v4599_v8 = vpop.permute.xlu1 %1974 }
 0x4ee   :  { %v1956_v11 = vmul.f32 %v3457_v32, %v1907_v59  ;;  %vm1968_vm15 = vcmp.eq.s32.totalorder %v4597_v5, 1  ;;  %vm1976_vm0 = vcmp.eq.s32.totalorder %v4599_v8, 1  ;;  %v4693_v8 = vld [vmem:[#allocation9 + $0x34] ss:$24 sps:$4 sm:$0xff]   ;;  %v4699_v5 = vld [vmem:[#allocation9 + $0x30] ss:$24 sps:$4 sm:$0xff]  }
 0x4ef   :  { %v3084_v41 = vmul.f32 -1.442695, %v1949_v54 }
 0x4f0   :  { %v1957_v50 = vadd.f32 %v1956_v11, %v1920_v1 }
 0x4f1   :  { %3462 = vpow2.f32 %v3084_v41  ;;  %v5000_v41 = vld [vmem:[#allocation34_spill] sm:$0xff] }
 0x4f5   :  { %v3461_v57 = vpop.eup %3460 }
 0x4f6   :  { %v1939_v60 = vmul.f32 %v3461_v57, %v1938_v6  ;;  %v5002_v6 = vld [vmem:[#allocation36_spill] sm:$0xff]  ;;  %v5003_v57 = vld [vmem:[#allocation37_spill] sm:$0xff] }
 0x4f8   :  { %v1941_v18 = vadd.f32 %v1940_v58, %v1939_v60  ;;  %v5004_v60 = vld [vmem:[#allocation17_spill] sm:$0xff]  ;;  %v2105_v58 = vld [vmem:[#allocation2 + $0x60] sm:$0xff] }
 0x4fa   :  { %v4607_v39 = vsel %vm1968_vm15, %v1941_v18, %v4500_v49  ;;  %v4998_v49 = vld [vmem:[#allocation32_spill] sm:$0xff] }
 0x4fb   :  { %v3463_v43 = vpop.eup %3462 }
 0x4fc   :  { %v1953_v61 = vadd.f32 1.0, %v3463_v43  ;;  %v5005_v43 = vld [vmem:[#allocation23_spill] sm:$0xff] }
 0x4fe   :  { %3464 = vrcp.f32 %v1953_v61 }
 0x4ff   :  { %3466 = vtanh.f32 %v1957_v50  ;;  %v2107_v50 = vunpack.c.l.bf16 %v2105_v58 }
 0x508   :  { %v3465_v2 = vpop.eup %3464 }
 0x509   :  { %v1959_v42 = vsub.f32 1.0, %v3465_v2  ;;  %v3467_v56 = vpop.eup %3466  ;;  %v1961_v59 = vmul.f32 %v3465_v2, %v4505_v48 }
 0x50b   :  { %v1960_v34 = vmul.f32 %v3467_v56, %v1959_v42  ;;  %v2110_v56 = vld [vmem:[#allocation2 + $0x54] sm:$0xff] }
 0x50d   :  { %v1962_v32 = vadd.f32 %v1961_v59, %v1960_v34 }
 0x50f   :  { %v4612_v54 = vsel %vm1976_vm0, %v1962_v32, %v4505_v48  ;;  %v4999_v48 = vld [vmem:[#allocation33_spill] sm:$0xff] }
 0x510   :  { %v1981_v11 = vpack.c.bf16 %v4612_v54, %v4607_v39 }
 0x512   :  { %2015 = vmatmul.mubr.bf16.vlgmr.msra.gmra.mrb[40].mxu1 %v1981_v11  ;;  %2056 = vmatmul.mubr.bf16.vlgmr.msra.gmra.mrb[56].mxu0 %v1981_v11 }
 0x513   :  { %2065 = vmatpush1.bf16.msra.mxu1 %v4380_v19  ;;  %2096 = vmatprep.mubr.bf16.mxu1 %v4953_v38 }
 0x514   :  { %2066 = vmatprep.subr.bf16.mxu1 %v4384_v31  ;;  %2165 = vmatpush1.bf16.msra.mxu0 %v4284_v4  ;;  %v4991_v4 = vld [vmem:[#allocation20_spill] sm:$0xff] }
 0x515   :  { %2166 = vmatprep.subr.bf16.mxu0 %v4287_v46  ;;  %2196 = vmatprep.mubr.bf16.mxu0 %v4953_v38  ;;  %v4992_v46 = vld [vmem:[#allocation21_spill] sm:$0xff] }
 0x517   :  { %2067 = vmatpush1.bf16.msra.mxu1 %v4390_v23 }
 0x518   :  { %2068 = vmatprep.subr.bf16.mxu1 %v4393_v24  ;;  %2167 = vmatpush1.bf16.msra.mxu0 %v4293_v13  ;;  %v4993_v13 = vld [vmem:[#allocation24_spill] sm:$0xff] }
 0x519   :  { %2168 = vmatprep.subr.bf16.mxu0 %v4296_v9  ;;  %v4994_v9 = vld [vmem:[#allocation25_spill] sm:$0xff] }
 0x51b   :  { %2069 = vmatpush1.bf16.msra.mxu1 %v4398_v25 }
 0x51c   :  { %2070 = vmatprep.subr.bf16.mxu1 %v4401_v27  ;;  %2169 = vmatpush1.bf16.msra.mxu0 %v4301_v12  ;;  %v4995_v12 = vld [vmem:[#allocation28_spill] sm:$0xff] }
 0x51d   :  { %2170 = vmatprep.subr.bf16.mxu0 %v4304_v17  ;;  %v4996_v17 = vld [vmem:[#allocation29_spill] sm:$0xff] }
 0x51f   :  { %2071 = vmatpush1.bf16.msra.mxu1 %v4523_v14 }
 0x520   :  { %2072 = vmatprep.subr.bf16.mxu1 %v4526_v7  ;;  %2171 = vmatpush1.bf16.msra.mxu0 %v4309_v15  ;;  %v4997_v15 = vld [vmem:[#allocation30_spill] sm:$0xff] }
 0x521   :  { %2172 = vmatprep.subr.bf16.mxu0 %v4409_v29 }
 0x523   :  { %2073 = vmatpush1.bf16.msra.mxu1 %v4531_v62 }
 0x524   :  { %2074 = vmatprep.subr.bf16.mxu1 %v4534_v21  ;;  %2173 = vmatpush1.bf16.msra.mxu0 %v4414_v3 }
 0x525   :  { %2174 = vmatprep.subr.bf16.mxu0 %v4417_v37 }
 0x527   :  { %2075 = vmatpush1.bf16.msra.mxu1 %v4539_v53 }
 0x528   :  { %2076 = vmatprep.subr.bf16.mxu1 %v4542_v55  ;;  %2175 = vmatpush1.bf16.msra.mxu0 %v4422_v26 }
 0x529   :  { %2176 = vmatprep.subr.bf16.mxu0 %v4425_v28 }
 0x52b   :  { %2077 = vmatpush1.bf16.msra.mxu1 %v4547_v22 }
 0x52c   :  { %2078 = vmatprep.subr.bf16.mxu1 %v4550_v35  ;;  %2177 = vmatpush1.bf16.msra.mxu0 %v4430_v30 }
 0x52d   :  { %2178 = vmatprep.subr.bf16.mxu0 %v4433_v33 }
 0x52f   :  { %2079 = vmatpush1.bf16.msra.mxu1 %v4555_v52 }
 0x530   :  { %2205 = vmatprep.subr.bf16.mxu1 %v4437_v36  ;;  %2179 = vmatpush1.bf16.msra.mxu0 %v4440_v40 }
 0x531   :  { %2246 = vmatprep.subr.bf16.mxu0 %v4443_v44 }
 0x532   :  { %2097 = vmatmul.mubr.bf16.vlgmr.msra.gmra.mrb[44].mxu1 %v1981_v11 }
 0x533   :  { %2206 = vmatpush1.bf16.msra.mxu1 %v4446_v47  ;;  %2237 = vmatprep.mubr.bf16.mxu1 %v4953_v38 }
 0x534   :  { %2207 = vmatprep.subr.bf16.mxu1 %v4450_v51 }
 0x537   :  { %2208 = vmatpush1.bf16.msra.mxu1 %v4991_v4 }
 0x538   :  { %2209 = vmatprep.subr.bf16.mxu1 %v4992_v46 }
 0x53b   :  { %2210 = vmatpush1.bf16.msra.mxu1 %v4993_v13 }
 0x53c   :  { %2211 = vmatprep.subr.bf16.mxu1 %v4994_v9 }
 0x53f   :  { %2212 = vmatpush1.bf16.msra.mxu1 %v4995_v12 }
 0x540   :  { %2213 = vmatprep.subr.bf16.mxu1 %v4996_v17 }
 0x543   :  { %2214 = vmatpush1.bf16.msra.mxu1 %v4997_v15 }
 0x544   :  { %2215 = vmatprep.subr.bf16.mxu1 %v4998_v49 }
 0x547   :  { %2216 = vmatpush1.bf16.msra.mxu1 %v4999_v48 }
 0x548   :  { %2217 = vmatprep.subr.bf16.mxu1 %v5000_v41  ;;  %v2108_v41 = vunpack.c.h.bf16 %v2105_v58  ;;  %v2106_v58 = vld [vmem:[#allocation2 + $0x5c] ss:$12 sps:$4 sm:$0xff]  }
 0x54b   :  { %2218 = vmatpush1.bf16.msra.mxu1 %v5001_v10 }
 0x54c   :  { %2219 = vmatprep.subr.bf16.mxu1 %v5002_v6 }
 0x54f   :  { %2220 = vmatpush1.bf16.msra.mxu1 %v5003_v57 }
 0x550   :  { %2346 = vmatprep.subr.bf16.mxu1 %v5004_v60  ;;  %v2112_v60 = vunpack.c.l.bf16 %v2110_v56 }
 0x5e5   :  { %v2016_v18 = vpop.f32.mrb[40].mxu1  ;;  %v2057_v1 = vpop.f32.mrb[56].mxu0 }
 0x5e6   :  { %v2017_v61 = vadd.f32 %v2016_v18, %v5005_v43  ;;  %v2018_v2 = vpop.f32.mrb[41].mxu1  ;;  %v2059_v42 = vpop.f32.mrb[57].mxu0 }
 0x5e7   :  { %v2019_v34 = vadd.f32 %v2018_v2, %v4971_v16  ;;  %v2020_v59 = vpop.f32.mrb[42].mxu1  ;;  %v2060_v32 = vpop.f32.mrb[58].mxu0 }
 0x5e8   :  { %v2115_v11 = vadd.f32 %v2107_v50, %v2017_v61  ;;  %v2021_v10 = vpop.f32.mrb[43].mxu1  ;;  %v2061_v6 = vpop.f32.mrb[59].mxu0  ;;  %v2109_v32 = vunpack.c.h.bf16 %v2106_v58 }
 0x5e9   :  { %v2062_v57 = vadd.f32 %v2061_v6, %v4242_v45  ;;  %v2122_v49 = vadd.f32 %v2108_v41, %v2019_v34  ;;  %v2058_v6 = vadd.f32 %v2057_v1, %v4972_v63  ;;  %v2113_v34 = vunpack.c.h.bf16 %v2110_v56 }
 0x5ea   :  { %v3085_v48 = vmul.f32 -1.442695, %v2115_v11 }
 0x5eb   :  { %v2136_v15 = vadd.f32 %v2112_v60, %v2062_v57  ;;  %v3086_v43 = vmul.f32 -1.442695, %v2122_v49 }
 0x5ec   :  { %3468 = vpow2.f32 %v3085_v48 }
 0x5ed   :  { %v3087_v18 = vmul.f32 -1.442695, %v2136_v15 }
 0x5ef   :  { %3470 = vpow2.f32 %v3087_v18 }
 0x5f0   :  { %3472 = vpow2.f32 %v3086_v43 }
 0x5f6   :  { %v3469_v42 = vpop.eup %3468 }
 0x5f7   :  { %v2119_v17 = vadd.f32 1.0, %v3469_v42 }
 0x5f9   :  { %v3471_v2 = vpop.eup %3470  ;;  %3474 = vrcp.f32 %v2119_v17 }
 0x5fa   :  { %v2140_v59 = vadd.f32 1.0, %v3471_v2  ;;  %v3473_v61 = vpop.eup %3472 }
 0x5fb   :  { %v2126_v10 = vadd.f32 1.0, %v3473_v61 }
 0x5fc   :  { %3476 = vrcp.f32 %v2140_v59 }
 0x5fd   :  { %3478 = vrcp.f32 %v2126_v10 }
 0x603   :  { %v3475_v50 = vpop.eup %3474 }
 0x604   :  { %v2129_v41 = vmul.f32 %v3475_v50, %v2058_v6 }
 0x605   :  { %v2098_v48 = vpop.f32.mrb[44].mxu1 }
 0x606   :  { %v2130_v15 = vadd.f32 %v2129_v41, %v2109_v32  ;;  %v2099_v49 = vpop.f32.mrb[45].mxu1  ;;  %v3477_v60 = vpop.eup %3476  ;;  %v2114_v32 = vunpack.c.l.bf16 %v2106_v58 }
 0x607   :  { %v2100_v57 = vpop.f32.mrb[46].mxu1  ;;  %v3479_v1 = vpop.eup %3478 }
 0x608   :  { %3480 = vtanh.f32 %v2130_v15  ;;  %v2101_v43 = vadd.f32 %v2100_v57, %v4247_v0  ;;  %v2102_v17 = vpop.f32.mrb[47].mxu1  ;;  %v2132_v59 = vsub.f32 1.0, %v3479_v1  ;;  %v2134_v6 = vmul.f32 %v3479_v1, %v4607_v39 }
 0x609   :  { %v2103_v11 = vadd.f32 %v2102_v17, %v4256_v20 }
 0x60a   :  { %v2143_v18 = vadd.f32 %v2113_v34, %v2101_v43 }
 0x60b   :  { %v2150_v42 = vmul.f32 %v3477_v60, %v2103_v11 }
 0x60c   :  { %v3088_v2 = vmul.f32 -1.442695, %v2143_v18  ;;  %v4690_v18 = vld [vmem:[#allocation9] ss:$24 sps:$4 sm:$0xff]  }
 0x60d   :  { %v2151_v15 = vadd.f32 %v2150_v42, %v2114_v32 }
 0x60e   :  { %3482 = vpow2.f32 %v3088_v2 }
 0x612   :  { %v3481_v61 = vpop.eup %3480 }
 0x613   :  { %v2133_v10 = vmul.f32 %v3481_v61, %v2132_v59 }
 0x615   :  { %v2135_v50 = vadd.f32 %v2134_v6, %v2133_v10 }
 0x617   :  { %v4678_v11 = vsel %vm1976_vm0, %v2135_v50, %v4607_v39  ;;  %v4710_v39 = vld [vmem:[#allocation9 + $0x94] ss:$24 sps:$4 sm:$0xff]  }
 0x618   :  { %v3483_v41 = vpop.eup %3482 }
 0x619   :  { %v2147_v48 = vadd.f32 1.0, %v3483_v41 }
 0x61b   :  { %3484 = vrcp.f32 %v2147_v48 }
 0x61c   :  { %3486 = vtanh.f32 %v2151_v15 }
 0x625   :  { %v3485_v56 = vpop.eup %3484 }
 0x626   :  { %v2153_v49 = vsub.f32 1.0, %v3485_v56  ;;  %v3487_v57 = vpop.eup %3486  ;;  %v2155_v34 = vmul.f32 %v3485_v56, %v4612_v54 }
 0x628   :  { %v2154_v43 = vmul.f32 %v3487_v57, %v2153_v49 }
 0x62a   :  { %v2156_v17 = vadd.f32 %v2155_v34, %v2154_v43 }
 0x62c   :  { %v4683_v58 = vsel %vm1968_vm15, %v2156_v17, %v4612_v54  ;;  %v2288_v17 = vld [vmem:[#allocation2 + $0x44] ss:$60 sps:$4 sm:$0xff]  }
 0x62d   :  { %v2163_v60 = vpack.c.bf16 %v4683_v58, %v4678_v11 }
 0x62f   :  { %2197 = vmatmul.mubr.bf16.vlgmr.msra.gmra.mrb[60].mxu0 %v2163_v60  ;;  %2238 = vmatmul.mubr.bf16.vlgmr.msra.gmra.mrb[48].mxu1 %v2163_v60 }
 0x630   :  { %2247 = vmatpush1.bf16.msra.mxu0 %v4380_v19  ;;  %2278 = vmatprep.mubr.bf16.mxu0 %v4953_v38  ;;  %v4702_v19 = vld [vmem:[#allocation9 + $0x64] ss:$24 sps:$4 sm:$0xff]  }
 0x631   :  { %2248 = vmatprep.subr.bf16.mxu0 %v4384_v31  ;;  %2347 = vmatpush1.bf16.msra.mxu1 %v4690_v18  ;;  %v4707_v31 = vld [vmem:[#allocation9 + $0x60] ss:$24 sps:$4 sm:$0xff]  }
 0x632   :  { %2348 = vmatprep.subr.bf16.mxu1 %v4693_v8  ;;  %2378 = vmatprep.mubr.bf16.mxu1 %v4953_v38 }
 0x634   :  { %2249 = vmatpush1.bf16.msra.mxu0 %v4390_v23  ;;  %v4715_v23 = vld [vmem:[#allocation9 + $0x90] ss:$24 sps:$4 sm:$0xff]  }
 0x635   :  { %2250 = vmatprep.subr.bf16.mxu0 %v4393_v24  ;;  %2349 = vmatpush1.bf16.msra.mxu1 %v4699_v5  ;;  %v5006_v24 = vld [vmem:[#allocation29_spill] sm:$0xff] }
 0x636   :  { %2350 = vmatprep.subr.bf16.mxu1 %v4702_v19 }
 0x638   :  { %2251 = vmatpush1.bf16.msra.mxu0 %v4398_v25  ;;  %v5007_v25 = vld [vmem:[#allocation30_spill] sm:$0xff] }
 0x639   :  { %2252 = vmatprep.subr.bf16.mxu0 %v4401_v27  ;;  %2351 = vmatpush1.bf16.msra.mxu1 %v4707_v31  ;;  %v5008_v27 = vld [vmem:[#allocation32_spill] sm:$0xff] }
 0x63a   :  { %2352 = vmatprep.subr.bf16.mxu1 %v4710_v39 }
 0x63c   :  { %2253 = vmatpush1.bf16.msra.mxu0 %v4523_v14 }
 0x63d   :  { %2254 = vmatprep.subr.bf16.mxu0 %v4526_v7  ;;  %2353 = vmatpush1.bf16.msra.mxu1 %v4715_v23 }
 0x63e   :  { %2354 = vmatprep.subr.bf16.mxu1 %v4409_v29  ;;  %v5009_v29 = vld [vmem:[#allocation33_spill] sm:$0xff] }
 0x640   :  { %2255 = vmatpush1.bf16.msra.mxu0 %v4531_v62 }
 0x641   :  { %2256 = vmatprep.subr.bf16.mxu0 %v4534_v21  ;;  %2355 = vmatpush1.bf16.msra.mxu1 %v4414_v3  ;;  %v5010_v3 = vld [vmem:[#allocation34_spill] sm:$0xff] }
 0x642   :  { %2356 = vmatprep.subr.bf16.mxu1 %v4417_v37  ;;  %v5011_v37 = vld [vmem:[#allocation35_spill] sm:$0xff] }
 0x644   :  { %2257 = vmatpush1.bf16.msra.mxu0 %v4539_v53 }
 0x645   :  { %2258 = vmatprep.subr.bf16.mxu0 %v4542_v55  ;;  %2357 = vmatpush1.bf16.msra.mxu1 %v4422_v26  ;;  %v5012_v26 = vld [vmem:[#allocation36_spill] sm:$0xff] }
 0x646   :  { %2358 = vmatprep.subr.bf16.mxu1 %v4425_v28  ;;  %v5013_v28 = vld [vmem:[#allocation37_spill] sm:$0xff] }
 0x648   :  { %2259 = vmatpush1.bf16.msra.mxu0 %v4547_v22 }
 0x649   :  { %2260 = vmatprep.subr.bf16.mxu0 %v4550_v35  ;;  %2359 = vmatpush1.bf16.msra.mxu1 %v4430_v30  ;;  %v3603_v30 = vld [vmem:[#allocation9 + $0x4] ss:$24 sps:$4 sm:$0xff]  }
 0x64a   :  { %2360 = vmatprep.subr.bf16.mxu1 %v4433_v33  ;;  %v2287_v33 = vld [vmem:[#allocation2 + $0x78] sm:$0xff] }
 0x64b   :  { %v2290_v59 = vunpack.c.h.bf16 %v2287_v33 }
 0x64c   :  { %2261 = vmatpush1.bf16.msra.mxu0 %v4555_v52 }
 0x64d   :  { %2387 = vmatprep.subr.bf16.mxu0 %v4437_v36  ;;  %2361 = vmatpush1.bf16.msra.mxu1 %v4440_v40 }
 0x64e   :  { %2428 = vmatprep.subr.bf16.mxu1 %v4443_v44  ;;  %v5014_v44 = vld [vmem:[#allocation23_spill] sm:$0xff] }
 0x64f   :  { %2279 = vmatmul.mubr.bf16.vlgmr.msra.gmra.mrb[64].mxu0 %v2163_v60 }
 0x650   :  { %2388 = vmatpush1.bf16.msra.mxu0 %v4446_v47  ;;  %2419 = vmatprep.mubr.bf16.mxu0 %v4953_v38 }
 0x651   :  { %2389 = vmatprep.subr.bf16.mxu0 %v4450_v51  ;;  %v2289_v51 = vunpack.c.l.bf16 %v2287_v33 }
 0x654   :  { %2390 = vmatpush1.bf16.msra.mxu0 %v4991_v4 }
 0x655   :  { %2391 = vmatprep.subr.bf16.mxu0 %v4992_v46  ;;  %v2292_v46 = vld [vmem:[#allocation2 + $0x3c] sm:$0xff] }
 0x656   :  { %v2294_v10 = vunpack.c.l.bf16 %v2292_v46 }
 0x658   :  { %2392 = vmatpush1.bf16.msra.mxu0 %v4993_v13 }
 0x659   :  { %2393 = vmatprep.subr.bf16.mxu0 %v4994_v9 }
 0x65c   :  { %2394 = vmatpush1.bf16.msra.mxu0 %v4995_v12 }
 0x65d   :  { %2395 = vmatprep.subr.bf16.mxu0 %v5006_v24 }
 0x660   :  { %2396 = vmatpush1.bf16.msra.mxu0 %v5007_v25  ;;  %v2291_v25 = vunpack.c.h.bf16 %v2288_v17 }
 0x661   :  { %2397 = vmatprep.subr.bf16.mxu0 %v5008_v27 }
 0x664   :  { %2398 = vmatpush1.bf16.msra.mxu0 %v5009_v29 }
 0x665   :  { %2399 = vmatprep.subr.bf16.mxu0 %v5010_v3 }
 0x668   :  { %2400 = vmatpush1.bf16.msra.mxu0 %v5011_v37 }
 0x669   :  { %2401 = vmatprep.subr.bf16.mxu0 %v5012_v26 }
 0x66c   :  { %2402 = vmatpush1.bf16.msra.mxu0 %v5013_v28 }
 0x66d   :  { %2528 = vmatprep.subr.bf16.mxu0 %v3603_v30 }
 0x702   :  { %v2198_v36 = vpop.f32.mrb[60].mxu0  ;;  %v2239_v40 = vpop.f32.mrb[48].mxu1 }
 0x703   :  { %v2199_v47 = vadd.f32 %v2198_v36, %v5014_v44  ;;  %v2200_v54 = vpop.f32.mrb[61].mxu0  ;;  %v2241_v4 = vpop.f32.mrb[49].mxu1  ;;  %v2240_v60 = vadd.f32 %v2239_v40, %v4972_v63 }
 0x704   :  { %v2201_v13 = vadd.f32 %v2200_v54, %v4971_v16  ;;  %v2202_v9 = vpop.f32.mrb[62].mxu0  ;;  %v2242_v12 = vpop.f32.mrb[50].mxu1  ;;  %v2295_v4 = vunpack.c.h.bf16 %v2292_v46 }
 0x705   :  { %v2297_v42 = vadd.f32 %v2289_v51, %v2199_v47  ;;  %v2203_v2 = vpop.f32.mrb[63].mxu0  ;;  %v2243_v1 = vpop.f32.mrb[51].mxu1 }
 0x706   :  { %v2244_v61 = vadd.f32 %v2243_v1, %v4242_v45  ;;  %v2304_v50 = vadd.f32 %v2290_v59, %v2201_v13 }
 0x707   :  { %v3089_v6 = vmul.f32 -1.442695, %v2297_v42 }
 0x708   :  { %v2318_v32 = vadd.f32 %v2294_v10, %v2244_v61  ;;  %v3090_v48 = vmul.f32 -1.442695, %v2304_v50 }
 0x709   :  { %3488 = vpow2.f32 %v3089_v6 }
 0x70a   :  { %v3091_v41 = vmul.f32 -1.442695, %v2318_v32  ;;  %v2296_v32 = vunpack.c.l.bf16 %v2288_v17 }
 0x70c   :  { %3490 = vpow2.f32 %v3091_v41 }
 0x70d   :  { %3492 = vpow2.f32 %v3090_v48 }
 0x713   :  { %v3489_v15 = vpop.eup %3488 }
 0x714   :  { %v2301_v56 = vadd.f32 1.0, %v3489_v15 }
 0x716   :  { %v3491_v49 = vpop.eup %3490  ;;  %3494 = vrcp.f32 %v2301_v56 }
 0x717   :  { %v2322_v57 = vadd.f32 1.0, %v3491_v49  ;;  %v3493_v43 = vpop.eup %3492 }
 0x718   :  { %v2308_v34 = vadd.f32 1.0, %v3493_v43 }
 0x719   :  { %3496 = vrcp.f32 %v2322_v57 }
 0x71a   :  { %3498 = vrcp.f32 %v2308_v34 }
 0x720   :  { %v3495_v24 = vpop.eup %3494 }
 0x721   :  { %v2311_v30 = vmul.f32 %v3495_v24, %v2240_v60 }
 0x722   :  { %v2280_v33 = vpop.f32.mrb[64].mxu0 }
 0x723   :  { %v2312_v36 = vadd.f32 %v2311_v30, %v2291_v25  ;;  %v2281_v47 = vpop.f32.mrb[65].mxu0  ;;  %v3497_v12 = vpop.eup %3496  ;;  %v4771_v33 = vld [vmem:[#allocation9 + $0x10] ss:$24 sps:$4 sm:$0xff]  }
 0x724   :  { %v2282_v51 = vpop.f32.mrb[66].mxu0  ;;  %v3499_v40 = vpop.eup %3498  ;;  %v4789_v47 = vld [vmem:[#allocation9 + $0x70] ss:$24 sps:$4 sm:$0xff]  }
 0x725   :  { %3500 = vtanh.f32 %v2312_v36  ;;  %v2283_v54 = vadd.f32 %v2282_v51, %v4247_v0  ;;  %v2284_v13 = vpop.f32.mrb[67].mxu0  ;;  %v2314_v59 = vsub.f32 1.0, %v3499_v40  ;;  %v2316_v6 = vmul.f32 %v3499_v40, %v4678_v11  ;;  %v4775_v36 = vld [vmem:[#allocation9 + $0x44] ss:$24 sps:$4 sm:$0xff]   ;;  %v3616_v51 = vld [vmem:[#allocation9 + $0x154] ss:$24 sps:$4 sm:$0xff]  }
 0x726   :  { %v2285_v9 = vadd.f32 %v2284_v13, %v4256_v20  ;;  %v3619_v13 = vld [vmem:[#allocation9 + $0x14] ss:$24 sps:$4 sm:$0xff]  }
 0x727   :  { %v2325_v42 = vadd.f32 %v2295_v4, %v2283_v54  ;;  %v3617_v54 = vld [vmem:[#allocation9 + $0xc] ss:$24 sps:$4 sm:$0xff]   ;;  %v3618_v4 = vld [vmem:[#allocation9 + $0x150] ss:$24 sps:$4 sm:$0xff]   ;;  %v3625_v40 = vld [vmem:[#allocation9 + $0x9c] ss:$24 sps:$4 sm:$0xff]  }
 0x728   :  { %v2332_v2 = vmul.f32 %v3497_v12, %v2285_v9  ;;  %v3620_v9 = vld [vmem:[#allocation9 + $0x8] ss:$24 sps:$4 sm:$0xff]   ;;  %v3621_v12 = vld [vmem:[#allocation9 + $0x3c] ss:$24 sps:$4 sm:$0xff]  }
 0x729   :  { %v3092_v1 = vmul.f32 -1.442695, %v2325_v42  ;;  %v3622_v42 = vld [vmem:[#allocation9 + $0x38] ss:$24 sps:$4 sm:$0xff]  }
 0x72a   :  { %v2333_v15 = vadd.f32 %v2332_v2, %v2296_v32  ;;  %v3623_v2 = vld [vmem:[#allocation9 + $0x6c] ss:$24 sps:$4 sm:$0xff]  }
 0x72b   :  { %3502 = vpow2.f32 %v3092_v1  ;;  %v3624_v1 = vld [vmem:[#allocation9 + $0x68] ss:$24 sps:$4 sm:$0xff]  }
 0x72f   :  { %v3501_v61 = vpop.eup %3500 }
 0x730   :  { %v2315_v10 = vmul.f32 %v3501_v61, %v2314_v59  ;;  %v3626_v59 = vld [vmem:[#allocation9 + $0x98] ss:$24 sps:$4 sm:$0xff]   ;;  %v3627_v61 = vld [vmem:[#allocation9 + $0xcc] ss:$24 sps:$4 sm:$0xff]  }
 0x732   :  { %v2317_v50 = vadd.f32 %v2316_v6, %v2315_v10  ;;  %v3628_v10 = vld [vmem:[#allocation9 + $0xc8] ss:$24 sps:$4 sm:$0xff]   ;;  %v2469_v6 = vld [vmem:[#allocation2 + $0x90] sm:$0xff] }
 0x734   :  { %v4762_v24 = vsel %vm1780_vm14, %v2317_v50, %v4678_v11  ;;  %v4781_v11 = vld [vmem:[#allocation9 + $0x40] ss:$24 sps:$4 sm:$0xff]  }
 0x735   :  { %v3503_v41 = vpop.eup %3502 }
 0x736   :  { %v2329_v48 = vadd.f32 1.0, %v3503_v41 }
 0x738   :  { %3504 = vrcp.f32 %v2329_v48  ;;  %v2471_v48 = vunpack.c.l.bf16 %v2469_v6 }
 0x739   :  { %3506 = vtanh.f32 %v2333_v15 }
 0x742   :  { %v3505_v46 = vpop.eup %3504 }
 0x743   :  { %v2335_v56 = vsub.f32 1.0, %v3505_v46  ;;  %v3507_v49 = vpop.eup %3506  ;;  %v2337_v43 = vmul.f32 %v3505_v46, %v4683_v58 }
 0x745   :  { %v2336_v57 = vmul.f32 %v3507_v49, %v2335_v56  ;;  %v2474_v56 = vld [vmem:[#allocation2 + $0x24] sm:$0xff] }
 0x747   :  { %v2338_v34 = vadd.f32 %v2337_v43, %v2336_v57  ;;  %v2472_v43 = vunpack.c.h.bf16 %v2469_v6 }
 0x749   :  { %v4767_v17 = vsel %vm1772_vm13, %v2338_v34, %v4683_v58  ;;  %v4784_v58 = vld [vmem:[#allocation9 + $0x74] ss:$24 sps:$4 sm:$0xff]  }
 0x74a   :  { %v2345_v30 = vpack.c.bf16 %v4767_v17, %v4762_v24 }
 0x74c   :  { %2379 = vmatmul.mubr.bf16.vlgmr.msra.gmra.mrb[52].mxu1 %v2345_v30  ;;  %2420 = vmatmul.mubr.bf16.vlgmr.msra.gmra.mrb[68].mxu0 %v2345_v30 }
 0x74d   :  { %2429 = vmatpush1.bf16.msra.mxu1 %v4771_v33  ;;  %2460 = vmatprep.mubr.bf16.mxu1 %v4953_v38 }
 0x74e   :  { %2430 = vmatprep.subr.bf16.mxu1 %v4775_v36  ;;  %2529 = vmatpush1.bf16.msra.mxu0 %v4690_v18  ;;  %v4792_v18 = vld [vmem:[#allocation9 + $0xa4] ss:$24 sps:$4 sm:$0xff]  }
 0x74f   :  { %2530 = vmatprep.subr.bf16.mxu0 %v4693_v8  ;;  %2560 = vmatprep.mubr.bf16.mxu0 %v4953_v38  ;;  %v3610_v8 = vld [vmem:[#allocation9 + $0xc4] ss:$24 sps:$4 sm:$0xff]  }
 0x751   :  { %2431 = vmatpush1.bf16.msra.mxu1 %v4781_v11 }
 0x752   :  { %2432 = vmatprep.subr.bf16.mxu1 %v4784_v58  ;;  %2531 = vmatpush1.bf16.msra.mxu0 %v4699_v5  ;;  %v3611_v5 = vld [vmem:[#allocation9 + $0xc0] ss:$24 sps:$4 sm:$0xff]  }
 0x753   :  { %2532 = vmatprep.subr.bf16.mxu0 %v4702_v19  ;;  %v3612_v19 = vld [vmem:[#allocation9 + $0xf4] ss:$24 sps:$4 sm:$0xff]  }
 0x755   :  { %2433 = vmatpush1.bf16.msra.mxu1 %v4789_v47 }
 0x756   :  { %2434 = vmatprep.subr.bf16.mxu1 %v4792_v18  ;;  %2533 = vmatpush1.bf16.msra.mxu0 %v4707_v31  ;;  %v3613_v31 = vld [vmem:[#allocation9 + $0xf0] ss:$24 sps:$4 sm:$0xff]  }
 0x757   :  { %2534 = vmatprep.subr.bf16.mxu0 %v4710_v39  ;;  %v3614_v39 = vld [vmem:[#allocation9 + $0x124] ss:$24 sps:$4 sm:$0xff]  }
 0x759   :  { %2435 = vmatpush1.bf16.msra.mxu1 %v4523_v14 }
 0x75a   :  { %2436 = vmatprep.subr.bf16.mxu1 %v4526_v7  ;;  %2535 = vmatpush1.bf16.msra.mxu0 %v4715_v23  ;;  %v3615_v23 = vld [vmem:[#allocation9 + $0x120] ss:$24 sps:$4 sm:$0xff]  }
 0x75b   :  { %2536 = vmatprep.subr.bf16.mxu0 %v3610_v8 }
 0x75d   :  { %2437 = vmatpush1.bf16.msra.mxu1 %v4531_v62 }
 0x75e   :  { %2438 = vmatprep.subr.bf16.mxu1 %v4534_v21  ;;  %2537 = vmatpush1.bf16.msra.mxu0 %v3611_v5 }
 0x75f   :  { %2538 = vmatprep.subr.bf16.mxu0 %v3612_v19 }
 0x761   :  { %2439 = vmatpush1.bf16.msra.mxu1 %v4539_v53 }
 0x762   :  { %2440 = vmatprep.subr.bf16.mxu1 %v4542_v55  ;;  %2539 = vmatpush1.bf16.msra.mxu0 %v3613_v31 }
 0x763   :  { %2540 = vmatprep.subr.bf16.mxu0 %v3614_v39 }
 0x765   :  { %2441 = vmatpush1.bf16.msra.mxu1 %v4547_v22 }
 0x766   :  { %2442 = vmatprep.subr.bf16.mxu1 %v4550_v35  ;;  %2541 = vmatpush1.bf16.msra.mxu0 %v3615_v23 }
 0x767   :  { %2542 = vmatprep.subr.bf16.mxu0 %v3616_v51 }
 0x769   :  { %2443 = vmatpush1.bf16.msra.mxu1 %v4555_v52 }
 0x76a   :  { %2569 = vmatprep.subr.bf16.mxu1 %v3617_v54  ;;  %2543 = vmatpush1.bf16.msra.mxu0 %v3618_v4  ;;  %v2470_v54 = vld [vmem:[#allocation2 + $0x2c] ss:$108 sps:$4 sm:$0xff]  }
 0x76b   :  { %2610 = vmatprep.subr.bf16.mxu0 %v3619_v13 }
 0x76c   :  { %2461 = vmatmul.mubr.bf16.vlgmr.msra.gmra.mrb[56].mxu1 %v2345_v30 }
 0x76d   :  { %2570 = vmatpush1.bf16.msra.mxu1 %v3620_v9  ;;  %2601 = vmatprep.mubr.bf16.mxu1 %v4953_v38  ;;  %v2473_v9 = vunpack.c.h.bf16 %v2470_v54 }
 0x76e   :  { %2571 = vmatprep.subr.bf16.mxu1 %v3621_v12 }
 0x771   :  { %2572 = vmatpush1.bf16.msra.mxu1 %v3622_v42 }
 0x772   :  { %2573 = vmatprep.subr.bf16.mxu1 %v3623_v2 }
 0x775   :  { %2574 = vmatpush1.bf16.msra.mxu1 %v3624_v1 }
 0x776   :  { %2575 = vmatprep.subr.bf16.mxu1 %v3625_v40 }
 0x779   :  { %2576 = vmatpush1.bf16.msra.mxu1 %v3626_v59 }
 0x77a   :  { %2577 = vmatprep.subr.bf16.mxu1 %v3627_v61  ;;  %v2477_v61 = vunpack.c.h.bf16 %v2474_v56 }
 0x77d   :  { %2578 = vmatpush1.bf16.msra.mxu1 %v3628_v10 }
 0x77e   :  { %2579 = vmatprep.subr.bf16.mxu1 %v5008_v27 }
 0x781   :  { %2580 = vmatpush1.bf16.msra.mxu1 %v5009_v29 }
 0x782   :  { %2581 = vmatprep.subr.bf16.mxu1 %v5010_v3 }
 0x785   :  { %2582 = vmatpush1.bf16.msra.mxu1 %v5011_v37 }
 0x786   :  { %2583 = vmatprep.subr.bf16.mxu1 %v5012_v26 }
 0x789   :  { %2584 = vmatpush1.bf16.msra.mxu1 %v5013_v28  ;;  %v2476_v28 = vunpack.c.l.bf16 %v2474_v56 }
 0x81f   :  { %v2380_v50 = vpop.f32.mrb[52].mxu1  ;;  %v2421_v32 = vpop.f32.mrb[68].mxu0 }
 0x820   :  { %v2381_v41 = vadd.f32 %v2380_v50, %v5014_v44  ;;  %v2382_v15 = vpop.f32.mrb[53].mxu1  ;;  %v2423_v46 = vpop.f32.mrb[69].mxu0  ;;  %v2422_v4 = vadd.f32 %v2421_v32, %v4972_v63 }
 0x821   :  { %v2383_v27 = vadd.f32 %v2382_v15, %v4971_v16  ;;  %v2384_v29 = vpop.f32.mrb[54].mxu1  ;;  %v2424_v49 = vpop.f32.mrb[70].mxu0 }
 0x822   :  { %v2479_v3 = vadd.f32 %v2471_v48, %v2381_v41  ;;  %v2385_v57 = vpop.f32.mrb[55].mxu1  ;;  %v2425_v37 = vpop.f32.mrb[71].mxu0 }
 0x823   :  { %v2426_v26 = vadd.f32 %v2425_v37, %v4242_v45  ;;  %v2486_v60 = vadd.f32 %v2472_v43, %v2383_v27  ;;  %v2478_v57 = vunpack.c.l.bf16 %v2470_v54 }
 0x824   :  { %v3093_v34 = vmul.f32 -1.442695, %v2479_v3 }
 0x825   :  { %v2500_v25 = vadd.f32 %v2476_v28, %v2426_v26  ;;  %v3094_v8 = vmul.f32 -1.442695, %v2486_v60 }
 0x826   :  { %3508 = vpow2.f32 %v3093_v34 }
 0x827   :  { %v3095_v30 = vmul.f32 -1.442695, %v2500_v25 }
 0x829   :  { %3510 = vpow2.f32 %v3095_v30 }
 0x82a   :  { %3512 = vpow2.f32 %v3094_v8 }
 0x830   :  { %v3509_v5 = vpop.eup %3508 }
 0x831   :  { %v2483_v19 = vadd.f32 1.0, %v3509_v5 }
 0x833   :  { %v3511_v31 = vpop.eup %3510  ;;  %3514 = vrcp.f32 %v2483_v19 }
 0x834   :  { %v2504_v39 = vadd.f32 1.0, %v3511_v31  ;;  %v3513_v23 = vpop.eup %3512 }
 0x835   :  { %v2490_v51 = vadd.f32 1.0, %v3513_v23 }
 0x836   :  { %3516 = vrcp.f32 %v2504_v39 }
 0x837   :  { %3518 = vrcp.f32 %v2490_v51 }
 0x83d   :  { %v3515_v13 = vpop.eup %3514 }
 0x83e   :  { %v2493_v12 = vmul.f32 %v3515_v13, %v2422_v4 }
 0x83f   :  { %v2462_v42 = vpop.f32.mrb[56].mxu1 }
 0x840   :  { %v2494_v2 = vadd.f32 %v2493_v12, %v2473_v9  ;;  %v2463_v1 = vpop.f32.mrb[57].mxu1  ;;  %v3517_v50 = vpop.eup %3516  ;;  %v2656_v12 = vld [vmem:[#allocation2 + $0xc] sm:$0xff] }
 0x841   :  { %v2464_v40 = vpop.f32.mrb[58].mxu1  ;;  %v3519_v32 = vpop.eup %3518 }
 0x842   :  { %3520 = vtanh.f32 %v2494_v2  ;;  %v2465_v59 = vadd.f32 %v2464_v40, %v4247_v0  ;;  %v2466_v10 = vpop.f32.mrb[59].mxu1  ;;  %v2496_v46 = vsub.f32 1.0, %v3519_v32  ;;  %v2498_v49 = vmul.f32 %v3519_v32, %v4762_v24 }
 0x843   :  { %v2467_v6 = vadd.f32 %v2466_v10, %v4256_v20 }
 0x844   :  { %v2507_v41 = vadd.f32 %v2477_v61, %v2465_v59 }
 0x845   :  { %v2514_v48 = vmul.f32 %v3517_v50, %v2467_v6  ;;  %v2658_v50 = vunpack.c.l.bf16 %v2656_v12 }
 0x846   :  { %v3096_v15 = vmul.f32 -1.442695, %v2507_v41 }
 0x847   :  { %v2515_v26 = vadd.f32 %v2514_v48, %v2478_v57  ;;  %v2652_v57 = vld [vmem:[#allocation2 + $0x14] ss:$156 sps:$4 sm:$0xff]  }
 0x848   :  { %3522 = vpow2.f32 %v3096_v15 }
 0x84c   :  { %v3521_v27 = vpop.eup %3520 }
 0x84d   :  { %v2497_v29 = vmul.f32 %v3521_v27, %v2496_v46 }
 0x84f   :  { %v2499_v3 = vadd.f32 %v2498_v49, %v2497_v29 }
 0x851   :  { %v4825_v5 = vsel %vm1584_vm12, %v2499_v3, %v4762_v24  ;;  %v3757_v24 = vmov 0.0  }
 0x852   :  { %v3523_v37 = vpop.eup %3522  ;;  %3169 = vmatprep.subr.bf16.mxu1 %v3757_v24 }
 0x853   :  { %v2511_v43 = vadd.f32 1.0, %v3523_v37 }
 0x855   :  { %3524 = vrcp.f32 %v2511_v43  ;;  %v2655_v43 = vunpack.c.h.bf16 %v2652_v57 }
 0x856   :  { %3526 = vtanh.f32 %v2515_v26 }
 0x85f   :  { %v3525_v56 = vpop.eup %3524 }
 0x860   :  { %v2517_v28 = vsub.f32 1.0, %v3525_v56  ;;  %v3527_v34 = vpop.eup %3526  ;;  %v2519_v25 = vmul.f32 %v3525_v56, %v4767_v17 }
 0x862   :  { %v2518_v60 = vmul.f32 %v3527_v34, %v2517_v28 }
 0x864   :  { %v2520_v30 = vadd.f32 %v2519_v25, %v2518_v60 }
 0x866   :  { %v4830_v31 = vsel %vm1576_vm11, %v2520_v30, %v4767_v17  ;;  %v3382_v17 = vld [vmem:[#allocation10 + $0x10] sm:$0xff]   ;;  %v2659_v30 = vunpack.c.h.bf16 %v2656_v12 }
 0x867   :  { %v2527_v39 = vpack.c.bf16 %v4830_v31, %v4825_v5 }
 0x869   :  { %2561 = vmatmul.mubr.bf16.vlgmr.msra.gmra.mrb[72].mxu0 %v2527_v39  ;;  %2602 = vmatmul.mubr.bf16.vlgmr.msra.gmra.mrb[60].mxu1 %v2527_v39 }
 0x86a   :  { %2611 = vmatpush1.bf16.msra.mxu0 %v4771_v33  ;;  %2642 = vmatprep.mubr.bf16.mxu0 %v4953_v38  ;;  %v3372_v38 = vld [vmem:[#allocation10 + $0x40] sm:$0xff]   ;;  %v3383_v33 = vld [vmem:[#allocation10 + $0x18] sm:$0xff]  }
 0x86b   :  { %2612 = vmatprep.subr.bf16.mxu0 %v4775_v36  ;;  %3170 = vmatpush3.bf16.msra.mxu1 %v3372_v38  ;;  %v3384_v36 = vld [vmem:[#allocation10 + $0x20] sm:$0xff]  }
 0x86c   :  { %3171 = vmatprep.subr.bf16.mxu1 %v3757_v24  ;;  %3185 = vmatprep.mubr.msk.bf16.mxu1 %vm3758_vm1, %v3757_v24 }
 0x86e   :  { %2613 = vmatpush1.bf16.msra.mxu0 %v4781_v11  ;;  %v3385_v11 = vld [vmem:[#allocation10 + $0x28] sm:$0xff]  }
 0x86f   :  { %2614 = vmatprep.subr.bf16.mxu0 %v4784_v58  ;;  %v3386_v58 = vld [vmem:[#allocation10 + $0x30] sm:$0xff]  }
 0x872   :  { %2615 = vmatpush1.bf16.msra.mxu0 %v4789_v47  ;;  %v3387_v47 = vld [vmem:[#allocation10 + $0x38] sm:$0xff]  }
 0x873   :  { %2616 = vmatprep.subr.bf16.mxu0 %v4792_v18  ;;  %v2651_v18 = vld [vmem:[#allocation2 + $0xa8] sm:$0xff] }
 0x874   :  { %v2653_v4 = vunpack.c.l.bf16 %v2651_v18  ;;  %v2654_v10 = vunpack.c.h.bf16 %v2651_v18 }
 0x876   :  { %2617 = vmatpush1.bf16.msra.mxu0 %v4523_v14  ;;  %v3373_v14 = vld [vmem:[#allocation10 + $0x48] sm:$0xff]  }
 0x877   :  { %2618 = vmatprep.subr.bf16.mxu0 %v4526_v7  ;;  %3172 = vmatpush3.bf16.msra.mxu1 %v3373_v14  ;;  %v3374_v7 = vld [vmem:[#allocation10 + $0x50] sm:$0xff]  }
 0x878   :  { %3173 = vmatprep.subr.bf16.mxu1 %v3757_v24 }
 0x87a   :  { %2619 = vmatpush1.bf16.msra.mxu0 %v4531_v62  ;;  %v3375_v62 = vld [vmem:[#allocation10 + $0x58] sm:$0xff]  }
 0x87b   :  { %2620 = vmatprep.subr.bf16.mxu0 %v4534_v21  ;;  %3174 = vmatpush3.bf16.msra.mxu1 %v3374_v7  ;;  %v3376_v21 = vld [vmem:[#allocation10 + $0x60] sm:$0xff]  }
 0x87c   :  { %3175 = vmatprep.subr.bf16.mxu1 %v3757_v24 }
 0x87e   :  { %2621 = vmatpush1.bf16.msra.mxu0 %v4539_v53  ;;  %v3377_v53 = vld [vmem:[#allocation10 + $0x68] sm:$0xff]  }
 0x87f   :  { %2622 = vmatprep.subr.bf16.mxu0 %v4542_v55  ;;  %3176 = vmatpush3.bf16.msra.mxu1 %v3375_v62  ;;  %v3378_v55 = vld [vmem:[#allocation10] sm:$0xff]  }
 0x880   :  { %3177 = vmatprep.subr.bf16.mxu1 %v3757_v24 }
 0x882   :  { %2623 = vmatpush1.bf16.msra.mxu0 %v4547_v22  ;;  %v3379_v22 = vld [vmem:[#allocation10 + $0x70] sm:$0xff]  }
 0x883   :  { %2624 = vmatprep.subr.bf16.mxu0 %v4550_v35  ;;  %3178 = vmatpush3.bf16.msra.mxu1 %v3376_v21  ;;  %v3380_v35 = vld [vmem:[#allocation10 + $0x8] sm:$0xff]  }
 0x884   :  { %3179 = vmatprep.subr.bf16.mxu1 %v3757_v24 }
 0x886   :  { %2625 = vmatpush1.bf16.msra.mxu0 %v4555_v52  ;;  %v3381_v52 = vld [vmem:[#allocation10 + $0x78] sm:$0xff]  }
 0x887   :  { %3189 = vmatprep.subr.bf16.mxu0 %v3757_v24  ;;  %3180 = vmatpush3.bf16.msra.mxu1 %v3377_v53 }
 0x888   :  { %3181 = vmatprep.subr.bf16.mxu1 %v3757_v24 }
 0x889   :  { %2643 = vmatmul.mubr.bf16.vlgmr.msra.gmra.mrb[76].mxu0 %v2527_v39 }
 0x88a   :  { %3190 = vmatpush3.bf16.msra.mxu0 %v3378_v55  ;;  %3205 = vmatprep.mubr.msk.bf16.mxu0 %vm3758_vm1, %v3757_v24 }
 0x88b   :  { %3191 = vmatprep.subr.bf16.mxu0 %v3757_v24  ;;  %3182 = vmatpush3.bf16.msra.mxu1 %v3379_v22  ;;  %v2660_v22 = vunpack.c.l.bf16 %v2652_v57 }
 0x88c   :  { %3183 = vmatprep.subr.bf16.mxu1 %v3757_v24 }
 0x88e   :  { %3192 = vmatpush3.bf16.msra.mxu0 %v3380_v35 }
 0x88f   :  { %3193 = vmatprep.subr.bf16.mxu0 %v3757_v24  ;;  %3184 = vmatpush3.bf16.msra.mxu1 %v3381_v52 }
 0x892   :  { %3194 = vmatpush3.bf16.msra.mxu0 %v3382_v17 }
 0x893   :  { %3195 = vmatprep.subr.bf16.mxu0 %v3757_v24 }
 0x896   :  { %3196 = vmatpush3.bf16.msra.mxu0 %v3383_v33 }
 0x897   :  { %3197 = vmatprep.subr.bf16.mxu0 %v3757_v24 }
 0x89a   :  { %3198 = vmatpush3.bf16.msra.mxu0 %v3384_v36 }
 0x89b   :  { %3199 = vmatprep.subr.bf16.mxu0 %v3757_v24 }
 0x89e   :  { %3200 = vmatpush3.bf16.msra.mxu0 %v3385_v11 }
 0x89f   :  { %3201 = vmatprep.subr.bf16.mxu0 %v3757_v24 }
 0x8a2   :  { %3202 = vmatpush3.bf16.msra.mxu0 %v3386_v58 }
 0x8a3   :  { %3203 = vmatprep.subr.bf16.mxu0 %v3757_v24 }
 0x8a6   :  { %3204 = vmatpush3.bf16.msra.mxu0 %v3387_v47 }
 0x93c   :  { %v2562_v23 = vpop.f32.mrb[72].mxu0  ;;  %v2603_v51 = vpop.f32.mrb[60].mxu1 }
 0x93d   :  { %v2563_v54 = vadd.f32 %v2562_v23, %v5014_v44  ;;  %v2564_v13 = vpop.f32.mrb[73].mxu0  ;;  %v2605_v9 = vpop.f32.mrb[61].mxu1 }
 0x93e   :  { %v2565_v42 = vadd.f32 %v2564_v13, %v4971_v16  ;;  %v2566_v2 = vpop.f32.mrb[74].mxu0  ;;  %v2606_v1 = vpop.f32.mrb[62].mxu1 }
 0x93f   :  { %v2661_v40 = vadd.f32 %v2653_v4, %v2563_v54  ;;  %v2567_v59 = vpop.f32.mrb[75].mxu0  ;;  %v2607_v61 = vpop.f32.mrb[63].mxu1  ;;  %v3117_v2 = vld [vmem:[%s4886_s7] ss:$0 sm:$0xff] }
 0x940   :  { %v2608_v6 = vadd.f32 %v2607_v61, %v4242_v45  ;;  %v2668_v48 = vadd.f32 %v2654_v10, %v2565_v42  ;;  %v2604_v45 = vadd.f32 %v2603_v51, %v4972_v63 }
 0x941   :  { %v3097_v41 = vmul.f32 -1.442695, %v2661_v40 }
 0x942   :  { %v2682_v15 = vadd.f32 %v2658_v50, %v2608_v6  ;;  %v3098_v32 = vmul.f32 -1.442695, %v2668_v48 }
 0x943   :  { %3528 = vpow2.f32 %v3097_v41 }
 0x944   :  { %v3099_v44 = vmul.f32 -1.442695, %v2682_v15 }
 0x946   :  { %3530 = vpow2.f32 %v3099_v44 }
 0x947   :  { %3532 = vpow2.f32 %v3098_v32 }
 0x94d   :  { %v3529_v46 = vpop.eup %3528 }
 0x94e   :  { %v2665_v27 = vadd.f32 1.0, %v3529_v46 }
 0x950   :  { %v3531_v16 = vpop.eup %3530  ;;  %3534 = vrcp.f32 %v2665_v27 }
 0x951   :  { %v2686_v29 = vadd.f32 1.0, %v3531_v16  ;;  %v3533_v49 = vpop.eup %3532 }
 0x952   :  { %v2672_v3 = vadd.f32 1.0, %v3533_v49 }
 0x953   :  { %3536 = vrcp.f32 %v2686_v29 }
 0x954   :  { %3538 = vrcp.f32 %v2672_v3 }
 0x95a   :  { %v3535_v37 = vpop.eup %3534 }
 0x95b   :  { %v2675_v26 = vmul.f32 %v3535_v37, %v2604_v45 }
 0x95c   :  { %v2644_v56 = vpop.f32.mrb[76].mxu0 }
 0x95d   :  { %v2676_v28 = vadd.f32 %v2675_v26, %v2655_v43  ;;  %v2645_v34 = vpop.f32.mrb[77].mxu0  ;;  %v3537_v39 = vpop.eup %3536 }
 0x95e   :  { %v2646_v60 = vpop.f32.mrb[78].mxu0  ;;  %v3539_v63 = vpop.eup %3538 }
 0x95f   :  { %3540 = vtanh.f32 %v2676_v28  ;;  %v2647_v25 = vadd.f32 %v2646_v60, %v4247_v0  ;;  %v2648_v8 = vpop.f32.mrb[79].mxu0  ;;  %v2678_v7 = vsub.f32 1.0, %v3539_v63  ;;  %v2680_v53 = vmul.f32 %v3539_v63, %v4825_v5 }
 0x960   :  { %v2649_v19 = vadd.f32 %v2648_v8, %v4256_v20 }
 0x961   :  { %v2689_v38 = vadd.f32 %v2659_v30, %v2647_v25 }
 0x962   :  { %v2696_v24 = vmul.f32 %v3537_v39, %v2649_v19 }
 0x963   :  { %v3100_v14 = vmul.f32 -1.442695, %v2689_v38 }
 0x964   :  { %v2697_v33 = vadd.f32 %v2696_v24, %v2660_v22 }
 0x965   :  { %3542 = vpow2.f32 %v3100_v14 }
 0x969   :  { %v3541_v62 = vpop.eup %3540 }
 0x96a   :  { %v2679_v21 = vmul.f32 %v3541_v62, %v2678_v7 }
 0x96c   :  { %v2681_v55 = vadd.f32 %v2680_v53, %v2679_v21 }
 0x96e   :  { %v2703_v0 = vsel %vm1388_vm8, %v2681_v55, %v4825_v5 }
 0x96f   :  { %v3543_v52 = vpop.eup %3542  ;;  %v2742_v17 = vpack.c.bf16 %v2703_v0, %v2703_v0 }
 0x970   :  { %v2693_v20 = vadd.f32 1.0, %v3543_v52 }
 0x971   :  { %3186 = vmatmul.mubr.bf16.vlgmr.msra.gmra.mrb[64].mxu1 %v2742_v17 }
 0x972   :  { %3544 = vrcp.f32 %v2693_v20 }
 0x973   :  { %3546 = vtanh.f32 %v2697_v33 }
 0x97c   :  { %v3545_v36 = vpop.eup %3544 }
 0x97d   :  { %v2699_v11 = vsub.f32 1.0, %v3545_v36  ;;  %v3547_v58 = vpop.eup %3546  ;;  %v2701_v18 = vmul.f32 %v3545_v36, %v4830_v31 }
 0x97f   :  { %v2700_v47 = vmul.f32 %v3547_v58, %v2699_v11 }
 0x981   :  { %v2702_v23 = vadd.f32 %v2701_v18, %v2700_v47 }
 0x983   :  { %v2705_v54 = vsel %vm1380_vm9, %v2702_v23, %v4830_v31 }
 0x984   :  { %v2741_v4 = vpack.c.bf16 %v2705_v54, %v2705_v54 }
 0x986   :  { %3206 = vmatmul.mubr.bf16.vlgmr.msra.gmra.mrb[80].mxu0 %v2741_v4 }
 0xa44   :  { %v2825_v5 = vpop.f32.mrb[64].mxu1 }
 0xa45   :  { %v3187_v13 = vpop.f32.mrb[65].mxu1 }
 0xa46   :  { %v2828_v9 = vpop.f32.mrb[66].mxu1 }
 0xa47   :  { %v3188_v12 = vpop.f32.mrb[67].mxu1 }
 0xa59   :  { %v2913_v42 = vpop.f32.mrb[80].mxu0 }
 0xa5a   :  { %v2914_v1 = vadd.f32 %v2913_v42, %v2825_v5  ;;  %v3207_v40 = vpop.f32.mrb[81].mxu0 }
 0xa5b   :  { %v2916_v59 = vpop.f32.mrb[82].mxu0 }
 0xa5c   :  { %v2926_v61 = vadd.f32 %v3117_v2, %v2914_v1  ;;  %v3208_v10 = vpop.f32.mrb[83].mxu0 }
 0xa5e   :  { %2927 = vst [vmem:[#allocation12] sm:$0xff] %v2926_v61 }
 0xa5f   :  { %3728 = shalt.err (!%p3725_p8)
}
 0xa60   :  { %s3729_s7 = scalar_lea.hbm %s4887_s8, 128 }
 0xa61   :  { %p3730_p9 = scmp.ne.s32.totalorder %s4887_s8, %s3729_s7  ;;  %p3733_p10 = scmp.lt.u32.totalorder %s3729_s7, %s4887_s8 }
 0xa63   :  { %p3735_p11 = pnand %p3733_p10, %p3730_p9 }
 0xa65   :  { %3738 = shalt.err (!%p3735_p11)
}
 0xa66   :  { %2937 = dma.vmem_to_hbm [thread:$0]  %s2935_s14, 128, %s4887_s8, [#allocation6]  }
 0xa67   :  { %3745 = dma.done.wait [#allocation6], 128  }
 0xa68   :  { %3746 = vsyncadd [#allocation6], 4294967168 }
 0xa69   :  { %2941 = vsyncpa [#allocation5], 1 }
 0xa6a   :  { %2942 = vsyncpa [#allocation8], 1 }
 0xa6b   :  { %2943 = vsyncpa [#allocation11], 1 }
 0xa6c   :  { %2944 = vsyncpa [#allocation6], 1 }

</bundles_post_ra>
